<compile_context>
chip_gen: v6e
topology: v6e:2x2x1
jax: 0.10.0
libtpu: 0.0.40
codegen_flags: <defaults>
</compile_context>

<pallas_src>
import functools

import jax
import jax.numpy as jnp
from jax import lax
from jax.experimental import pallas as pl
from jax.experimental.pallas import tpu as pltpu

VOCAB_SIZE = 32  # stand-in for get_vocab_size() (SMILES vocabularies are small)


def _round_up(x, m):
    return ((x + m - 1) // m) * m


def _leaky_relu(x, negative_slope=0.01):
    return jnp.where(x >= 0, x, negative_slope * x)


def compound_encoder_kernel(
    tok_ref,      # (T*B, 1) int32   time-major flattened token ids (index = t*B + b)
    lens_ref,     # (B, 1)   int32   gather index per batch element
    table0_ref,   # (Vp, 4H) bf16    emb @ W_ih[0]^T + b_ih[0] + b_hh[0], gates [i,f,o,g]
    whh0_ref,     # (H, 4H)  bf16    W_hh[0]^T, gates [i,f,o,g]
    bcat_ref,     # (L-1, 1, 4H) f32 b_ih[l] + b_hh[l] for l >= 1, gates [i,f,o,g]
    b1_ref,       # (1, H)   f32
    b2_ref,       # (1, OP)  f32
    wcat_hbm,     # (L-1, 2H, 4H) bf16  HBM: [W_ih[l]^T ; W_hh[l]^T] for l >= 1
    w1_hbm,       # (H, H)   bf16    HBM: final_mlp[0].weight^T
    w2_hbm,       # (H, OP)  bf16    HBM: final_mlp[2].weight^T (lane-padded)
    out_ref,      # (B, OP)  f32
    x0g_scr,      # (T*B, 4H) f32 scratch: precomputed layer-0 input gate contributions
    wcat_buf,     # (L-1, 2H, 4H) bf16 VMEM scratch
    w1_buf,       # (H, H)   bf16 VMEM scratch
    w2_buf,       # (H, OP)  bf16 VMEM scratch
    dma_sems,     # DMA semaphores (3,)
    *,
    seq_len,
    batch,
    num_layers,
    hidden_size,
):
    T, B, H, L = seq_len, batch, hidden_size, num_layers
    Vp = table0_ref.shape[0]

    # ---- Kick off weight DMAs immediately so they overlap the precompute / recurrence.
    wcat_cp = pltpu.make_async_copy(wcat_hbm, wcat_buf, dma_sems.at[0])
    w1_cp = pltpu.make_async_copy(w1_hbm, w1_buf, dma_sems.at[1])
    w2_cp = pltpu.make_async_copy(w2_hbm, w2_buf, dma_sems.at[2])
    wcat_cp.start()
    w1_cp.start()
    w2_cp.start()

    # ---- Pre-loop: fused embedding lookup + layer-0 input projection (+ bias) for all T*B
    #      positions in one bf16 MXU pass: onehot(tok) @ (emb @ Wih0^T + b0).
    tok = tok_ref[...]                                                      # (T*B, 1) int32
    onehot = (tok == lax.broadcasted_iota(jnp.int32, (T * B, Vp), 1)).astype(jnp.bfloat16)
    x0g_scr[...] = jnp.dot(onehot, table0_ref[...], preferred_element_type=jnp.float32)

    # ---- Hoisted small loads / broadcasts (JAX does not CSE broadcast_in_dim).
    lens_v = lens_ref[...]                                                  # (B, 1) int32
    biases = [jnp.broadcast_to(bcat_ref[l], (B, 4 * H)) for l in range(L - 1)]

    def lstm_cell(gates, c_prev):
        # Gate columns are pre-permuted to [i, f, o, g]:
        # one sigmoid over contiguous (B, 3H), one tanh over (B, H).
        sig = jax.nn.sigmoid(gates[:, : 3 * H])
        g_g = jnp.tanh(gates[:, 3 * H:])
        i_g = sig[:, 0 * H:1 * H]
        f_g = sig[:, 1 * H:2 * H]
        o_g = sig[:, 2 * H:3 * H]
        c_new = f_g * c_prev + i_g * g_g
        h_new = o_g * jnp.tanh(c_new)
        return h_new, c_new

    # ---- LSTM state lives in vregs across the statically unrolled time loop.
    zero = jnp.zeros((B, H), jnp.float32)
    h = [zero] * L
    c = [zero] * L
    pick = zero

    for t in range(T):  # static unroll: full cross-step scheduling visibility (T=8)
        # Layer 0: input projection is precomputed; only the recurrent matmul remains.
        gates = x0g_scr[t * B:(t + 1) * B, :] + jnp.dot(
            h[0].astype(jnp.bfloat16), whh0_ref[...],
            preferred_element_type=jnp.float32)
        h[0], c[0] = lstm_cell(gates, c[0])
        inp = h[0]

        if t == 0:
            # Layer >=1 weights are first needed here; everything above overlapped the DMA.
            wcat_cp.wait()

        for l in range(1, L):
            # Fused [x ; h] @ [Wih^T ; Whh^T]: a single K=2H MXU pass per layer-step.
            xh = jnp.concatenate([inp, h[l]], axis=-1).astype(jnp.bfloat16)  # (B, 2H)
            gates = jnp.dot(xh, wcat_buf[l - 1],
                            preferred_element_type=jnp.float32) + biases[l - 1]
            h[l], c[l] = lstm_cell(gates, c[l])
            inp = h[l]

        # outputs[lens, arange(B)]: select (not accumulate) the step lens[b] output.
        pick = jnp.where(lens_v == t, inp, pick)

    # ---- final_mlp: Linear -> LeakyReLU -> Linear (lane-dense padded output).
    w1_cp.wait()
    w2_cp.wait()
    hid = jnp.dot(pick.astype(jnp.bfloat16), w1_buf[...],
                  preferred_element_type=jnp.float32) + b1_ref[...]
    hid = _leaky_relu(hid)
    out_ref[...] = jnp.dot(hid.astype(jnp.bfloat16), w2_buf[...],
                           preferred_element_type=jnp.float32) + b2_ref[...]


def _full_spec(shape):
    nd = len(shape)
    return pl.BlockSpec(shape, lambda i, _nd=nd: (0,) * _nd)


def _reorder_gates(x, axis=-1):
    """PyTorch gate layout [i, f, g, o] -> kernel layout [i, f, o, g] along the 4H axis."""
    i_g, f_g, g_g, o_g = jnp.split(x, 4, axis=axis)
    return jnp.concatenate([i_g, f_g, o_g, g_g], axis=axis)


def prepare_params(params, *, num_layers, hidden_size, out_dim):
    """One-time parameter transform (kept off the per-call forward path). Requires num_layers >= 2."""
    H = hidden_size
    G = 4 * H
    emb = params["emb"].astype(jnp.float32)
    V = emb.shape[0]
    Vp = _round_up(max(V, 128), 128)           # lane/K-aligned vocab pad for the one-hot matmul
    OP = _round_up(max(out_dim, 128), 128)     # lane-dense output pad

    # Fold embedding + layer-0 input projection + layer-0 bias into one (Vp, 4H) bf16 table.
    table0 = emb @ params["w_ih"][0].T + params["b_ih"][0] + params["b_hh"][0]
    table0 = _reorder_gates(table0, axis=-1)
    table0_p = jnp.zeros((Vp, G), jnp.float32).at[:V].set(table0)

    wcat = jnp.stack([
        _reorder_gates(
            jnp.concatenate([params["w_ih"][l].T, params["w_hh"][l].T], axis=0), axis=-1)
        for l in range(1, num_layers)
    ]).astype(jnp.bfloat16)                                             # (L-1, 2H, 4H)
    bcat = _reorder_gates(params["b_ih"][1:] + params["b_hh"][1:], axis=-1)
    bcat = bcat[:, None, :].astype(jnp.float32)                         # (L-1, 1, 4H)

    w2p = jnp.zeros((H, OP), jnp.float32).at[:, :out_dim].set(params["w2"].T)
    b2p = jnp.zeros((1, OP), jnp.float32).at[:, :out_dim].set(params["b2"])

    return {
        "table0": table0_p.astype(jnp.bfloat16),                        # (Vp, 4H)
        "whh0": _reorder_gates(params["w_hh"][0].T, axis=-1).astype(jnp.bfloat16),  # (H, 4H)
        "wcat": wcat,
        "bcat": bcat,
        "w1": params["w1"].T.astype(jnp.bfloat16),                      # (H, H)
        "b1": params["b1"][None, :].astype(jnp.float32),                # (1, H)
        "w2": w2p.astype(jnp.bfloat16),                                 # (H, OP)
        "b2": b2p,                                                      # (1, OP)
    }


@functools.partial(jax.jit, static_argnames=("num_layers", "hidden_size", "out_dim"))
def compound_encoder_forward(tokens, lens, prep, *, num_layers, hidden_size, out_dim):
    """tokens: (B, T) int32 token ids; lens: (B,) int32 gather indices (in [0, T))."""
    B0, T = tokens.shape
    H = hidden_size
    L = num_layers
    OP = prep["w2"].shape[1]
    B = _round_up(B0, 8)                       # pad batch to the f32 sublane tile

    tok_p = jnp.zeros((B, T), jnp.int32).at[:B0].set(tokens.astype(jnp.int32))
    lens_p = jnp.zeros((B, 1), jnp.int32).at[:B0, 0].set(lens.astype(jnp.int32))
    tok_tm = tok_p.T.reshape(T * B, 1)         # time-major flatten: index = t*B + b

    # Auto-pipelined (small) operands first, then the manually-DMA'd weights (pl.ANY).
    auto_ops = (tok_tm, lens_p, prep["table0"], prep["whh0"], prep["bcat"],
                prep["b1"], prep["b2"])
    hbm_ops = (prep["wcat"], prep["w1"], prep["w2"])

    kernel = functools.partial(
        compound_encoder_kernel,
        seq_len=T, batch=B, num_layers=L, hidden_size=H,
    )

    out = pl.pallas_call(
        kernel,
        out_shape=jax.ShapeDtypeStruct((B, OP), jnp.float32),
        grid=(1,),
        in_specs=[_full_spec(op.shape) for op in auto_ops]
                 + [pl.BlockSpec(memory_space=pl.ANY) for _ in hbm_ops],
        out_specs=_full_spec((B, OP)),
        scratch_shapes=[
            pltpu.VMEM((T * B, 4 * H), jnp.float32),        # x0g
            pltpu.VMEM((L - 1, 2 * H, 4 * H), jnp.bfloat16),  # wcat buffer
            pltpu.VMEM((H, H), jnp.bfloat16),               # w1 buffer
            pltpu.VMEM((H, OP), jnp.bfloat16),              # w2 buffer
            pltpu.SemaphoreType.DMA((3,)),
        ],
        compiler_params=pltpu.CompilerParams(dimension_semantics=("arbitrary",)),
    )(*auto_ops, *hbm_ops)
    return out[:B0, :out_dim]


def reference_forward(tokens, lens, params, num_layers, hidden_size, out_dim):
    """Pure-JAX f32 reference of the PyTorch forward pass."""
    x = params["emb"][tokens.T]  # (T, B, H)
    T, B, H = x.shape
    h = jnp.zeros((num_layers, B, H), jnp.float32)
    c = jnp.zeros((num_layers, B, H), jnp.float32)
    outs = []
    for t in range(T):
        inp = x[t]
        new_h, new_c = [], []
        for l in range(num_layers):
            gates = (
                inp @ params["w_ih"][l].T + params["b_ih"][l]
                + h[l] @ params["w_hh"][l].T + params["b_hh"][l]
            )
            i_g, f_g, g_g, o_g = jnp.split(gates, 4, axis=-1)
            i_g = jax.nn.sigmoid(i_g)
            f_g = jax.nn.sigmoid(f_g)
            g_g = jnp.tanh(g_g)
            o_g = jax.nn.sigmoid(o_g)
            cc = f_g * c[l] + i_g * g_g
            hh = o_g * jnp.tanh(cc)
            new_h.append(hh)
            new_c.append(cc)
            inp = hh
        h = jnp.stack(new_h)
        c = jnp.stack(new_c)
        outs.append(inp)
    outputs = jnp.stack(outs)                       # (T, B, H)
    picked = outputs[lens, jnp.arange(B)]           # (B, H)
    hid = picked @ params["w1"].T + params["b1"]
    hid = jnp.where(hid >= 0, hid, 0.01 * hid)
    return hid @ params["w2"].T + params["b2"]


if __name__ == "__main__":
    B, T = 4, 8
    hidden_size, out_dim, num_layers = 128, 32, 3
    V = VOCAB_SIZE

    key = jax.random.PRNGKey(0)
    keys = jax.random.split(key, 12)
    s = float(1.0 / jnp.sqrt(hidden_size))

    def u(k, shape):
        return jax.random.uniform(k, shape, jnp.float32, -s, s)

    params = {
        "emb": jax.random.normal(keys[0], (V, hidden_size), jnp.float32) * 0.1,
        "w_ih": u(keys[1], (num_layers, 4 * hidden_size, hidden_size)),
        "w_hh": u(keys[2], (num_layers, 4 * hidden_size, hidden_size)),
        "b_ih": u(keys[3], (num_layers, 4 * hidden_size)),
        "b_hh": u(keys[4], (num_layers, 4 * hidden_size)),
        "w1": u(keys[5], (hidden_size, hidden_size)),
        "b1": u(keys[6], (hidden_size,)),
        "w2": u(keys[7], (out_dim, hidden_size)),
        "b2": u(keys[8], (out_dim,)),
    }

    tokens = jax.random.randint(keys[9], (B, T), 0, V, dtype=jnp.int32)
    lens = jax.random.randint(keys[10], (B,), 0, T, dtype=jnp.int32)

    prep = prepare_params(
        params, num_layers=num_layers, hidden_size=hidden_size, out_dim=out_dim
    )

    out = compound_encoder_forward(
        tokens, lens, prep,
        num_layers=num_layers, hidden_size=hidden_size, out_dim=out_dim,
    )
    out = jax.block_until_ready(out)

    ref = reference_forward(tokens, lens, params, num_layers, hidden_size, out_dim)
    assert out.shape == (B, out_dim)
    assert jnp.allclose(out, ref, atol=3e-2, rtol=3e-2), (out, ref)
    print("KERNEL_OK")
</pallas_src>

<mosaic_0001>
module attributes {stable_mosaic.version = 11 : i64} {
  func.func @compound_encoder_kernel(%arg0: i32, %arg1: memref<64x1xi32, #tpu.memory_space<vmem>>, %arg2: memref<8x1xi32, #tpu.memory_space<vmem>>, %arg3: memref<128x512xbf16, #tpu.memory_space<vmem>>, %arg4: memref<128x512xbf16, #tpu.memory_space<vmem>>, %arg5: memref<2x1x512xf32, #tpu.memory_space<vmem>>, %arg6: memref<1x128xf32, #tpu.memory_space<vmem>>, %arg7: memref<1x128xf32, #tpu.memory_space<vmem>>, %arg8: memref<2x256x512xbf16, #tpu.memory_space<any>>, %arg9: memref<128x128xbf16, #tpu.memory_space<any>>, %arg10: memref<128x128xbf16, #tpu.memory_space<any>>, %arg11: memref<8x128xf32, #tpu.memory_space<vmem>>, %arg12: memref<64x512xf32, #tpu.memory_space<vmem>>, %arg13: memref<2x256x512xbf16, #tpu.memory_space<vmem>>, %arg14: memref<128x128xbf16, #tpu.memory_space<vmem>>, %arg15: memref<128x128xbf16, #tpu.memory_space<vmem>>, %arg16: memref<3x!tpu.dma_semaphore, #tpu.memory_space<semaphore_mem>>) attributes {dimension_semantics = [#tpu.dimension_semantics<arbitrary>], iteration_bounds = array<i64: 1>, scalar_prefetch = 0 : i64, scratch_operands = 5 : i64, tpu.core_type = #tpu.core_type<tc>, window_params = [{pipeline_mode = #tpu.pipeline_mode<synchronous>, transform_indices = @transform_0, window_bounds = array<i64: 64, 1>}, {pipeline_mode = #tpu.pipeline_mode<synchronous>, transform_indices = @transform_1, window_bounds = array<i64: 8, 1>}, {pipeline_mode = #tpu.pipeline_mode<synchronous>, transform_indices = @transform_2, window_bounds = array<i64: 128, 512>}, {pipeline_mode = #tpu.pipeline_mode<synchronous>, transform_indices = @transform_3, window_bounds = array<i64: 128, 512>}, {pipeline_mode = #tpu.pipeline_mode<synchronous>, transform_indices = @transform_4, window_bounds = array<i64: 2, 1, 512>}, {pipeline_mode = #tpu.pipeline_mode<synchronous>, transform_indices = @transform_5, window_bounds = array<i64: 1, 128>}, {pipeline_mode = #tpu.pipeline_mode<synchronous>, transform_indices = @transform_6, window_bounds = array<i64: 1, 128>}, {}, {}, {}, {pipeline_mode = #tpu.pipeline_mode<synchronous>, transform_indices = @transform_10, window_bounds = array<i64: 8, 128>}]} {
    %c0_i32 = arith.constant 0 : i32
    %0 = tpu.memref_slice %arg16[%c0_i32] : memref<3x!tpu.dma_semaphore, #tpu.memory_space<semaphore_mem>> -> memref<1x!tpu.dma_semaphore, #tpu.memory_space<semaphore_mem>>
    %1 = tpu.memref_squeeze %0 : memref<1x!tpu.dma_semaphore, #tpu.memory_space<semaphore_mem>> -> memref<!tpu.dma_semaphore, #tpu.memory_space<semaphore_mem>>
    tpu.enqueue_dma source(%arg8 : memref<2x256x512xbf16, #tpu.memory_space<any>>) target(%arg13 : memref<2x256x512xbf16, #tpu.memory_space<vmem>>) target_semaphore(%1 : memref<!tpu.dma_semaphore, #tpu.memory_space<semaphore_mem>>)
    %c1_i32 = arith.constant 1 : i32
    %2 = tpu.memref_slice %arg16[%c1_i32] : memref<3x!tpu.dma_semaphore, #tpu.memory_space<semaphore_mem>> -> memref<1x!tpu.dma_semaphore, #tpu.memory_space<semaphore_mem>>
    %3 = tpu.memref_squeeze %2 : memref<1x!tpu.dma_semaphore, #tpu.memory_space<semaphore_mem>> -> memref<!tpu.dma_semaphore, #tpu.memory_space<semaphore_mem>>
    tpu.enqueue_dma source(%arg9 : memref<128x128xbf16, #tpu.memory_space<any>>) target(%arg14 : memref<128x128xbf16, #tpu.memory_space<vmem>>) target_semaphore(%3 : memref<!tpu.dma_semaphore, #tpu.memory_space<semaphore_mem>>)
    %c2_i32 = arith.constant 2 : i32
    %4 = tpu.memref_slice %arg16[%c2_i32] : memref<3x!tpu.dma_semaphore, #tpu.memory_space<semaphore_mem>> -> memref<1x!tpu.dma_semaphore, #tpu.memory_space<semaphore_mem>>
    %5 = tpu.memref_squeeze %4 : memref<1x!tpu.dma_semaphore, #tpu.memory_space<semaphore_mem>> -> memref<!tpu.dma_semaphore, #tpu.memory_space<semaphore_mem>>
    tpu.enqueue_dma source(%arg10 : memref<128x128xbf16, #tpu.memory_space<any>>) target(%arg15 : memref<128x128xbf16, #tpu.memory_space<vmem>>) target_semaphore(%5 : memref<!tpu.dma_semaphore, #tpu.memory_space<semaphore_mem>>)
    %c0 = arith.constant 0 : index
    %c0_0 = arith.constant 0 : index
    %6 = vector.load %arg1[%c0, %c0_0] : memref<64x1xi32, #tpu.memory_space<vmem>>, vector<64x1xi32>
    %7 = tpu.iota {dimensions = array<i32: 1>} : vector<64x128xi32>
    %8 = vector.broadcast %6 : vector<64x1xi32> to vector<64x128xi32>
    %9 = arith.cmpi eq, %8, %7 : vector<64x128xi32>
    %10 = arith.extui %9 : vector<64x128xi1> to vector<64x128xi32>
    %11 = arith.sitofp %10 : vector<64x128xi32> to vector<64x128xf32>
    %12 = arith.truncf %11 : vector<64x128xf32> to vector<64x128xbf16>
    %c0_1 = arith.constant 0 : index
    %c0_2 = arith.constant 0 : index
    %13 = vector.load %arg3[%c0_1, %c0_2] : memref<128x512xbf16, #tpu.memory_space<vmem>>, vector<128x512xbf16>
    %cst = arith.constant dense<0.000000e+00> : vector<64x512xf32>
    %14 = tpu.matmul %12, %13, %cst {dimension_numbers = #tpu.dot_dimension_numbers<[1], [0], [0], [1], [0, 0, 1, 1], [], []>} : vector<64x128xbf16>, vector<128x512xbf16>, vector<64x512xf32> -> vector<64x512xf32>
    %c0_3 = arith.constant 0 : index
    %c0_4 = arith.constant 0 : index
    %15 = vector.load %arg12[%c0_3, %c0_4] : memref<64x512xf32, #tpu.memory_space<vmem>>, vector<64x512xf32>
    tpu.vector_store %arg12[%c0_3, %c0_4], %14 {strides = array<i32>} : memref<64x512xf32, #tpu.memory_space<vmem>>, vector<64x512xf32>,
    %c0_5 = arith.constant 0 : index
    %c0_6 = arith.constant 0 : index
    %16 = vector.load %arg2[%c0_5, %c0_6] : memref<8x1xi32, #tpu.memory_space<vmem>>, vector<8x1xi32>
    %c0_7 = arith.constant 0 : index
    %c0_8 = arith.constant 0 : index
    %c0_9 = arith.constant 0 : index
    %17 = vector.load %arg5[%c0_7, %c0_8, %c0_9] : memref<2x1x512xf32, #tpu.memory_space<vmem>>, vector<1x1x512xf32>
    %18 = vector.shape_cast %17 : vector<1x1x512xf32> to vector<1x512xf32>
    %19 = vector.shape_cast %18 : vector<1x512xf32> to vector<1x512xf32>
    %20 = vector.broadcast %19 : vector<1x512xf32> to vector<8x512xf32>
    %c1 = arith.constant 1 : index
    %c0_10 = arith.constant 0 : index
    %c0_11 = arith.constant 0 : index
    %21 = vector.load %arg5[%c1, %c0_10, %c0_11] : memref<2x1x512xf32, #tpu.memory_space<vmem>>, vector<1x1x512xf32>
    %22 = vector.shape_cast %21 : vector<1x1x512xf32> to vector<1x512xf32>
    %23 = vector.shape_cast %22 : vector<1x512xf32> to vector<1x512xf32>
    %24 = vector.broadcast %23 : vector<1x512xf32> to vector<8x512xf32>
    %cst_12 = arith.constant 0.000000e+00 : f32
    %25 = vector.broadcast %cst_12 : f32 to vector<8x128xf32>
    %c0_13 = arith.constant 0 : index
    %c0_14 = arith.constant 0 : index
    %26 = vector.load %arg12[%c0_13, %c0_14] : memref<64x512xf32, #tpu.memory_space<vmem>>, vector<8x512xf32>
    %27 = arith.truncf %25 : vector<8x128xf32> to vector<8x128xbf16>
    %c0_15 = arith.constant 0 : index
    %c0_16 = arith.constant 0 : index
    %28 = vector.load %arg4[%c0_15, %c0_16] : memref<128x512xbf16, #tpu.memory_space<vmem>>, vector<128x512xbf16>
    %cst_17 = arith.constant dense<0.000000e+00> : vector<8x512xf32>
    %29 = tpu.matmul %27, %28, %cst_17 {dimension_numbers = #tpu.dot_dimension_numbers<[1], [0], [0], [1], [0, 0, 1, 1], [], []>} : vector<8x128xbf16>, vector<128x512xbf16>, vector<8x512xf32> -> vector<8x512xf32>
    %30 = arith.addf %26, %29 : vector<8x512xf32>
    %31 = vector.extract_strided_slice %30 {offsets = [0, 0], sizes = [8, 384], strides = [1, 1]} : vector<8x512xf32> to vector<8x384xf32>
    %32 = arith.negf %31 : vector<8x384xf32>
    %33 = math.exp %32 : vector<8x384xf32>
    %cst_18 = arith.constant 1.000000e+00 : f32
    %34 = vector.broadcast %cst_18 : f32 to vector<8x384xf32>
    %35 = arith.addf %34, %33 : vector<8x384xf32>
    %36 = arith.divf %34, %35 : vector<8x384xf32>
    %37 = vector.extract_strided_slice %30 {offsets = [0, 384], sizes = [8, 128], strides = [1, 1]} : vector<8x512xf32> to vector<8x128xf32>
    %38 = math.tanh %37 : vector<8x128xf32>
    %39 = vector.extract_strided_slice %36 {offsets = [0, 0], sizes = [8, 128], strides = [1, 1]} : vector<8x384xf32> to vector<8x128xf32>
    %40 = vector.extract_strided_slice %36 {offsets = [0, 128], sizes = [8, 128], strides = [1, 1]} : vector<8x384xf32> to vector<8x128xf32>
    %41 = vector.extract_strided_slice %36 {offsets = [0, 256], sizes = [8, 128], strides = [1, 1]} : vector<8x384xf32> to vector<8x128xf32>
    %42 = arith.mulf %40, %25 : vector<8x128xf32>
    %43 = arith.mulf %39, %38 : vector<8x128xf32>
    %44 = arith.addf %42, %43 : vector<8x128xf32>
    %45 = math.tanh %44 : vector<8x128xf32>
    %46 = arith.mulf %41, %45 : vector<8x128xf32>
    %c0_i32_19 = arith.constant 0 : i32
    %47 = tpu.memref_slice %arg16[%c0_i32_19] : memref<3x!tpu.dma_semaphore, #tpu.memory_space<semaphore_mem>> -> memref<1x!tpu.dma_semaphore, #tpu.memory_space<semaphore_mem>>
    %48 = tpu.memref_squeeze %47 : memref<1x!tpu.dma_semaphore, #tpu.memory_space<semaphore_mem>> -> memref<!tpu.dma_semaphore, #tpu.memory_space<semaphore_mem>>
    tpu.wait_dma2 semaphore(%48 : memref<!tpu.dma_semaphore, #tpu.memory_space<semaphore_mem>>) src(%arg8 : memref<2x256x512xbf16, #tpu.memory_space<any>>) dst(%arg13 : memref<2x256x512xbf16, #tpu.memory_space<vmem>>)
    %49 = tpu.concatenate %46, %25 in 1 : vector<8x128xf32>, vector<8x128xf32> -> vector<8x256xf32>
    %50 = arith.truncf %49 : vector<8x256xf32> to vector<8x256xbf16>
    %c0_20 = arith.constant 0 : index
    %c0_21 = arith.constant 0 : index
    %c0_22 = arith.constant 0 : index
    %51 = vector.load %arg13[%c0_20, %c0_21, %c0_22] : memref<2x256x512xbf16, #tpu.memory_space<vmem>>, vector<1x256x512xbf16>
    %52 = vector.shape_cast %51 : vector<1x256x512xbf16> to vector<256x512xbf16>
    %cst_23 = arith.constant dense<0.000000e+00> : vector<8x512xf32>
    %53 = tpu.matmul %50, %52, %cst_23 {dimension_numbers = #tpu.dot_dimension_numbers<[1], [0], [0], [1], [0, 0, 1, 1], [], []>} : vector<8x256xbf16>, vector<256x512xbf16>, vector<8x512xf32> -> vector<8x512xf32>
    %54 = arith.addf %53, %20 : vector<8x512xf32>
    %55 = vector.extract_strided_slice %54 {offsets = [0, 0], sizes = [8, 384], strides = [1, 1]} : vector<8x512xf32> to vector<8x384xf32>
    %56 = arith.negf %55 : vector<8x384xf32>
    %57 = math.exp %56 : vector<8x384xf32>
    %cst_24 = arith.constant 1.000000e+00 : f32
    %58 = vector.broadcast %cst_24 : f32 to vector<8x384xf32>
    %59 = arith.addf %58, %57 : vector<8x384xf32>
    %60 = arith.divf %58, %59 : vector<8x384xf32>
    %61 = vector.extract_strided_slice %54 {offsets = [0, 384], sizes = [8, 128], strides = [1, 1]} : vector<8x512xf32> to vector<8x128xf32>
    %62 = math.tanh %61 : vector<8x128xf32>
    %63 = vector.extract_strided_slice %60 {offsets = [0, 0], sizes = [8, 128], strides = [1, 1]} : vector<8x384xf32> to vector<8x128xf32>
    %64 = vector.extract_strided_slice %60 {offsets = [0, 128], sizes = [8, 128], strides = [1, 1]} : vector<8x384xf32> to vector<8x128xf32>
    %65 = vector.extract_strided_slice %60 {offsets = [0, 256], sizes = [8, 128], strides = [1, 1]} : vector<8x384xf32> to vector<8x128xf32>
    %66 = arith.mulf %64, %25 : vector<8x128xf32>
    %67 = arith.mulf %63, %62 : vector<8x128xf32>
    %68 = arith.addf %66, %67 : vector<8x128xf32>
    %69 = math.tanh %68 : vector<8x128xf32>
    %70 = arith.mulf %65, %69 : vector<8x128xf32>
    %71 = tpu.concatenate %70, %25 in 1 : vector<8x128xf32>, vector<8x128xf32> -> vector<8x256xf32>
    %72 = arith.truncf %71 : vector<8x256xf32> to vector<8x256xbf16>
    %c1_25 = arith.constant 1 : index
    %c0_26 = arith.constant 0 : index
    %c0_27 = arith.constant 0 : index
    %73 = vector.load %arg13[%c1_25, %c0_26, %c0_27] : memref<2x256x512xbf16, #tpu.memory_space<vmem>>, vector<1x256x512xbf16>
    %74 = vector.shape_cast %73 : vector<1x256x512xbf16> to vector<256x512xbf16>
    %cst_28 = arith.constant dense<0.000000e+00> : vector<8x512xf32>
    %75 = tpu.matmul %72, %74, %cst_28 {dimension_numbers = #tpu.dot_dimension_numbers<[1], [0], [0], [1], [0, 0, 1, 1], [], []>} : vector<8x256xbf16>, vector<256x512xbf16>, vector<8x512xf32> -> vector<8x512xf32>
    %76 = arith.addf %75, %24 : vector<8x512xf32>
    %77 = vector.extract_strided_slice %76 {offsets = [0, 0], sizes = [8, 384], strides = [1, 1]} : vector<8x512xf32> to vector<8x384xf32>
    %78 = arith.negf %77 : vector<8x384xf32>
    %79 = math.exp %78 : vector<8x384xf32>
    %cst_29 = arith.constant 1.000000e+00 : f32
    %80 = vector.broadcast %cst_29 : f32 to vector<8x384xf32>
    %81 = arith.addf %80, %79 : vector<8x384xf32>
    %82 = arith.divf %80, %81 : vector<8x384xf32>
    %83 = vector.extract_strided_slice %76 {offsets = [0, 384], sizes = [8, 128], strides = [1, 1]} : vector<8x512xf32> to vector<8x128xf32>
    %84 = math.tanh %83 : vector<8x128xf32>
    %85 = vector.extract_strided_slice %82 {offsets = [0, 0], sizes = [8, 128], strides = [1, 1]} : vector<8x384xf32> to vector<8x128xf32>
    %86 = vector.extract_strided_slice %82 {offsets = [0, 128], sizes = [8, 128], strides = [1, 1]} : vector<8x384xf32> to vector<8x128xf32>
    %87 = vector.extract_strided_slice %82 {offsets = [0, 256], sizes = [8, 128], strides = [1, 1]} : vector<8x384xf32> to vector<8x128xf32>
    %88 = arith.mulf %86, %25 : vector<8x128xf32>
    %89 = arith.mulf %85, %84 : vector<8x128xf32>
    %90 = arith.addf %88, %89 : vector<8x128xf32>
    %91 = math.tanh %90 : vector<8x128xf32>
    %92 = arith.mulf %87, %91 : vector<8x128xf32>
    %c0_i32_30 = arith.constant 0 : i32
    %93 = vector.broadcast %c0_i32_30 : i32 to vector<8x1xi32>
    %94 = arith.cmpi eq, %16, %93 : vector<8x1xi32>
    %95 = vector.shape_cast %94 : vector<8x1xi1> to vector<8x1xi1>
    %96 = vector.broadcast %95 : vector<8x1xi1> to vector<8x128xi1>
    %97 = arith.select %96, %92, %25 : vector<8x128xi1>, vector<8x128xf32>
    %c8 = arith.constant 8 : index
    %c0_31 = arith.constant 0 : index
    %98 = vector.load %arg12[%c8, %c0_31] : memref<64x512xf32, #tpu.memory_space<vmem>>, vector<8x512xf32>
    %99 = arith.truncf %46 : vector<8x128xf32> to vector<8x128xbf16>
    %c0_32 = arith.constant 0 : index
    %c0_33 = arith.constant 0 : index
    %100 = vector.load %arg4[%c0_32, %c0_33] : memref<128x512xbf16, #tpu.memory_space<vmem>>, vector<128x512xbf16>
    %cst_34 = arith.constant dense<0.000000e+00> : vector<8x512xf32>
    %101 = tpu.matmul %99, %100, %cst_34 {dimension_numbers = #tpu.dot_dimension_numbers<[1], [0], [0], [1], [0, 0, 1, 1], [], []>} : vector<8x128xbf16>, vector<128x512xbf16>, vector<8x512xf32> -> vector<8x512xf32>
    %102 = arith.addf %98, %101 : vector<8x512xf32>
    %103 = vector.extract_strided_slice %102 {offsets = [0, 0], sizes = [8, 384], strides = [1, 1]} : vector<8x512xf32> to vector<8x384xf32>
    %104 = arith.negf %103 : vector<8x384xf32>
    %105 = math.exp %104 : vector<8x384xf32>
    %cst_35 = arith.constant 1.000000e+00 : f32
    %106 = vector.broadcast %cst_35 : f32 to vector<8x384xf32>
    %107 = arith.addf %106, %105 : vector<8x384xf32>
    %108 = arith.divf %106, %107 : vector<8x384xf32>
    %109 = vector.extract_strided_slice %102 {offsets = [0, 384], sizes = [8, 128], strides = [1, 1]} : vector<8x512xf32> to vector<8x128xf32>
    %110 = math.tanh %109 : vector<8x128xf32>
    %111 = vector.extract_strided_slice %108 {offsets = [0, 0], sizes = [8, 128], strides = [1, 1]} : vector<8x384xf32> to vector<8x128xf32>
    %112 = vector.extract_strided_slice %108 {offsets = [0, 128], sizes = [8, 128], strides = [1, 1]} : vector<8x384xf32> to vector<8x128xf32>
    %113 = vector.extract_strided_slice %108 {offsets = [0, 256], sizes = [8, 128], strides = [1, 1]} : vector<8x384xf32> to vector<8x128xf32>
    %114 = arith.mulf %112, %44 : vector<8x128xf32>
    %115 = arith.mulf %111, %110 : vector<8x128xf32>
    %116 = arith.addf %114, %115 : vector<8x128xf32>
    %117 = math.tanh %116 : vector<8x128xf32>
    %118 = arith.mulf %113, %117 : vector<8x128xf32>
    %119 = tpu.concatenate %118, %70 in 1 : vector<8x128xf32>, vector<8x128xf32> -> vector<8x256xf32>
    %120 = arith.truncf %119 : vector<8x256xf32> to vector<8x256xbf16>
    %c0_36 = arith.constant 0 : index
    %c0_37 = arith.constant 0 : index
    %c0_38 = arith.constant 0 : index
    %121 = vector.load %arg13[%c0_36, %c0_37, %c0_38] : memref<2x256x512xbf16, #tpu.memory_space<vmem>>, vector<1x256x512xbf16>
    %122 = vector.shape_cast %121 : vector<1x256x512xbf16> to vector<256x512xbf16>
    %cst_39 = arith.constant dense<0.000000e+00> : vector<8x512xf32>
    %123 = tpu.matmul %120, %122, %cst_39 {dimension_numbers = #tpu.dot_dimension_numbers<[1], [0], [0], [1], [0, 0, 1, 1], [], []>} : vector<8x256xbf16>, vector<256x512xbf16>, vector<8x512xf32> -> vector<8x512xf32>
    %124 = arith.addf %123, %20 : vector<8x512xf32>
    %125 = vector.extract_strided_slice %124 {offsets = [0, 0], sizes = [8, 384], strides = [1, 1]} : vector<8x512xf32> to vector<8x384xf32>
    %126 = arith.negf %125 : vector<8x384xf32>
    %127 = math.exp %126 : vector<8x384xf32>
    %cst_40 = arith.constant 1.000000e+00 : f32
    %128 = vector.broadcast %cst_40 : f32 to vector<8x384xf32>
    %129 = arith.addf %128, %127 : vector<8x384xf32>
    %130 = arith.divf %128, %129 : vector<8x384xf32>
    %131 = vector.extract_strided_slice %124 {offsets = [0, 384], sizes = [8, 128], strides = [1, 1]} : vector<8x512xf32> to vector<8x128xf32>
    %132 = math.tanh %131 : vector<8x128xf32>
    %133 = vector.extract_strided_slice %130 {offsets = [0, 0], sizes = [8, 128], strides = [1, 1]} : vector<8x384xf32> to vector<8x128xf32>
    %134 = vector.extract_strided_slice %130 {offsets = [0, 128], sizes = [8, 128], strides = [1, 1]} : vector<8x384xf32> to vector<8x128xf32>
    %135 = vector.extract_strided_slice %130 {offsets = [0, 256], sizes = [8, 128], strides = [1, 1]} : vector<8x384xf32> to vector<8x128xf32>
    %136 = arith.mulf %134, %68 : vector<8x128xf32>
    %137 = arith.mulf %133, %132 : vector<8x128xf32>
    %138 = arith.addf %136, %137 : vector<8x128xf32>
    %139 = math.tanh %138 : vector<8x128xf32>
    %140 = arith.mulf %135, %139 : vector<8x128xf32>
    %141 = tpu.concatenate %140, %92 in 1 : vector<8x128xf32>, vector<8x128xf32> -> vector<8x256xf32>
    %142 = arith.truncf %141 : vector<8x256xf32> to vector<8x256xbf16>
    %c1_41 = arith.constant 1 : index
    %c0_42 = arith.constant 0 : index
    %c0_43 = arith.constant 0 : index
    %143 = vector.load %arg13[%c1_41, %c0_42, %c0_43] : memref<2x256x512xbf16, #tpu.memory_space<vmem>>, vector<1x256x512xbf16>
    %144 = vector.shape_cast %143 : vector<1x256x512xbf16> to vector<256x512xbf16>
    %cst_44 = arith.constant dense<0.000000e+00> : vector<8x512xf32>
    %145 = tpu.matmul %142, %144, %cst_44 {dimension_numbers = #tpu.dot_dimension_numbers<[1], [0], [0], [1], [0, 0, 1, 1], [], []>} : vector<8x256xbf16>, vector<256x512xbf16>, vector<8x512xf32> -> vector<8x512xf32>
    %146 = arith.addf %145, %24 : vector<8x512xf32>
    %147 = vector.extract_strided_slice %146 {offsets = [0, 0], sizes = [8, 384], strides = [1, 1]} : vector<8x512xf32> to vector<8x384xf32>
    %148 = arith.negf %147 : vector<8x384xf32>
    %149 = math.exp %148 : vector<8x384xf32>
    %cst_45 = arith.constant 1.000000e+00 : f32
    %150 = vector.broadcast %cst_45 : f32 to vector<8x384xf32>
    %151 = arith.addf %150, %149 : vector<8x384xf32>
    %152 = arith.divf %150, %151 : vector<8x384xf32>
    %153 = vector.extract_strided_slice %146 {offsets = [0, 384], sizes = [8, 128], strides = [1, 1]} : vector<8x512xf32> to vector<8x128xf32>
    %154 = math.tanh %153 : vector<8x128xf32>
    %155 = vector.extract_strided_slice %152 {offsets = [0, 0], sizes = [8, 128], strides = [1, 1]} : vector<8x384xf32> to vector<8x128xf32>
    %156 = vector.extract_strided_slice %152 {offsets = [0, 128], sizes = [8, 128], strides = [1, 1]} : vector<8x384xf32> to vector<8x128xf32>
    %157 = vector.extract_strided_slice %152 {offsets = [0, 256], sizes = [8, 128], strides = [1, 1]} : vector<8x384xf32> to vector<8x128xf32>
    %158 = arith.mulf %156, %90 : vector<8x128xf32>
    %159 = arith.mulf %155, %154 : vector<8x128xf32>
    %160 = arith.addf %158, %159 : vector<8x128xf32>
    %161 = math.tanh %160 : vector<8x128xf32>
    %162 = arith.mulf %157, %161 : vector<8x128xf32>
    %c1_i32_46 = arith.constant 1 : i32
    %163 = vector.broadcast %c1_i32_46 : i32 to vector<8x1xi32>
    %164 = arith.cmpi eq, %16, %163 : vector<8x1xi32>
    %165 = vector.shape_cast %164 : vector<8x1xi1> to vector<8x1xi1>
    %166 = vector.broadcast %165 : vector<8x1xi1> to vector<8x128xi1>
    %167 = arith.select %166, %162, %97 : vector<8x128xi1>, vector<8x128xf32>
    %c16 = arith.constant 16 : index
    %c0_47 = arith.constant 0 : index
    %168 = vector.load %arg12[%c16, %c0_47] : memref<64x512xf32, #tpu.memory_space<vmem>>, vector<8x512xf32>
    %169 = arith.truncf %118 : vector<8x128xf32> to vector<8x128xbf16>
    %c0_48 = arith.constant 0 : index
    %c0_49 = arith.constant 0 : index
    %170 = vector.load %arg4[%c0_48, %c0_49] : memref<128x512xbf16, #tpu.memory_space<vmem>>, vector<128x512xbf16>
    %cst_50 = arith.constant dense<0.000000e+00> : vector<8x512xf32>
    %171 = tpu.matmul %169, %170, %cst_50 {dimension_numbers = #tpu.dot_dimension_numbers<[1], [0], [0], [1], [0, 0, 1, 1], [], []>} : vector<8x128xbf16>, vector<128x512xbf16>, vector<8x512xf32> -> vector<8x512xf32>
    %172 = arith.addf %168, %171 : vector<8x512xf32>
    %173 = vector.extract_strided_slice %172 {offsets = [0, 0], sizes = [8, 384], strides = [1, 1]} : vector<8x512xf32> to vector<8x384xf32>
    %174 = arith.negf %173 : vector<8x384xf32>
    %175 = math.exp %174 : vector<8x384xf32>
    %cst_51 = arith.constant 1.000000e+00 : f32
    %176 = vector.broadcast %cst_51 : f32 to vector<8x384xf32>
    %177 = arith.addf %176, %175 : vector<8x384xf32>
    %178 = arith.divf %176, %177 : vector<8x384xf32>
    %179 = vector.extract_strided_slice %172 {offsets = [0, 384], sizes = [8, 128], strides = [1, 1]} : vector<8x512xf32> to vector<8x128xf32>
    %180 = math.tanh %179 : vector<8x128xf32>
    %181 = vector.extract_strided_slice %178 {offsets = [0, 0], sizes = [8, 128], strides = [1, 1]} : vector<8x384xf32> to vector<8x128xf32>
    %182 = vector.extract_strided_slice %178 {offsets = [0, 128], sizes = [8, 128], strides = [1, 1]} : vector<8x384xf32> to vector<8x128xf32>
    %183 = vector.extract_strided_slice %178 {offsets = [0, 256], sizes = [8, 128], strides = [1, 1]} : vector<8x384xf32> to vector<8x128xf32>
    %184 = arith.mulf %182, %116 : vector<8x128xf32>
    %185 = arith.mulf %181, %180 : vector<8x128xf32>
    %186 = arith.addf %184, %185 : vector<8x128xf32>
    %187 = math.tanh %186 : vector<8x128xf32>
    %188 = arith.mulf %183, %187 : vector<8x128xf32>
    %189 = tpu.concatenate %188, %140 in 1 : vector<8x128xf32>, vector<8x128xf32> -> vector<8x256xf32>
    %190 = arith.truncf %189 : vector<8x256xf32> to vector<8x256xbf16>
    %c0_52 = arith.constant 0 : index
    %c0_53 = arith.constant 0 : index
    %c0_54 = arith.constant 0 : index
    %191 = vector.load %arg13[%c0_52, %c0_53, %c0_54] : memref<2x256x512xbf16, #tpu.memory_space<vmem>>, vector<1x256x512xbf16>
    %192 = vector.shape_cast %191 : vector<1x256x512xbf16> to vector<256x512xbf16>
    %cst_55 = arith.constant dense<0.000000e+00> : vector<8x512xf32>
    %193 = tpu.matmul %190, %192, %cst_55 {dimension_numbers = #tpu.dot_dimension_numbers<[1], [0], [0], [1], [0, 0, 1, 1], [], []>} : vector<8x256xbf16>, vector<256x512xbf16>, vector<8x512xf32> -> vector<8x512xf32>
    %194 = arith.addf %193, %20 : vector<8x512xf32>
    %195 = vector.extract_strided_slice %194 {offsets = [0, 0], sizes = [8, 384], strides = [1, 1]} : vector<8x512xf32> to vector<8x384xf32>
    %196 = arith.negf %195 : vector<8x384xf32>
    %197 = math.exp %196 : vector<8x384xf32>
    %cst_56 = arith.constant 1.000000e+00 : f32
    %198 = vector.broadcast %cst_56 : f32 to vector<8x384xf32>
    %199 = arith.addf %198, %197 : vector<8x384xf32>
    %200 = arith.divf %198, %199 : vector<8x384xf32>
    %201 = vector.extract_strided_slice %194 {offsets = [0, 384], sizes = [8, 128], strides = [1, 1]} : vector<8x512xf32> to vector<8x128xf32>
    %202 = math.tanh %201 : vector<8x128xf32>
    %203 = vector.extract_strided_slice %200 {offsets = [0, 0], sizes = [8, 128], strides = [1, 1]} : vector<8x384xf32> to vector<8x128xf32>
    %204 = vector.extract_strided_slice %200 {offsets = [0, 128], sizes = [8, 128], strides = [1, 1]} : vector<8x384xf32> to vector<8x128xf32>
    %205 = vector.extract_strided_slice %200 {offsets = [0, 256], sizes = [8, 128], strides = [1, 1]} : vector<8x384xf32> to vector<8x128xf32>
    %206 = arith.mulf %204, %138 : vector<8x128xf32>
    %207 = arith.mulf %203, %202 : vector<8x128xf32>
    %208 = arith.addf %206, %207 : vector<8x128xf32>
    %209 = math.tanh %208 : vector<8x128xf32>
    %210 = arith.mulf %205, %209 : vector<8x128xf32>
    %211 = tpu.concatenate %210, %162 in 1 : vector<8x128xf32>, vector<8x128xf32> -> vector<8x256xf32>
    %212 = arith.truncf %211 : vector<8x256xf32> to vector<8x256xbf16>
    %c1_57 = arith.constant 1 : index
    %c0_58 = arith.constant 0 : index
    %c0_59 = arith.constant 0 : index
    %213 = vector.load %arg13[%c1_57, %c0_58, %c0_59] : memref<2x256x512xbf16, #tpu.memory_space<vmem>>, vector<1x256x512xbf16>
    %214 = vector.shape_cast %213 : vector<1x256x512xbf16> to vector<256x512xbf16>
    %cst_60 = arith.constant dense<0.000000e+00> : vector<8x512xf32>
    %215 = tpu.matmul %212, %214, %cst_60 {dimension_numbers = #tpu.dot_dimension_numbers<[1], [0], [0], [1], [0, 0, 1, 1], [], []>} : vector<8x256xbf16>, vector<256x512xbf16>, vector<8x512xf32> -> vector<8x512xf32>
    %216 = arith.addf %215, %24 : vector<8x512xf32>
    %217 = vector.extract_strided_slice %216 {offsets = [0, 0], sizes = [8, 384], strides = [1, 1]} : vector<8x512xf32> to vector<8x384xf32>
    %218 = arith.negf %217 : vector<8x384xf32>
    %219 = math.exp %218 : vector<8x384xf32>
    %cst_61 = arith.constant 1.000000e+00 : f32
    %220 = vector.broadcast %cst_61 : f32 to vector<8x384xf32>
    %221 = arith.addf %220, %219 : vector<8x384xf32>
    %222 = arith.divf %220, %221 : vector<8x384xf32>
    %223 = vector.extract_strided_slice %216 {offsets = [0, 384], sizes = [8, 128], strides = [1, 1]} : vector<8x512xf32> to vector<8x128xf32>
    %224 = math.tanh %223 : vector<8x128xf32>
    %225 = vector.extract_strided_slice %222 {offsets = [0, 0], sizes = [8, 128], strides = [1, 1]} : vector<8x384xf32> to vector<8x128xf32>
    %226 = vector.extract_strided_slice %222 {offsets = [0, 128], sizes = [8, 128], strides = [1, 1]} : vector<8x384xf32> to vector<8x128xf32>
    %227 = vector.extract_strided_slice %222 {offsets = [0, 256], sizes = [8, 128], strides = [1, 1]} : vector<8x384xf32> to vector<8x128xf32>
    %228 = arith.mulf %226, %160 : vector<8x128xf32>
    %229 = arith.mulf %225, %224 : vector<8x128xf32>
    %230 = arith.addf %228, %229 : vector<8x128xf32>
    %231 = math.tanh %230 : vector<8x128xf32>
    %232 = arith.mulf %227, %231 : vector<8x128xf32>
    %c2_i32_62 = arith.constant 2 : i32
    %233 = vector.broadcast %c2_i32_62 : i32 to vector<8x1xi32>
    %234 = arith.cmpi eq, %16, %233 : vector<8x1xi32>
    %235 = vector.shape_cast %234 : vector<8x1xi1> to vector<8x1xi1>
    %236 = vector.broadcast %235 : vector<8x1xi1> to vector<8x128xi1>
    %237 = arith.select %236, %232, %167 : vector<8x128xi1>, vector<8x128xf32>
    %c24 = arith.constant 24 : index
    %c0_63 = arith.constant 0 : index
    %238 = vector.load %arg12[%c24, %c0_63] : memref<64x512xf32, #tpu.memory_space<vmem>>, vector<8x512xf32>
    %239 = arith.truncf %188 : vector<8x128xf32> to vector<8x128xbf16>
    %c0_64 = arith.constant 0 : index
    %c0_65 = arith.constant 0 : index
    %240 = vector.load %arg4[%c0_64, %c0_65] : memref<128x512xbf16, #tpu.memory_space<vmem>>, vector<128x512xbf16>
    %cst_66 = arith.constant dense<0.000000e+00> : vector<8x512xf32>
    %241 = tpu.matmul %239, %240, %cst_66 {dimension_numbers = #tpu.dot_dimension_numbers<[1], [0], [0], [1], [0, 0, 1, 1], [], []>} : vector<8x128xbf16>, vector<128x512xbf16>, vector<8x512xf32> -> vector<8x512xf32>
    %242 = arith.addf %238, %241 : vector<8x512xf32>
    %243 = vector.extract_strided_slice %242 {offsets = [0, 0], sizes = [8, 384], strides = [1, 1]} : vector<8x512xf32> to vector<8x384xf32>
    %244 = arith.negf %243 : vector<8x384xf32>
    %245 = math.exp %244 : vector<8x384xf32>
    %cst_67 = arith.constant 1.000000e+00 : f32
    %246 = vector.broadcast %cst_67 : f32 to vector<8x384xf32>
    %247 = arith.addf %246, %245 : vector<8x384xf32>
    %248 = arith.divf %246, %247 : vector<8x384xf32>
    %249 = vector.extract_strided_slice %242 {offsets = [0, 384], sizes = [8, 128], strides = [1, 1]} : vector<8x512xf32> to vector<8x128xf32>
    %250 = math.tanh %249 : vector<8x128xf32>
    %251 = vector.extract_strided_slice %248 {offsets = [0, 0], sizes = [8, 128], strides = [1, 1]} : vector<8x384xf32> to vector<8x128xf32>
    %252 = vector.extract_strided_slice %248 {offsets = [0, 128], sizes = [8, 128], strides = [1, 1]} : vector<8x384xf32> to vector<8x128xf32>
    %253 = vector.extract_strided_slice %248 {offsets = [0, 256], sizes = [8, 128], strides = [1, 1]} : vector<8x384xf32> to vector<8x128xf32>
    %254 = arith.mulf %252, %186 : vector<8x128xf32>
    %255 = arith.mulf %251, %250 : vector<8x128xf32>
    %256 = arith.addf %254, %255 : vector<8x128xf32>
    %257 = math.tanh %256 : vector<8x128xf32>
    %258 = arith.mulf %253, %257 : vector<8x128xf32>
    %259 = tpu.concatenate %258, %210 in 1 : vector<8x128xf32>, vector<8x128xf32> -> vector<8x256xf32>
    %260 = arith.truncf %259 : vector<8x256xf32> to vector<8x256xbf16>
    %c0_68 = arith.constant 0 : index
    %c0_69 = arith.constant 0 : index
    %c0_70 = arith.constant 0 : index
    %261 = vector.load %arg13[%c0_68, %c0_69, %c0_70] : memref<2x256x512xbf16, #tpu.memory_space<vmem>>, vector<1x256x512xbf16>
    %262 = vector.shape_cast %261 : vector<1x256x512xbf16> to vector<256x512xbf16>
    %cst_71 = arith.constant dense<0.000000e+00> : vector<8x512xf32>
    %263 = tpu.matmul %260, %262, %cst_71 {dimension_numbers = #tpu.dot_dimension_numbers<[1], [0], [0], [1], [0, 0, 1, 1], [], []>} : vector<8x256xbf16>, vector<256x512xbf16>, vector<8x512xf32> -> vector<8x512xf32>
    %264 = arith.addf %263, %20 : vector<8x512xf32>
    %265 = vector.extract_strided_slice %264 {offsets = [0, 0], sizes = [8, 384], strides = [1, 1]} : vector<8x512xf32> to vector<8x384xf32>
    %266 = arith.negf %265 : vector<8x384xf32>
    %267 = math.exp %266 : vector<8x384xf32>
    %cst_72 = arith.constant 1.000000e+00 : f32
    %268 = vector.broadcast %cst_72 : f32 to vector<8x384xf32>
    %269 = arith.addf %268, %267 : vector<8x384xf32>
    %270 = arith.divf %268, %269 : vector<8x384xf32>
    %271 = vector.extract_strided_slice %264 {offsets = [0, 384], sizes = [8, 128], strides = [1, 1]} : vector<8x512xf32> to vector<8x128xf32>
    %272 = math.tanh %271 : vector<8x128xf32>
    %273 = vector.extract_strided_slice %270 {offsets = [0, 0], sizes = [8, 128], strides = [1, 1]} : vector<8x384xf32> to vector<8x128xf32>
    %274 = vector.extract_strided_slice %270 {offsets = [0, 128], sizes = [8, 128], strides = [1, 1]} : vector<8x384xf32> to vector<8x128xf32>
    %275 = vector.extract_strided_slice %270 {offsets = [0, 256], sizes = [8, 128], strides = [1, 1]} : vector<8x384xf32> to vector<8x128xf32>
    %276 = arith.mulf %274, %208 : vector<8x128xf32>
    %277 = arith.mulf %273, %272 : vector<8x128xf32>
    %278 = arith.addf %276, %277 : vector<8x128xf32>
    %279 = math.tanh %278 : vector<8x128xf32>
    %280 = arith.mulf %275, %279 : vector<8x128xf32>
    %281 = tpu.concatenate %280, %232 in 1 : vector<8x128xf32>, vector<8x128xf32> -> vector<8x256xf32>
    %282 = arith.truncf %281 : vector<8x256xf32> to vector<8x256xbf16>
    %c1_73 = arith.constant 1 : index
    %c0_74 = arith.constant 0 : index
    %c0_75 = arith.constant 0 : index
    %283 = vector.load %arg13[%c1_73, %c0_74, %c0_75] : memref<2x256x512xbf16, #tpu.memory_space<vmem>>, vector<1x256x512xbf16>
    %284 = vector.shape_cast %283 : vector<1x256x512xbf16> to vector<256x512xbf16>
    %cst_76 = arith.constant dense<0.000000e+00> : vector<8x512xf32>
    %285 = tpu.matmul %282, %284, %cst_76 {dimension_numbers = #tpu.dot_dimension_numbers<[1], [0], [0], [1], [0, 0, 1, 1], [], []>} : vector<8x256xbf16>, vector<256x512xbf16>, vector<8x512xf32> -> vector<8x512xf32>
    %286 = arith.addf %285, %24 : vector<8x512xf32>
    %287 = vector.extract_strided_slice %286 {offsets = [0, 0], sizes = [8, 384], strides = [1, 1]} : vector<8x512xf32> to vector<8x384xf32>
    %288 = arith.negf %287 : vector<8x384xf32>
    %289 = math.exp %288 : vector<8x384xf32>
    %cst_77 = arith.constant 1.000000e+00 : f32
    %290 = vector.broadcast %cst_77 : f32 to vector<8x384xf32>
    %291 = arith.addf %290, %289 : vector<8x384xf32>
    %292 = arith.divf %290, %291 : vector<8x384xf32>
    %293 = vector.extract_strided_slice %286 {offsets = [0, 384], sizes = [8, 128], strides = [1, 1]} : vector<8x512xf32> to vector<8x128xf32>
    %294 = math.tanh %293 : vector<8x128xf32>
    %295 = vector.extract_strided_slice %292 {offsets = [0, 0], sizes = [8, 128], strides = [1, 1]} : vector<8x384xf32> to vector<8x128xf32>
    %296 = vector.extract_strided_slice %292 {offsets = [0, 128], sizes = [8, 128], strides = [1, 1]} : vector<8x384xf32> to vector<8x128xf32>
    %297 = vector.extract_strided_slice %292 {offsets = [0, 256], sizes = [8, 128], strides = [1, 1]} : vector<8x384xf32> to vector<8x128xf32>
    %298 = arith.mulf %296, %230 : vector<8x128xf32>
    %299 = arith.mulf %295, %294 : vector<8x128xf32>
    %300 = arith.addf %298, %299 : vector<8x128xf32>
    %301 = math.tanh %300 : vector<8x128xf32>
    %302 = arith.mulf %297, %301 : vector<8x128xf32>
    %c3_i32 = arith.constant 3 : i32
    %303 = vector.broadcast %c3_i32 : i32 to vector<8x1xi32>
    %304 = arith.cmpi eq, %16, %303 : vector<8x1xi32>
    %305 = vector.shape_cast %304 : vector<8x1xi1> to vector<8x1xi1>
    %306 = vector.broadcast %305 : vector<8x1xi1> to vector<8x128xi1>
    %307 = arith.select %306, %302, %237 : vector<8x128xi1>, vector<8x128xf32>
    %c32 = arith.constant 32 : index
    %c0_78 = arith.constant 0 : index
    %308 = vector.load %arg12[%c32, %c0_78] : memref<64x512xf32, #tpu.memory_space<vmem>>, vector<8x512xf32>
    %309 = arith.truncf %258 : vector<8x128xf32> to vector<8x128xbf16>
    %c0_79 = arith.constant 0 : index
    %c0_80 = arith.constant 0 : index
    %310 = vector.load %arg4[%c0_79, %c0_80] : memref<128x512xbf16, #tpu.memory_space<vmem>>, vector<128x512xbf16>
    %cst_81 = arith.constant dense<0.000000e+00> : vector<8x512xf32>
    %311 = tpu.matmul %309, %310, %cst_81 {dimension_numbers = #tpu.dot_dimension_numbers<[1], [0], [0], [1], [0, 0, 1, 1], [], []>} : vector<8x128xbf16>, vector<128x512xbf16>, vector<8x512xf32> -> vector<8x512xf32>
    %312 = arith.addf %308, %311 : vector<8x512xf32>
    %313 = vector.extract_strided_slice %312 {offsets = [0, 0], sizes = [8, 384], strides = [1, 1]} : vector<8x512xf32> to vector<8x384xf32>
    %314 = arith.negf %313 : vector<8x384xf32>
    %315 = math.exp %314 : vector<8x384xf32>
    %cst_82 = arith.constant 1.000000e+00 : f32
    %316 = vector.broadcast %cst_82 : f32 to vector<8x384xf32>
    %317 = arith.addf %316, %315 : vector<8x384xf32>
    %318 = arith.divf %316, %317 : vector<8x384xf32>
    %319 = vector.extract_strided_slice %312 {offsets = [0, 384], sizes = [8, 128], strides = [1, 1]} : vector<8x512xf32> to vector<8x128xf32>
    %320 = math.tanh %319 : vector<8x128xf32>
    %321 = vector.extract_strided_slice %318 {offsets = [0, 0], sizes = [8, 128], strides = [1, 1]} : vector<8x384xf32> to vector<8x128xf32>
    %322 = vector.extract_strided_slice %318 {offsets = [0, 128], sizes = [8, 128], strides = [1, 1]} : vector<8x384xf32> to vector<8x128xf32>
    %323 = vector.extract_strided_slice %318 {offsets = [0, 256], sizes = [8, 128], strides = [1, 1]} : vector<8x384xf32> to vector<8x128xf32>
    %324 = arith.mulf %322, %256 : vector<8x128xf32>
    %325 = arith.mulf %321, %320 : vector<8x128xf32>
    %326 = arith.addf %324, %325 : vector<8x128xf32>
    %327 = math.tanh %326 : vector<8x128xf32>
    %328 = arith.mulf %323, %327 : vector<8x128xf32>
    %329 = tpu.concatenate %328, %280 in 1 : vector<8x128xf32>, vector<8x128xf32> -> vector<8x256xf32>
    %330 = arith.truncf %329 : vector<8x256xf32> to vector<8x256xbf16>
    %c0_83 = arith.constant 0 : index
    %c0_84 = arith.constant 0 : index
    %c0_85 = arith.constant 0 : index
    %331 = vector.load %arg13[%c0_83, %c0_84, %c0_85] : memref<2x256x512xbf16, #tpu.memory_space<vmem>>, vector<1x256x512xbf16>
    %332 = vector.shape_cast %331 : vector<1x256x512xbf16> to vector<256x512xbf16>
    %cst_86 = arith.constant dense<0.000000e+00> : vector<8x512xf32>
    %333 = tpu.matmul %330, %332, %cst_86 {dimension_numbers = #tpu.dot_dimension_numbers<[1], [0], [0], [1], [0, 0, 1, 1], [], []>} : vector<8x256xbf16>, vector<256x512xbf16>, vector<8x512xf32> -> vector<8x512xf32>
    %334 = arith.addf %333, %20 : vector<8x512xf32>
    %335 = vector.extract_strided_slice %334 {offsets = [0, 0], sizes = [8, 384], strides = [1, 1]} : vector<8x512xf32> to vector<8x384xf32>
    %336 = arith.negf %335 : vector<8x384xf32>
    %337 = math.exp %336 : vector<8x384xf32>
    %cst_87 = arith.constant 1.000000e+00 : f32
    %338 = vector.broadcast %cst_87 : f32 to vector<8x384xf32>
    %339 = arith.addf %338, %337 : vector<8x384xf32>
    %340 = arith.divf %338, %339 : vector<8x384xf32>
    %341 = vector.extract_strided_slice %334 {offsets = [0, 384], sizes = [8, 128], strides = [1, 1]} : vector<8x512xf32> to vector<8x128xf32>
    %342 = math.tanh %341 : vector<8x128xf32>
    %343 = vector.extract_strided_slice %340 {offsets = [0, 0], sizes = [8, 128], strides = [1, 1]} : vector<8x384xf32> to vector<8x128xf32>
    %344 = vector.extract_strided_slice %340 {offsets = [0, 128], sizes = [8, 128], strides = [1, 1]} : vector<8x384xf32> to vector<8x128xf32>
    %345 = vector.extract_strided_slice %340 {offsets = [0, 256], sizes = [8, 128], strides = [1, 1]} : vector<8x384xf32> to vector<8x128xf32>
    %346 = arith.mulf %344, %278 : vector<8x128xf32>
    %347 = arith.mulf %343, %342 : vector<8x128xf32>
    %348 = arith.addf %346, %347 : vector<8x128xf32>
    %349 = math.tanh %348 : vector<8x128xf32>
    %350 = arith.mulf %345, %349 : vector<8x128xf32>
    %351 = tpu.concatenate %350, %302 in 1 : vector<8x128xf32>, vector<8x128xf32> -> vector<8x256xf32>
    %352 = arith.truncf %351 : vector<8x256xf32> to vector<8x256xbf16>
    %c1_88 = arith.constant 1 : index
    %c0_89 = arith.constant 0 : index
    %c0_90 = arith.constant 0 : index
    %353 = vector.load %arg13[%c1_88, %c0_89, %c0_90] : memref<2x256x512xbf16, #tpu.memory_space<vmem>>, vector<1x256x512xbf16>
    %354 = vector.shape_cast %353 : vector<1x256x512xbf16> to vector<256x512xbf16>
    %cst_91 = arith.constant dense<0.000000e+00> : vector<8x512xf32>
    %355 = tpu.matmul %352, %354, %cst_91 {dimension_numbers = #tpu.dot_dimension_numbers<[1], [0], [0], [1], [0, 0, 1, 1], [], []>} : vector<8x256xbf16>, vector<256x512xbf16>, vector<8x512xf32> -> vector<8x512xf32>
    %356 = arith.addf %355, %24 : vector<8x512xf32>
    %357 = vector.extract_strided_slice %356 {offsets = [0, 0], sizes = [8, 384], strides = [1, 1]} : vector<8x512xf32> to vector<8x384xf32>
    %358 = arith.negf %357 : vector<8x384xf32>
    %359 = math.exp %358 : vector<8x384xf32>
    %cst_92 = arith.constant 1.000000e+00 : f32
    %360 = vector.broadcast %cst_92 : f32 to vector<8x384xf32>
    %361 = arith.addf %360, %359 : vector<8x384xf32>
    %362 = arith.divf %360, %361 : vector<8x384xf32>
    %363 = vector.extract_strided_slice %356 {offsets = [0, 384], sizes = [8, 128], strides = [1, 1]} : vector<8x512xf32> to vector<8x128xf32>
    %364 = math.tanh %363 : vector<8x128xf32>
    %365 = vector.extract_strided_slice %362 {offsets = [0, 0], sizes = [8, 128], strides = [1, 1]} : vector<8x384xf32> to vector<8x128xf32>
    %366 = vector.extract_strided_slice %362 {offsets = [0, 128], sizes = [8, 128], strides = [1, 1]} : vector<8x384xf32> to vector<8x128xf32>
    %367 = vector.extract_strided_slice %362 {offsets = [0, 256], sizes = [8, 128], strides = [1, 1]} : vector<8x384xf32> to vector<8x128xf32>
    %368 = arith.mulf %366, %300 : vector<8x128xf32>
    %369 = arith.mulf %365, %364 : vector<8x128xf32>
    %370 = arith.addf %368, %369 : vector<8x128xf32>
    %371 = math.tanh %370 : vector<8x128xf32>
    %372 = arith.mulf %367, %371 : vector<8x128xf32>
    %c4_i32 = arith.constant 4 : i32
    %373 = vector.broadcast %c4_i32 : i32 to vector<8x1xi32>
    %374 = arith.cmpi eq, %16, %373 : vector<8x1xi32>
    %375 = vector.shape_cast %374 : vector<8x1xi1> to vector<8x1xi1>
    %376 = vector.broadcast %375 : vector<8x1xi1> to vector<8x128xi1>
    %377 = arith.select %376, %372, %307 : vector<8x128xi1>, vector<8x128xf32>
    %c40 = arith.constant 40 : index
    %c0_93 = arith.constant 0 : index
    %378 = vector.load %arg12[%c40, %c0_93] : memref<64x512xf32, #tpu.memory_space<vmem>>, vector<8x512xf32>
    %379 = arith.truncf %328 : vector<8x128xf32> to vector<8x128xbf16>
    %c0_94 = arith.constant 0 : index
    %c0_95 = arith.constant 0 : index
    %380 = vector.load %arg4[%c0_94, %c0_95] : memref<128x512xbf16, #tpu.memory_space<vmem>>, vector<128x512xbf16>
    %cst_96 = arith.constant dense<0.000000e+00> : vector<8x512xf32>
    %381 = tpu.matmul %379, %380, %cst_96 {dimension_numbers = #tpu.dot_dimension_numbers<[1], [0], [0], [1], [0, 0, 1, 1], [], []>} : vector<8x128xbf16>, vector<128x512xbf16>, vector<8x512xf32> -> vector<8x512xf32>
    %382 = arith.addf %378, %381 : vector<8x512xf32>
    %383 = vector.extract_strided_slice %382 {offsets = [0, 0], sizes = [8, 384], strides = [1, 1]} : vector<8x512xf32> to vector<8x384xf32>
    %384 = arith.negf %383 : vector<8x384xf32>
    %385 = math.exp %384 : vector<8x384xf32>
    %cst_97 = arith.constant 1.000000e+00 : f32
    %386 = vector.broadcast %cst_97 : f32 to vector<8x384xf32>
    %387 = arith.addf %386, %385 : vector<8x384xf32>
    %388 = arith.divf %386, %387 : vector<8x384xf32>
    %389 = vector.extract_strided_slice %382 {offsets = [0, 384], sizes = [8, 128], strides = [1, 1]} : vector<8x512xf32> to vector<8x128xf32>
    %390 = math.tanh %389 : vector<8x128xf32>
    %391 = vector.extract_strided_slice %388 {offsets = [0, 0], sizes = [8, 128], strides = [1, 1]} : vector<8x384xf32> to vector<8x128xf32>
    %392 = vector.extract_strided_slice %388 {offsets = [0, 128], sizes = [8, 128], strides = [1, 1]} : vector<8x384xf32> to vector<8x128xf32>
    %393 = vector.extract_strided_slice %388 {offsets = [0, 256], sizes = [8, 128], strides = [1, 1]} : vector<8x384xf32> to vector<8x128xf32>
    %394 = arith.mulf %392, %326 : vector<8x128xf32>
    %395 = arith.mulf %391, %390 : vector<8x128xf32>
    %396 = arith.addf %394, %395 : vector<8x128xf32>
    %397 = math.tanh %396 : vector<8x128xf32>
    %398 = arith.mulf %393, %397 : vector<8x128xf32>
    %399 = tpu.concatenate %398, %350 in 1 : vector<8x128xf32>, vector<8x128xf32> -> vector<8x256xf32>
    %400 = arith.truncf %399 : vector<8x256xf32> to vector<8x256xbf16>
    %c0_98 = arith.constant 0 : index
    %c0_99 = arith.constant 0 : index
    %c0_100 = arith.constant 0 : index
    %401 = vector.load %arg13[%c0_98, %c0_99, %c0_100] : memref<2x256x512xbf16, #tpu.memory_space<vmem>>, vector<1x256x512xbf16>
    %402 = vector.shape_cast %401 : vector<1x256x512xbf16> to vector<256x512xbf16>
    %cst_101 = arith.constant dense<0.000000e+00> : vector<8x512xf32>
    %403 = tpu.matmul %400, %402, %cst_101 {dimension_numbers = #tpu.dot_dimension_numbers<[1], [0], [0], [1], [0, 0, 1, 1], [], []>} : vector<8x256xbf16>, vector<256x512xbf16>, vector<8x512xf32> -> vector<8x512xf32>
    %404 = arith.addf %403, %20 : vector<8x512xf32>
    %405 = vector.extract_strided_slice %404 {offsets = [0, 0], sizes = [8, 384], strides = [1, 1]} : vector<8x512xf32> to vector<8x384xf32>
    %406 = arith.negf %405 : vector<8x384xf32>
    %407 = math.exp %406 : vector<8x384xf32>
    %cst_102 = arith.constant 1.000000e+00 : f32
    %408 = vector.broadcast %cst_102 : f32 to vector<8x384xf32>
    %409 = arith.addf %408, %407 : vector<8x384xf32>
    %410 = arith.divf %408, %409 : vector<8x384xf32>
    %411 = vector.extract_strided_slice %404 {offsets = [0, 384], sizes = [8, 128], strides = [1, 1]} : vector<8x512xf32> to vector<8x128xf32>
    %412 = math.tanh %411 : vector<8x128xf32>
    %413 = vector.extract_strided_slice %410 {offsets = [0, 0], sizes = [8, 128], strides = [1, 1]} : vector<8x384xf32> to vector<8x128xf32>
    %414 = vector.extract_strided_slice %410 {offsets = [0, 128], sizes = [8, 128], strides = [1, 1]} : vector<8x384xf32> to vector<8x128xf32>
    %415 = vector.extract_strided_slice %410 {offsets = [0, 256], sizes = [8, 128], strides = [1, 1]} : vector<8x384xf32> to vector<8x128xf32>
    %416 = arith.mulf %414, %348 : vector<8x128xf32>
    %417 = arith.mulf %413, %412 : vector<8x128xf32>
    %418 = arith.addf %416, %417 : vector<8x128xf32>
    %419 = math.tanh %418 : vector<8x128xf32>
    %420 = arith.mulf %415, %419 : vector<8x128xf32>
    %421 = tpu.concatenate %420, %372 in 1 : vector<8x128xf32>, vector<8x128xf32> -> vector<8x256xf32>
    %422 = arith.truncf %421 : vector<8x256xf32> to vector<8x256xbf16>
    %c1_103 = arith.constant 1 : index
    %c0_104 = arith.constant 0 : index
    %c0_105 = arith.constant 0 : index
    %423 = vector.load %arg13[%c1_103, %c0_104, %c0_105] : memref<2x256x512xbf16, #tpu.memory_space<vmem>>, vector<1x256x512xbf16>
    %424 = vector.shape_cast %423 : vector<1x256x512xbf16> to vector<256x512xbf16>
    %cst_106 = arith.constant dense<0.000000e+00> : vector<8x512xf32>
    %425 = tpu.matmul %422, %424, %cst_106 {dimension_numbers = #tpu.dot_dimension_numbers<[1], [0], [0], [1], [0, 0, 1, 1], [], []>} : vector<8x256xbf16>, vector<256x512xbf16>, vector<8x512xf32> -> vector<8x512xf32>
    %426 = arith.addf %425, %24 : vector<8x512xf32>
    %427 = vector.extract_strided_slice %426 {offsets = [0, 0], sizes = [8, 384], strides = [1, 1]} : vector<8x512xf32> to vector<8x384xf32>
    %428 = arith.negf %427 : vector<8x384xf32>
    %429 = math.exp %428 : vector<8x384xf32>
    %cst_107 = arith.constant 1.000000e+00 : f32
    %430 = vector.broadcast %cst_107 : f32 to vector<8x384xf32>
    %431 = arith.addf %430, %429 : vector<8x384xf32>
    %432 = arith.divf %430, %431 : vector<8x384xf32>
    %433 = vector.extract_strided_slice %426 {offsets = [0, 384], sizes = [8, 128], strides = [1, 1]} : vector<8x512xf32> to vector<8x128xf32>
    %434 = math.tanh %433 : vector<8x128xf32>
    %435 = vector.extract_strided_slice %432 {offsets = [0, 0], sizes = [8, 128], strides = [1, 1]} : vector<8x384xf32> to vector<8x128xf32>
    %436 = vector.extract_strided_slice %432 {offsets = [0, 128], sizes = [8, 128], strides = [1, 1]} : vector<8x384xf32> to vector<8x128xf32>
    %437 = vector.extract_strided_slice %432 {offsets = [0, 256], sizes = [8, 128], strides = [1, 1]} : vector<8x384xf32> to vector<8x128xf32>
    %438 = arith.mulf %436, %370 : vector<8x128xf32>
    %439 = arith.mulf %435, %434 : vector<8x128xf32>
    %440 = arith.addf %438, %439 : vector<8x128xf32>
    %441 = math.tanh %440 : vector<8x128xf32>
    %442 = arith.mulf %437, %441 : vector<8x128xf32>
    %c5_i32 = arith.constant 5 : i32
    %443 = vector.broadcast %c5_i32 : i32 to vector<8x1xi32>
    %444 = arith.cmpi eq, %16, %443 : vector<8x1xi32>
    %445 = vector.shape_cast %444 : vector<8x1xi1> to vector<8x1xi1>
    %446 = vector.broadcast %445 : vector<8x1xi1> to vector<8x128xi1>
    %447 = arith.select %446, %442, %377 : vector<8x128xi1>, vector<8x128xf32>
    %c48 = arith.constant 48 : index
    %c0_108 = arith.constant 0 : index
    %448 = vector.load %arg12[%c48, %c0_108] : memref<64x512xf32, #tpu.memory_space<vmem>>, vector<8x512xf32>
    %449 = arith.truncf %398 : vector<8x128xf32> to vector<8x128xbf16>
    %c0_109 = arith.constant 0 : index
    %c0_110 = arith.constant 0 : index
    %450 = vector.load %arg4[%c0_109, %c0_110] : memref<128x512xbf16, #tpu.memory_space<vmem>>, vector<128x512xbf16>
    %cst_111 = arith.constant dense<0.000000e+00> : vector<8x512xf32>
    %451 = tpu.matmul %449, %450, %cst_111 {dimension_numbers = #tpu.dot_dimension_numbers<[1], [0], [0], [1], [0, 0, 1, 1], [], []>} : vector<8x128xbf16>, vector<128x512xbf16>, vector<8x512xf32> -> vector<8x512xf32>
    %452 = arith.addf %448, %451 : vector<8x512xf32>
    %453 = vector.extract_strided_slice %452 {offsets = [0, 0], sizes = [8, 384], strides = [1, 1]} : vector<8x512xf32> to vector<8x384xf32>
    %454 = arith.negf %453 : vector<8x384xf32>
    %455 = math.exp %454 : vector<8x384xf32>
    %cst_112 = arith.constant 1.000000e+00 : f32
    %456 = vector.broadcast %cst_112 : f32 to vector<8x384xf32>
    %457 = arith.addf %456, %455 : vector<8x384xf32>
    %458 = arith.divf %456, %457 : vector<8x384xf32>
    %459 = vector.extract_strided_slice %452 {offsets = [0, 384], sizes = [8, 128], strides = [1, 1]} : vector<8x512xf32> to vector<8x128xf32>
    %460 = math.tanh %459 : vector<8x128xf32>
    %461 = vector.extract_strided_slice %458 {offsets = [0, 0], sizes = [8, 128], strides = [1, 1]} : vector<8x384xf32> to vector<8x128xf32>
    %462 = vector.extract_strided_slice %458 {offsets = [0, 128], sizes = [8, 128], strides = [1, 1]} : vector<8x384xf32> to vector<8x128xf32>
    %463 = vector.extract_strided_slice %458 {offsets = [0, 256], sizes = [8, 128], strides = [1, 1]} : vector<8x384xf32> to vector<8x128xf32>
    %464 = arith.mulf %462, %396 : vector<8x128xf32>
    %465 = arith.mulf %461, %460 : vector<8x128xf32>
    %466 = arith.addf %464, %465 : vector<8x128xf32>
    %467 = math.tanh %466 : vector<8x128xf32>
    %468 = arith.mulf %463, %467 : vector<8x128xf32>
    %469 = tpu.concatenate %468, %420 in 1 : vector<8x128xf32>, vector<8x128xf32> -> vector<8x256xf32>
    %470 = arith.truncf %469 : vector<8x256xf32> to vector<8x256xbf16>
    %c0_113 = arith.constant 0 : index
    %c0_114 = arith.constant 0 : index
    %c0_115 = arith.constant 0 : index
    %471 = vector.load %arg13[%c0_113, %c0_114, %c0_115] : memref<2x256x512xbf16, #tpu.memory_space<vmem>>, vector<1x256x512xbf16>
    %472 = vector.shape_cast %471 : vector<1x256x512xbf16> to vector<256x512xbf16>
    %cst_116 = arith.constant dense<0.000000e+00> : vector<8x512xf32>
    %473 = tpu.matmul %470, %472, %cst_116 {dimension_numbers = #tpu.dot_dimension_numbers<[1], [0], [0], [1], [0, 0, 1, 1], [], []>} : vector<8x256xbf16>, vector<256x512xbf16>, vector<8x512xf32> -> vector<8x512xf32>
    %474 = arith.addf %473, %20 : vector<8x512xf32>
    %475 = vector.extract_strided_slice %474 {offsets = [0, 0], sizes = [8, 384], strides = [1, 1]} : vector<8x512xf32> to vector<8x384xf32>
    %476 = arith.negf %475 : vector<8x384xf32>
    %477 = math.exp %476 : vector<8x384xf32>
    %cst_117 = arith.constant 1.000000e+00 : f32
    %478 = vector.broadcast %cst_117 : f32 to vector<8x384xf32>
    %479 = arith.addf %478, %477 : vector<8x384xf32>
    %480 = arith.divf %478, %479 : vector<8x384xf32>
    %481 = vector.extract_strided_slice %474 {offsets = [0, 384], sizes = [8, 128], strides = [1, 1]} : vector<8x512xf32> to vector<8x128xf32>
    %482 = math.tanh %481 : vector<8x128xf32>
    %483 = vector.extract_strided_slice %480 {offsets = [0, 0], sizes = [8, 128], strides = [1, 1]} : vector<8x384xf32> to vector<8x128xf32>
    %484 = vector.extract_strided_slice %480 {offsets = [0, 128], sizes = [8, 128], strides = [1, 1]} : vector<8x384xf32> to vector<8x128xf32>
    %485 = vector.extract_strided_slice %480 {offsets = [0, 256], sizes = [8, 128], strides = [1, 1]} : vector<8x384xf32> to vector<8x128xf32>
    %486 = arith.mulf %484, %418 : vector<8x128xf32>
    %487 = arith.mulf %483, %482 : vector<8x128xf32>
    %488 = arith.addf %486, %487 : vector<8x128xf32>
    %489 = math.tanh %488 : vector<8x128xf32>
    %490 = arith.mulf %485, %489 : vector<8x128xf32>
    %491 = tpu.concatenate %490, %442 in 1 : vector<8x128xf32>, vector<8x128xf32> -> vector<8x256xf32>
    %492 = arith.truncf %491 : vector<8x256xf32> to vector<8x256xbf16>
    %c1_118 = arith.constant 1 : index
    %c0_119 = arith.constant 0 : index
    %c0_120 = arith.constant 0 : index
    %493 = vector.load %arg13[%c1_118, %c0_119, %c0_120] : memref<2x256x512xbf16, #tpu.memory_space<vmem>>, vector<1x256x512xbf16>
    %494 = vector.shape_cast %493 : vector<1x256x512xbf16> to vector<256x512xbf16>
    %cst_121 = arith.constant dense<0.000000e+00> : vector<8x512xf32>
    %495 = tpu.matmul %492, %494, %cst_121 {dimension_numbers = #tpu.dot_dimension_numbers<[1], [0], [0], [1], [0, 0, 1, 1], [], []>} : vector<8x256xbf16>, vector<256x512xbf16>, vector<8x512xf32> -> vector<8x512xf32>
    %496 = arith.addf %495, %24 : vector<8x512xf32>
    %497 = vector.extract_strided_slice %496 {offsets = [0, 0], sizes = [8, 384], strides = [1, 1]} : vector<8x512xf32> to vector<8x384xf32>
    %498 = arith.negf %497 : vector<8x384xf32>
    %499 = math.exp %498 : vector<8x384xf32>
    %cst_122 = arith.constant 1.000000e+00 : f32
    %500 = vector.broadcast %cst_122 : f32 to vector<8x384xf32>
    %501 = arith.addf %500, %499 : vector<8x384xf32>
    %502 = arith.divf %500, %501 : vector<8x384xf32>
    %503 = vector.extract_strided_slice %496 {offsets = [0, 384], sizes = [8, 128], strides = [1, 1]} : vector<8x512xf32> to vector<8x128xf32>
    %504 = math.tanh %503 : vector<8x128xf32>
    %505 = vector.extract_strided_slice %502 {offsets = [0, 0], sizes = [8, 128], strides = [1, 1]} : vector<8x384xf32> to vector<8x128xf32>
    %506 = vector.extract_strided_slice %502 {offsets = [0, 128], sizes = [8, 128], strides = [1, 1]} : vector<8x384xf32> to vector<8x128xf32>
    %507 = vector.extract_strided_slice %502 {offsets = [0, 256], sizes = [8, 128], strides = [1, 1]} : vector<8x384xf32> to vector<8x128xf32>
    %508 = arith.mulf %506, %440 : vector<8x128xf32>
    %509 = arith.mulf %505, %504 : vector<8x128xf32>
    %510 = arith.addf %508, %509 : vector<8x128xf32>
    %511 = math.tanh %510 : vector<8x128xf32>
    %512 = arith.mulf %507, %511 : vector<8x128xf32>
    %c6_i32 = arith.constant 6 : i32
    %513 = vector.broadcast %c6_i32 : i32 to vector<8x1xi32>
    %514 = arith.cmpi eq, %16, %513 : vector<8x1xi32>
    %515 = vector.shape_cast %514 : vector<8x1xi1> to vector<8x1xi1>
    %516 = vector.broadcast %515 : vector<8x1xi1> to vector<8x128xi1>
    %517 = arith.select %516, %512, %447 : vector<8x128xi1>, vector<8x128xf32>
    %c56 = arith.constant 56 : index
    %c0_123 = arith.constant 0 : index
    %518 = vector.load %arg12[%c56, %c0_123] : memref<64x512xf32, #tpu.memory_space<vmem>>, vector<8x512xf32>
    %519 = arith.truncf %468 : vector<8x128xf32> to vector<8x128xbf16>
    %c0_124 = arith.constant 0 : index
    %c0_125 = arith.constant 0 : index
    %520 = vector.load %arg4[%c0_124, %c0_125] : memref<128x512xbf16, #tpu.memory_space<vmem>>, vector<128x512xbf16>
    %cst_126 = arith.constant dense<0.000000e+00> : vector<8x512xf32>
    %521 = tpu.matmul %519, %520, %cst_126 {dimension_numbers = #tpu.dot_dimension_numbers<[1], [0], [0], [1], [0, 0, 1, 1], [], []>} : vector<8x128xbf16>, vector<128x512xbf16>, vector<8x512xf32> -> vector<8x512xf32>
    %522 = arith.addf %518, %521 : vector<8x512xf32>
    %523 = vector.extract_strided_slice %522 {offsets = [0, 0], sizes = [8, 384], strides = [1, 1]} : vector<8x512xf32> to vector<8x384xf32>
    %524 = arith.negf %523 : vector<8x384xf32>
    %525 = math.exp %524 : vector<8x384xf32>
    %cst_127 = arith.constant 1.000000e+00 : f32
    %526 = vector.broadcast %cst_127 : f32 to vector<8x384xf32>
    %527 = arith.addf %526, %525 : vector<8x384xf32>
    %528 = arith.divf %526, %527 : vector<8x384xf32>
    %529 = vector.extract_strided_slice %522 {offsets = [0, 384], sizes = [8, 128], strides = [1, 1]} : vector<8x512xf32> to vector<8x128xf32>
    %530 = math.tanh %529 : vector<8x128xf32>
    %531 = vector.extract_strided_slice %528 {offsets = [0, 0], sizes = [8, 128], strides = [1, 1]} : vector<8x384xf32> to vector<8x128xf32>
    %532 = vector.extract_strided_slice %528 {offsets = [0, 128], sizes = [8, 128], strides = [1, 1]} : vector<8x384xf32> to vector<8x128xf32>
    %533 = vector.extract_strided_slice %528 {offsets = [0, 256], sizes = [8, 128], strides = [1, 1]} : vector<8x384xf32> to vector<8x128xf32>
    %534 = arith.mulf %532, %466 : vector<8x128xf32>
    %535 = arith.mulf %531, %530 : vector<8x128xf32>
    %536 = arith.addf %534, %535 : vector<8x128xf32>
    %537 = math.tanh %536 : vector<8x128xf32>
    %538 = arith.mulf %533, %537 : vector<8x128xf32>
    %539 = tpu.concatenate %538, %490 in 1 : vector<8x128xf32>, vector<8x128xf32> -> vector<8x256xf32>
    %540 = arith.truncf %539 : vector<8x256xf32> to vector<8x256xbf16>
    %c0_128 = arith.constant 0 : index
    %c0_129 = arith.constant 0 : index
    %c0_130 = arith.constant 0 : index
    %541 = vector.load %arg13[%c0_128, %c0_129, %c0_130] : memref<2x256x512xbf16, #tpu.memory_space<vmem>>, vector<1x256x512xbf16>
    %542 = vector.shape_cast %541 : vector<1x256x512xbf16> to vector<256x512xbf16>
    %cst_131 = arith.constant dense<0.000000e+00> : vector<8x512xf32>
    %543 = tpu.matmul %540, %542, %cst_131 {dimension_numbers = #tpu.dot_dimension_numbers<[1], [0], [0], [1], [0, 0, 1, 1], [], []>} : vector<8x256xbf16>, vector<256x512xbf16>, vector<8x512xf32> -> vector<8x512xf32>
    %544 = arith.addf %543, %20 : vector<8x512xf32>
    %545 = vector.extract_strided_slice %544 {offsets = [0, 0], sizes = [8, 384], strides = [1, 1]} : vector<8x512xf32> to vector<8x384xf32>
    %546 = arith.negf %545 : vector<8x384xf32>
    %547 = math.exp %546 : vector<8x384xf32>
    %cst_132 = arith.constant 1.000000e+00 : f32
    %548 = vector.broadcast %cst_132 : f32 to vector<8x384xf32>
    %549 = arith.addf %548, %547 : vector<8x384xf32>
    %550 = arith.divf %548, %549 : vector<8x384xf32>
    %551 = vector.extract_strided_slice %544 {offsets = [0, 384], sizes = [8, 128], strides = [1, 1]} : vector<8x512xf32> to vector<8x128xf32>
    %552 = math.tanh %551 : vector<8x128xf32>
    %553 = vector.extract_strided_slice %550 {offsets = [0, 0], sizes = [8, 128], strides = [1, 1]} : vector<8x384xf32> to vector<8x128xf32>
    %554 = vector.extract_strided_slice %550 {offsets = [0, 128], sizes = [8, 128], strides = [1, 1]} : vector<8x384xf32> to vector<8x128xf32>
    %555 = vector.extract_strided_slice %550 {offsets = [0, 256], sizes = [8, 128], strides = [1, 1]} : vector<8x384xf32> to vector<8x128xf32>
    %556 = arith.mulf %554, %488 : vector<8x128xf32>
    %557 = arith.mulf %553, %552 : vector<8x128xf32>
    %558 = arith.addf %556, %557 : vector<8x128xf32>
    %559 = math.tanh %558 : vector<8x128xf32>
    %560 = arith.mulf %555, %559 : vector<8x128xf32>
    %561 = tpu.concatenate %560, %512 in 1 : vector<8x128xf32>, vector<8x128xf32> -> vector<8x256xf32>
    %562 = arith.truncf %561 : vector<8x256xf32> to vector<8x256xbf16>
    %c1_133 = arith.constant 1 : index
    %c0_134 = arith.constant 0 : index
    %c0_135 = arith.constant 0 : index
    %563 = vector.load %arg13[%c1_133, %c0_134, %c0_135] : memref<2x256x512xbf16, #tpu.memory_space<vmem>>, vector<1x256x512xbf16>
    %564 = vector.shape_cast %563 : vector<1x256x512xbf16> to vector<256x512xbf16>
    %cst_136 = arith.constant dense<0.000000e+00> : vector<8x512xf32>
    %565 = tpu.matmul %562, %564, %cst_136 {dimension_numbers = #tpu.dot_dimension_numbers<[1], [0], [0], [1], [0, 0, 1, 1], [], []>} : vector<8x256xbf16>, vector<256x512xbf16>, vector<8x512xf32> -> vector<8x512xf32>
    %566 = arith.addf %565, %24 : vector<8x512xf32>
    %567 = vector.extract_strided_slice %566 {offsets = [0, 0], sizes = [8, 384], strides = [1, 1]} : vector<8x512xf32> to vector<8x384xf32>
    %568 = arith.negf %567 : vector<8x384xf32>
    %569 = math.exp %568 : vector<8x384xf32>
    %cst_137 = arith.constant 1.000000e+00 : f32
    %570 = vector.broadcast %cst_137 : f32 to vector<8x384xf32>
    %571 = arith.addf %570, %569 : vector<8x384xf32>
    %572 = arith.divf %570, %571 : vector<8x384xf32>
    %573 = vector.extract_strided_slice %566 {offsets = [0, 384], sizes = [8, 128], strides = [1, 1]} : vector<8x512xf32> to vector<8x128xf32>
    %574 = math.tanh %573 : vector<8x128xf32>
    %575 = vector.extract_strided_slice %572 {offsets = [0, 0], sizes = [8, 128], strides = [1, 1]} : vector<8x384xf32> to vector<8x128xf32>
    %576 = vector.extract_strided_slice %572 {offsets = [0, 128], sizes = [8, 128], strides = [1, 1]} : vector<8x384xf32> to vector<8x128xf32>
    %577 = vector.extract_strided_slice %572 {offsets = [0, 256], sizes = [8, 128], strides = [1, 1]} : vector<8x384xf32> to vector<8x128xf32>
    %578 = arith.mulf %576, %510 : vector<8x128xf32>
    %579 = arith.mulf %575, %574 : vector<8x128xf32>
    %580 = arith.addf %578, %579 : vector<8x128xf32>
    %581 = math.tanh %580 : vector<8x128xf32>
    %582 = arith.mulf %577, %581 : vector<8x128xf32>
    %c7_i32 = arith.constant 7 : i32
    %583 = vector.broadcast %c7_i32 : i32 to vector<8x1xi32>
    %584 = arith.cmpi eq, %16, %583 : vector<8x1xi32>
    %585 = vector.shape_cast %584 : vector<8x1xi1> to vector<8x1xi1>
    %586 = vector.broadcast %585 : vector<8x1xi1> to vector<8x128xi1>
    %587 = arith.select %586, %582, %517 : vector<8x128xi1>, vector<8x128xf32>
    %c1_i32_138 = arith.constant 1 : i32
    %588 = tpu.memref_slice %arg16[%c1_i32_138] : memref<3x!tpu.dma_semaphore, #tpu.memory_space<semaphore_mem>> -> memref<1x!tpu.dma_semaphore, #tpu.memory_space<semaphore_mem>>
    %589 = tpu.memref_squeeze %588 : memref<1x!tpu.dma_semaphore, #tpu.memory_space<semaphore_mem>> -> memref<!tpu.dma_semaphore, #tpu.memory_space<semaphore_mem>>
    tpu.wait_dma2 semaphore(%589 : memref<!tpu.dma_semaphore, #tpu.memory_space<semaphore_mem>>) src(%arg9 : memref<128x128xbf16, #tpu.memory_space<any>>) dst(%arg14 : memref<128x128xbf16, #tpu.memory_space<vmem>>)
    %c2_i32_139 = arith.constant 2 : i32
    %590 = tpu.memref_slice %arg16[%c2_i32_139] : memref<3x!tpu.dma_semaphore, #tpu.memory_space<semaphore_mem>> -> memref<1x!tpu.dma_semaphore, #tpu.memory_space<semaphore_mem>>
    %591 = tpu.memref_squeeze %590 : memref<1x!tpu.dma_semaphore, #tpu.memory_space<semaphore_mem>> -> memref<!tpu.dma_semaphore, #tpu.memory_space<semaphore_mem>>
    tpu.wait_dma2 semaphore(%591 : memref<!tpu.dma_semaphore, #tpu.memory_space<semaphore_mem>>) src(%arg10 : memref<128x128xbf16, #tpu.memory_space<any>>) dst(%arg15 : memref<128x128xbf16, #tpu.memory_space<vmem>>)
    %592 = arith.truncf %587 : vector<8x128xf32> to vector<8x128xbf16>
    %c0_140 = arith.constant 0 : index
    %c0_141 = arith.constant 0 : index
    %593 = vector.load %arg14[%c0_140, %c0_141] : memref<128x128xbf16, #tpu.memory_space<vmem>>, vector<128x128xbf16>
    %cst_142 = arith.constant dense<0.000000e+00> : vector<8x128xf32>
    %594 = tpu.matmul %592, %593, %cst_142 {dimension_numbers = #tpu.dot_dimension_numbers<[1], [0], [0], [1], [0, 0, 1, 1], [], []>} : vector<8x128xbf16>, vector<128x128xbf16>, vector<8x128xf32> -> vector<8x128xf32>
    %c0_143 = arith.constant 0 : index
    %c0_144 = arith.constant 0 : index
    %595 = vector.load %arg6[%c0_143, %c0_144] : memref<1x128xf32, #tpu.memory_space<vmem>>, vector<1x128xf32>
    %596 = vector.broadcast %595 : vector<1x128xf32> to vector<8x128xf32>
    %597 = arith.addf %594, %596 : vector<8x128xf32>
    %cst_145 = arith.constant 0.000000e+00 : f32
    %598 = vector.broadcast %cst_145 : f32 to vector<8x128xf32>
    %599 = arith.cmpf oge, %597, %598 : vector<8x128xf32>
    %cst_146 = arith.constant 0.00999999977 : f32
    %600 = vector.broadcast %cst_146 : f32 to vector<8x128xf32>
    %601 = arith.mulf %600, %597 : vector<8x128xf32>
    %602 = arith.select %599, %597, %601 : vector<8x128xi1>, vector<8x128xf32>
    %603 = arith.truncf %602 : vector<8x128xf32> to vector<8x128xbf16>
    %c0_147 = arith.constant 0 : index
    %c0_148 = arith.constant 0 : index
    %604 = vector.load %arg15[%c0_147, %c0_148] : memref<128x128xbf16, #tpu.memory_space<vmem>>, vector<128x128xbf16>
    %cst_149 = arith.constant dense<0.000000e+00> : vector<8x128xf32>
    %605 = tpu.matmul %603, %604, %cst_149 {dimension_numbers = #tpu.dot_dimension_numbers<[1], [0], [0], [1], [0, 0, 1, 1], [], []>} : vector<8x128xbf16>, vector<128x128xbf16>, vector<8x128xf32> -> vector<8x128xf32>
    %c0_150 = arith.constant 0 : index
    %c0_151 = arith.constant 0 : index
    %606 = vector.load %arg7[%c0_150, %c0_151] : memref<1x128xf32, #tpu.memory_space<vmem>>, vector<1x128xf32>
    %607 = vector.broadcast %606 : vector<1x128xf32> to vector<8x128xf32>
    %608 = arith.addf %605, %607 : vector<8x128xf32>
    %c0_152 = arith.constant 0 : index
    %c0_153 = arith.constant 0 : index
    %609 = vector.load %arg11[%c0_152, %c0_153] : memref<8x128xf32, #tpu.memory_space<vmem>>, vector<8x128xf32>
    tpu.vector_store %arg11[%c0_152, %c0_153], %608 {strides = array<i32>} : memref<8x128xf32, #tpu.memory_space<vmem>>, vector<8x128xf32>,
    return
  }
  func.func @transform_0(%arg0: i32) -> (i32, i32) {
    %c0_i32 = arith.constant 0 : i32
    %c0_i32_0 = arith.constant 0 : i32
    %c0_i32_1 = arith.constant 0 : i32
    return %c0_i32, %c0_i32_0 : i32, i32
  }
  func.func @transform_1(%arg0: i32) -> (i32, i32) {
    %c0_i32 = arith.constant 0 : i32
    %c0_i32_0 = arith.constant 0 : i32
    %c0_i32_1 = arith.constant 0 : i32
    return %c0_i32, %c0_i32_0 : i32, i32
  }
  func.func @transform_2(%arg0: i32) -> (i32, i32) {
    %c0_i32 = arith.constant 0 : i32
    %c0_i32_0 = arith.constant 0 : i32
    %c0_i32_1 = arith.constant 0 : i32
    return %c0_i32, %c0_i32_0 : i32, i32
  }
  func.func @transform_3(%arg0: i32) -> (i32, i32) {
    %c0_i32 = arith.constant 0 : i32
    %c0_i32_0 = arith.constant 0 : i32
    %c0_i32_1 = arith.constant 0 : i32
    return %c0_i32, %c0_i32_0 : i32, i32
  }
  func.func @transform_4(%arg0: i32) -> (i32, i32, i32) {
    %c0_i32 = arith.constant 0 : i32
    %c0_i32_0 = arith.constant 0 : i32
    %c0_i32_1 = arith.constant 0 : i32
    %c0_i32_2 = arith.constant 0 : i32
    return %c0_i32, %c0_i32_0, %c0_i32_1 : i32, i32, i32
  }
  func.func @transform_5(%arg0: i32) -> (i32, i32) {
    %c0_i32 = arith.constant 0 : i32
    %c0_i32_0 = arith.constant 0 : i32
    %c0_i32_1 = arith.constant 0 : i32
    return %c0_i32, %c0_i32_0 : i32, i32
  }
  func.func @transform_6(%arg0: i32) -> (i32, i32) {
    %c0_i32 = arith.constant 0 : i32
    %c0_i32_0 = arith.constant 0 : i32
    %c0_i32_1 = arith.constant 0 : i32
    return %c0_i32, %c0_i32_0 : i32, i32
  }
  func.func @transform_10(%arg0: i32) -> (i32, i32) {
    %c0_i32 = arith.constant 0 : i32
    %c0_i32_0 = arith.constant 0 : i32
    %c0_i32_1 = arith.constant 0 : i32
    return %c0_i32, %c0_i32_0 : i32, i32
  }
}

</mosaic_0001>

<bundles_post_ra>
// kernel: compound_encoder_forward.1
= control target key start
LH: loop header
LB: loop body
LE: loop exit
PB: predicated region body
PF: predicated region fallthrough
CT: control target
= control target key end

     0   :  { %15 = vsyncpa [#allocation8], 0  ;;  %s9569_s0 = inlined_call_operand.vmem [shape: s32[64,1], index: 0, kind: input, shape index: {}]   ;;  %s9570_s1 = inlined_call_operand.vmem [shape: s32[8,1], index: 1, kind: input, shape index: {}]   ;;  %s9571_s2 = inlined_call_operand.hbm [shape: bf16[128,512], index: 2, kind: input, shape index: {}]   ;;  %s9572_s3 = inlined_call_operand.hbm [shape: bf16[128,512], index: 3, kind: input, shape index: {}]   ;;  %s9573_s4 = inlined_call_operand.hbm [shape: f32[2,1,512], index: 4, kind: input, shape index: {}]   ;;  %s9574_s5 = inlined_call_operand.hbm [shape: f32[1,128], index: 5, kind: input, shape index: {}]   ;;  %s9575_s6 = inlined_call_operand.hbm [shape: f32[1,128], index: 6, kind: input, shape index: {}]   ;;  %s9576_s7 = inlined_call_operand.hbm [shape: bf16[2,256,512], index: 7, kind: input, shape index: {}]   ;;  %s9577_s8 = inlined_call_operand.vmem [shape: bf16[128,128], index: 8, kind: input, shape index: {}]   ;;  %s9578_s9 = inlined_call_operand.vmem [shape: bf16[128,128], index: 9, kind: input, shape index: {}]   ;;  %s9579_s10 = inlined_call_operand.vmem [shape: f32[8,128], index: 10, kind: output, shape index: {}]  }
   0x1   :  { %16 = vsyncpa [#allocation10], 0 }
   0x2   :  { %17 = vsyncpa [#allocation13], 0  ;;  %s6598_s13 = smov [#allocation9]   ;;  %s6599_s15 = smov [#allocation12]  }
   0x3   :  { %s39_s14 = sshll.u32 %s6598_s13, 4  ;;  %s64_s16 = sshll.u32 %s6599_s15, 4  ;;  %s40_s14 = int_to_ptr.vmem [resolvable:$true] %s39_s14  ;;  %s65_s16 = int_to_ptr.vmem [resolvable:$true] %s64_s16 }
   0x4   :  { %s6474_s17 = scalar_lea.vmem %s40_s14, 4096  ;;  %p6479_p1 = scmp.lt.s32.totalorder %s40_s14, %s40_s14 }
   0x5   :  { %p6475_p0 = scmp.ne.s32.totalorder %s40_s14, %s6474_s17  ;;  %p6480_p2 = scmp.lt.s32.totalorder %s6474_s17, %s6474_s17 }
   0x7   :  { %p6481_p3 = por %p6480_p2, %p6479_p1 }
   0x9   :  { %p6482_p4 = pnand %p6481_p3, %p6475_p0 }
   0xb   :  { %6485 = shalt.err (!%p6482_p4)
}
   0xc   :  { %s6600_s18 = smov 256   ;;  %s6601_s19 = smov 16  }
   0xd   :  { %45 = dma.hbm_to_vmem [thread:$0]  %s9572_s3, 4096, %s40_s14, [#allocation10], %s6600_s18, %s6600_s18, %s6601_s19  }
   0xe   :  { %s6494_s22 = scalar_lea.vmem %s65_s16, 16  ;;  %s6498_s23 = scalar_lea.vmem %s65_s16, 32 }
   0xf   :  { %p6495_p5 = scmp.ne.s32.totalorder %s65_s16, %s6494_s22  ;;  %p6499_p6 = scmp.lt.s32.totalorder %s65_s16, %s65_s16 }
  0x10   :  { %p6500_p7 = scmp.lt.s32.totalorder %s6498_s23, %s6494_s22 }
  0x12   :  { %p6501_p8 = por %p6500_p7, %p6499_p6 }
  0x14   :  { %p6502_p9 = pnand %p6501_p8, %p6495_p5 }
  0x16   :  { %6505 = shalt.err (!%p6502_p9)
}
  0x17   :  { %67 = dma.hbm_to_vmem [thread:$0]  %s9574_s5, 16, %s65_s16, [#allocation13]  }
  0x18   :  { %s6602_s26 = smov [#allocation7]   ;;  %s6603_s28 = smov [#allocation11]  }
  0x19   :  { %s27_s27 = sshll.u32 %s6602_s26, 4  ;;  %s51_s29 = sshll.u32 %s6603_s28, 4  ;;  %s28_s27 = int_to_ptr.vmem [resolvable:$true] %s27_s27  ;;  %s52_s29 = int_to_ptr.vmem [resolvable:$true] %s51_s29 }
  0x1a   :  { %s6514_s30 = scalar_lea.vmem %s28_s27, 4096  ;;  %p6519_p11 = scmp.lt.s32.totalorder %s28_s27, %s28_s27 }
  0x1b   :  { %p6515_p10 = scmp.ne.s32.totalorder %s28_s27, %s6514_s30  ;;  %p6520_p12 = scmp.lt.s32.totalorder %s6514_s30, %s6514_s30 }
  0x1d   :  { %p6521_p13 = por %p6520_p12, %p6519_p11 }
  0x1f   :  { %p6522_p0 = pnand %p6521_p13, %p6515_p10 }
  0x21   :  { %6525 = shalt.err (!%p6522_p0)
}
  0x22   :  { %33 = dma.hbm_to_vmem [thread:$0]  %s9571_s2, 4096, %s28_s27, [#allocation8], %s6600_s18, %s6600_s18, %s6601_s19  }
  0x23   :  { %s6534_s12 = scalar_lea.vmem %s52_s29, 128  ;;  %p6539_p2 = scmp.lt.s32.totalorder %s52_s29, %s52_s29 }
  0x24   :  { %p6535_p1 = scmp.ne.s32.totalorder %s52_s29, %s6534_s12  ;;  %p6540_p3 = scmp.lt.s32.totalorder %s6534_s12, %s6534_s12 }
  0x26   :  { %p6541_p4 = por %p6540_p3, %p6539_p2 }
  0x28   :  { %p6542_p5 = pnand %p6541_p4, %p6535_p1 }
  0x2a   :  { %6545 = shalt.err (!%p6542_p5)
}
  0x2b   :  { %s6604_s5 = smov 64   ;;  %s6605_s13 = smov 4  }
  0x2c   :  { %57 = dma.hbm_to_vmem [thread:$0]  %s9573_s4, 128, %s52_s29, [#allocation10], %s6604_s5, %s6604_s5, %s6605_s13  }
  0x2d   :  { %s6606_s16 = smov [#allocation14]  }
  0x2e   :  { %s74_s17 = sshll.u32 %s6606_s16, 4  ;;  %s75_s17 = int_to_ptr.vmem [resolvable:$true] %s74_s17 }
  0x2f   :  { %s6554_s20 = scalar_lea.vmem %s75_s17, 16  ;;  %s6558_s21 = scalar_lea.vmem %s75_s17, 32 }
  0x30   :  { %p6555_p6 = scmp.ne.s32.totalorder %s75_s17, %s6554_s20  ;;  %p6559_p7 = scmp.lt.s32.totalorder %s75_s17, %s75_s17 }
  0x31   :  { %p6560_p8 = scmp.lt.s32.totalorder %s6558_s21, %s6554_s20 }
  0x33   :  { %p6561_p9 = por %p6560_p8, %p6559_p7 }
  0x35   :  { %p6562_p10 = pnand %p6561_p9, %p6555_p6 }
  0x37   :  { %6565 = shalt.err (!%p6562_p10)
}
  0x38   :  { %77 = dma.hbm_to_vmem [thread:$0]  %s9575_s6, 16, %s75_s17, [#allocation13]  }
  0x39   :  { %6586 = dma.done.wait [#allocation8], 4096  }
  0x3a   :  { %6587 = vsyncadd [#allocation8], 4294963200 }
  0x3b   :  { %6588 = dma.done.wait [#allocation10], 4224  }
  0x3c   :  { %6589 = vsyncadd [#allocation10], 4294963072 }
  0x3d   :  { %6590 = dma.done.wait [#allocation13], 32  }
  0x3e   :  { %6591 = vsyncadd [#allocation13], 4294967264  ;;  %s6607_s4 = smov [#allocation3]  }
  0x3f   :  { %s101_s19 = sshll.u32 %s6607_s4, 4  ;;  %s102_s19 = int_to_ptr.vmem [resolvable:$true] %s101_s19 }
  0x40   :  { %s6574_s22 = scalar_lea.vmem %s102_s19, 16384  ;;  %p6579_p12 = scmp.lt.s32.totalorder %s102_s19, %s102_s19 }
  0x41   :  { %p6575_p11 = scmp.ne.s32.totalorder %s102_s19, %s6574_s22  ;;  %p6580_p13 = scmp.lt.s32.totalorder %s6574_s22, %s6574_s22 }
  0x43   :  { %p6581_p0 = por %p6580_p13, %p6579_p12 }
  0x45   :  { %p6582_p1 = pnand %p6581_p0, %p6575_p11 }
  0x47   :  { %6585 = shalt.err (!%p6582_p1)  }
  0x48   :  { %104 = dma.hbm_to_vmem [thread:$0]  %s9576_s7, 16384, %s102_s19, [#allocation6]  ;;  %v139_v0 = vld [vmem:[%s9577_s8] sm:$0xff]  ;;  %v141_v1 = vld [vmem:[%s9577_s8 + $0x8] sm:$0xff]  ;;  %v143_v2 = vld [vmem:[%s9577_s8 + $0x10] sm:$0xff] }
  0x49   :  { %140 = vst [vmem:[#allocation4] sm:$0xff] %v139_v0  ;;  %142 = vst [vmem:[#allocation4 + $0x8] sm:$0xff] %v141_v1  ;;  %v145_v3 = vld [vmem:[%s9577_s8 + $0x18] sm:$0xff]  ;;  %v147_v4 = vld [vmem:[%s9577_s8 + $0x20] sm:$0xff] }
  0x4a   :  { %144 = vst [vmem:[#allocation4 + $0x10] sm:$0xff] %v143_v2  ;;  %v149_v5 = vld [vmem:[%s9577_s8 + $0x28] sm:$0xff]  ;;  %146 = vst [vmem:[#allocation4 + $0x18] sm:$0xff] %v145_v3  ;;  %v151_v6 = vld [vmem:[%s9577_s8 + $0x30] sm:$0xff] }
  0x4b   :  { %148 = vst [vmem:[#allocation4 + $0x20] sm:$0xff] %v147_v4  ;;  %150 = vst [vmem:[#allocation4 + $0x28] sm:$0xff] %v149_v5  ;;  %v153_v7 = vld [vmem:[%s9577_s8 + $0x38] sm:$0xff] }
  0x4c   :  { %152 = vst [vmem:[#allocation4 + $0x30] sm:$0xff] %v151_v6  ;;  %154 = vst [vmem:[#allocation4 + $0x38] sm:$0xff] %v153_v7 }
  0x4d   :  { %162 = vsyncadd [#allocation6 + $0x1], 1024  ;;  %v197_v8 = vld [vmem:[%s9578_s9] sm:$0xff]  ;;  %v199_v9 = vld [vmem:[%s9578_s9 + $0x8] sm:$0xff]  ;;  %v9580_v18 = vmov 0  }
  0x4e   :  { %198 = vst [vmem:[#allocation5] sm:$0xff] %v197_v8  ;;  %200 = vst [vmem:[#allocation5 + $0x8] sm:$0xff] %v199_v9  ;;  %v201_v10 = vld [vmem:[%s9578_s9 + $0x10] sm:$0xff]  ;;  %v203_v11 = vld [vmem:[%s9578_s9 + $0x18] sm:$0xff]  ;;  %5237 = vset.pattern.permute.xlu1 %v9580_v18  ;;  %5236 = vset.pattern.permute.xlu0 %v9580_v18 }
  0x4f   :  { %v205_v12 = vld [vmem:[%s9578_s9 + $0x20] sm:$0xff]  ;;  %202 = vst [vmem:[#allocation5 + $0x10] sm:$0xff] %v201_v10  ;;  %204 = vst [vmem:[#allocation5 + $0x18] sm:$0xff] %v203_v11  ;;  %v207_v13 = vld [vmem:[%s9578_s9 + $0x28] sm:$0xff] }
  0x50   :  { %206 = vst [vmem:[#allocation5 + $0x20] sm:$0xff] %v205_v12  ;;  %v209_v14 = vld [vmem:[%s9578_s9 + $0x30] sm:$0xff]  ;;  %v211_v15 = vld [vmem:[%s9578_s9 + $0x38] sm:$0xff]  ;;  %208 = vst [vmem:[#allocation5 + $0x28] sm:$0xff] %v207_v13 }
  0x51   :  { %210 = vst [vmem:[#allocation5 + $0x30] sm:$0xff] %v209_v14  ;;  %212 = vst [vmem:[#allocation5 + $0x38] sm:$0xff] %v211_v15  ;;  %v223_v16 = vld [vmem:[%s9569_s0 + $0x10] sm:$0xff]  ;;  %v221_v17 = vld [vmem:[%s9569_s0] sm:$0xff] }
  0x52   :  { %238 = vperm.xlu1 %5237, %v223_v16   ;;  %232 = vperm.xlu0 %5236, %v221_v17   ;;  %v224_v19 = vld [vmem:[%s9569_s0 + $0x18] sm:$0xff]  ;;  %v222_v20 = vld [vmem:[%s9569_s0 + $0x8] sm:$0xff] }
  0x53   :  { %220 = vsyncadd [#allocation6 + $0x2], 1024  ;;  %v5238_v21 = vld [vmem:[#allocation7 + $0xe4] ss:$16 sps:$4 sm:$0xff]   ;;  %507 = vmatprep.mubr.bf16.mxu0 %v9580_v18  ;;  %580 = vmatprep.mubr.bf16.mxu1 %v9580_v18  ;;  %v5240_v22 = vld [vmem:[#allocation7 + $0xe0] ss:$16 sps:$4 sm:$0xff]   ;;  %v229_v37 = vlaneseq }
  0x54   :  { %v226_v23 = vld [vmem:[%s9569_s0 + $0x28] sm:$0xff]  ;;  %v225_v24 = vld [vmem:[%s9569_s0 + $0x20] sm:$0xff]  ;;  %475 = vmatprep.subr.bf16.mxu0 %v5238_v21  ;;  %v228_v31 = vld [vmem:[%s9569_s0 + $0x38] sm:$0xff]  ;;  %v6609_v21 = vmov 1.0|1.0  }
  0x55   :  { %v5241_v25 = vld [vmem:[#allocation7 + $0xec] ss:$16 sps:$4 sm:$0xff]   ;;  %v5243_v26 = vld [vmem:[#allocation7 + $0xe8] ss:$16 sps:$4 sm:$0xff]   ;;  %v5244_v27 = vld [vmem:[#allocation7 + $0xc4] ss:$16 sps:$4 sm:$0xff]   ;;  %476 = vmatpush1.bf16.msra.mxu0 %v5240_v22 }
  0x56   :  { %241 = vperm.xlu1 %5237, %v224_v19   ;;  %235 = vperm.xlu0 %5236, %v222_v20   ;;  %v5246_v28 = vld [vmem:[#allocation7 + $0xc0] ss:$16 sps:$4 sm:$0xff]   ;;  %v5247_v29 = vld [vmem:[#allocation7 + $0xcc] ss:$16 sps:$4 sm:$0xff]   ;;  %v5249_v30 = vld [vmem:[#allocation7 + $0xc8] ss:$16 sps:$4 sm:$0xff]  }
  0x57   :  { %548 = vmatprep.subr.bf16.mxu1 %v5241_v25  ;;  %477 = vmatprep.subr.bf16.mxu0 %v5244_v27  ;;  %v227_v32 = vld [vmem:[%s9569_s0 + $0x30] sm:$0xff]  ;;  %v5253_v35 = vld [vmem:[#allocation7 + $0xac] ss:$16 sps:$4 sm:$0xff]   ;;  %v5255_v36 = vld [vmem:[#allocation7 + $0xa8] ss:$16 sps:$4 sm:$0xff]   ;;  %v657_v40 = vshrl.u32 %v229_v37, 7 }
  0x58   :  { %549 = vmatpush1.bf16.msra.mxu1 %v5243_v26  ;;  %v5250_v33 = vld [vmem:[#allocation7 + $0xa4] ss:$16 sps:$4 sm:$0xff]   ;;  %v5252_v34 = vld [vmem:[#allocation7 + $0xa0] ss:$16 sps:$4 sm:$0xff]   ;;  %v5259_v39 = vld [vmem:[#allocation7 + $0x8c] ss:$16 sps:$4 sm:$0xff]  }
  0x59   :  { %550 = vmatprep.subr.bf16.mxu1 %v5247_v29  ;;  %478 = vmatpush1.bf16.msra.mxu0 %v5246_v28  ;;  %v5256_v38 = vld [vmem:[#allocation7 + $0x84] ss:$16 sps:$4 sm:$0xff]   ;;  %v5258_v41 = vld [vmem:[#allocation7 + $0x80] ss:$16 sps:$4 sm:$0xff]   ;;  %v5261_v42 = vld [vmem:[#allocation7 + $0x88] ss:$16 sps:$4 sm:$0xff]  }
  0x5a   :  { %247 = vperm.xlu1 %5237, %v226_v23   ;;  %244 = vperm.xlu0 %5236, %v225_v24   ;;  %v5262_v43 = vld [vmem:[#allocation7 + $0x64] ss:$16 sps:$4 sm:$0xff]   ;;  %v5265_v44 = vld [vmem:[#allocation7 + $0x6c] ss:$16 sps:$4 sm:$0xff]   ;;  %v658_v45 = vsub.s32 0, %v657_v40  ;;  %v662_v47 = vsub.s32 1, %v657_v40 }
  0x5b   :  { %479 = vmatprep.subr.bf16.mxu0 %v5250_v33  ;;  %v5264_v46 = vld [vmem:[#allocation7 + $0x60] ss:$16 sps:$4 sm:$0xff]   ;;  %v666_v48 = vsub.s32 2, %v657_v40  ;;  %v670_v49 = vsub.s32 3, %v657_v40  ;;  %v5267_v50 = vld [vmem:[#allocation7 + $0x68] ss:$16 sps:$4 sm:$0xff]  }
  0x5c   :  { %551 = vmatpush1.bf16.msra.mxu1 %v5249_v30  ;;  %v5268_v51 = vld [vmem:[#allocation7 + $0x44] ss:$16 sps:$4 sm:$0xff]   ;;  %v5271_v52 = vld [vmem:[#allocation7 + $0x4c] ss:$16 sps:$4 sm:$0xff]   ;;  %v654_v53 = vld [vmem:[#allocation11] sm:$0xf] }
  0x5d   :  { %552 = vmatprep.subr.bf16.mxu1 %v5253_v35  ;;  %480 = vmatpush1.bf16.msra.mxu0 %v5252_v34  ;;  %v6763_v54 = vrot.slane %v654_v53, %v658_v45  ;;  %v6765_v55 = vrot.slane %v654_v53, %v662_v47  ;;  %v6767_v56 = vrot.slane %v654_v53, %v666_v48  ;;  %v677_v58 = vld [vmem:[#allocation11 + $0x4] sm:$0xf]  ;;  %v5270_v59 = vld [vmem:[#allocation7 + $0x40] ss:$16 sps:$4 sm:$0xff]   ;;  %v5273_v60 = vld [vmem:[#allocation7 + $0x48] ss:$16 sps:$4 sm:$0xff]  }
  0x5e   :  { %253 = vperm.xlu1 %5237, %v228_v31   ;;  %250 = vperm.xlu0 %5236, %v227_v32   ;;  %v6769_v57 = vrot.slane %v654_v53, %v670_v49  ;;  %v6771_v61 = vrot.slane %v677_v58, %v658_v45  ;;  %v6773_v62 = vrot.slane %v677_v58, %v662_v47  ;;  %v5274_v1 = vld [vmem:[#allocation7 + $0x24] ss:$16 sps:$4 sm:$0xff]   ;;  %v5277_v2 = vld [vmem:[#allocation7 + $0x2c] ss:$16 sps:$4 sm:$0xff]   ;;  %v5276_v4 = vld [vmem:[#allocation7 + $0x20] ss:$16 sps:$4 sm:$0xff]  }
  0x5f   :  { %481 = vmatprep.subr.bf16.mxu0 %v5256_v38  ;;  %9997 = vst [vmem:[#allocation27_spill] sm:$0xff] %v6765_v55  ;;  %v6775_v63 = vrot.slane %v677_v58, %v666_v48  ;;  %v6777_v0 = vrot.slane %v677_v58, %v670_v49  ;;  %v6782_v3 = vld [vmem:[%s9570_s1] sm:$0xff]  ;;  %v5279_v5 = vld [vmem:[#allocation7 + $0x28] ss:$16 sps:$4 sm:$0xff]   ;;  %v5283_v7 = vld [vmem:[#allocation7 + $0xc] ss:$16 sps:$4 sm:$0xff]  }
  0x60   :  { %553 = vmatpush1.bf16.msra.mxu1 %v5255_v36  ;;  %9998 = vst [vmem:[#allocation28_spill] sm:$0xff] %v6771_v61  ;;  %9999 = vst [vmem:[#allocation29_spill] sm:$0xff] %v6773_v62  ;;  %v5280_v6 = vld [vmem:[#allocation7 + $0x4] ss:$16 sps:$4 sm:$0xff]   ;;  %v5282_v8 = vld [vmem:[#allocation7] ss:$16 sps:$4 sm:$0xff]  }
  0x61   :  { %554 = vmatprep.subr.bf16.mxu1 %v5259_v39  ;;  %482 = vmatpush1.bf16.msra.mxu0 %v5258_v41  ;;  %10000 = vst [vmem:[#allocation30_spill] sm:$0xff] %v6775_v63  ;;  %10001 = vst [vmem:[#allocation31_spill] sm:$0xff] %v6777_v0  ;;  %v5285_v9 = vld [vmem:[#allocation7 + $0x8] ss:$16 sps:$4 sm:$0xff]   ;;  %v5288_v10 = vld [vmem:[#allocation9 + $0xe4] ss:$16 sps:$4 sm:$0xff]  }
  0x62   :  { %483 = vmatprep.subr.bf16.mxu0 %v5262_v43  ;;  %10002 = vst [vmem:[#allocation32_spill] sm:$0xff] %v6782_v3  ;;  %v5291_v11 = vld [vmem:[#allocation9 + $0xec] ss:$16 sps:$4 sm:$0xff]   ;;  %v6785_v13 = vand.u32 127, %v229_v37  ;;  %v5286_v16 = vld [vmem:[#allocation9 + $0xe0] ss:$16 sps:$4 sm:$0xff]  }
  0x63   :  { %v5289_v17 = vld [vmem:[#allocation9 + $0xe8] ss:$16 sps:$4 sm:$0xff]   ;;  %v5294_v19 = vld [vmem:[#allocation9 + $0xc4] ss:$16 sps:$4 sm:$0xff]   ;;  %v5297_v20 = vld [vmem:[#allocation9 + $0xcc] ss:$16 sps:$4 sm:$0xff]  }
  0x64   :  { %555 = vmatpush1.bf16.msra.mxu1 %v5261_v42  ;;  %v5292_v22 = vld [vmem:[#allocation9 + $0xc0] ss:$16 sps:$4 sm:$0xff]   ;;  %v5295_v23 = vld [vmem:[#allocation9 + $0xc8] ss:$16 sps:$4 sm:$0xff]   ;;  %v5300_v24 = vld [vmem:[#allocation9 + $0xa4] ss:$16 sps:$4 sm:$0xff]  }
  0x65   :  { %556 = vmatprep.subr.bf16.mxu1 %v5265_v44  ;;  %484 = vmatpush1.bf16.msra.mxu0 %v5264_v46  ;;  %v5303_v25 = vld [vmem:[#allocation9 + $0xac] ss:$16 sps:$4 sm:$0xff]   ;;  %v5298_v27 = vld [vmem:[#allocation9 + $0xa0] ss:$16 sps:$4 sm:$0xff]   ;;  %v5301_v28 = vld [vmem:[#allocation9 + $0xa8] ss:$16 sps:$4 sm:$0xff]  }
  0x66   :  { %485 = vmatprep.subr.bf16.mxu0 %v5268_v51  ;;  %v5306_v29 = vld [vmem:[#allocation9 + $0x84] ss:$16 sps:$4 sm:$0xff]   ;;  %v5309_v30 = vld [vmem:[#allocation9 + $0x8c] ss:$16 sps:$4 sm:$0xff]   ;;  %v5304_v33 = vld [vmem:[#allocation9 + $0x80] ss:$16 sps:$4 sm:$0xff]  }
  0x67   :  { %v5307_v34 = vld [vmem:[#allocation9 + $0x88] ss:$16 sps:$4 sm:$0xff]   ;;  %v5312_v35 = vld [vmem:[#allocation9 + $0x64] ss:$16 sps:$4 sm:$0xff]   ;;  %v5315_v36 = vld [vmem:[#allocation9 + $0x6c] ss:$16 sps:$4 sm:$0xff]  }
  0x68   :  { %557 = vmatpush1.bf16.msra.mxu1 %v5267_v50  ;;  %v5310_v37 = vld [vmem:[#allocation9 + $0x60] ss:$16 sps:$4 sm:$0xff]   ;;  %v5313_v38 = vld [vmem:[#allocation9 + $0x68] ss:$16 sps:$4 sm:$0xff]   ;;  %v5318_v39 = vld [vmem:[#allocation9 + $0x44] ss:$16 sps:$4 sm:$0xff]  }
  0x69   :  { %558 = vmatprep.subr.bf16.mxu1 %v5271_v52  ;;  %486 = vmatpush1.bf16.msra.mxu0 %v5270_v59  ;;  %v5321_v40 = vld [vmem:[#allocation9 + $0x4c] ss:$16 sps:$4 sm:$0xff]   ;;  %v5316_v43 = vld [vmem:[#allocation9 + $0x40] ss:$16 sps:$4 sm:$0xff]   ;;  %v5319_v44 = vld [vmem:[#allocation9 + $0x48] ss:$16 sps:$4 sm:$0xff]  }
  0x6a   :  { %487 = vmatprep.subr.bf16.mxu0 %v5274_v1  ;;  %v5324_v45 = vld [vmem:[#allocation9 + $0x24] ss:$16 sps:$4 sm:$0xff]   ;;  %v5327_v46 = vld [vmem:[#allocation9 + $0x2c] ss:$16 sps:$4 sm:$0xff]   ;;  %v5322_v47 = vld [vmem:[#allocation9 + $0x20] ss:$16 sps:$4 sm:$0xff]  }
  0x6b   :  { %v5325_v48 = vld [vmem:[#allocation9 + $0x28] ss:$16 sps:$4 sm:$0xff]   ;;  %v5330_v49 = vld [vmem:[#allocation9 + $0x4] ss:$16 sps:$4 sm:$0xff]   ;;  %v5333_v50 = vld [vmem:[#allocation9 + $0xc] ss:$16 sps:$4 sm:$0xff]  }
  0x6c   :  { %559 = vmatpush1.bf16.msra.mxu1 %v5273_v60  ;;  %v5328_v51 = vld [vmem:[#allocation9] ss:$16 sps:$4 sm:$0xff]   ;;  %v5331_v52 = vld [vmem:[#allocation9 + $0x8] ss:$16 sps:$4 sm:$0xff]  }
  0x6d   :  { %560 = vmatprep.subr.bf16.mxu1 %v5277_v2  ;;  %488 = vmatpush1.bf16.msra.mxu0 %v5276_v4 }
  0x6e   :  { %489 = vmatprep.subr.bf16.mxu0 %v5280_v6 }
  0x70   :  { %561 = vmatpush1.bf16.msra.mxu1 %v5279_v5 }
  0x71   :  { %562 = vmatprep.subr.bf16.mxu1 %v5283_v7  ;;  %490 = vmatpush1.bf16.msra.mxu0 %v5282_v8 }
  0x72   :  { %895 = vmatprep.subr.bf16.mxu0 %v5288_v10 }
  0x74   :  { %563 = vmatpush1.bf16.msra.mxu1 %v5285_v9 }
  0x75   :  { %936 = vmatprep.subr.bf16.mxu1 %v5291_v11 }
  0xcd   :  { %v233_v12 = vpop.permute.xlu0 %232  ;;  %v239_v15 = vpop.permute.xlu1 %238 }
  0xce   :  { %vm255_vm1 = vcmp.eq.s32.totalorder %v233_v12, %v6785_v13  ;;  %vm257_vm3 = vcmp.eq.s32.totalorder %v239_v15, %v6785_v13 }
  0xd1   :  { %v236_v14 = vpop.permute.xlu0 %235  ;;  %v242_v26 = vpop.permute.xlu1 %241 }
  0xd2   :  { %vm256_vm0 = vcmp.eq.s32.totalorder %v236_v14, %v6785_v13  ;;  %vm258_vm4 = vcmp.eq.s32.totalorder %v242_v26, %v6785_v13 }
  0xd3   :  { %vm4862_vm2 = vmpackc.low %vm256_vm0, %vm255_vm1 }
  0xd4   :  { %4863 = vmatmul.mubr.msk.bf16.vlgmr.msra.gmra.mxu0 %vm4862_vm2, %v6609_v21  ;;  %4871 = vmatmul.mubr.msk.bf16.vlgmr.msra.gmra.mxu1 %vm4862_vm2, %v6609_v21  ;;  %vm4864_vm5 = vmpackc.low %vm258_vm4, %vm257_vm3 }
  0xd5   :  { %896 = vmatpush1.bf16.msra.mxu0 %v5286_v16  ;;  %937 = vmatpush1.bf16.msra.mxu1 %v5289_v17  ;;  %v248_v31 = vpop.permute.xlu1 %247  ;;  %v245_v32 = vpop.permute.xlu0 %244 }
  0xd6   :  { %897 = vmatprep.subr.bf16.mxu0 %v5294_v19  ;;  %938 = vmatprep.subr.bf16.mxu1 %v5297_v20  ;;  %vm260_vm6 = vcmp.eq.s32.totalorder %v248_v31, %v6785_v13  ;;  %vm259_vm7 = vcmp.eq.s32.totalorder %v245_v32, %v6785_v13 }
  0xd7   :  { %517 = vmatprep.mubr.bf16.mxu0 %v9580_v18  ;;  %590 = vmatprep.mubr.bf16.mxu1 %v9580_v18  ;;  %vm4866_vm8 = vmpackc.low %vm260_vm6, %vm259_vm7 }
  0xd9   :  { %898 = vmatpush1.bf16.msra.mxu0 %v5292_v22  ;;  %939 = vmatpush1.bf16.msra.mxu1 %v5295_v23  ;;  %v254_v41 = vpop.permute.xlu1 %253  ;;  %v251_v42 = vpop.permute.xlu0 %250 }
  0xda   :  { %899 = vmatprep.subr.bf16.mxu0 %v5300_v24  ;;  %940 = vmatprep.subr.bf16.mxu1 %v5303_v25  ;;  %vm262_vm9 = vcmp.eq.s32.totalorder %v254_v41, %v6785_v13  ;;  %vm261_vm10 = vcmp.eq.s32.totalorder %v251_v42, %v6785_v13 }
  0xdb   :  { %vm4868_vm11 = vmpackc.low %vm262_vm9, %vm261_vm10 }
  0xdc   :  { %4865 = vmatmul.mubr.msk.bf16.gmra.mxu0 %vm4864_vm5, %v6609_v21  ;;  %4873 = vmatmul.mubr.msk.bf16.gmra.mxu1 %vm4864_vm5, %v6609_v21 }
  0xdd   :  { %900 = vmatpush1.bf16.msra.mxu0 %v5298_v27  ;;  %941 = vmatpush1.bf16.msra.mxu1 %v5301_v28 }
  0xde   :  { %901 = vmatprep.subr.bf16.mxu0 %v5306_v29  ;;  %942 = vmatprep.subr.bf16.mxu1 %v5309_v30 }
  0xdf   :  { %527 = vmatprep.mubr.bf16.mxu0 %v9580_v18  ;;  %600 = vmatprep.mubr.bf16.mxu1 %v9580_v18 }
  0xe1   :  { %902 = vmatpush1.bf16.msra.mxu0 %v5304_v33  ;;  %943 = vmatpush1.bf16.msra.mxu1 %v5307_v34 }
  0xe2   :  { %903 = vmatprep.subr.bf16.mxu0 %v5312_v35  ;;  %944 = vmatprep.subr.bf16.mxu1 %v5315_v36 }
  0xe4   :  { %4867 = vmatmul.mubr.msk.bf16.gmra.mxu0 %vm4866_vm8, %v6609_v21  ;;  %4875 = vmatmul.mubr.msk.bf16.gmra.mxu1 %vm4866_vm8, %v6609_v21 }
  0xe5   :  { %904 = vmatpush1.bf16.msra.mxu0 %v5310_v37  ;;  %945 = vmatpush1.bf16.msra.mxu1 %v5313_v38 }
  0xe6   :  { %905 = vmatprep.subr.bf16.mxu0 %v5318_v39  ;;  %946 = vmatprep.subr.bf16.mxu1 %v5321_v40 }
  0xe7   :  { %537 = vmatprep.mubr.bf16.mxu0 %v9580_v18  ;;  %610 = vmatprep.mubr.bf16.mxu1 %v9580_v18 }
  0xe9   :  { %906 = vmatpush1.bf16.msra.mxu0 %v5316_v43  ;;  %947 = vmatpush1.bf16.msra.mxu1 %v5319_v44 }
  0xea   :  { %907 = vmatprep.subr.bf16.mxu0 %v5324_v45  ;;  %948 = vmatprep.subr.bf16.mxu1 %v5327_v46 }
  0xec   :  { %4869 = vmatmul.mubr.msk.bf16.gmra.mxu0 %vm4868_vm11, %v6609_v21  ;;  %4877 = vmatmul.mubr.msk.bf16.gmra.mxu1 %vm4868_vm11, %v6609_v21 }
  0xed   :  { %908 = vmatpush1.bf16.msra.mxu0 %v5322_v47  ;;  %949 = vmatpush1.bf16.msra.mxu1 %v5325_v48 }
  0xee   :  { %909 = vmatprep.subr.bf16.mxu0 %v5330_v49  ;;  %950 = vmatprep.subr.bf16.mxu1 %v5333_v50 }
  0xef   :  { %927 = vmatprep.mubr.bf16.mxu0 %v9580_v18  ;;  %968 = vmatprep.mubr.bf16.mxu1 %v9580_v18 }
  0xf1   :  { %910 = vmatpush1.bf16.msra.mxu0 %v5328_v51  ;;  %951 = vmatpush1.bf16.msra.mxu1 %v5331_v52 }
  0xf4   :  { %928 = vmatmul.mubr.bf16.vlgmr.msra.gmra.mxu0 %v9580_v18  ;;  %969 = vmatmul.mubr.bf16.vlgmr.msra.gmra.mxu1 %v9580_v18 }
 0x194   :  { %v509_v53 = vpop.f32.mrf.mxu0  ;;  %v582_v58 = vpop.f32.mrf.mxu1 }
 0x196   :  { %v511_v59 = vpop.f32.mrf.mxu0  ;;  %v584_v60 = vpop.f32.mrf.mxu1 }
 0x198   :  { %v6813_v1 = vpop.f32.mrf.mxu0  ;;  %v6815_v2 = vpop.f32.mrf.mxu1 }
 0x199   :  { %10003 = vst [vmem:[#allocation33_spill] sm:$0xff] %v6813_v1  ;;  %10004 = vst [vmem:[#allocation34_spill] sm:$0xff] %v6815_v2 }
 0x19a   :  { %v6817_v4 = vpop.f32.mrf.mxu0  ;;  %v6819_v5 = vpop.f32.mrf.mxu1 }
 0x19b   :  { %10005 = vst [vmem:[#allocation35_spill] sm:$0xff] %v6817_v4  ;;  %10006 = vst [vmem:[#allocation36_spill] sm:$0xff] %v6819_v5 }
 0x19c   :  { %v6821_v6 = vpop.f32.mrf.mxu0  ;;  %v6823_v7 = vpop.f32.mrf.mxu1 }
 0x19d   :  { %10007 = vst [vmem:[#allocation37_spill] sm:$0xff] %v6821_v6  ;;  %10008 = vst [vmem:[#allocation38_spill] sm:$0xff] %v6823_v7 }
 0x19e   :  { %v6825_v8 = vpop.f32.mrf.mxu0  ;;  %v6827_v9 = vpop.f32.mrf.mxu1 }
 0x19f   :  { %10009 = vst [vmem:[#allocation39_spill] sm:$0xff] %v6825_v8  ;;  %10010 = vst [vmem:[#allocation40_spill] sm:$0xff] %v6827_v9 }
 0x1a0   :  { %v6829_v10 = vpop.f32.mrf.mxu0  ;;  %v6831_v11 = vpop.f32.mrf.mxu1 }
 0x1a1   :  { %10011 = vst [vmem:[#allocation41_spill] sm:$0xff] %v6829_v10  ;;  %10012 = vst [vmem:[#allocation42_spill] sm:$0xff] %v6831_v11 }
 0x1a2   :  { %v6833_v12 = vpop.f32.mrf.mxu0  ;;  %v6835_v13 = vpop.f32.mrf.mxu1 }
 0x1a3   :  { %10013 = vst [vmem:[#allocation43_spill] sm:$0xff] %v6833_v12  ;;  %10014 = vst [vmem:[#allocation44_spill] sm:$0xff] %v6835_v13 }
 0x1a4   :  { %v6837_v14 = vpop.f32.mrf.mxu0  ;;  %v6839_v15 = vpop.f32.mrf.mxu1 }
 0x1a5   :  { %10015 = vst [vmem:[#allocation45_spill] sm:$0xff] %v6837_v14  ;;  %10016 = vst [vmem:[#allocation46_spill] sm:$0xff] %v6839_v15 }
 0x1a6   :  { %v6841_v16 = vpop.f32.mrf.mxu0  ;;  %v6843_v17 = vpop.f32.mrf.mxu1 }
 0x1a7   :  { %10017 = vst [vmem:[#allocation47_spill] sm:$0xff] %v6841_v16  ;;  %10018 = vst [vmem:[#allocation48_spill] sm:$0xff] %v6843_v17 }
 0x1a8   :  { %v6845_v19 = vpop.f32.mrf.mxu0  ;;  %v6847_v20 = vpop.f32.mrf.mxu1 }
 0x1a9   :  { %10019 = vst [vmem:[#allocation49_spill] sm:$0xff] %v6845_v19  ;;  %10020 = vst [vmem:[#allocation50_spill] sm:$0xff] %v6847_v20 }
 0x1aa   :  { %v6849_v21 = vpop.f32.mrf.mxu0  ;;  %v6851_v22 = vpop.f32.mrf.mxu1 }
 0x1ab   :  { %10021 = vst [vmem:[#allocation51_spill] sm:$0xff] %v6849_v21  ;;  %10022 = vst [vmem:[#allocation52_spill] sm:$0xff] %v6851_v22 }
 0x1ac   :  { %v6853_v23 = vpop.f32.mrf.mxu0  ;;  %v6855_v24 = vpop.f32.mrf.mxu1 }
 0x1ad   :  { %10023 = vst [vmem:[#allocation53_spill] sm:$0xff] %v6853_v23  ;;  %10024 = vst [vmem:[#allocation54_spill] sm:$0xff] %v6855_v24 }
 0x1ae   :  { %v6857_v25 = vpop.f32.mrf.mxu0  ;;  %v6859_v26 = vpop.f32.mrf.mxu1 }
 0x1af   :  { %10025 = vst [vmem:[#allocation55_spill] sm:$0xff] %v6857_v25  ;;  %10026 = vst [vmem:[#allocation56_spill] sm:$0xff] %v6859_v26 }
 0x1b0   :  { %v6861_v27 = vpop.f32.mrf.mxu0  ;;  %v6863_v28 = vpop.f32.mrf.mxu1 }
 0x1b1   :  { %10027 = vst [vmem:[#allocation57_spill] sm:$0xff] %v6861_v27  ;;  %10028 = vst [vmem:[#allocation58_spill] sm:$0xff] %v6863_v28 }
 0x1b2   :  { %v6865_v29 = vpop.f32.mrf.mxu0  ;;  %v6867_v30 = vpop.f32.mrf.mxu1 }
 0x1b3   :  { %10029 = vst [vmem:[#allocation59_spill] sm:$0xff] %v6865_v29  ;;  %10030 = vst [vmem:[#allocation60_spill] sm:$0xff] %v6867_v30 }
 0x1b4   :  { %v929_v31 = vpop.f32.mrf.mxu0  ;;  %v970_v32 = vpop.f32.mrf.mxu1 }
 0x1b5   :  { %v977_v33 = vadd.f32 %v929_v31, %v509_v53  ;;  %v979_v43 = vadd.f32 %v970_v32, %v582_v58 }
 0x1b6   :  { %v931_v34 = vpop.f32.mrf.mxu0  ;;  %v972_v35 = vpop.f32.mrf.mxu1 }
 0x1b7   :  { %v4910_v36 = vmul.f32 -1.442695, %v977_v33  ;;  %v978_v37 = vadd.f32 %v931_v34, %v511_v59  ;;  %v4912_v44 = vmul.f32 -1.442695, %v979_v43  ;;  %v980_v46 = vadd.f32 %v972_v35, %v584_v60 }
 0x1b8   :  { %v933_v38 = vpop.f32.mrf.mxu0  ;;  %v974_v39 = vpop.f32.mrf.mxu1 }
 0x1b9   :  { %5334 = vpow2.f32 %v4910_v36  ;;  %v4911_v40 = vmul.f32 -1.442695, %v978_v37 }
 0x1ba   :  { %v934_v41 = vpop.f32.mrf.mxu0  ;;  %v975_v42 = vpop.f32.mrf.mxu1 }
 0x1bb   :  { %5336 = vpow2.f32 %v4911_v40 }
 0x1bc   :  { %5338 = vpow2.f32 %v4912_v44 }
 0x1c6   :  { %v5335_v45 = vpop.eup %5334 }
 0x1c7   :  { %v990_v47 = vadd.f32 1.0, %v5335_v45 }
 0x1c8   :  { %v5337_v48 = vpop.eup %5336 }
 0x1c9   :  { %5340 = vrcp.f32 %v990_v47  ;;  %v991_v49 = vadd.f32 1.0, %v5337_v48  ;;  %v5339_v50 = vpop.eup %5338 }
 0x1ca   :  { %5342 = vtanh.f32 %v980_v46  ;;  %v992_v59 = vadd.f32 1.0, %v5339_v50 }
 0x1cb   :  { %5344 = vrcp.f32 %v991_v49 }
 0x1cc   :  { %5346 = vrcp.f32 %v992_v59 }
 0x1d6   :  { %v5341_v51 = vpop.eup %5340 }
 0x1d7   :  { %v5343_v52 = vpop.eup %5342 }
 0x1d8   :  { %v5345_v53 = vpop.eup %5344  ;;  %v1001_v33 = vmul.f32 %v5343_v52, %v5341_v51 }
 0x1d9   :  { %v1000_v31 = vmul.f32 0.0, %v5345_v53  ;;  %v5347_v58 = vpop.eup %5346 }
 0x1db   :  { %v6869_v34 = vadd.f32 %v1001_v33, %v1000_v31 }
 0x1dd   :  { %10031 = vst [vmem:[#allocation61_spill] sm:$0xff] %v6869_v34  ;;  %5348 = vtanh.f32 %v6869_v34 }
 0x1ea   :  { %v5349_v60 = vpop.eup %5348 }
 0x1eb   :  { %v6872_v32 = vmul.f32 %v5349_v60, %v5347_v58 }
 0x1ec   :  { %6592 = dma.done.wait [#allocation6], 16384 }
 0x1ed   :  { %6593 = vsyncadd [#allocation6], 4294950912  ;;  %5350 = vset.pattern.permute.xlu0 %v9580_v18  ;;  %5351 = vset.pattern.permute.xlu1 %v9580_v18  ;;  %v9582_v35 = vmov 0.0|0.0   ;;  %v5352_v36 = vld [vmem:[#allocation3 + $0xe4] ss:$16 sps:$4 sm:$0xff]   ;;  %v7040_v1 = vpack.c.bf16 %v6872_v32, %v6872_v32  ;;  %vm1994_vm12 = vcmp.eq.s32.totalorder %v6782_v3, 0 }
 0x1ee   :  { %1428 = vmatprep.mubr.bf16.mxu0 %v9582_v35  ;;  %1469 = vmatprep.mubr.bf16.mxu1 %v9582_v35  ;;  %v5354_v37 = vld [vmem:[#allocation3 + $0xe0] ss:$16 sps:$4 sm:$0xff]   ;;  %v5355_v38 = vld [vmem:[#allocation3 + $0xc4] ss:$16 sps:$4 sm:$0xff]   ;;  %v5363_v41 = vld [vmem:[#allocation3 + $0xec] ss:$16 sps:$4 sm:$0xff]  }
 0x1ef   :  { %1396 = vmatprep.subr.bf16.mxu0 %v5352_v36  ;;  %v5357_v39 = vld [vmem:[#allocation3 + $0xc0] ss:$16 sps:$4 sm:$0xff]   ;;  %v5358_v40 = vld [vmem:[#allocation3 + $0xa4] ss:$16 sps:$4 sm:$0xff]   ;;  %v5366_v42 = vld [vmem:[#allocation3 + $0xe8] ss:$16 sps:$4 sm:$0xff]   ;;  %1437 = vmatprep.subr.bf16.mxu1 %v5363_v41 }
 0x1f0   :  { %1397 = vmatpush1.bf16.msra.mxu0 %v5354_v37  ;;  %v5360_v43 = vld [vmem:[#allocation3 + $0xa0] ss:$16 sps:$4 sm:$0xff]   ;;  %v5361_v44 = vld [vmem:[#allocation3 + $0x84] ss:$16 sps:$4 sm:$0xff]   ;;  %1438 = vmatpush1.bf16.msra.mxu1 %v5366_v42  ;;  %v6878_v45 = vld [vmem:[#allocation3 + $0xcc] ss:$16 sps:$4 sm:$0xff]  }
 0x1f1   :  { %1398 = vmatprep.subr.bf16.mxu0 %v5355_v38  ;;  %v6880_v46 = vld [vmem:[#allocation3 + $0xc8] ss:$16 sps:$4 sm:$0xff]   ;;  %1439 = vmatprep.subr.bf16.mxu1 %v6878_v45  ;;  %v6883_v47 = vld [vmem:[#allocation3 + $0x80] ss:$16 sps:$4 sm:$0xff]   ;;  %v5367_v48 = vld [vmem:[#allocation3 + $0x64] ss:$16 sps:$4 sm:$0xff]  }
 0x1f2   :  { %v6885_v49 = vld [vmem:[#allocation3 + $0xac] ss:$16 sps:$4 sm:$0xff]   ;;  %v6888_v50 = vld [vmem:[#allocation3 + $0xa8] ss:$16 sps:$4 sm:$0xff]   ;;  %v6894_v52 = vld [vmem:[#allocation3 + $0x60] ss:$16 sps:$4 sm:$0xff]  }
 0x1f3   :  { %v6891_v51 = vld [vmem:[#allocation3 + $0x8c] ss:$16 sps:$4 sm:$0xff]   ;;  %v6896_v53 = vld [vmem:[#allocation3 + $0x44] ss:$16 sps:$4 sm:$0xff]   ;;  %v6899_v59 = vld [vmem:[#allocation3 + $0x88] ss:$16 sps:$4 sm:$0xff]  }
 0x1f4   :  { %1399 = vmatpush1.bf16.msra.mxu0 %v5357_v39  ;;  %1440 = vmatpush1.bf16.msra.mxu1 %v6880_v46  ;;  %v6902_v31 = vld [vmem:[#allocation3 + $0x6c] ss:$16 sps:$4 sm:$0xff]   ;;  %v6905_v33 = vld [vmem:[#allocation3 + $0x40] ss:$16 sps:$4 sm:$0xff]   ;;  %v6907_v58 = vld [vmem:[#allocation3 + $0x24] ss:$16 sps:$4 sm:$0xff]  }
 0x1f5   :  { %1400 = vmatprep.subr.bf16.mxu0 %v5358_v40  ;;  %1441 = vmatprep.subr.bf16.mxu1 %v6885_v49  ;;  %v6911_v60 = vld [vmem:[#allocation3 + $0x68] ss:$16 sps:$4 sm:$0xff]   ;;  %v6914_v36 = vld [vmem:[#allocation3 + $0x4c] ss:$16 sps:$4 sm:$0xff]   ;;  %v6917_v37 = vld [vmem:[#allocation3 + $0x20] ss:$16 sps:$4 sm:$0xff]  }
 0x1f6   :  { %v6920_v38 = vld [vmem:[#allocation3 + $0x4] ss:$16 sps:$4 sm:$0xff]   ;;  %v6923_v39 = vld [vmem:[#allocation3 + $0x48] ss:$16 sps:$4 sm:$0xff]   ;;  %v6926_v40 = vld [vmem:[#allocation3 + $0x2c] ss:$16 sps:$4 sm:$0xff]  }
 0x1f7   :  { %v6929_v41 = vld [vmem:[#allocation3] ss:$16 sps:$4 sm:$0xff]   ;;  %v6931_v42 = vld [vmem:[#allocation3 + $0x1e4] ss:$16 sps:$4 sm:$0xff]   ;;  %v6947_v35 = vld [vmem:[#allocation3 + $0x8] ss:$16 sps:$4 sm:$0xff]  }
 0x1f8   :  { %1401 = vmatpush1.bf16.msra.mxu0 %v5360_v43  ;;  %1442 = vmatpush1.bf16.msra.mxu1 %v6888_v50  ;;  %v6935_v43 = vld [vmem:[#allocation3 + $0x28] ss:$16 sps:$4 sm:$0xff]   ;;  %v6944_v18 = vld [vmem:[#allocation3 + $0x1c4] ss:$16 sps:$4 sm:$0xff]   ;;  %v6950_v30 = vld [vmem:[#allocation3 + $0x1ec] ss:$16 sps:$4 sm:$0xff]  }
 0x1f9   :  { %1402 = vmatprep.subr.bf16.mxu0 %v5361_v44  ;;  %1443 = vmatprep.subr.bf16.mxu1 %v6891_v51  ;;  %v6938_v44 = vld [vmem:[#allocation3 + $0xc] ss:$16 sps:$4 sm:$0xff]   ;;  %v6953_v28 = vld [vmem:[#allocation3 + $0x1c0] ss:$16 sps:$4 sm:$0xff]   ;;  %v6955_v29 = vld [vmem:[#allocation3 + $0x1a4] ss:$16 sps:$4 sm:$0xff]  }
 0x1fa   :  { %v6959_v27 = vld [vmem:[#allocation3 + $0x1e8] ss:$16 sps:$4 sm:$0xff]   ;;  %v6962_v26 = vld [vmem:[#allocation3 + $0x1cc] ss:$16 sps:$4 sm:$0xff]   ;;  %v6965_v24 = vld [vmem:[#allocation3 + $0x1a0] ss:$16 sps:$4 sm:$0xff]  }
 0x1fb   :  { %v6967_v25 = vld [vmem:[#allocation3 + $0x184] ss:$16 sps:$4 sm:$0xff]   ;;  %v6971_v23 = vld [vmem:[#allocation3 + $0x1c8] ss:$16 sps:$4 sm:$0xff]   ;;  %v6974_v22 = vld [vmem:[#allocation3 + $0x1ac] ss:$16 sps:$4 sm:$0xff]  }
 0x1fc   :  { %1403 = vmatpush1.bf16.msra.mxu0 %v6883_v47  ;;  %1444 = vmatpush1.bf16.msra.mxu1 %v6899_v59  ;;  %v6977_v20 = vld [vmem:[#allocation3 + $0x180] ss:$16 sps:$4 sm:$0xff]   ;;  %v6980_v21 = vld [vmem:[#allocation3 + $0x164] ss:$16 sps:$4 sm:$0xff]   ;;  %v6983_v19 = vld [vmem:[#allocation3 + $0x1a8] ss:$16 sps:$4 sm:$0xff]  }
 0x1fd   :  { %1404 = vmatprep.subr.bf16.mxu0 %v5367_v48  ;;  %1445 = vmatprep.subr.bf16.mxu1 %v6902_v31  ;;  %v6941_v48 = vld [vmem:[#allocation3 + $0x1e0] ss:$16 sps:$4 sm:$0xff]   ;;  %v6986_v17 = vld [vmem:[#allocation3 + $0x18c] ss:$16 sps:$4 sm:$0xff]   ;;  %v6991_v16 = vld [vmem:[#allocation3 + $0x144] ss:$16 sps:$4 sm:$0xff]  }
 0x1fe   :  { %v6988_v15 = vld [vmem:[#allocation3 + $0x160] ss:$16 sps:$4 sm:$0xff]   ;;  %10032 = vst [vmem:[#allocation62_spill] sm:$0xff] %v6991_v16  ;;  %v6993_v14 = vld [vmem:[#allocation3 + $0x188] ss:$16 sps:$4 sm:$0xff]  }
 0x1ff   :  { %v6995_v13 = vld [vmem:[#allocation3 + $0x16c] ss:$16 sps:$4 sm:$0xff]   ;;  %v6999_v11 = vld [vmem:[#allocation3 + $0x140] ss:$16 sps:$4 sm:$0xff]   ;;  %v7002_v12 = vld [vmem:[#allocation3 + $0x124] ss:$16 sps:$4 sm:$0xff]  }
 0x200   :  { %1405 = vmatpush1.bf16.msra.mxu0 %v6894_v52  ;;  %1446 = vmatpush1.bf16.msra.mxu1 %v6911_v60  ;;  %10033 = vst [vmem:[#allocation63_spill] sm:$0xff] %v6999_v11  ;;  %10034 = vst [vmem:[#allocation64_spill] sm:$0xff] %v7002_v12  ;;  %v7004_v10 = vld [vmem:[#allocation3 + $0x168] ss:$16 sps:$4 sm:$0xff]   ;;  %v7007_v9 = vld [vmem:[#allocation3 + $0x14c] ss:$16 sps:$4 sm:$0xff]  }
 0x201   :  { %1406 = vmatprep.subr.bf16.mxu0 %v6896_v53  ;;  %1447 = vmatprep.subr.bf16.mxu1 %v6914_v36  ;;  %10035 = vst [vmem:[#allocation65_spill] sm:$0xff] %v7007_v9  ;;  %v7011_v7 = vld [vmem:[#allocation3 + $0x120] ss:$16 sps:$4 sm:$0xff]   ;;  %v7014_v8 = vld [vmem:[#allocation3 + $0x104] ss:$16 sps:$4 sm:$0xff]  }
 0x202   :  { %10036 = vst [vmem:[#allocation66_spill] sm:$0xff] %v7011_v7  ;;  %10037 = vst [vmem:[#allocation67_spill] sm:$0xff] %v7014_v8  ;;  %v7016_v6 = vld [vmem:[#allocation3 + $0x148] ss:$16 sps:$4 sm:$0xff]   ;;  %v7019_v34 = vld [vmem:[#allocation3 + $0x12c] ss:$16 sps:$4 sm:$0xff]  }
 0x203   :  { %10038 = vst [vmem:[#allocation68_spill] sm:$0xff] %v7016_v6  ;;  %10039 = vst [vmem:[#allocation69_spill] sm:$0xff] %v7019_v34  ;;  %v7023_v5 = vld [vmem:[#allocation3 + $0x100] ss:$16 sps:$4 sm:$0xff]   ;;  %v7026_v0 = vld [vmem:[#allocation3 + $0x128] ss:$16 sps:$4 sm:$0xff]  }
 0x204   :  { %1407 = vmatpush1.bf16.msra.mxu0 %v6905_v33  ;;  %1448 = vmatpush1.bf16.msra.mxu1 %v6923_v39  ;;  %10040 = vst [vmem:[#allocation70_spill] sm:$0xff] %v7023_v5  ;;  %10041 = vst [vmem:[#allocation71_spill] sm:$0xff] %v7026_v0  ;;  %v7028_v2 = vld [vmem:[#allocation3 + $0x2e4] ss:$16 sps:$4 sm:$0xff]   ;;  %v7031_v63 = vld [vmem:[#allocation3 + $0x10c] ss:$16 sps:$4 sm:$0xff]  }
 0x205   :  { %1408 = vmatprep.subr.bf16.mxu0 %v6907_v58  ;;  %1449 = vmatprep.subr.bf16.mxu1 %v6926_v40  ;;  %10042 = vst [vmem:[#allocation72_spill] sm:$0xff] %v7028_v2  ;;  %10043 = vst [vmem:[#allocation73_spill] sm:$0xff] %v7031_v63  ;;  %v7036_v4 = vld [vmem:[#allocation3 + $0x2e0] ss:$16 sps:$4 sm:$0xff]   ;;  %v7042_v61 = vld [vmem:[#allocation3 + $0x108] ss:$16 sps:$4 sm:$0xff]  }
 0x206   :  { %10044 = vst [vmem:[#allocation74_spill] sm:$0xff] %v7036_v4  ;;  %10045 = vst [vmem:[#allocation75_spill] sm:$0xff] %v7042_v61  ;;  %v7044_v62 = vld [vmem:[#allocation3 + $0x2c4] ss:$16 sps:$4 sm:$0xff]   ;;  %v7055_v32 = vld [vmem:[#allocation3 + $0x2e8] ss:$16 sps:$4 sm:$0xff]  }
 0x207   :  { %10046 = vst [vmem:[#allocation76_spill] sm:$0xff] %v7044_v62  ;;  %10049 = vst [vmem:[#allocation79_spill] sm:$0xff] %v7055_v32 }
 0x208   :  { %1409 = vmatpush1.bf16.msra.mxu0 %v6917_v37  ;;  %1450 = vmatpush1.bf16.msra.mxu1 %v6935_v43 }
 0x209   :  { %1410 = vmatprep.subr.bf16.mxu0 %v6920_v38  ;;  %1451 = vmatprep.subr.bf16.mxu1 %v6938_v44 }
 0x20c   :  { %1411 = vmatpush1.bf16.msra.mxu0 %v6929_v41  ;;  %1452 = vmatpush1.bf16.msra.mxu1 %v6947_v35 }
 0x20d   :  { %1412 = vmatprep.subr.bf16.mxu0 %v6931_v42  ;;  %1453 = vmatprep.subr.bf16.mxu1 %v6950_v30 }
 0x210   :  { %1413 = vmatpush2.bf16.msra.mxu0 %v6941_v48  ;;  %1454 = vmatpush2.bf16.msra.mxu1 %v6959_v27 }
 0x211   :  { %1414 = vmatprep.subr.bf16.mxu0 %v6944_v18  ;;  %1455 = vmatprep.subr.bf16.mxu1 %v6962_v26 }
 0x214   :  { %1415 = vmatpush2.bf16.msra.mxu0 %v6953_v28  ;;  %1456 = vmatpush2.bf16.msra.mxu1 %v6971_v23 }
 0x215   :  { %1416 = vmatprep.subr.bf16.mxu0 %v6955_v29  ;;  %1457 = vmatprep.subr.bf16.mxu1 %v6974_v22 }
 0x218   :  { %1417 = vmatpush2.bf16.msra.mxu0 %v6965_v24  ;;  %1458 = vmatpush2.bf16.msra.mxu1 %v6983_v19 }
 0x219   :  { %1418 = vmatprep.subr.bf16.mxu0 %v6967_v25  ;;  %1459 = vmatprep.subr.bf16.mxu1 %v6986_v17 }
 0x21c   :  { %1419 = vmatpush2.bf16.msra.mxu0 %v6977_v20  ;;  %1460 = vmatpush2.bf16.msra.mxu1 %v6993_v14 }
 0x21d   :  { %1420 = vmatprep.subr.bf16.mxu0 %v6980_v21  ;;  %1461 = vmatprep.subr.bf16.mxu1 %v6995_v13 }
 0x220   :  { %1421 = vmatpush2.bf16.msra.mxu0 %v6988_v15  ;;  %1462 = vmatpush2.bf16.msra.mxu1 %v7004_v10 }
 0x221   :  { %1422 = vmatprep.subr.bf16.mxu0 %v6991_v16  ;;  %1463 = vmatprep.subr.bf16.mxu1 %v7007_v9 }
 0x224   :  { %1423 = vmatpush2.bf16.msra.mxu0 %v6999_v11  ;;  %1464 = vmatpush2.bf16.msra.mxu1 %v7016_v6 }
 0x225   :  { %1424 = vmatprep.subr.bf16.mxu0 %v7002_v12  ;;  %1465 = vmatprep.subr.bf16.mxu1 %v7019_v34  ;;  %v7058_v34 = vld [vmem:[#allocation3 + $0x2cc] ss:$16 sps:$4 sm:$0xff]   ;;  %v10051_v12 = vmov 0.0|0.0  }
 0x226   :  { %10050 = vst [vmem:[#allocation80_spill] sm:$0xff] %v7058_v34 }
 0x228   :  { %1425 = vmatpush2.bf16.msra.mxu0 %v7011_v7  ;;  %v7047_v7 = vld [vmem:[#allocation3 + $0x2ec] ss:$16 sps:$4 sm:$0xff]   ;;  %1466 = vmatpush2.bf16.msra.mxu1 %v7026_v0 }
 0x229   :  { %1426 = vmatprep.subr.bf16.mxu0 %v7014_v8  ;;  %10047 = vst [vmem:[#allocation77_spill] sm:$0xff] %v7047_v7  ;;  %1467 = vmatprep.subr.bf16.mxu1 %v7031_v63  ;;  %v7052_v8 = vld [vmem:[#allocation3 + $0x2c0] ss:$16 sps:$4 sm:$0xff]  }
 0x22a   :  { %10048 = vst [vmem:[#allocation78_spill] sm:$0xff] %v7052_v8 }
 0x22c   :  { %1427 = vmatpush2.bf16.msra.mxu0 %v7023_v5  ;;  %1468 = vmatpush2.bf16.msra.mxu1 %v7042_v61  ;;  %v7074_v61 = vld [vmem:[#allocation3 + $0x2ac] ss:$16 sps:$4 sm:$0xff]  }
 0x22d   :  { %1888 = vmatprep.subr.bf16.mxu0 %v7028_v2  ;;  %1929 = vmatprep.subr.bf16.mxu1 %v7047_v7  ;;  %v7064_v2 = vld [vmem:[#allocation3 + $0x2c8] ss:$16 sps:$4 sm:$0xff]   ;;  %10054 = vst [vmem:[#allocation83_spill] sm:$0xff] %v7074_v61  ;;  %v7216_v5 = vld [vmem:[#allocation3 + $0x32c] ss:$16 sps:$4 sm:$0xff]  }
 0x22e   :  { %10052 = vst [vmem:[#allocation81_spill] sm:$0xff] %v7064_v2  ;;  %v7078_v7 = vld [vmem:[#allocation3 + $0x2a8] ss:$16 sps:$4 sm:$0xff]   ;;  %10102 = vst [vmem:[#allocation131_spill] sm:$0xff] %v7216_v5 }
 0x22f   :  { %1429 = vmatmul.mubr.bf16.vlgmr.msra.gmra.mxu0 %v7040_v1  ;;  %1470 = vmatmul.mubr.bf16.vlgmr.msra.gmra.mxu1 %v7040_v1  ;;  %10056 = vst [vmem:[#allocation85_spill] sm:$0xff] %v7078_v7 }
 0x230   :  { %1889 = vmatpush1.bf16.msra.mxu0 %v7036_v4  ;;  %1920 = vmatprep.mubr.bf16.mxu0 %v10051_v12  ;;  %v7072_v4 = vld [vmem:[#allocation3 + $0x2a4] ss:$16 sps:$4 sm:$0xff]  }
 0x231   :  { %1890 = vmatprep.subr.bf16.mxu0 %v7044_v62  ;;  %1930 = vmatpush1.bf16.msra.mxu1 %v7055_v32  ;;  %10053 = vst [vmem:[#allocation82_spill] sm:$0xff] %v7072_v4  ;;  %v7076_v62 = vld [vmem:[#allocation3 + $0x2a0] ss:$16 sps:$4 sm:$0xff]   ;;  %v7200_v32 = vld [vmem:[#allocation3 + $0x344] ss:$16 sps:$4 sm:$0xff]  }
 0x232   :  { %1961 = vmatprep.mubr.bf16.mxu1 %v10051_v12  ;;  %1931 = vmatprep.subr.bf16.mxu1 %v7058_v34  ;;  %10055 = vst [vmem:[#allocation84_spill] sm:$0xff] %v7076_v62  ;;  %v7084_v12 = vld [vmem:[#allocation3 + $0x284] ss:$16 sps:$4 sm:$0xff]   ;;  %v7090_v34 = vld [vmem:[#allocation3 + $0x288] ss:$16 sps:$4 sm:$0xff]   ;;  %10097 = vst [vmem:[#allocation126_spill] sm:$0xff] %v7200_v32 }
 0x233   :  { %10057 = vst [vmem:[#allocation86_spill] sm:$0xff] %v7084_v12  ;;  %10060 = vst [vmem:[#allocation89_spill] sm:$0xff] %v7090_v34 }
 0x234   :  { %1891 = vmatpush1.bf16.msra.mxu0 %v7052_v8  ;;  %v7086_v8 = vld [vmem:[#allocation3 + $0x28c] ss:$16 sps:$4 sm:$0xff]  }
 0x235   :  { %1932 = vmatpush1.bf16.msra.mxu1 %v7064_v2  ;;  %1892 = vmatprep.subr.bf16.mxu0 %v7072_v4  ;;  %10058 = vst [vmem:[#allocation87_spill] sm:$0xff] %v7086_v8  ;;  %v7088_v2 = vld [vmem:[#allocation3 + $0x280] ss:$16 sps:$4 sm:$0xff]   ;;  %v7102_v4 = vld [vmem:[#allocation3 + $0x268] ss:$16 sps:$4 sm:$0xff]  }
 0x236   :  { %1933 = vmatprep.subr.bf16.mxu1 %v7074_v61  ;;  %10059 = vst [vmem:[#allocation88_spill] sm:$0xff] %v7088_v2  ;;  %v7096_v61 = vld [vmem:[#allocation3 + $0x264] ss:$16 sps:$4 sm:$0xff]   ;;  %10064 = vst [vmem:[#allocation93_spill] sm:$0xff] %v7102_v4 }
 0x237   :  { %10061 = vst [vmem:[#allocation90_spill] sm:$0xff] %v7096_v61 }
 0x238   :  { %1893 = vmatpush1.bf16.msra.mxu0 %v7076_v62  ;;  %v7098_v62 = vld [vmem:[#allocation3 + $0x26c] ss:$16 sps:$4 sm:$0xff]  }
 0x239   :  { %1934 = vmatpush1.bf16.msra.mxu1 %v7078_v7  ;;  %1894 = vmatprep.subr.bf16.mxu0 %v7084_v12  ;;  %10062 = vst [vmem:[#allocation91_spill] sm:$0xff] %v7098_v62  ;;  %v7100_v7 = vld [vmem:[#allocation3 + $0x260] ss:$16 sps:$4 sm:$0xff]   ;;  %v7114_v12 = vld [vmem:[#allocation3 + $0x248] ss:$16 sps:$4 sm:$0xff]  }
 0x23a   :  { %1935 = vmatprep.subr.bf16.mxu1 %v7086_v8  ;;  %10063 = vst [vmem:[#allocation92_spill] sm:$0xff] %v7100_v7  ;;  %v7108_v8 = vld [vmem:[#allocation3 + $0x244] ss:$16 sps:$4 sm:$0xff]   ;;  %10068 = vst [vmem:[#allocation97_spill] sm:$0xff] %v7114_v12 }
 0x23b   :  { %10065 = vst [vmem:[#allocation94_spill] sm:$0xff] %v7108_v8 }
 0x23c   :  { %1895 = vmatpush1.bf16.msra.mxu0 %v7088_v2  ;;  %v7110_v2 = vld [vmem:[#allocation3 + $0x24c] ss:$16 sps:$4 sm:$0xff]  }
 0x23d   :  { %1936 = vmatpush1.bf16.msra.mxu1 %v7090_v34  ;;  %1896 = vmatprep.subr.bf16.mxu0 %v7096_v61  ;;  %10066 = vst [vmem:[#allocation95_spill] sm:$0xff] %v7110_v2  ;;  %v7112_v34 = vld [vmem:[#allocation3 + $0x240] ss:$16 sps:$4 sm:$0xff]   ;;  %v7126_v61 = vld [vmem:[#allocation3 + $0x228] ss:$16 sps:$4 sm:$0xff]  }
 0x23e   :  { %1937 = vmatprep.subr.bf16.mxu1 %v7098_v62  ;;  %10067 = vst [vmem:[#allocation96_spill] sm:$0xff] %v7112_v34  ;;  %v7120_v62 = vld [vmem:[#allocation3 + $0x224] ss:$16 sps:$4 sm:$0xff]   ;;  %10072 = vst [vmem:[#allocation101_spill] sm:$0xff] %v7126_v61 }
 0x23f   :  { %10069 = vst [vmem:[#allocation98_spill] sm:$0xff] %v7120_v62 }
 0x240   :  { %1897 = vmatpush1.bf16.msra.mxu0 %v7100_v7  ;;  %v7122_v7 = vld [vmem:[#allocation3 + $0x22c] ss:$16 sps:$4 sm:$0xff]  }
 0x241   :  { %1938 = vmatpush1.bf16.msra.mxu1 %v7102_v4  ;;  %1898 = vmatprep.subr.bf16.mxu0 %v7108_v8  ;;  %10070 = vst [vmem:[#allocation99_spill] sm:$0xff] %v7122_v7  ;;  %v7124_v4 = vld [vmem:[#allocation3 + $0x220] ss:$16 sps:$4 sm:$0xff]   ;;  %v7138_v8 = vld [vmem:[#allocation3 + $0x208] ss:$16 sps:$4 sm:$0xff]  }
 0x242   :  { %1939 = vmatprep.subr.bf16.mxu1 %v7110_v2  ;;  %10071 = vst [vmem:[#allocation100_spill] sm:$0xff] %v7124_v4  ;;  %v7132_v2 = vld [vmem:[#allocation3 + $0x204] ss:$16 sps:$4 sm:$0xff]   ;;  %10076 = vst [vmem:[#allocation105_spill] sm:$0xff] %v7138_v8 }
 0x243   :  { %10073 = vst [vmem:[#allocation102_spill] sm:$0xff] %v7132_v2 }
 0x244   :  { %1899 = vmatpush1.bf16.msra.mxu0 %v7112_v34  ;;  %v7134_v34 = vld [vmem:[#allocation3 + $0x20c] ss:$16 sps:$4 sm:$0xff]  }
 0x245   :  { %1940 = vmatpush1.bf16.msra.mxu1 %v7114_v12  ;;  %1900 = vmatprep.subr.bf16.mxu0 %v7120_v62  ;;  %10074 = vst [vmem:[#allocation103_spill] sm:$0xff] %v7134_v34  ;;  %v7136_v12 = vld [vmem:[#allocation3 + $0x200] ss:$16 sps:$4 sm:$0xff]   ;;  %v7150_v62 = vld [vmem:[#allocation3 + $0x3e8] ss:$16 sps:$4 sm:$0xff]  }
 0x246   :  { %1941 = vmatprep.subr.bf16.mxu1 %v7122_v7  ;;  %10075 = vst [vmem:[#allocation104_spill] sm:$0xff] %v7136_v12  ;;  %v7144_v7 = vld [vmem:[#allocation3 + $0x3e4] ss:$16 sps:$4 sm:$0xff]   ;;  %10080 = vst [vmem:[#allocation109_spill] sm:$0xff] %v7150_v62 }
 0x247   :  { %10077 = vst [vmem:[#allocation106_spill] sm:$0xff] %v7144_v7 }
 0x248   :  { %1901 = vmatpush1.bf16.msra.mxu0 %v7124_v4  ;;  %v7146_v4 = vld [vmem:[#allocation3 + $0x3ec] ss:$16 sps:$4 sm:$0xff]  }
 0x249   :  { %1942 = vmatpush1.bf16.msra.mxu1 %v7126_v61  ;;  %1902 = vmatprep.subr.bf16.mxu0 %v7132_v2  ;;  %10078 = vst [vmem:[#allocation107_spill] sm:$0xff] %v7146_v4  ;;  %v7148_v61 = vld [vmem:[#allocation3 + $0x3e0] ss:$16 sps:$4 sm:$0xff]   ;;  %v7162_v2 = vld [vmem:[#allocation3 + $0x3c8] ss:$16 sps:$4 sm:$0xff]  }
 0x24a   :  { %1943 = vmatprep.subr.bf16.mxu1 %v7134_v34  ;;  %10079 = vst [vmem:[#allocation108_spill] sm:$0xff] %v7148_v61  ;;  %v7156_v34 = vld [vmem:[#allocation3 + $0x3c4] ss:$16 sps:$4 sm:$0xff]   ;;  %10084 = vst [vmem:[#allocation113_spill] sm:$0xff] %v7162_v2 }
 0x24b   :  { %10081 = vst [vmem:[#allocation110_spill] sm:$0xff] %v7156_v34 }
 0x24c   :  { %1903 = vmatpush1.bf16.msra.mxu0 %v7136_v12  ;;  %v7158_v12 = vld [vmem:[#allocation3 + $0x3cc] ss:$16 sps:$4 sm:$0xff]  }
 0x24d   :  { %1944 = vmatpush1.bf16.msra.mxu1 %v7138_v8  ;;  %1904 = vmatprep.subr.bf16.mxu0 %v7144_v7  ;;  %10082 = vst [vmem:[#allocation111_spill] sm:$0xff] %v7158_v12  ;;  %v7160_v8 = vld [vmem:[#allocation3 + $0x3c0] ss:$16 sps:$4 sm:$0xff]   ;;  %v7174_v7 = vld [vmem:[#allocation3 + $0x3a8] ss:$16 sps:$4 sm:$0xff]  }
 0x24e   :  { %1945 = vmatprep.subr.bf16.mxu1 %v7146_v4  ;;  %10083 = vst [vmem:[#allocation112_spill] sm:$0xff] %v7160_v8  ;;  %v7168_v4 = vld [vmem:[#allocation3 + $0x3a4] ss:$16 sps:$4 sm:$0xff]   ;;  %10088 = vst [vmem:[#allocation117_spill] sm:$0xff] %v7174_v7 }
 0x24f   :  { %10085 = vst [vmem:[#allocation114_spill] sm:$0xff] %v7168_v4 }
 0x250   :  { %1905 = vmatpush2.bf16.msra.mxu0 %v7148_v61  ;;  %v7170_v61 = vld [vmem:[#allocation3 + $0x3ac] ss:$16 sps:$4 sm:$0xff]  }
 0x251   :  { %1946 = vmatpush2.bf16.msra.mxu1 %v7150_v62  ;;  %1906 = vmatprep.subr.bf16.mxu0 %v7156_v34  ;;  %10086 = vst [vmem:[#allocation115_spill] sm:$0xff] %v7170_v61  ;;  %v7172_v62 = vld [vmem:[#allocation3 + $0x3a0] ss:$16 sps:$4 sm:$0xff]   ;;  %v7186_v34 = vld [vmem:[#allocation3 + $0x388] ss:$16 sps:$4 sm:$0xff]  }
 0x252   :  { %1947 = vmatprep.subr.bf16.mxu1 %v7158_v12  ;;  %10087 = vst [vmem:[#allocation116_spill] sm:$0xff] %v7172_v62  ;;  %v7180_v12 = vld [vmem:[#allocation3 + $0x384] ss:$16 sps:$4 sm:$0xff]   ;;  %10092 = vst [vmem:[#allocation121_spill] sm:$0xff] %v7186_v34 }
 0x253   :  { %10089 = vst [vmem:[#allocation118_spill] sm:$0xff] %v7180_v12 }
 0x254   :  { %1907 = vmatpush2.bf16.msra.mxu0 %v7160_v8  ;;  %v7182_v8 = vld [vmem:[#allocation3 + $0x38c] ss:$16 sps:$4 sm:$0xff]  }
 0x255   :  { %1948 = vmatpush2.bf16.msra.mxu1 %v7162_v2  ;;  %1908 = vmatprep.subr.bf16.mxu0 %v7168_v4  ;;  %10090 = vst [vmem:[#allocation119_spill] sm:$0xff] %v7182_v8  ;;  %v7184_v2 = vld [vmem:[#allocation3 + $0x380] ss:$16 sps:$4 sm:$0xff]   ;;  %v7198_v4 = vld [vmem:[#allocation3 + $0x368] ss:$16 sps:$4 sm:$0xff]  }
 0x256   :  { %1949 = vmatprep.subr.bf16.mxu1 %v7170_v61  ;;  %10091 = vst [vmem:[#allocation120_spill] sm:$0xff] %v7184_v2  ;;  %v7192_v61 = vld [vmem:[#allocation3 + $0x364] ss:$16 sps:$4 sm:$0xff]   ;;  %10096 = vst [vmem:[#allocation125_spill] sm:$0xff] %v7198_v4 }
 0x257   :  { %10093 = vst [vmem:[#allocation122_spill] sm:$0xff] %v7192_v61 }
 0x258   :  { %1909 = vmatpush2.bf16.msra.mxu0 %v7172_v62  ;;  %v7194_v62 = vld [vmem:[#allocation3 + $0x36c] ss:$16 sps:$4 sm:$0xff]  }
 0x259   :  { %1950 = vmatpush2.bf16.msra.mxu1 %v7174_v7  ;;  %1910 = vmatprep.subr.bf16.mxu0 %v7180_v12  ;;  %10094 = vst [vmem:[#allocation123_spill] sm:$0xff] %v7194_v62  ;;  %v7196_v7 = vld [vmem:[#allocation3 + $0x360] ss:$16 sps:$4 sm:$0xff]   ;;  %v7204_v12 = vld [vmem:[#allocation3 + $0x34c] ss:$16 sps:$4 sm:$0xff]  }
 0x25a   :  { %1951 = vmatprep.subr.bf16.mxu1 %v7182_v8  ;;  %10095 = vst [vmem:[#allocation124_spill] sm:$0xff] %v7196_v7  ;;  %10098 = vst [vmem:[#allocation127_spill] sm:$0xff] %v7204_v12  ;;  %v7214_v8 = vld [vmem:[#allocation3 + $0x324] ss:$16 sps:$4 sm:$0xff]  }
 0x25b   :  { %10101 = vst [vmem:[#allocation130_spill] sm:$0xff] %v7214_v8 }
 0x25c   :  { %1911 = vmatpush2.bf16.msra.mxu0 %v7184_v2  ;;  %v7210_v2 = vld [vmem:[#allocation3 + $0x348] ss:$16 sps:$4 sm:$0xff]  }
 0x25d   :  { %1952 = vmatpush2.bf16.msra.mxu1 %v7186_v34  ;;  %1912 = vmatprep.subr.bf16.mxu0 %v7192_v61  ;;  %v7208_v34 = vld [vmem:[#allocation3 + $0x340] ss:$16 sps:$4 sm:$0xff]   ;;  %10100 = vst [vmem:[#allocation129_spill] sm:$0xff] %v7210_v2 }
 0x25e   :  { %1953 = vmatprep.subr.bf16.mxu1 %v7194_v62  ;;  %10099 = vst [vmem:[#allocation128_spill] sm:$0xff] %v7208_v34  ;;  %v7220_v62 = vld [vmem:[#allocation3 + $0x320] ss:$16 sps:$4 sm:$0xff]  }
 0x25f   :  { %10103 = vst [vmem:[#allocation132_spill] sm:$0xff] %v7220_v62 }
 0x260   :  { %1913 = vmatpush2.bf16.msra.mxu0 %v7196_v7  ;;  %v7222_v7 = vld [vmem:[#allocation3 + $0x328] ss:$16 sps:$4 sm:$0xff]  }
 0x261   :  { %1954 = vmatpush2.bf16.msra.mxu1 %v7198_v4  ;;  %1914 = vmatprep.subr.bf16.mxu0 %v7200_v32  ;;  %10104 = vst [vmem:[#allocation133_spill] sm:$0xff] %v7222_v7  ;;  %v7226_v4 = vld [vmem:[#allocation3 + $0x304] ss:$16 sps:$4 sm:$0xff]   ;;  %v7228_v32 = vld [vmem:[#allocation3 + $0x30c] ss:$16 sps:$4 sm:$0xff]  }
 0x262   :  { %1955 = vmatprep.subr.bf16.mxu1 %v7204_v12  ;;  %10105 = vst [vmem:[#allocation134_spill] sm:$0xff] %v7226_v4  ;;  %10106 = vst [vmem:[#allocation135_spill] sm:$0xff] %v7228_v32  ;;  %v7232_v12 = vld [vmem:[#allocation3 + $0x300] ss:$16 sps:$4 sm:$0xff]  }
 0x263   :  { %10107 = vst [vmem:[#allocation136_spill] sm:$0xff] %v7232_v12 }
 0x264   :  { %1915 = vmatpush2.bf16.msra.mxu0 %v7208_v34  ;;  %v7234_v34 = vld [vmem:[#allocation3 + $0x308] ss:$16 sps:$4 sm:$0xff]  }
 0x265   :  { %1956 = vmatpush2.bf16.msra.mxu1 %v7210_v2  ;;  %1916 = vmatprep.subr.bf16.mxu0 %v7214_v8  ;;  %10108 = vst [vmem:[#allocation137_spill] sm:$0xff] %v7234_v34  ;;  %v7238_v2 = vld [vmem:[#allocation9 + $0xe4] ss:$16 sps:$4 sm:$0xff]   ;;  %v7240_v8 = vld [vmem:[#allocation9 + $0xec] ss:$16 sps:$4 sm:$0xff]  }
 0x266   :  { %1957 = vmatprep.subr.bf16.mxu1 %v7216_v5  ;;  %10109 = vst [vmem:[#allocation138_spill] sm:$0xff] %v7238_v2  ;;  %10110 = vst [vmem:[#allocation139_spill] sm:$0xff] %v7240_v8 }
 0x268   :  { %1917 = vmatpush2.bf16.msra.mxu0 %v7220_v62 }
 0x269   :  { %1958 = vmatpush2.bf16.msra.mxu1 %v7222_v7  ;;  %1918 = vmatprep.subr.bf16.mxu0 %v7226_v4  ;;  %v10111_v7 = vmov 0  }
 0x26a   :  { %1959 = vmatprep.subr.bf16.mxu1 %v7228_v32  ;;  %v1995_v62 = vsel %vm1994_vm12, 1, %v10111_v7 }
 0x26b   :  { %1997 = vperm.xlu0 %5350, %v1995_v62  }
 0x26c   :  { %1919 = vmatpush2.bf16.msra.mxu0 %v7232_v12 }
 0x26d   :  { %1960 = vmatpush2.bf16.msra.mxu1 %v7234_v34  ;;  %2197 = vmatprep.subr.bf16.mxu0 %v7238_v2 }
 0x26e   :  { %2238 = vmatprep.subr.bf16.mxu1 %v7240_v8 }
 0x2ef   :  { %v1430_v4 = vpop.f32.mrf.mxu0  ;;  %v1471_v34 = vpop.f32.mrf.mxu1 }
 0x2f0   :  { %v1431_v32 = vadd.f32 %v1430_v4, %v6763_v54  ;;  %v1472_v3 = vadd.f32 %v1471_v34, %v6767_v56 }
 0x2f1   :  { %v1432_v5 = vpop.f32.mrf.mxu0  ;;  %v1473_v2 = vpop.f32.mrf.mxu1 }
 0x2f2   :  { %v4977_v61 = vmul.f32 -1.442695, %v1431_v32  ;;  %v1433_v63 = vadd.f32 %v1432_v5, %v6765_v55  ;;  %v4979_v9 = vmul.f32 -1.442695, %v1472_v3  ;;  %v1474_v62 = vadd.f32 %v1473_v2, %v6769_v57 }
 0x2f3   :  { %v1434_v0 = vpop.f32.mrf.mxu0  ;;  %v1475_v8 = vpop.f32.mrf.mxu1 }
 0x2f4   :  { %5592 = vpow2.f32 %v4977_v61  ;;  %v4978_v12 = vmul.f32 -1.442695, %v1433_v63 }
 0x2f5   :  { %v1435_v6 = vpop.f32.mrf.mxu0  ;;  %v1476_v11 = vpop.f32.mrf.mxu1 }
 0x2f6   :  { %5594 = vpow2.f32 %v4978_v12  ;;  %v7255_v11 = vld [vmem:[#allocation9 + $0xe0] ss:$16 sps:$4 sm:$0xff]  }
 0x2f7   :  { %5596 = vpow2.f32 %v4979_v9 }
 0x2f8   :  { %5598 = vtanh.f32 %v1474_v62 }
 0x301   :  { %v5593_v16 = vpop.eup %5592 }
 0x302   :  { %v1487_v4 = vadd.f32 1.0, %v5593_v16  ;;  %v7257_v16 = vld [vmem:[#allocation9 + $0xe8] ss:$16 sps:$4 sm:$0xff]  }
 0x303   :  { %v5595_v32 = vpop.eup %5594 }
 0x304   :  { %5600 = vrcp.f32 %v1487_v4  ;;  %v1488_v0 = vadd.f32 1.0, %v5595_v32  ;;  %v5597_v61 = vpop.eup %5596  ;;  %v7261_v4 = vld [vmem:[#allocation9 + $0xc4] ss:$16 sps:$4 sm:$0xff]   ;;  %v7263_v32 = vld [vmem:[#allocation9 + $0xcc] ss:$16 sps:$4 sm:$0xff]  }
 0x305   :  { %v5599_v63 = vpop.eup %5598  ;;  %v1489_v12 = vadd.f32 1.0, %v5597_v61  ;;  %v7275_v61 = vld [vmem:[#allocation9 + $0xa4] ss:$16 sps:$4 sm:$0xff]  }
 0x306   :  { %5602 = vrcp.f32 %v1488_v0  ;;  %v7271_v0 = vld [vmem:[#allocation9 + $0xc8] ss:$16 sps:$4 sm:$0xff]   ;;  %10112 = vst [vmem:[#allocation140_spill] sm:$0xff] %v7275_v61 }
 0x307   :  { %5604 = vrcp.f32 %v1489_v12  ;;  %v7289_v12 = vld [vmem:[#allocation9 + $0x84] ss:$16 sps:$4 sm:$0xff]  }
 0x308   :  { %10116 = vst [vmem:[#allocation144_spill] sm:$0xff] %v7289_v12 }
 0x311   :  { %v5601_v5 = vpop.eup %5600 }
 0x312   :  { %v1498_v55 = vmul.f32 %v5601_v5, %v5599_v63  ;;  %v7277_v63 = vld [vmem:[#allocation9 + $0xac] ss:$16 sps:$4 sm:$0xff]   ;;  %v7283_v5 = vld [vmem:[#allocation9 + $0xa0] ss:$16 sps:$4 sm:$0xff]  }
 0x313   :  { %v5603_v6 = vpop.eup %5602  ;;  %10113 = vst [vmem:[#allocation141_spill] sm:$0xff] %v7277_v63  ;;  %10114 = vst [vmem:[#allocation142_spill] sm:$0xff] %v7283_v5 }
 0x314   :  { %v1497_v8 = vmul.f32 0.0, %v5603_v6  ;;  %v5605_v3 = vpop.eup %5604  ;;  %v7285_v6 = vld [vmem:[#allocation9 + $0xa8] ss:$16 sps:$4 sm:$0xff]  }
 0x315   :  { %10115 = vst [vmem:[#allocation143_spill] sm:$0xff] %v7285_v6 }
 0x316   :  { %v7252_v34 = vadd.f32 %v1498_v55, %v1497_v8  ;;  %v7269_v55 = vld [vmem:[#allocation9 + $0xc0] ss:$16 sps:$4 sm:$0xff]   ;;  %v7291_v8 = vld [vmem:[#allocation9 + $0x8c] ss:$16 sps:$4 sm:$0xff]  }
 0x317   :  { %10117 = vst [vmem:[#allocation145_spill] sm:$0xff] %v7291_v8 }
 0x318   :  { %5606 = vtanh.f32 %v7252_v34 }
 0x325   :  { %v5607_v2 = vpop.eup %5606 }
 0x326   :  { %v1501_v9 = vmul.f32 %v5607_v2, %v5605_v3  ;;  %v7295_v3 = vld [vmem:[#allocation9 + $0x80] ss:$16 sps:$4 sm:$0xff]   ;;  %v7297_v2 = vld [vmem:[#allocation9 + $0x88] ss:$16 sps:$4 sm:$0xff]  }
 0x327   :  { %10118 = vst [vmem:[#allocation146_spill] sm:$0xff] %v7295_v3  ;;  %10119 = vst [vmem:[#allocation147_spill] sm:$0xff] %v7297_v2 }
 0x328   :  { %v7259_v62 = vpack.c.bf16 %v1501_v9, %v1501_v9  ;;  %v7301_v9 = vld [vmem:[#allocation9 + $0x64] ss:$16 sps:$4 sm:$0xff]  }
 0x329   :  { %10120 = vst [vmem:[#allocation148_spill] sm:$0xff] %v7301_v9 }
 0x32a   :  { %1921 = vmatmul.mubr.bf16.vlgmr.msra.gmra.mxu0 %v7259_v62  ;;  %1962 = vmatmul.mubr.bf16.vlgmr.msra.gmra.mxu1 %v7259_v62 }
 0x32b   :  { %2198 = vmatpush1.bf16.msra.mxu0 %v7255_v11  ;;  %2239 = vmatpush1.bf16.msra.mxu1 %v7257_v16 }
 0x32c   :  { %2199 = vmatprep.subr.bf16.mxu0 %v7261_v4  ;;  %2240 = vmatprep.subr.bf16.mxu1 %v7263_v32 }
 0x32d   :  { %2229 = vmatprep.mubr.bf16.mxu0 %v10111_v7  ;;  %2270 = vmatprep.mubr.bf16.mxu1 %v10111_v7 }
 0x32f   :  { %2200 = vmatpush1.bf16.msra.mxu0 %v7269_v55  ;;  %2241 = vmatpush1.bf16.msra.mxu1 %v7271_v0 }
 0x330   :  { %2201 = vmatprep.subr.bf16.mxu0 %v7275_v61  ;;  %2242 = vmatprep.subr.bf16.mxu1 %v7277_v63  ;;  %v7303_v61 = vld [vmem:[#allocation9 + $0x6c] ss:$16 sps:$4 sm:$0xff]   ;;  %v7307_v63 = vld [vmem:[#allocation9 + $0x60] ss:$16 sps:$4 sm:$0xff]  }
 0x331   :  { %10121 = vst [vmem:[#allocation149_spill] sm:$0xff] %v7303_v61  ;;  %10122 = vst [vmem:[#allocation150_spill] sm:$0xff] %v7307_v63 }
 0x333   :  { %2202 = vmatpush1.bf16.msra.mxu0 %v7283_v5  ;;  %2243 = vmatpush1.bf16.msra.mxu1 %v7285_v6  ;;  %v7309_v5 = vld [vmem:[#allocation9 + $0x68] ss:$16 sps:$4 sm:$0xff]   ;;  %v7313_v6 = vld [vmem:[#allocation9 + $0x44] ss:$16 sps:$4 sm:$0xff]  }
 0x334   :  { %2203 = vmatprep.subr.bf16.mxu0 %v7289_v12  ;;  %2244 = vmatprep.subr.bf16.mxu1 %v7291_v8  ;;  %10123 = vst [vmem:[#allocation151_spill] sm:$0xff] %v7309_v5  ;;  %10124 = vst [vmem:[#allocation152_spill] sm:$0xff] %v7313_v6  ;;  %v7315_v12 = vld [vmem:[#allocation9 + $0x4c] ss:$16 sps:$4 sm:$0xff]   ;;  %v7319_v8 = vld [vmem:[#allocation9 + $0x40] ss:$16 sps:$4 sm:$0xff]  }
 0x335   :  { %10125 = vst [vmem:[#allocation153_spill] sm:$0xff] %v7315_v12  ;;  %10126 = vst [vmem:[#allocation154_spill] sm:$0xff] %v7319_v8 }
 0x337   :  { %2204 = vmatpush1.bf16.msra.mxu0 %v7295_v3  ;;  %2245 = vmatpush1.bf16.msra.mxu1 %v7297_v2  ;;  %v7321_v3 = vld [vmem:[#allocation9 + $0x48] ss:$16 sps:$4 sm:$0xff]   ;;  %v7325_v2 = vld [vmem:[#allocation9 + $0x24] ss:$16 sps:$4 sm:$0xff]  }
 0x338   :  { %2205 = vmatprep.subr.bf16.mxu0 %v7301_v9  ;;  %2246 = vmatprep.subr.bf16.mxu1 %v7303_v61  ;;  %10127 = vst [vmem:[#allocation155_spill] sm:$0xff] %v7325_v2  ;;  %v7327_v9 = vld [vmem:[#allocation9 + $0x2c] ss:$16 sps:$4 sm:$0xff]   ;;  %v7331_v61 = vld [vmem:[#allocation9 + $0x20] ss:$16 sps:$4 sm:$0xff]  }
 0x339   :  { %10128 = vst [vmem:[#allocation156_spill] sm:$0xff] %v7327_v9 }
 0x33b   :  { %2206 = vmatpush1.bf16.msra.mxu0 %v7307_v63  ;;  %2247 = vmatpush1.bf16.msra.mxu1 %v7309_v5  ;;  %v7333_v63 = vld [vmem:[#allocation9 + $0x28] ss:$16 sps:$4 sm:$0xff]   ;;  %v7337_v5 = vld [vmem:[#allocation9 + $0x4] ss:$16 sps:$4 sm:$0xff]  }
 0x33c   :  { %2207 = vmatprep.subr.bf16.mxu0 %v7313_v6  ;;  %2248 = vmatprep.subr.bf16.mxu1 %v7315_v12  ;;  %v7339_v6 = vld [vmem:[#allocation9 + $0xc] ss:$16 sps:$4 sm:$0xff]   ;;  %v7343_v12 = vld [vmem:[#allocation9] ss:$16 sps:$4 sm:$0xff]  }
 0x33d   :  { %10129 = vst [vmem:[#allocation157_spill] sm:$0xff] %v7339_v6 }
 0x33f   :  { %2208 = vmatpush1.bf16.msra.mxu0 %v7319_v8  ;;  %2249 = vmatpush1.bf16.msra.mxu1 %v7321_v3  ;;  %v7345_v8 = vld [vmem:[#allocation9 + $0x8] ss:$16 sps:$4 sm:$0xff]  }
 0x340   :  { %2209 = vmatprep.subr.bf16.mxu0 %v7325_v2  ;;  %2250 = vmatprep.subr.bf16.mxu1 %v7327_v9  ;;  %10130 = vst [vmem:[#allocation158_spill] sm:$0xff] %v7345_v8  ;;  %v7351_v9 = vld [vmem:[#allocation3 + $0xe4] ss:$16 sps:$4 sm:$0xff]   ;;  %v7354_v2 = vld [vmem:[#allocation3 + $0xec] ss:$16 sps:$4 sm:$0xff]  }
 0x341   :  { %10131 = vst [vmem:[#allocation159_spill] sm:$0xff] %v7351_v9  ;;  %10132 = vst [vmem:[#allocation160_spill] sm:$0xff] %v7354_v2 }
 0x343   :  { %2210 = vmatpush1.bf16.msra.mxu0 %v7331_v61  ;;  %2251 = vmatpush1.bf16.msra.mxu1 %v7333_v63 }
 0x344   :  { %2211 = vmatprep.subr.bf16.mxu0 %v7337_v5  ;;  %2252 = vmatprep.subr.bf16.mxu1 %v7339_v6  ;;  %v7361_v6 = vld [vmem:[#allocation3 + $0xe0] ss:$16 sps:$4 sm:$0xff]  }
 0x347   :  { %2212 = vmatpush1.bf16.msra.mxu0 %v7343_v12  ;;  %2253 = vmatpush1.bf16.msra.mxu1 %v7345_v8  ;;  %v7364_v8 = vld [vmem:[#allocation3 + $0xe8] ss:$16 sps:$4 sm:$0xff]  }
 0x348   :  { %2308 = vmatprep.subr.bf16.mxu0 %v7351_v9  ;;  %2349 = vmatprep.subr.bf16.mxu1 %v7354_v2  ;;  %v7367_v9 = vld [vmem:[#allocation3 + $0xc4] ss:$16 sps:$4 sm:$0xff]   ;;  %v7371_v2 = vld [vmem:[#allocation3 + $0xc0] ss:$16 sps:$4 sm:$0xff]  }
 0x349   :  { %10133 = vst [vmem:[#allocation161_spill] sm:$0xff] %v7367_v9 }
 0x34a   :  { %2230 = vmatmul.mubr.bf16.vlgmr.msra.gmra.mxu0 %v7040_v1  ;;  %2271 = vmatmul.mubr.bf16.vlgmr.msra.gmra.mxu1 %v7040_v1  ;;  %v7375_v1 = vld [vmem:[#allocation3 + $0xa4] ss:$16 sps:$4 sm:$0xff]  }
 0x34b   :  { %2340 = vmatprep.mubr.bf16.mxu0 %v7259_v62  ;;  %2381 = vmatprep.mubr.bf16.mxu1 %v7259_v62  ;;  %v7379_v62 = vld [vmem:[#allocation3 + $0xa0] ss:$16 sps:$4 sm:$0xff]  }
 0x34c   :  { %2309 = vmatpush1.bf16.msra.mxu0 %v7361_v6  ;;  %2350 = vmatpush1.bf16.msra.mxu1 %v7364_v8 }
 0x34d   :  { %2310 = vmatprep.subr.bf16.mxu0 %v7367_v9  ;;  %2351 = vmatprep.subr.bf16.mxu1 %v6878_v45  ;;  %v7383_v9 = vld [vmem:[#allocation3 + $0x84] ss:$16 sps:$4 sm:$0xff]  }
 0x34e   :  { %v7389_v45 = vld [vmem:[#allocation3 + $0x64] ss:$16 sps:$4 sm:$0xff]  }
 0x350   :  { %2311 = vmatpush1.bf16.msra.mxu0 %v7371_v2  ;;  %2352 = vmatpush1.bf16.msra.mxu1 %v6880_v46 }
 0x351   :  { %2312 = vmatprep.subr.bf16.mxu0 %v7375_v1  ;;  %2353 = vmatprep.subr.bf16.mxu1 %v6885_v49 }
 0x354   :  { %2313 = vmatpush1.bf16.msra.mxu0 %v7379_v62  ;;  %2354 = vmatpush1.bf16.msra.mxu1 %v6888_v50  ;;  %v10148_v50 = vld [vmem:[#allocation29_spill] sm:$0xff] }
 0x355   :  { %2314 = vmatprep.subr.bf16.mxu0 %v7383_v9  ;;  %2355 = vmatprep.subr.bf16.mxu1 %v6891_v51 }
 0x358   :  { %2315 = vmatpush1.bf16.msra.mxu0 %v6883_v47  ;;  %2356 = vmatpush1.bf16.msra.mxu1 %v6899_v59 }
 0x359   :  { %2316 = vmatprep.subr.bf16.mxu0 %v7389_v45  ;;  %2357 = vmatprep.subr.bf16.mxu1 %v6902_v31 }
 0x35c   :  { %2317 = vmatpush1.bf16.msra.mxu0 %v6894_v52  ;;  %2358 = vmatpush1.bf16.msra.mxu1 %v6911_v60  ;;  %v10149_v52 = vld [vmem:[#allocation28_spill] sm:$0xff]  ;;  %v10150_v60 = vld [vmem:[#allocation33_spill] sm:$0xff] }
 0x35d   :  { %2318 = vmatprep.subr.bf16.mxu0 %v6896_v53  ;;  %2359 = vmatprep.subr.bf16.mxu1 %v6914_v36 }
 0x360   :  { %2319 = vmatpush1.bf16.msra.mxu0 %v6905_v33  ;;  %2360 = vmatpush1.bf16.msra.mxu1 %v6923_v39 }
 0x361   :  { %2320 = vmatprep.subr.bf16.mxu0 %v6907_v58  ;;  %2361 = vmatprep.subr.bf16.mxu1 %v6926_v40  ;;  %v10151_v40 = vld [vmem:[#allocation35_spill] sm:$0xff] }
 0x364   :  { %2321 = vmatpush1.bf16.msra.mxu0 %v6917_v37  ;;  %2362 = vmatpush1.bf16.msra.mxu1 %v6935_v43 }
 0x365   :  { %2322 = vmatprep.subr.bf16.mxu0 %v6920_v38  ;;  %2363 = vmatprep.subr.bf16.mxu1 %v6938_v44 }
 0x368   :  { %2323 = vmatpush1.bf16.msra.mxu0 %v6929_v41  ;;  %2364 = vmatpush1.bf16.msra.mxu1 %v6947_v35 }
 0x369   :  { %2324 = vmatprep.subr.bf16.mxu0 %v6931_v42  ;;  %2365 = vmatprep.subr.bf16.mxu1 %v6950_v30 }
 0x36c   :  { %2325 = vmatpush2.bf16.msra.mxu0 %v6941_v48  ;;  %2366 = vmatpush2.bf16.msra.mxu1 %v6959_v27 }
 0x36d   :  { %2326 = vmatprep.subr.bf16.mxu0 %v6944_v18  ;;  %2367 = vmatprep.subr.bf16.mxu1 %v6962_v26  ;;  %v10134_v18 = vld [vmem:[#allocation62_spill] sm:$0xff]  ;;  %v10147_v26 = vld [vmem:[#allocation77_spill] sm:$0xff] }
 0x370   :  { %2327 = vmatpush2.bf16.msra.mxu0 %v6953_v28  ;;  %2368 = vmatpush2.bf16.msra.mxu1 %v6971_v23  ;;  %v10137_v23 = vld [vmem:[#allocation68_spill] sm:$0xff] }
 0x371   :  { %2328 = vmatprep.subr.bf16.mxu0 %v6955_v29  ;;  %2369 = vmatprep.subr.bf16.mxu1 %v6974_v22  ;;  %v10135_v22 = vld [vmem:[#allocation65_spill] sm:$0xff] }
 0x374   :  { %2329 = vmatpush2.bf16.msra.mxu0 %v6965_v24  ;;  %2370 = vmatpush2.bf16.msra.mxu1 %v6983_v19  ;;  %v10136_v19 = vld [vmem:[#allocation63_spill] sm:$0xff] }
 0x375   :  { %2330 = vmatprep.subr.bf16.mxu0 %v6967_v25  ;;  %2371 = vmatprep.subr.bf16.mxu1 %v6986_v17  ;;  %v10138_v17 = vld [vmem:[#allocation64_spill] sm:$0xff]  ;;  %v10145_v24 = vld [vmem:[#allocation75_spill] sm:$0xff] }
 0x376   :  { %v10146_v25 = vld [vmem:[#allocation72_spill] sm:$0xff] }
 0x378   :  { %2331 = vmatpush2.bf16.msra.mxu0 %v6977_v20  ;;  %2372 = vmatpush2.bf16.msra.mxu1 %v6993_v14  ;;  %v10139_v20 = vld [vmem:[#allocation69_spill] sm:$0xff]  ;;  %v10140_v14 = vld [vmem:[#allocation66_spill] sm:$0xff] }
 0x379   :  { %2332 = vmatprep.subr.bf16.mxu0 %v6980_v21  ;;  %2373 = vmatprep.subr.bf16.mxu1 %v6995_v13  ;;  %v10141_v21 = vld [vmem:[#allocation71_spill] sm:$0xff] }
 0x37a   :  { %v10142_v13 = vld [vmem:[#allocation67_spill] sm:$0xff] }
 0x37c   :  { %2333 = vmatpush2.bf16.msra.mxu0 %v6988_v15  ;;  %2374 = vmatpush2.bf16.msra.mxu1 %v7004_v10  ;;  %v10143_v15 = vld [vmem:[#allocation73_spill] sm:$0xff]  ;;  %v10144_v10 = vld [vmem:[#allocation70_spill] sm:$0xff] }
 0x37d   :  { %2334 = vmatprep.subr.bf16.mxu0 %v10134_v18  ;;  %2375 = vmatprep.subr.bf16.mxu1 %v10135_v22 }
 0x380   :  { %2335 = vmatpush2.bf16.msra.mxu0 %v10136_v19  ;;  %2376 = vmatpush2.bf16.msra.mxu1 %v10137_v23  ;;  %v10152_v23 = vld [vmem:[#allocation30_spill] sm:$0xff] }
 0x381   :  { %2336 = vmatprep.subr.bf16.mxu0 %v10138_v17  ;;  %2377 = vmatprep.subr.bf16.mxu1 %v10139_v20 }
 0x384   :  { %2337 = vmatpush2.bf16.msra.mxu0 %v10140_v14  ;;  %2378 = vmatpush2.bf16.msra.mxu1 %v10141_v21  ;;  %v10153_v14 = vld [vmem:[#allocation34_spill] sm:$0xff] }
 0x385   :  { %2338 = vmatprep.subr.bf16.mxu0 %v10142_v13  ;;  %2379 = vmatprep.subr.bf16.mxu1 %v10143_v15 }
 0x388   :  { %2339 = vmatpush2.bf16.msra.mxu0 %v10144_v10  ;;  %2380 = vmatpush2.bf16.msra.mxu1 %v10145_v24  ;;  %v10154_v10 = vld [vmem:[#allocation31_spill] sm:$0xff] }
 0x389   :  { %2416 = vmatprep.subr.bf16.mxu0 %v10146_v25  ;;  %2457 = vmatprep.subr.bf16.mxu1 %v10147_v26  ;;  %v10155_v26 = vld [vmem:[#allocation36_spill] sm:$0xff] }
 0x3ea   :  { %v1922_v27 = vpop.f32.mrf.mxu0  ;;  %v1963_v28 = vpop.f32.mrf.mxu1 }
 0x3eb   :  { %v1923_v53 = vadd.f32 %v1922_v27, %v10149_v52  ;;  %v1964_v17 = vadd.f32 %v1963_v28, %v10152_v23 }
 0x3ec   :  { %v1924_v29 = vpop.f32.mrf.mxu0  ;;  %v1965_v30 = vpop.f32.mrf.mxu1 }
 0x3ed   :  { %v1925_v51 = vadd.f32 %v1924_v29, %v10148_v50  ;;  %v5044_v31 = vmul.f32 -1.442695, %v1923_v53  ;;  %v5046_v15 = vmul.f32 -1.442695, %v1964_v17  ;;  %v1966_v24 = vadd.f32 %v1965_v30, %v10154_v10 }
 0x3ee   :  { %v1926_v35 = vpop.f32.mrf.mxu0  ;;  %v1967_v46 = vpop.f32.mrf.mxu1 }
 0x3ef   :  { %v5045_v59 = vmul.f32 -1.442695, %v1925_v51 }
 0x3f0   :  { %v1927_v47 = vpop.f32.mrf.mxu0  ;;  %v1968_v49 = vpop.f32.mrf.mxu1 }
 0x3f1   :  { %5608 = vpow2.f32 %v5045_v59 }
 0x3f2   :  { %5610 = vpow2.f32 %v5044_v31 }
 0x3fe   :  { %v5609_v22 = vpop.eup %5608 }
 0x3ff   :  { %v5611_v19 = vpop.eup %5610  ;;  %v1980_v20 = vadd.f32 1.0, %v5609_v22 }
 0x400   :  { %v1979_v13 = vadd.f32 1.0, %v5611_v19 }
 0x40a   :  { %v2231_v33 = vpop.f32.mrf.mxu0  ;;  %v2272_v58 = vpop.f32.mrf.mxu1 }
 0x40b   :  { %v2279_v36 = vadd.f32 %v2231_v33, %v10150_v60  ;;  %v2281_v21 = vadd.f32 %v2272_v58, %v10153_v14  ;;  %v10157_v14 = vld [vmem:[#allocation74_spill] sm:$0xff] }
 0x40c   :  { %v2233_v37 = vpop.f32.mrf.mxu0  ;;  %v2274_v38 = vpop.f32.mrf.mxu1 }
 0x40d   :  { %v5079_v39 = vmul.f32 -1.442695, %v2279_v36  ;;  %v2280_v41 = vadd.f32 %v2233_v37, %v10151_v40  ;;  %v5081_v25 = vmul.f32 -1.442695, %v2281_v21  ;;  %v2282_v27 = vadd.f32 %v2274_v38, %v10155_v26  ;;  %v10158_v21 = vld [vmem:[#allocation79_spill] sm:$0xff]  ;;  %v10163_v26 = vld [vmem:[#allocation82_spill] sm:$0xff] }
 0x40e   :  { %v2235_v42 = vpop.f32.mrf.mxu0  ;;  %v2276_v43 = vpop.f32.mrf.mxu1 }
 0x40f   :  { %5612 = vpow2.f32 %v5079_v39  ;;  %v5080_v44 = vmul.f32 -1.442695, %v2280_v41  ;;  %v10156_v39 = vld [vmem:[#allocation61_spill] sm:$0xff] }
 0x410   :  { %v2236_v48 = vpop.f32.mrf.mxu0  ;;  %v2277_v18 = vpop.f32.mrf.mxu1 }
 0x411   :  { %5614 = vpow2.f32 %v5080_v44 }
 0x412   :  { %5616 = vrcp.f32 %v1980_v20 }
 0x413   :  { %5618 = vrcp.f32 %v1979_v13  ;;  %v10159_v13 = vld [vmem:[#allocation76_spill] sm:$0xff] }
 0x414   :  { %5620 = vpow2.f32 %v5046_v15  ;;  %v10160_v15 = vld [vmem:[#allocation80_spill] sm:$0xff] }
 0x415   :  { %5622 = vtanh.f32 %v1966_v24  ;;  %v10161_v24 = vld [vmem:[#allocation78_spill] sm:$0xff] }
 0x416   :  { %5624 = vpow2.f32 %v5081_v25  ;;  %v10162_v25 = vld [vmem:[#allocation81_spill] sm:$0xff] }
 0x417   :  { %5626 = vtanh.f32 %v2282_v27  ;;  %v10164_v27 = vld [vmem:[#allocation83_spill] sm:$0xff] }
 0x41c   :  { %v5613_v29 = vpop.eup %5612 }
 0x41d   :  { %v2292_v35 = vadd.f32 1.0, %v5613_v29  ;;  %v10165_v29 = vld [vmem:[#allocation84_spill] sm:$0xff] }
 0x41e   :  { %v5615_v46 = vpop.eup %5614 }
 0x41f   :  { %5628 = vrcp.f32 %v2292_v35  ;;  %v2293_v28 = vadd.f32 1.0, %v5615_v46  ;;  %v5617_v47 = vpop.eup %5616  ;;  %v10166_v35 = vld [vmem:[#allocation85_spill] sm:$0xff]  ;;  %v10167_v46 = vld [vmem:[#allocation86_spill] sm:$0xff] }
 0x420   :  { %v5619_v49 = vpop.eup %5618  ;;  %v1989_v53 = vmul.f32 0.0, %v5617_v47  ;;  %v10169_v47 = vld [vmem:[#allocation88_spill] sm:$0xff] }
 0x421   :  { %5630 = vrcp.f32 %v2293_v28  ;;  %v5621_v51 = vpop.eup %5620  ;;  %v10168_v28 = vld [vmem:[#allocation87_spill] sm:$0xff] }
 0x422   :  { %v5623_v59 = vpop.eup %5622  ;;  %v1981_v36 = vadd.f32 1.0, %v5621_v51  ;;  %v10171_v51 = vld [vmem:[#allocation90_spill] sm:$0xff] }
 0x423   :  { %v5625_v30 = vpop.eup %5624  ;;  %v1990_v31 = vmul.f32 %v5623_v59, %v5619_v49  ;;  %v10170_v49 = vld [vmem:[#allocation89_spill] sm:$0xff]  ;;  %v10173_v59 = vld [vmem:[#allocation92_spill] sm:$0xff] }
 0x424   :  { %v5627_v33 = vpop.eup %5626  ;;  %v2294_v38 = vadd.f32 1.0, %v5625_v30  ;;  %v10174_v30 = vld [vmem:[#allocation93_spill] sm:$0xff] }
 0x425   :  { %v7449_v60 = vadd.f32 %v1990_v31, %v1989_v53  ;;  %v10172_v53 = vld [vmem:[#allocation91_spill] sm:$0xff]  ;;  %v10175_v31 = vld [vmem:[#allocation94_spill] sm:$0xff] }
 0x427   :  { %5632 = vtanh.f32 %v7449_v60 }
 0x428   :  { %5634 = vrcp.f32 %v1981_v36  ;;  %v10178_v36 = vld [vmem:[#allocation97_spill] sm:$0xff] }
 0x429   :  { %5636 = vrcp.f32 %v2294_v38  ;;  %v10180_v38 = vld [vmem:[#allocation99_spill] sm:$0xff] }
 0x42c   :  { %v5629_v58 = vpop.eup %5628 }
 0x42d   :  { %v2303_v41 = vmul.f32 %v5629_v58, %v5627_v33  ;;  %v10176_v33 = vld [vmem:[#allocation95_spill] sm:$0xff]  ;;  %v10177_v58 = vld [vmem:[#allocation96_spill] sm:$0xff] }
 0x42e   :  { %v5631_v37 = vpop.eup %5630 }
 0x42f   :  { %v2302_v40 = vmul.f32 %v5631_v37, %v10156_v39  ;;  %v10179_v37 = vld [vmem:[#allocation98_spill] sm:$0xff]  ;;  %v10181_v39 = vld [vmem:[#allocation100_spill] sm:$0xff] }
 0x431   :  { %v7453_v42 = vadd.f32 %v2303_v41, %v2302_v40  ;;  %v10182_v40 = vld [vmem:[#allocation101_spill] sm:$0xff]  ;;  %v10183_v41 = vld [vmem:[#allocation102_spill] sm:$0xff] }
 0x433   :  { %5638 = vtanh.f32 %v7453_v42 }
 0x434   :  { %v5633_v43 = vpop.eup %5632 }
 0x435   :  { %v5635_v44 = vpop.eup %5634 }
 0x436   :  { %v5637_v48 = vpop.eup %5636  ;;  %v7456_v22 = vmul.f32 %v5635_v44, %v5633_v43  ;;  %v10184_v43 = vld [vmem:[#allocation103_spill] sm:$0xff]  ;;  %v10185_v44 = vld [vmem:[#allocation104_spill] sm:$0xff] }
 0x438   :  { %v2415_v20 = vpack.c.bf16 %v7456_v22, %v7456_v22 }
 0x440   :  { %v5639_v18 = vpop.eup %5638 }
 0x441   :  { %v2306_v19 = vmul.f32 %v5639_v18, %v5637_v48  ;;  %v10186_v48 = vld [vmem:[#allocation105_spill] sm:$0xff]  ;;  %v10187_v18 = vld [vmem:[#allocation106_spill] sm:$0xff] }
 0x443   :  { %v7458_v17 = vpack.c.bf16 %v2306_v19, %v2306_v19  ;;  %v10188_v19 = vld [vmem:[#allocation107_spill] sm:$0xff] }
 0x445   :  { %2341 = vmatmul.mubr.bf16.vlgmr.msra.gmra.mxu0 %v7458_v17  ;;  %2382 = vmatmul.mubr.bf16.vlgmr.msra.gmra.mxu1 %v7458_v17 }
 0x446   :  { %2448 = vmatprep.mubr.bf16.mxu0 %v2415_v20  ;;  %2489 = vmatprep.mubr.bf16.mxu1 %v2415_v20  ;;  %v10189_v20 = vld [vmem:[#allocation108_spill] sm:$0xff] }
 0x447   :  { %2417 = vmatpush1.bf16.msra.mxu0 %v10157_v14  ;;  %2458 = vmatpush1.bf16.msra.mxu1 %v10158_v21  ;;  %v10190_v14 = vld [vmem:[#allocation109_spill] sm:$0xff]  ;;  %v10191_v21 = vld [vmem:[#allocation110_spill] sm:$0xff] }
 0x448   :  { %2418 = vmatprep.subr.bf16.mxu0 %v10159_v13  ;;  %2459 = vmatprep.subr.bf16.mxu1 %v10160_v15  ;;  %v10192_v13 = vld [vmem:[#allocation111_spill] sm:$0xff]  ;;  %v10193_v15 = vld [vmem:[#allocation112_spill] sm:$0xff] }
 0x44b   :  { %2419 = vmatpush1.bf16.msra.mxu0 %v10161_v24  ;;  %2460 = vmatpush1.bf16.msra.mxu1 %v10162_v25  ;;  %v10194_v24 = vld [vmem:[#allocation113_spill] sm:$0xff]  ;;  %v10195_v25 = vld [vmem:[#allocation114_spill] sm:$0xff] }
 0x44c   :  { %2420 = vmatprep.subr.bf16.mxu0 %v10163_v26  ;;  %2461 = vmatprep.subr.bf16.mxu1 %v10164_v27  ;;  %v10196_v26 = vld [vmem:[#allocation115_spill] sm:$0xff]  ;;  %v10197_v27 = vld [vmem:[#allocation116_spill] sm:$0xff] }
 0x44f   :  { %2421 = vmatpush1.bf16.msra.mxu0 %v10165_v29  ;;  %2462 = vmatpush1.bf16.msra.mxu1 %v10166_v35  ;;  %v10198_v29 = vld [vmem:[#allocation117_spill] sm:$0xff]  ;;  %v10199_v35 = vld [vmem:[#allocation118_spill] sm:$0xff] }
 0x450   :  { %2422 = vmatprep.subr.bf16.mxu0 %v10167_v46  ;;  %2463 = vmatprep.subr.bf16.mxu1 %v10168_v28  ;;  %v10200_v46 = vld [vmem:[#allocation119_spill] sm:$0xff]  ;;  %v10201_v28 = vld [vmem:[#allocation120_spill] sm:$0xff] }
 0x453   :  { %2423 = vmatpush1.bf16.msra.mxu0 %v10169_v47  ;;  %2464 = vmatpush1.bf16.msra.mxu1 %v10170_v49  ;;  %v10202_v47 = vld [vmem:[#allocation121_spill] sm:$0xff]  ;;  %v10203_v49 = vld [vmem:[#allocation122_spill] sm:$0xff] }
 0x454   :  { %2424 = vmatprep.subr.bf16.mxu0 %v10171_v51  ;;  %2465 = vmatprep.subr.bf16.mxu1 %v10172_v53  ;;  %v10204_v51 = vld [vmem:[#allocation123_spill] sm:$0xff]  ;;  %v10205_v53 = vld [vmem:[#allocation124_spill] sm:$0xff] }
 0x457   :  { %2425 = vmatpush1.bf16.msra.mxu0 %v10173_v59  ;;  %2466 = vmatpush1.bf16.msra.mxu1 %v10174_v30  ;;  %v10206_v59 = vld [vmem:[#allocation125_spill] sm:$0xff]  ;;  %v10207_v30 = vld [vmem:[#allocation126_spill] sm:$0xff] }
 0x458   :  { %2426 = vmatprep.subr.bf16.mxu0 %v10175_v31  ;;  %2467 = vmatprep.subr.bf16.mxu1 %v10176_v33  ;;  %v10208_v31 = vld [vmem:[#allocation127_spill] sm:$0xff]  ;;  %v10209_v33 = vld [vmem:[#allocation128_spill] sm:$0xff] }
 0x45b   :  { %2427 = vmatpush1.bf16.msra.mxu0 %v10177_v58  ;;  %2468 = vmatpush1.bf16.msra.mxu1 %v10178_v36  ;;  %v10210_v58 = vld [vmem:[#allocation129_spill] sm:$0xff]  ;;  %v10211_v36 = vld [vmem:[#allocation130_spill] sm:$0xff] }
 0x45c   :  { %2428 = vmatprep.subr.bf16.mxu0 %v10179_v37  ;;  %2469 = vmatprep.subr.bf16.mxu1 %v10180_v38  ;;  %v10212_v37 = vld [vmem:[#allocation131_spill] sm:$0xff]  ;;  %v10213_v38 = vld [vmem:[#allocation132_spill] sm:$0xff] }
 0x45f   :  { %2429 = vmatpush1.bf16.msra.mxu0 %v10181_v39  ;;  %2470 = vmatpush1.bf16.msra.mxu1 %v10182_v40  ;;  %v10214_v39 = vld [vmem:[#allocation133_spill] sm:$0xff]  ;;  %v10215_v40 = vld [vmem:[#allocation134_spill] sm:$0xff] }
 0x460   :  { %2430 = vmatprep.subr.bf16.mxu0 %v10183_v41  ;;  %2471 = vmatprep.subr.bf16.mxu1 %v10184_v43  ;;  %v10216_v41 = vld [vmem:[#allocation135_spill] sm:$0xff]  ;;  %v10217_v43 = vld [vmem:[#allocation136_spill] sm:$0xff] }
 0x463   :  { %2431 = vmatpush1.bf16.msra.mxu0 %v10185_v44  ;;  %2472 = vmatpush1.bf16.msra.mxu1 %v10186_v48  ;;  %v10218_v44 = vld [vmem:[#allocation137_spill] sm:$0xff]  ;;  %v10219_v48 = vld [vmem:[#allocation138_spill] sm:$0xff] }
 0x464   :  { %2432 = vmatprep.subr.bf16.mxu0 %v10187_v18  ;;  %2473 = vmatprep.subr.bf16.mxu1 %v10188_v19  ;;  %v10220_v18 = vld [vmem:[#allocation139_spill] sm:$0xff]  ;;  %v10221_v19 = vld [vmem:[#allocation32_spill] sm:$0xff] }
 0x465   :  { %vm2522_vm13 = vcmp.eq.s32.totalorder %v10221_v19, 1  ;;  %vm2858_vm0 = vcmp.eq.s32.totalorder %v10221_v19, 2 }
 0x467   :  { %2433 = vmatpush2.bf16.msra.mxu0 %v10189_v20  ;;  %2474 = vmatpush2.bf16.msra.mxu1 %v10190_v14  ;;  %v2523_v20 = vsel %vm2522_vm13, 1, %v10111_v7 }
 0x468   :  { %2434 = vmatprep.subr.bf16.mxu0 %v10191_v21  ;;  %2475 = vmatprep.subr.bf16.mxu1 %v10192_v13 }
 0x469   :  { %2525 = vperm.xlu0 %5350, %v2523_v20  }
 0x46b   :  { %2435 = vmatpush2.bf16.msra.mxu0 %v10193_v15  ;;  %2476 = vmatpush2.bf16.msra.mxu1 %v10194_v24 }
 0x46c   :  { %2436 = vmatprep.subr.bf16.mxu0 %v10195_v25  ;;  %2477 = vmatprep.subr.bf16.mxu1 %v10196_v26  ;;  %v10222_v26 = vld [vmem:[#allocation27_spill] sm:$0xff] }
 0x46f   :  { %2437 = vmatpush2.bf16.msra.mxu0 %v10197_v27  ;;  %2478 = vmatpush2.bf16.msra.mxu1 %v10198_v29 }
 0x470   :  { %2438 = vmatprep.subr.bf16.mxu0 %v10199_v35  ;;  %2479 = vmatprep.subr.bf16.mxu1 %v10200_v46 }
 0x473   :  { %2439 = vmatpush2.bf16.msra.mxu0 %v10201_v28  ;;  %2480 = vmatpush2.bf16.msra.mxu1 %v10202_v47 }
 0x474   :  { %2440 = vmatprep.subr.bf16.mxu0 %v10203_v49  ;;  %2481 = vmatprep.subr.bf16.mxu1 %v10204_v51 }
 0x477   :  { %2441 = vmatpush2.bf16.msra.mxu0 %v10205_v53  ;;  %2482 = vmatpush2.bf16.msra.mxu1 %v10206_v59 }
 0x478   :  { %2442 = vmatprep.subr.bf16.mxu0 %v10207_v30  ;;  %2483 = vmatprep.subr.bf16.mxu1 %v10208_v31 }
 0x47b   :  { %2443 = vmatpush2.bf16.msra.mxu0 %v10209_v33  ;;  %2484 = vmatpush2.bf16.msra.mxu1 %v10210_v58 }
 0x47c   :  { %2444 = vmatprep.subr.bf16.mxu0 %v10211_v36  ;;  %2485 = vmatprep.subr.bf16.mxu1 %v10212_v37 }
 0x47f   :  { %2445 = vmatpush2.bf16.msra.mxu0 %v10213_v38  ;;  %2486 = vmatpush2.bf16.msra.mxu1 %v10214_v39 }
 0x480   :  { %2446 = vmatprep.subr.bf16.mxu0 %v10215_v40  ;;  %2487 = vmatprep.subr.bf16.mxu1 %v10216_v41 }
 0x483   :  { %2447 = vmatpush2.bf16.msra.mxu0 %v10217_v43  ;;  %2488 = vmatpush2.bf16.msra.mxu1 %v10218_v44 }
 0x484   :  { %2533 = vmatprep.subr.bf16.mxu0 %v10219_v48  ;;  %2574 = vmatprep.subr.bf16.mxu1 %v10220_v18 }
 0x505   :  { %v2342_v14 = vpop.f32.mrf.mxu0  ;;  %v2383_v21 = vpop.f32.mrf.mxu1 }
 0x506   :  { %v2343_v13 = vadd.f32 %v2342_v14, %v6763_v54  ;;  %v2384_v49 = vadd.f32 %v2383_v21, %v6767_v56  ;;  %v10224_v14 = vld [vmem:[#allocation141_spill] sm:$0xff]  ;;  %v10225_v21 = vld [vmem:[#allocation142_spill] sm:$0xff] }
 0x507   :  { %v2344_v15 = vpop.f32.mrf.mxu0  ;;  %v2385_v24 = vpop.f32.mrf.mxu1 }
 0x508   :  { %v5082_v25 = vmul.f32 -1.442695, %v2343_v13  ;;  %v2345_v27 = vadd.f32 %v2344_v15, %v10222_v26  ;;  %v5084_v51 = vmul.f32 -1.442695, %v2384_v49  ;;  %v2386_v59 = vadd.f32 %v2385_v24, %v6769_v57  ;;  %v10230_v13 = vld [vmem:[#allocation147_spill] sm:$0xff]  ;;  %v10231_v15 = vld [vmem:[#allocation148_spill] sm:$0xff] }
 0x509   :  { %v2346_v29 = vpop.f32.mrf.mxu0  ;;  %v2387_v35 = vpop.f32.mrf.mxu1  ;;  %v10234_v24 = vld [vmem:[#allocation151_spill] sm:$0xff] }
 0x50a   :  { %5640 = vpow2.f32 %v5082_v25  ;;  %v5083_v46 = vmul.f32 -1.442695, %v2345_v27  ;;  %v10235_v25 = vld [vmem:[#allocation152_spill] sm:$0xff]  ;;  %v10236_v27 = vld [vmem:[#allocation153_spill] sm:$0xff]  ;;  %v10237_v29 = vld [vmem:[#allocation154_spill] sm:$0xff] }
 0x50b   :  { %v2347_v28 = vpop.f32.mrf.mxu0  ;;  %v2388_v47 = vpop.f32.mrf.mxu1  ;;  %v10238_v35 = vld [vmem:[#allocation155_spill] sm:$0xff] }
 0x50c   :  { %5642 = vpow2.f32 %v5083_v46  ;;  %v10239_v46 = vld [vmem:[#allocation156_spill] sm:$0xff]  ;;  %v10240_v28 = vld [vmem:[#allocation157_spill] sm:$0xff]  ;;  %v10241_v47 = vld [vmem:[#allocation158_spill] sm:$0xff] }
 0x50d   :  { %5644 = vpow2.f32 %v5084_v51  ;;  %v10242_v49 = vld [vmem:[#allocation159_spill] sm:$0xff]  ;;  %v10243_v51 = vld [vmem:[#allocation160_spill] sm:$0xff] }
 0x517   :  { %v5641_v53 = vpop.eup %5640 }
 0x518   :  { %v2399_v30 = vadd.f32 1.0, %v5641_v53  ;;  %v7615_v53 = vld [vmem:[#allocation3 + $0x4c] ss:$16 sps:$4 sm:$0xff]  }
 0x519   :  { %v5643_v31 = vpop.eup %5642 }
 0x51a   :  { %5646 = vrcp.f32 %v2399_v30  ;;  %v2400_v33 = vadd.f32 1.0, %v5643_v31  ;;  %v5645_v58 = vpop.eup %5644  ;;  %v7624_v30 = vld [vmem:[#allocation3 + $0x24] ss:$16 sps:$4 sm:$0xff]   ;;  %v7627_v31 = vld [vmem:[#allocation3 + $0x2c] ss:$16 sps:$4 sm:$0xff]  }
 0x51b   :  { %5648 = vtanh.f32 %v2386_v59  ;;  %v2401_v39 = vadd.f32 1.0, %v5645_v58  ;;  %v7621_v59 = vld [vmem:[#allocation3 + $0x48] ss:$16 sps:$4 sm:$0xff]  }
 0x51c   :  { %5650 = vrcp.f32 %v2400_v33  ;;  %v7630_v33 = vld [vmem:[#allocation3 + $0x20] ss:$16 sps:$4 sm:$0xff]   ;;  %v7633_v58 = vld [vmem:[#allocation3 + $0x28] ss:$16 sps:$4 sm:$0xff]  }
 0x51d   :  { %5652 = vrcp.f32 %v2401_v39  ;;  %v7645_v39 = vld [vmem:[#allocation3 + $0x8] ss:$16 sps:$4 sm:$0xff]  }
 0x527   :  { %v5647_v36 = vpop.eup %5646 }
 0x528   :  { %v5649_v37 = vpop.eup %5648 }
 0x529   :  { %v5651_v38 = vpop.eup %5650  ;;  %v2410_v41 = vmul.f32 %v5649_v37, %v5647_v36  ;;  %v7636_v36 = vld [vmem:[#allocation3 + $0x4] ss:$16 sps:$4 sm:$0xff]   ;;  %v7639_v37 = vld [vmem:[#allocation3 + $0xc] ss:$16 sps:$4 sm:$0xff]  }
 0x52a   :  { %v2409_v40 = vmul.f32 %v5651_v38, %v7252_v34  ;;  %v5653_v44 = vpop.eup %5652  ;;  %v10223_v34 = vld [vmem:[#allocation140_spill] sm:$0xff]  ;;  %v7642_v38 = vld [vmem:[#allocation3] ss:$16 sps:$4 sm:$0xff]  }
 0x52c   :  { %v7535_v43 = vadd.f32 %v2410_v41, %v2409_v40  ;;  %v7648_v40 = vld [vmem:[#allocation3 + $0x1e4] ss:$16 sps:$4 sm:$0xff]   ;;  %v7651_v41 = vld [vmem:[#allocation3 + $0x1ec] ss:$16 sps:$4 sm:$0xff]  }
 0x52e   :  { %5654 = vtanh.f32 %v7535_v43 }
 0x53b   :  { %v5655_v48 = vpop.eup %5654 }
 0x53c   :  { %v2413_v18 = vmul.f32 %v5655_v48, %v5653_v44  ;;  %v7654_v44 = vld [vmem:[#allocation3 + $0x1e0] ss:$16 sps:$4 sm:$0xff]   ;;  %v7657_v48 = vld [vmem:[#allocation3 + $0x1e8] ss:$16 sps:$4 sm:$0xff]  }
 0x53e   :  { %v2414_v20 = vpack.c.bf16 %v2413_v18, %v2413_v18  ;;  %v7660_v18 = vld [vmem:[#allocation3 + $0x1c4] ss:$16 sps:$4 sm:$0xff]  }
 0x540   :  { %2449 = vmatmul.mubr.bf16.vlgmr.msra.gmra.mxu0 %v2414_v20  ;;  %2490 = vmatmul.mubr.bf16.vlgmr.msra.gmra.mxu1 %v2414_v20 }
 0x541   :  { %2534 = vmatpush1.bf16.msra.mxu0 %v7255_v11  ;;  %2575 = vmatpush1.bf16.msra.mxu1 %v7257_v16  ;;  %v10226_v11 = vld [vmem:[#allocation143_spill] sm:$0xff]  ;;  %v10227_v16 = vld [vmem:[#allocation144_spill] sm:$0xff] }
 0x542   :  { %2535 = vmatprep.subr.bf16.mxu0 %v7261_v4  ;;  %2576 = vmatprep.subr.bf16.mxu1 %v7263_v32  ;;  %v10228_v4 = vld [vmem:[#allocation145_spill] sm:$0xff]  ;;  %v10229_v32 = vld [vmem:[#allocation146_spill] sm:$0xff] }
 0x543   :  { %2565 = vmatprep.mubr.bf16.mxu0 %v10111_v7  ;;  %2606 = vmatprep.mubr.bf16.mxu1 %v10111_v7 }
 0x545   :  { %2536 = vmatpush1.bf16.msra.mxu0 %v7269_v55  ;;  %2577 = vmatpush1.bf16.msra.mxu1 %v7271_v0  ;;  %v10232_v55 = vld [vmem:[#allocation149_spill] sm:$0xff]  ;;  %v10233_v0 = vld [vmem:[#allocation150_spill] sm:$0xff] }
 0x546   :  { %2537 = vmatprep.subr.bf16.mxu0 %v10223_v34  ;;  %2578 = vmatprep.subr.bf16.mxu1 %v10224_v14  ;;  %v7666_v34 = vld [vmem:[#allocation3 + $0x1c0] ss:$16 sps:$4 sm:$0xff]   ;;  %v7669_v14 = vld [vmem:[#allocation3 + $0x1c8] ss:$16 sps:$4 sm:$0xff]  }
 0x549   :  { %2538 = vmatpush1.bf16.msra.mxu0 %v10225_v21  ;;  %2579 = vmatpush1.bf16.msra.mxu1 %v10226_v11  ;;  %v7672_v21 = vld [vmem:[#allocation3 + $0x1a4] ss:$16 sps:$4 sm:$0xff]   ;;  %v7675_v11 = vld [vmem:[#allocation3 + $0x1ac] ss:$16 sps:$4 sm:$0xff]  }
 0x54a   :  { %2539 = vmatprep.subr.bf16.mxu0 %v10227_v16  ;;  %2580 = vmatprep.subr.bf16.mxu1 %v10228_v4  ;;  %v7678_v16 = vld [vmem:[#allocation3 + $0x1a0] ss:$16 sps:$4 sm:$0xff]   ;;  %v7681_v4 = vld [vmem:[#allocation3 + $0x1a8] ss:$16 sps:$4 sm:$0xff]  }
 0x54b   :  { %10245 = vst [vmem:[#allocation62_spill] sm:$0xff] %v7678_v16  ;;  %10246 = vst [vmem:[#allocation65_spill] sm:$0xff] %v7681_v4 }
 0x54d   :  { %2540 = vmatpush1.bf16.msra.mxu0 %v10229_v32  ;;  %2581 = vmatpush1.bf16.msra.mxu1 %v10230_v13  ;;  %v7684_v32 = vld [vmem:[#allocation3 + $0x184] ss:$16 sps:$4 sm:$0xff]   ;;  %v7687_v13 = vld [vmem:[#allocation3 + $0x18c] ss:$16 sps:$4 sm:$0xff]  }
 0x54e   :  { %2541 = vmatprep.subr.bf16.mxu0 %v10231_v15  ;;  %2582 = vmatprep.subr.bf16.mxu1 %v10232_v55  ;;  %10247 = vst [vmem:[#allocation63_spill] sm:$0xff] %v7684_v32  ;;  %10248 = vst [vmem:[#allocation68_spill] sm:$0xff] %v7687_v13  ;;  %v7690_v15 = vld [vmem:[#allocation3 + $0x180] ss:$16 sps:$4 sm:$0xff]   ;;  %v7693_v55 = vld [vmem:[#allocation3 + $0x188] ss:$16 sps:$4 sm:$0xff]  }
 0x54f   :  { %10249 = vst [vmem:[#allocation64_spill] sm:$0xff] %v7690_v15  ;;  %10250 = vst [vmem:[#allocation69_spill] sm:$0xff] %v7693_v55 }
 0x551   :  { %2542 = vmatpush1.bf16.msra.mxu0 %v10233_v0  ;;  %2583 = vmatpush1.bf16.msra.mxu1 %v10234_v24  ;;  %v7696_v0 = vld [vmem:[#allocation3 + $0x164] ss:$16 sps:$4 sm:$0xff]   ;;  %v7699_v24 = vld [vmem:[#allocation3 + $0x16c] ss:$16 sps:$4 sm:$0xff]  }
 0x552   :  { %2543 = vmatprep.subr.bf16.mxu0 %v10235_v25  ;;  %2584 = vmatprep.subr.bf16.mxu1 %v10236_v27  ;;  %10251 = vst [vmem:[#allocation66_spill] sm:$0xff] %v7696_v0  ;;  %10252 = vst [vmem:[#allocation71_spill] sm:$0xff] %v7699_v24  ;;  %v7702_v25 = vld [vmem:[#allocation3 + $0x160] ss:$16 sps:$4 sm:$0xff]   ;;  %v7705_v27 = vld [vmem:[#allocation3 + $0x168] ss:$16 sps:$4 sm:$0xff]  }
 0x553   :  { %10253 = vst [vmem:[#allocation67_spill] sm:$0xff] %v7702_v25  ;;  %10254 = vst [vmem:[#allocation73_spill] sm:$0xff] %v7705_v27 }
 0x555   :  { %2544 = vmatpush1.bf16.msra.mxu0 %v10237_v29  ;;  %2585 = vmatpush1.bf16.msra.mxu1 %v7321_v3  ;;  %v7596_v3 = vld [vmem:[#allocation3 + $0x80] ss:$16 sps:$4 sm:$0xff]   ;;  %v7708_v29 = vld [vmem:[#allocation3 + $0x144] ss:$16 sps:$4 sm:$0xff]  }
 0x556   :  { %2545 = vmatprep.subr.bf16.mxu0 %v10238_v35  ;;  %2586 = vmatprep.subr.bf16.mxu1 %v10239_v46  ;;  %10255 = vst [vmem:[#allocation70_spill] sm:$0xff] %v7708_v29  ;;  %v7711_v35 = vld [vmem:[#allocation3 + $0x14c] ss:$16 sps:$4 sm:$0xff]   ;;  %v7714_v46 = vld [vmem:[#allocation3 + $0x140] ss:$16 sps:$4 sm:$0xff]  }
 0x557   :  { %10256 = vst [vmem:[#allocation75_spill] sm:$0xff] %v7711_v35  ;;  %10257 = vst [vmem:[#allocation72_spill] sm:$0xff] %v7714_v46 }
 0x559   :  { %2546 = vmatpush1.bf16.msra.mxu0 %v7331_v61  ;;  %2587 = vmatpush1.bf16.msra.mxu1 %v7333_v63  ;;  %v10244_v61 = vld [vmem:[#allocation161_spill] sm:$0xff] }
 0x55a   :  { %2547 = vmatprep.subr.bf16.mxu0 %v7337_v5  ;;  %2588 = vmatprep.subr.bf16.mxu1 %v10240_v28  ;;  %v7577_v63 = vld [vmem:[#allocation3 + $0xcc] ss:$16 sps:$4 sm:$0xff]   ;;  %v7581_v5 = vld [vmem:[#allocation3 + $0xc8] ss:$16 sps:$4 sm:$0xff]  }
 0x55b   :  { %v7717_v28 = vld [vmem:[#allocation3 + $0x148] ss:$16 sps:$4 sm:$0xff]  }
 0x55c   :  { %10258 = vst [vmem:[#allocation77_spill] sm:$0xff] %v7717_v28 }
 0x55d   :  { %2548 = vmatpush1.bf16.msra.mxu0 %v7343_v12  ;;  %2589 = vmatpush1.bf16.msra.mxu1 %v10241_v47  ;;  %v7585_v12 = vld [vmem:[#allocation3 + $0xac] ss:$16 sps:$4 sm:$0xff]   ;;  %v7720_v47 = vld [vmem:[#allocation3 + $0x124] ss:$16 sps:$4 sm:$0xff]  }
 0x55e   :  { %2644 = vmatprep.subr.bf16.mxu0 %v10242_v49  ;;  %2685 = vmatprep.subr.bf16.mxu1 %v10243_v51  ;;  %10259 = vst [vmem:[#allocation33_spill] sm:$0xff] %v7720_v47  ;;  %v7723_v49 = vld [vmem:[#allocation3 + $0x12c] ss:$16 sps:$4 sm:$0xff]   ;;  %v7726_v51 = vld [vmem:[#allocation3 + $0x120] ss:$16 sps:$4 sm:$0xff]  }
 0x55f   :  { %10260 = vst [vmem:[#allocation35_spill] sm:$0xff] %v7723_v49  ;;  %10261 = vst [vmem:[#allocation34_spill] sm:$0xff] %v7726_v51 }
 0x560   :  { %2566 = vmatmul.mubr.bf16.vlgmr.msra.gmra.mxu0 %v7458_v17  ;;  %2607 = vmatmul.mubr.bf16.vlgmr.msra.gmra.mxu1 %v7458_v17  ;;  %v7612_v17 = vld [vmem:[#allocation3 + $0x44] ss:$16 sps:$4 sm:$0xff]  }
 0x561   :  { %2676 = vmatprep.mubr.bf16.mxu0 %v2414_v20  ;;  %2717 = vmatprep.mubr.bf16.mxu1 %v2414_v20  ;;  %v7663_v20 = vld [vmem:[#allocation3 + $0x1cc] ss:$16 sps:$4 sm:$0xff]  }
 0x562   :  { %2645 = vmatpush1.bf16.msra.mxu0 %v7361_v6  ;;  %2686 = vmatpush1.bf16.msra.mxu1 %v7364_v8  ;;  %v7589_v6 = vld [vmem:[#allocation3 + $0xa8] ss:$16 sps:$4 sm:$0xff]   ;;  %v7593_v8 = vld [vmem:[#allocation3 + $0x8c] ss:$16 sps:$4 sm:$0xff]  }
 0x563   :  { %2646 = vmatprep.subr.bf16.mxu0 %v10244_v61  ;;  %2687 = vmatprep.subr.bf16.mxu1 %v7577_v63  ;;  %v7729_v61 = vld [vmem:[#allocation3 + $0x128] ss:$16 sps:$4 sm:$0xff]  }
 0x564   :  { %10262 = vst [vmem:[#allocation36_spill] sm:$0xff] %v7729_v61 }
 0x566   :  { %2647 = vmatpush1.bf16.msra.mxu0 %v7371_v2  ;;  %2688 = vmatpush1.bf16.msra.mxu1 %v7581_v5  ;;  %v7599_v2 = vld [vmem:[#allocation3 + $0x88] ss:$16 sps:$4 sm:$0xff]  }
 0x567   :  { %2648 = vmatprep.subr.bf16.mxu0 %v7375_v1  ;;  %2689 = vmatprep.subr.bf16.mxu1 %v7585_v12  ;;  %v7603_v1 = vld [vmem:[#allocation3 + $0x6c] ss:$16 sps:$4 sm:$0xff]  }
 0x56a   :  { %2649 = vmatpush1.bf16.msra.mxu0 %v7379_v62  ;;  %2690 = vmatpush1.bf16.msra.mxu1 %v7589_v6  ;;  %v7606_v62 = vld [vmem:[#allocation3 + $0x60] ss:$16 sps:$4 sm:$0xff]  }
 0x56b   :  { %2650 = vmatprep.subr.bf16.mxu0 %v7383_v9  ;;  %2691 = vmatprep.subr.bf16.mxu1 %v7593_v8  ;;  %v7609_v9 = vld [vmem:[#allocation3 + $0x68] ss:$16 sps:$4 sm:$0xff]  }
 0x56e   :  { %2651 = vmatpush1.bf16.msra.mxu0 %v7596_v3  ;;  %2692 = vmatpush1.bf16.msra.mxu1 %v7599_v2 }
 0x56f   :  { %2652 = vmatprep.subr.bf16.mxu0 %v7389_v45  ;;  %2693 = vmatprep.subr.bf16.mxu1 %v7603_v1  ;;  %v7618_v45 = vld [vmem:[#allocation3 + $0x40] ss:$16 sps:$4 sm:$0xff]  }
 0x572   :  { %2653 = vmatpush1.bf16.msra.mxu0 %v7606_v62  ;;  %2694 = vmatpush1.bf16.msra.mxu1 %v7609_v9 }
 0x573   :  { %2654 = vmatprep.subr.bf16.mxu0 %v7612_v17  ;;  %2695 = vmatprep.subr.bf16.mxu1 %v7615_v53 }
 0x576   :  { %2655 = vmatpush1.bf16.msra.mxu0 %v7618_v45  ;;  %2696 = vmatpush1.bf16.msra.mxu1 %v7621_v59 }
 0x577   :  { %2656 = vmatprep.subr.bf16.mxu0 %v7624_v30  ;;  %2697 = vmatprep.subr.bf16.mxu1 %v7627_v31 }
 0x57a   :  { %2657 = vmatpush1.bf16.msra.mxu0 %v7630_v33  ;;  %2698 = vmatpush1.bf16.msra.mxu1 %v7633_v58 }
 0x57b   :  { %2658 = vmatprep.subr.bf16.mxu0 %v7636_v36  ;;  %2699 = vmatprep.subr.bf16.mxu1 %v7639_v37 }
 0x57e   :  { %2659 = vmatpush1.bf16.msra.mxu0 %v7642_v38  ;;  %2700 = vmatpush1.bf16.msra.mxu1 %v7645_v39 }
 0x57f   :  { %2660 = vmatprep.subr.bf16.mxu0 %v7648_v40  ;;  %2701 = vmatprep.subr.bf16.mxu1 %v7651_v41 }
 0x582   :  { %2661 = vmatpush2.bf16.msra.mxu0 %v7654_v44  ;;  %2702 = vmatpush2.bf16.msra.mxu1 %v7657_v48 }
 0x583   :  { %2662 = vmatprep.subr.bf16.mxu0 %v7660_v18  ;;  %2703 = vmatprep.subr.bf16.mxu1 %v7663_v20 }
 0x586   :  { %2663 = vmatpush2.bf16.msra.mxu0 %v7666_v34  ;;  %2704 = vmatpush2.bf16.msra.mxu1 %v7669_v14 }
 0x587   :  { %2664 = vmatprep.subr.bf16.mxu0 %v7672_v21  ;;  %2705 = vmatprep.subr.bf16.mxu1 %v7675_v11 }
 0x58a   :  { %2665 = vmatpush2.bf16.msra.mxu0 %v7678_v16  ;;  %2706 = vmatpush2.bf16.msra.mxu1 %v7681_v4 }
 0x58b   :  { %2666 = vmatprep.subr.bf16.mxu0 %v7684_v32  ;;  %2707 = vmatprep.subr.bf16.mxu1 %v7687_v13 }
 0x58e   :  { %2667 = vmatpush2.bf16.msra.mxu0 %v7690_v15  ;;  %2708 = vmatpush2.bf16.msra.mxu1 %v7693_v55 }
 0x58f   :  { %2668 = vmatprep.subr.bf16.mxu0 %v7696_v0  ;;  %2709 = vmatprep.subr.bf16.mxu1 %v7699_v24 }
 0x592   :  { %2669 = vmatpush2.bf16.msra.mxu0 %v7702_v25  ;;  %2710 = vmatpush2.bf16.msra.mxu1 %v7705_v27 }
 0x593   :  { %2670 = vmatprep.subr.bf16.mxu0 %v7708_v29  ;;  %2711 = vmatprep.subr.bf16.mxu1 %v7711_v35 }
 0x596   :  { %2671 = vmatpush2.bf16.msra.mxu0 %v7714_v46  ;;  %2712 = vmatpush2.bf16.msra.mxu1 %v7717_v28  ;;  %v7732_v46 = vld [vmem:[#allocation3 + $0x104] ss:$16 sps:$4 sm:$0xff]   ;;  %v7735_v28 = vld [vmem:[#allocation3 + $0x10c] ss:$16 sps:$4 sm:$0xff]  }
 0x597   :  { %2672 = vmatprep.subr.bf16.mxu0 %v7720_v47  ;;  %2713 = vmatprep.subr.bf16.mxu1 %v7723_v49  ;;  %10263 = vst [vmem:[#allocation61_spill] sm:$0xff] %v7732_v46  ;;  %10264 = vst [vmem:[#allocation74_spill] sm:$0xff] %v7735_v28  ;;  %v7738_v47 = vld [vmem:[#allocation3 + $0x100] ss:$16 sps:$4 sm:$0xff]   ;;  %v7741_v49 = vld [vmem:[#allocation3 + $0x108] ss:$16 sps:$4 sm:$0xff]  }
 0x598   :  { %10265 = vst [vmem:[#allocation79_spill] sm:$0xff] %v7738_v47  ;;  %10266 = vst [vmem:[#allocation76_spill] sm:$0xff] %v7741_v49 }
 0x59a   :  { %2673 = vmatpush2.bf16.msra.mxu0 %v7726_v51  ;;  %2714 = vmatpush2.bf16.msra.mxu1 %v7729_v61  ;;  %v7744_v51 = vld [vmem:[#allocation3 + $0x2e4] ss:$16 sps:$4 sm:$0xff]   ;;  %v7747_v61 = vld [vmem:[#allocation3 + $0x2ec] ss:$16 sps:$4 sm:$0xff]  }
 0x59b   :  { %2674 = vmatprep.subr.bf16.mxu0 %v7732_v46  ;;  %2715 = vmatprep.subr.bf16.mxu1 %v7735_v28  ;;  %10267 = vst [vmem:[#allocation80_spill] sm:$0xff] %v7744_v51  ;;  %10268 = vst [vmem:[#allocation78_spill] sm:$0xff] %v7747_v61 }
 0x59e   :  { %2675 = vmatpush2.bf16.msra.mxu0 %v7738_v47  ;;  %2716 = vmatpush2.bf16.msra.mxu1 %v7741_v49 }
 0x59f   :  { %2752 = vmatprep.subr.bf16.mxu0 %v7744_v51  ;;  %2793 = vmatprep.subr.bf16.mxu1 %v7747_v61 }
 0x600   :  { %v2450_v46 = vpop.f32.mrf.mxu0  ;;  %v2491_v35 = vpop.f32.mrf.mxu1 }
 0x601   :  { %v2451_v28 = vadd.f32 %v2450_v46, %v10149_v52  ;;  %v2492_v51 = vadd.f32 %v2491_v35, %v10152_v23  ;;  %v10270_v23 = vld [vmem:[#allocation39_spill] sm:$0xff] }
 0x602   :  { %v2452_v29 = vpop.f32.mrf.mxu0  ;;  %v2493_v27 = vpop.f32.mrf.mxu1 }
 0x603   :  { %v5085_v25 = vmul.f32 -1.442695, %v2451_v28  ;;  %v2453_v47 = vadd.f32 %v2452_v29, %v10148_v50  ;;  %v5087_v13 = vmul.f32 -1.442695, %v2492_v51  ;;  %v2494_v32 = vadd.f32 %v2493_v27, %v10154_v10  ;;  %v10269_v29 = vld [vmem:[#allocation37_spill] sm:$0xff] }
 0x604   :  { %v2454_v24 = vpop.f32.mrf.mxu0  ;;  %v2495_v0 = vpop.f32.mrf.mxu1 }
 0x605   :  { %5656 = vpow2.f32 %v5085_v25  ;;  %v5086_v49 = vmul.f32 -1.442695, %v2453_v47 }
 0x606   :  { %v2455_v55 = vpop.f32.mrf.mxu0  ;;  %v2496_v15 = vpop.f32.mrf.mxu1 }
 0x607   :  { %5658 = vpow2.f32 %v5086_v49 }
 0x608   :  { %5660 = vpow2.f32 %v5087_v13 }
 0x612   :  { %v5657_v61 = vpop.eup %5656 }
 0x613   :  { %v2507_v4 = vadd.f32 1.0, %v5657_v61 }
 0x614   :  { %v5659_v46 = vpop.eup %5658 }
 0x615   :  { %5662 = vrcp.f32 %v2507_v4  ;;  %v2508_v28 = vadd.f32 1.0, %v5659_v46  ;;  %v5661_v25 = vpop.eup %5660 }
 0x616   :  { %5664 = vtanh.f32 %v2494_v32  ;;  %v2509_v61 = vadd.f32 1.0, %v5661_v25 }
 0x617   :  { %5666 = vrcp.f32 %v2508_v28 }
 0x620   :  { %v2567_v24 = vpop.f32.mrf.mxu0  ;;  %v2608_v0 = vpop.f32.mrf.mxu1 }
 0x621   :  { %v2615_v55 = vadd.f32 %v2567_v24, %v10269_v29  ;;  %v10271_v24 = vld [vmem:[#allocation38_spill] sm:$0xff] }
 0x622   :  { %v5663_v15 = vpop.eup %5662  ;;  %v2569_v47 = vpop.f32.mrf.mxu0  ;;  %v2617_v29 = vadd.f32 %v2608_v0, %v10271_v24 }
 0x623   :  { %v2610_v49 = vpop.f32.mrf.mxu1  ;;  %v5665_v35 = vpop.eup %5664  ;;  %v5088_v51 = vmul.f32 -1.442695, %v2615_v55  ;;  %v2616_v50 = vadd.f32 %v2569_v47, %v10270_v23 }
 0x624   :  { %v5667_v27 = vpop.eup %5666  ;;  %v2571_v10 = vpop.f32.mrf.mxu0  ;;  %v2518_v32 = vmul.f32 %v5665_v35, %v5663_v15  ;;  %v5090_v55 = vmul.f32 -1.442695, %v2617_v29 }
 0x625   :  { %v2612_v13 = vpop.f32.mrf.mxu1  ;;  %v2517_v4 = vmul.f32 %v5667_v27, %v7449_v60  ;;  %5668 = vpow2.f32 %v5088_v51  ;;  %v5089_v46 = vmul.f32 -1.442695, %v2616_v50  ;;  %v1998_v23 = vpop.permute.xlu0 %1997  ;;  %v10272_v10 = vld [vmem:[#allocation40_spill] sm:$0xff] }
 0x626   :  { %v2572_v28 = vpop.f32.mrf.mxu0  ;;  %v2618_v47 = vadd.f32 %v2610_v49, %v10272_v10  ;;  %vm1999_vm14 = vcmp.eq.s32.totalorder %v1998_v23, 1 }
 0x627   :  { %v2613_v52 = vpop.f32.mrf.mxu1  ;;  %v7757_v16 = vadd.f32 %v2518_v32, %v2517_v4  ;;  %5670 = vpow2.f32 %v5089_v46  ;;  %v2000_v0 = vsel %vm1999_vm14, %v7456_v22, 0.0 }
 0x628   :  { %5672 = vrcp.f32 %v2509_v61 }
 0x629   :  { %5674 = vtanh.f32 %v7757_v16  ;;  %v2526_v60 = vpop.permute.xlu0 %2525 }
 0x62a   :  { %5676 = vpow2.f32 %v5090_v55  ;;  %vm2527_vm15 = vcmp.eq.s32.totalorder %v2526_v60, 1  ;;  %v7782_v60 = vld [vmem:[#allocation3 + $0x2cc] ss:$16 sps:$4 sm:$0xff]  }
 0x632   :  { %v5669_v25 = vpop.eup %5668 }
 0x633   :  { %v2628_v13 = vadd.f32 1.0, %v5669_v25 }
 0x634   :  { %v5671_v15 = vpop.eup %5670 }
 0x635   :  { %v5673_v50 = vpop.eup %5672  ;;  %5678 = vrcp.f32 %v2628_v13  ;;  %v2629_v52 = vadd.f32 1.0, %v5671_v15  ;;  %v7779_v13 = vld [vmem:[#allocation3 + $0x2c4] ss:$16 sps:$4 sm:$0xff]   ;;  %v7785_v15 = vld [vmem:[#allocation3 + $0x2c0] ss:$16 sps:$4 sm:$0xff]  }
 0x636   :  { %v5675_v35 = vpop.eup %5674  ;;  %5680 = vtanh.f32 %v2618_v47  ;;  %v7773_v47 = vld [vmem:[#allocation3 + $0x2e0] ss:$16 sps:$4 sm:$0xff]  }
 0x637   :  { %5682 = vrcp.f32 %v2629_v52  ;;  %v2521_v51 = vmul.f32 %v5675_v35, %v5673_v50  ;;  %v5677_v61 = vpop.eup %5676  ;;  %v7788_v50 = vld [vmem:[#allocation3 + $0x2c8] ss:$16 sps:$4 sm:$0xff]   ;;  %v7791_v52 = vld [vmem:[#allocation3 + $0x2a4] ss:$16 sps:$4 sm:$0xff]   ;;  %v7794_v35 = vld [vmem:[#allocation3 + $0x2ac] ss:$16 sps:$4 sm:$0xff]  }
 0x638   :  { %v2630_v46 = vadd.f32 1.0, %v5677_v61  ;;  %10273 = vst [vmem:[#allocation81_spill] sm:$0xff] %v7788_v50  ;;  %10274 = vst [vmem:[#allocation82_spill] sm:$0xff] %v7791_v52  ;;  %v7803_v61 = vld [vmem:[#allocation3 + $0x284] ss:$16 sps:$4 sm:$0xff]  }
 0x639   :  { %v7763_v27 = vsel %vm2527_vm15, %v2521_v51, %v2000_v0  ;;  %v2751_v22 = vpack.c.bf16 %v2521_v51, %v2521_v51  ;;  %10275 = vst [vmem:[#allocation83_spill] sm:$0xff] %v7794_v35  ;;  %v7797_v51 = vld [vmem:[#allocation3 + $0x2a0] ss:$16 sps:$4 sm:$0xff]   ;;  %v7800_v0 = vld [vmem:[#allocation3 + $0x2a8] ss:$16 sps:$4 sm:$0xff]   ;;  %10278 = vst [vmem:[#allocation86_spill] sm:$0xff] %v7803_v61 }
 0x63a   :  { %5684 = vrcp.f32 %v2630_v46  ;;  %10276 = vst [vmem:[#allocation84_spill] sm:$0xff] %v7797_v51  ;;  %10277 = vst [vmem:[#allocation85_spill] sm:$0xff] %v7800_v0  ;;  %v7815_v46 = vld [vmem:[#allocation3 + $0x264] ss:$16 sps:$4 sm:$0xff]  }
 0x63b   :  { %10282 = vst [vmem:[#allocation90_spill] sm:$0xff] %v7815_v46 }
 0x642   :  { %v5679_v4 = vpop.eup %5678 }
 0x643   :  { %v5681_v49 = vpop.eup %5680 }
 0x644   :  { %v5683_v32 = vpop.eup %5682  ;;  %v2639_v24 = vmul.f32 %v5681_v49, %v5679_v4  ;;  %v7806_v4 = vld [vmem:[#allocation3 + $0x28c] ss:$16 sps:$4 sm:$0xff]   ;;  %v7809_v49 = vld [vmem:[#allocation3 + $0x280] ss:$16 sps:$4 sm:$0xff]  }
 0x645   :  { %v2638_v28 = vmul.f32 %v5683_v32, %v7453_v42  ;;  %v7776_v42 = vld [vmem:[#allocation3 + $0x2e8] ss:$16 sps:$4 sm:$0xff]   ;;  %10279 = vst [vmem:[#allocation87_spill] sm:$0xff] %v7806_v4  ;;  %10280 = vst [vmem:[#allocation88_spill] sm:$0xff] %v7809_v49 }
 0x646   :  { %v7812_v32 = vld [vmem:[#allocation3 + $0x288] ss:$16 sps:$4 sm:$0xff]  }
 0x647   :  { %v7766_v29 = vadd.f32 %v2639_v24, %v2638_v28  ;;  %v5685_v23 = vpop.eup %5684  ;;  %10281 = vst [vmem:[#allocation89_spill] sm:$0xff] %v7812_v32  ;;  %v7818_v28 = vld [vmem:[#allocation3 + $0x26c] ss:$16 sps:$4 sm:$0xff]   ;;  %v7821_v24 = vld [vmem:[#allocation3 + $0x260] ss:$16 sps:$4 sm:$0xff]  }
 0x648   :  { %10283 = vst [vmem:[#allocation91_spill] sm:$0xff] %v7818_v28  ;;  %10284 = vst [vmem:[#allocation92_spill] sm:$0xff] %v7821_v24 }
 0x649   :  { %5686 = vtanh.f32 %v7766_v29 }
 0x656   :  { %v5687_v55 = vpop.eup %5686 }
 0x657   :  { %v2642_v25 = vmul.f32 %v5687_v55, %v5685_v23  ;;  %v7824_v23 = vld [vmem:[#allocation3 + $0x268] ss:$16 sps:$4 sm:$0xff]   ;;  %v7827_v55 = vld [vmem:[#allocation3 + $0x244] ss:$16 sps:$4 sm:$0xff]  }
 0x658   :  { %10285 = vst [vmem:[#allocation93_spill] sm:$0xff] %v7824_v23  ;;  %10286 = vst [vmem:[#allocation94_spill] sm:$0xff] %v7827_v55 }
 0x659   :  { %v7769_v10 = vpack.c.bf16 %v2642_v25, %v2642_v25  ;;  %v7830_v25 = vld [vmem:[#allocation3 + $0x24c] ss:$16 sps:$4 sm:$0xff]  }
 0x65a   :  { %10287 = vst [vmem:[#allocation95_spill] sm:$0xff] %v7830_v25 }
 0x65b   :  { %2677 = vmatmul.mubr.bf16.vlgmr.msra.gmra.mxu0 %v7769_v10  ;;  %2718 = vmatmul.mubr.bf16.vlgmr.msra.gmra.mxu1 %v7769_v10 }
 0x65c   :  { %2784 = vmatprep.mubr.bf16.mxu0 %v2751_v22  ;;  %2825 = vmatprep.mubr.bf16.mxu1 %v2751_v22  ;;  %v7833_v22 = vld [vmem:[#allocation3 + $0x240] ss:$16 sps:$4 sm:$0xff]  }
 0x65d   :  { %2753 = vmatpush1.bf16.msra.mxu0 %v7773_v47  ;;  %2794 = vmatpush1.bf16.msra.mxu1 %v7776_v42  ;;  %10288 = vst [vmem:[#allocation96_spill] sm:$0xff] %v7833_v22 }
 0x65e   :  { %2754 = vmatprep.subr.bf16.mxu0 %v7779_v13  ;;  %2795 = vmatprep.subr.bf16.mxu1 %v7782_v60 }
 0x661   :  { %2755 = vmatpush1.bf16.msra.mxu0 %v7785_v15  ;;  %2796 = vmatpush1.bf16.msra.mxu1 %v7788_v50 }
 0x662   :  { %2756 = vmatprep.subr.bf16.mxu0 %v7791_v52  ;;  %2797 = vmatprep.subr.bf16.mxu1 %v7794_v35 }
 0x665   :  { %2757 = vmatpush1.bf16.msra.mxu0 %v7797_v51  ;;  %2798 = vmatpush1.bf16.msra.mxu1 %v7800_v0 }
 0x666   :  { %2758 = vmatprep.subr.bf16.mxu0 %v7803_v61  ;;  %2799 = vmatprep.subr.bf16.mxu1 %v7806_v4 }
 0x669   :  { %2759 = vmatpush1.bf16.msra.mxu0 %v7809_v49  ;;  %2800 = vmatpush1.bf16.msra.mxu1 %v7812_v32 }
 0x66a   :  { %2760 = vmatprep.subr.bf16.mxu0 %v7815_v46  ;;  %2801 = vmatprep.subr.bf16.mxu1 %v7818_v28  ;;  %v7836_v28 = vld [vmem:[#allocation3 + $0x248] ss:$16 sps:$4 sm:$0xff]  }
 0x66b   :  { %10289 = vst [vmem:[#allocation97_spill] sm:$0xff] %v7836_v28 }
 0x66d   :  { %2761 = vmatpush1.bf16.msra.mxu0 %v7821_v24  ;;  %2802 = vmatpush1.bf16.msra.mxu1 %v7824_v23  ;;  %v7839_v24 = vld [vmem:[#allocation3 + $0x224] ss:$16 sps:$4 sm:$0xff]   ;;  %v7842_v23 = vld [vmem:[#allocation3 + $0x22c] ss:$16 sps:$4 sm:$0xff]  }
 0x66e   :  { %2762 = vmatprep.subr.bf16.mxu0 %v7827_v55  ;;  %2803 = vmatprep.subr.bf16.mxu1 %v7830_v25  ;;  %10290 = vst [vmem:[#allocation98_spill] sm:$0xff] %v7839_v24  ;;  %10291 = vst [vmem:[#allocation99_spill] sm:$0xff] %v7842_v23  ;;  %v7845_v55 = vld [vmem:[#allocation3 + $0x220] ss:$16 sps:$4 sm:$0xff]   ;;  %v7848_v25 = vld [vmem:[#allocation3 + $0x228] ss:$16 sps:$4 sm:$0xff]  }
 0x66f   :  { %10292 = vst [vmem:[#allocation100_spill] sm:$0xff] %v7845_v55  ;;  %10293 = vst [vmem:[#allocation101_spill] sm:$0xff] %v7848_v25 }
 0x671   :  { %2763 = vmatpush1.bf16.msra.mxu0 %v7833_v22  ;;  %2804 = vmatpush1.bf16.msra.mxu1 %v7836_v28  ;;  %v7851_v22 = vld [vmem:[#allocation3 + $0x204] ss:$16 sps:$4 sm:$0xff]   ;;  %v7854_v28 = vld [vmem:[#allocation3 + $0x20c] ss:$16 sps:$4 sm:$0xff]  }
 0x672   :  { %2764 = vmatprep.subr.bf16.mxu0 %v7839_v24  ;;  %2805 = vmatprep.subr.bf16.mxu1 %v7842_v23  ;;  %10294 = vst [vmem:[#allocation102_spill] sm:$0xff] %v7851_v22  ;;  %10295 = vst [vmem:[#allocation103_spill] sm:$0xff] %v7854_v28  ;;  %v7857_v24 = vld [vmem:[#allocation3 + $0x200] ss:$16 sps:$4 sm:$0xff]   ;;  %v7860_v23 = vld [vmem:[#allocation3 + $0x208] ss:$16 sps:$4 sm:$0xff]  }
 0x673   :  { %10296 = vst [vmem:[#allocation104_spill] sm:$0xff] %v7857_v24  ;;  %10297 = vst [vmem:[#allocation105_spill] sm:$0xff] %v7860_v23 }
 0x675   :  { %2765 = vmatpush1.bf16.msra.mxu0 %v7845_v55  ;;  %2806 = vmatpush1.bf16.msra.mxu1 %v7848_v25  ;;  %v7863_v55 = vld [vmem:[#allocation3 + $0x3e4] ss:$16 sps:$4 sm:$0xff]   ;;  %v7866_v25 = vld [vmem:[#allocation3 + $0x3ec] ss:$16 sps:$4 sm:$0xff]  }
 0x676   :  { %2766 = vmatprep.subr.bf16.mxu0 %v7851_v22  ;;  %2807 = vmatprep.subr.bf16.mxu1 %v7854_v28  ;;  %10298 = vst [vmem:[#allocation106_spill] sm:$0xff] %v7863_v55  ;;  %10299 = vst [vmem:[#allocation107_spill] sm:$0xff] %v7866_v25  ;;  %v7869_v22 = vld [vmem:[#allocation3 + $0x3e0] ss:$16 sps:$4 sm:$0xff]   ;;  %v7872_v28 = vld [vmem:[#allocation3 + $0x3e8] ss:$16 sps:$4 sm:$0xff]  }
 0x677   :  { %10300 = vst [vmem:[#allocation108_spill] sm:$0xff] %v7869_v22  ;;  %10301 = vst [vmem:[#allocation109_spill] sm:$0xff] %v7872_v28 }
 0x679   :  { %2767 = vmatpush1.bf16.msra.mxu0 %v7857_v24  ;;  %2808 = vmatpush1.bf16.msra.mxu1 %v7860_v23  ;;  %v7875_v24 = vld [vmem:[#allocation3 + $0x3c4] ss:$16 sps:$4 sm:$0xff]   ;;  %v7878_v23 = vld [vmem:[#allocation3 + $0x3cc] ss:$16 sps:$4 sm:$0xff]  }
 0x67a   :  { %2768 = vmatprep.subr.bf16.mxu0 %v7863_v55  ;;  %2809 = vmatprep.subr.bf16.mxu1 %v7866_v25  ;;  %10302 = vst [vmem:[#allocation110_spill] sm:$0xff] %v7875_v24  ;;  %10303 = vst [vmem:[#allocation111_spill] sm:$0xff] %v7878_v23  ;;  %v7881_v55 = vld [vmem:[#allocation3 + $0x3c0] ss:$16 sps:$4 sm:$0xff]   ;;  %v7884_v25 = vld [vmem:[#allocation3 + $0x3c8] ss:$16 sps:$4 sm:$0xff]  }
 0x67b   :  { %10304 = vst [vmem:[#allocation112_spill] sm:$0xff] %v7881_v55  ;;  %10305 = vst [vmem:[#allocation113_spill] sm:$0xff] %v7884_v25 }
 0x67d   :  { %2769 = vmatpush2.bf16.msra.mxu0 %v7869_v22  ;;  %2810 = vmatpush2.bf16.msra.mxu1 %v7872_v28  ;;  %v7887_v22 = vld [vmem:[#allocation3 + $0x3a4] ss:$16 sps:$4 sm:$0xff]   ;;  %v7890_v28 = vld [vmem:[#allocation3 + $0x3ac] ss:$16 sps:$4 sm:$0xff]  }
 0x67e   :  { %2770 = vmatprep.subr.bf16.mxu0 %v7875_v24  ;;  %2811 = vmatprep.subr.bf16.mxu1 %v7878_v23  ;;  %10306 = vst [vmem:[#allocation114_spill] sm:$0xff] %v7887_v22  ;;  %10307 = vst [vmem:[#allocation115_spill] sm:$0xff] %v7890_v28  ;;  %v7893_v24 = vld [vmem:[#allocation3 + $0x3a0] ss:$16 sps:$4 sm:$0xff]   ;;  %v7896_v23 = vld [vmem:[#allocation3 + $0x3a8] ss:$16 sps:$4 sm:$0xff]  }
 0x67f   :  { %10308 = vst [vmem:[#allocation116_spill] sm:$0xff] %v7893_v24  ;;  %10309 = vst [vmem:[#allocation117_spill] sm:$0xff] %v7896_v23 }
 0x681   :  { %2771 = vmatpush2.bf16.msra.mxu0 %v7881_v55  ;;  %2812 = vmatpush2.bf16.msra.mxu1 %v7884_v25  ;;  %v7899_v55 = vld [vmem:[#allocation3 + $0x384] ss:$16 sps:$4 sm:$0xff]   ;;  %v7902_v25 = vld [vmem:[#allocation3 + $0x38c] ss:$16 sps:$4 sm:$0xff]  }
 0x682   :  { %2772 = vmatprep.subr.bf16.mxu0 %v7887_v22  ;;  %2813 = vmatprep.subr.bf16.mxu1 %v7890_v28  ;;  %10310 = vst [vmem:[#allocation118_spill] sm:$0xff] %v7899_v55  ;;  %10311 = vst [vmem:[#allocation119_spill] sm:$0xff] %v7902_v25  ;;  %v7905_v22 = vld [vmem:[#allocation3 + $0x380] ss:$16 sps:$4 sm:$0xff]   ;;  %v7908_v28 = vld [vmem:[#allocation3 + $0x388] ss:$16 sps:$4 sm:$0xff]  }
 0x683   :  { %10312 = vst [vmem:[#allocation120_spill] sm:$0xff] %v7905_v22  ;;  %10313 = vst [vmem:[#allocation121_spill] sm:$0xff] %v7908_v28 }
 0x685   :  { %2773 = vmatpush2.bf16.msra.mxu0 %v7893_v24  ;;  %2814 = vmatpush2.bf16.msra.mxu1 %v7896_v23  ;;  %v7911_v24 = vld [vmem:[#allocation3 + $0x364] ss:$16 sps:$4 sm:$0xff]   ;;  %v7914_v23 = vld [vmem:[#allocation3 + $0x36c] ss:$16 sps:$4 sm:$0xff]  }
 0x686   :  { %2774 = vmatprep.subr.bf16.mxu0 %v7899_v55  ;;  %2815 = vmatprep.subr.bf16.mxu1 %v7902_v25  ;;  %10314 = vst [vmem:[#allocation122_spill] sm:$0xff] %v7911_v24  ;;  %10315 = vst [vmem:[#allocation123_spill] sm:$0xff] %v7914_v23  ;;  %v7917_v55 = vld [vmem:[#allocation3 + $0x360] ss:$16 sps:$4 sm:$0xff]   ;;  %v7920_v25 = vld [vmem:[#allocation3 + $0x368] ss:$16 sps:$4 sm:$0xff]  }
 0x687   :  { %10316 = vst [vmem:[#allocation124_spill] sm:$0xff] %v7917_v55  ;;  %10317 = vst [vmem:[#allocation125_spill] sm:$0xff] %v7920_v25 }
 0x689   :  { %2775 = vmatpush2.bf16.msra.mxu0 %v7905_v22  ;;  %2816 = vmatpush2.bf16.msra.mxu1 %v7908_v28  ;;  %v7923_v22 = vld [vmem:[#allocation3 + $0x344] ss:$16 sps:$4 sm:$0xff]   ;;  %v7926_v28 = vld [vmem:[#allocation3 + $0x34c] ss:$16 sps:$4 sm:$0xff]  }
 0x68a   :  { %2776 = vmatprep.subr.bf16.mxu0 %v7911_v24  ;;  %2817 = vmatprep.subr.bf16.mxu1 %v7914_v23  ;;  %10318 = vst [vmem:[#allocation126_spill] sm:$0xff] %v7923_v22  ;;  %10319 = vst [vmem:[#allocation127_spill] sm:$0xff] %v7926_v28  ;;  %v7929_v24 = vld [vmem:[#allocation3 + $0x340] ss:$16 sps:$4 sm:$0xff]   ;;  %v7932_v23 = vld [vmem:[#allocation3 + $0x348] ss:$16 sps:$4 sm:$0xff]  }
 0x68b   :  { %10320 = vst [vmem:[#allocation128_spill] sm:$0xff] %v7929_v24  ;;  %10321 = vst [vmem:[#allocation129_spill] sm:$0xff] %v7932_v23 }
 0x68d   :  { %2777 = vmatpush2.bf16.msra.mxu0 %v7917_v55  ;;  %2818 = vmatpush2.bf16.msra.mxu1 %v7920_v25  ;;  %v7935_v55 = vld [vmem:[#allocation3 + $0x324] ss:$16 sps:$4 sm:$0xff]   ;;  %v7938_v25 = vld [vmem:[#allocation3 + $0x32c] ss:$16 sps:$4 sm:$0xff]  }
 0x68e   :  { %2778 = vmatprep.subr.bf16.mxu0 %v7923_v22  ;;  %2819 = vmatprep.subr.bf16.mxu1 %v7926_v28  ;;  %10322 = vst [vmem:[#allocation130_spill] sm:$0xff] %v7935_v55  ;;  %10323 = vst [vmem:[#allocation131_spill] sm:$0xff] %v7938_v25  ;;  %v7941_v22 = vld [vmem:[#allocation3 + $0x320] ss:$16 sps:$4 sm:$0xff]   ;;  %v7944_v28 = vld [vmem:[#allocation3 + $0x328] ss:$16 sps:$4 sm:$0xff]  }
 0x68f   :  { %10324 = vst [vmem:[#allocation132_spill] sm:$0xff] %v7941_v22  ;;  %10325 = vst [vmem:[#allocation133_spill] sm:$0xff] %v7944_v28 }
 0x691   :  { %2779 = vmatpush2.bf16.msra.mxu0 %v7929_v24  ;;  %2820 = vmatpush2.bf16.msra.mxu1 %v7932_v23  ;;  %v7947_v24 = vld [vmem:[#allocation3 + $0x304] ss:$16 sps:$4 sm:$0xff]   ;;  %v7950_v23 = vld [vmem:[#allocation3 + $0x30c] ss:$16 sps:$4 sm:$0xff]  }
 0x692   :  { %2780 = vmatprep.subr.bf16.mxu0 %v7935_v55  ;;  %2821 = vmatprep.subr.bf16.mxu1 %v7938_v25  ;;  %10326 = vst [vmem:[#allocation134_spill] sm:$0xff] %v7947_v24  ;;  %10327 = vst [vmem:[#allocation135_spill] sm:$0xff] %v7950_v23  ;;  %v7953_v55 = vld [vmem:[#allocation3 + $0x300] ss:$16 sps:$4 sm:$0xff]   ;;  %v7956_v25 = vld [vmem:[#allocation3 + $0x308] ss:$16 sps:$4 sm:$0xff]  }
 0x693   :  { %10328 = vst [vmem:[#allocation136_spill] sm:$0xff] %v7953_v55  ;;  %10329 = vst [vmem:[#allocation137_spill] sm:$0xff] %v7956_v25 }
 0x695   :  { %2781 = vmatpush2.bf16.msra.mxu0 %v7941_v22  ;;  %2822 = vmatpush2.bf16.msra.mxu1 %v7944_v28  ;;  %v7959_v22 = vld [vmem:[#allocation9 + $0xe4] ss:$16 sps:$4 sm:$0xff]   ;;  %v7962_v28 = vld [vmem:[#allocation9 + $0xec] ss:$16 sps:$4 sm:$0xff]  }
 0x696   :  { %2782 = vmatprep.subr.bf16.mxu0 %v7947_v24  ;;  %2823 = vmatprep.subr.bf16.mxu1 %v7950_v23  ;;  %10330 = vst [vmem:[#allocation138_spill] sm:$0xff] %v7959_v22  ;;  %10331 = vst [vmem:[#allocation139_spill] sm:$0xff] %v7962_v28  ;;  %v2859_v23 = vsel %vm2858_vm0, 1, %v10111_v7 }
 0x697   :  { %2861 = vperm.xlu1 %5351, %v2859_v23  }
 0x699   :  { %2783 = vmatpush2.bf16.msra.mxu0 %v7953_v55  ;;  %2824 = vmatpush2.bf16.msra.mxu1 %v7956_v25 }
 0x69a   :  { %2869 = vmatprep.subr.bf16.mxu0 %v7959_v22  ;;  %2910 = vmatprep.subr.bf16.mxu1 %v7962_v28 }
 0x71b   :  { %v2678_v24 = vpop.f32.mrf.mxu0  ;;  %v2719_v46 = vpop.f32.mrf.mxu1 }
 0x71c   :  { %v2679_v55 = vadd.f32 %v2678_v24, %v6763_v54  ;;  %v2720_v19 = vadd.f32 %v2719_v46, %v6767_v56 }
 0x71d   :  { %v2680_v32 = vpop.f32.mrf.mxu0  ;;  %v2721_v49 = vpop.f32.mrf.mxu1 }
 0x71e   :  { %v5091_v25 = vmul.f32 -1.442695, %v2679_v55  ;;  %v2681_v4 = vadd.f32 %v2680_v32, %v10222_v26  ;;  %v5093_v35 = vmul.f32 -1.442695, %v2720_v19  ;;  %v2722_v52 = vadd.f32 %v2721_v49, %v6769_v57 }
 0x71f   :  { %v2682_v61 = vpop.f32.mrf.mxu0  ;;  %v2723_v22 = vpop.f32.mrf.mxu1 }
 0x720   :  { %5688 = vpow2.f32 %v5091_v25  ;;  %v5092_v0 = vmul.f32 -1.442695, %v2681_v4  ;;  %v7985_v22 = vld [vmem:[#allocation9 + $0xc4] ss:$16 sps:$4 sm:$0xff]  }
 0x721   :  { %v2683_v51 = vpop.f32.mrf.mxu0  ;;  %v2724_v28 = vpop.f32.mrf.mxu1 }
 0x722   :  { %5690 = vpow2.f32 %v5092_v0 }
 0x723   :  { %5692 = vpow2.f32 %v5093_v35 }
 0x72d   :  { %v5689_v23 = vpop.eup %5688 }
 0x72e   :  { %v2735_v50 = vadd.f32 1.0, %v5689_v23  ;;  %v7988_v23 = vld [vmem:[#allocation9 + $0xcc] ss:$16 sps:$4 sm:$0xff]  }
 0x72f   :  { %v5691_v24 = vpop.eup %5690 }
 0x730   :  { %5694 = vrcp.f32 %v2735_v50  ;;  %v2736_v55 = vadd.f32 1.0, %v5691_v24  ;;  %v5693_v61 = vpop.eup %5692  ;;  %v7993_v24 = vld [vmem:[#allocation9 + $0xc0] ss:$16 sps:$4 sm:$0xff]  }
 0x731   :  { %5696 = vtanh.f32 %v2722_v52  ;;  %v2737_v51 = vadd.f32 1.0, %v5693_v61  ;;  %v7979_v52 = vld [vmem:[#allocation9 + $0xe0] ss:$16 sps:$4 sm:$0xff]   ;;  %v7999_v61 = vld [vmem:[#allocation9 + $0xa4] ss:$16 sps:$4 sm:$0xff]  }
 0x732   :  { %5698 = vrcp.f32 %v2736_v55  ;;  %v7996_v55 = vld [vmem:[#allocation9 + $0xc8] ss:$16 sps:$4 sm:$0xff]  }
 0x733   :  { %5700 = vrcp.f32 %v2737_v51  ;;  %v8011_v51 = vld [vmem:[#allocation9 + $0x84] ss:$16 sps:$4 sm:$0xff]  }
 0x734   :  { %10332 = vst [vmem:[#allocation27_spill] sm:$0xff] %v8011_v51 }
 0x73d   :  { %v5695_v32 = vpop.eup %5694 }
 0x73e   :  { %v5697_v25 = vpop.eup %5696 }
 0x73f   :  { %v5699_v4 = vpop.eup %5698  ;;  %v2746_v28 = vmul.f32 %v5697_v25, %v5695_v32  ;;  %v8002_v32 = vld [vmem:[#allocation9 + $0xac] ss:$16 sps:$4 sm:$0xff]   ;;  %v8005_v25 = vld [vmem:[#allocation9 + $0xa0] ss:$16 sps:$4 sm:$0xff]  }
 0x740   :  { %v2745_v0 = vmul.f32 %v5699_v4, %v7535_v43  ;;  %v5701_v19 = vpop.eup %5700  ;;  %v7982_v43 = vld [vmem:[#allocation9 + $0xe8] ss:$16 sps:$4 sm:$0xff]  }
 0x741   :  { %v8008_v4 = vld [vmem:[#allocation9 + $0xa8] ss:$16 sps:$4 sm:$0xff]  }
 0x742   :  { %v7972_v46 = vadd.f32 %v2746_v28, %v2745_v0  ;;  %v8014_v0 = vld [vmem:[#allocation9 + $0x8c] ss:$16 sps:$4 sm:$0xff]   ;;  %v8017_v28 = vld [vmem:[#allocation9 + $0x80] ss:$16 sps:$4 sm:$0xff]  }
 0x743   :  { %10333 = vst [vmem:[#allocation140_spill] sm:$0xff] %v8014_v0  ;;  %10334 = vst [vmem:[#allocation141_spill] sm:$0xff] %v8017_v28 }
 0x744   :  { %5702 = vtanh.f32 %v7972_v46 }
 0x751   :  { %v5703_v49 = vpop.eup %5702 }
 0x752   :  { %v2749_v35 = vmul.f32 %v5703_v49, %v5701_v19  ;;  %v8020_v19 = vld [vmem:[#allocation9 + $0x88] ss:$16 sps:$4 sm:$0xff]   ;;  %v8023_v49 = vld [vmem:[#allocation9 + $0x64] ss:$16 sps:$4 sm:$0xff]  }
 0x753   :  { %10335 = vst [vmem:[#allocation142_spill] sm:$0xff] %v8020_v19  ;;  %10336 = vst [vmem:[#allocation143_spill] sm:$0xff] %v8023_v49 }
 0x754   :  { %v7975_v50 = vpack.c.bf16 %v2749_v35, %v2749_v35  ;;  %v8026_v35 = vld [vmem:[#allocation9 + $0x6c] ss:$16 sps:$4 sm:$0xff]  }
 0x755   :  { %10337 = vst [vmem:[#allocation144_spill] sm:$0xff] %v8026_v35 }
 0x756   :  { %2785 = vmatmul.mubr.bf16.vlgmr.msra.gmra.mxu0 %v7975_v50  ;;  %2826 = vmatmul.mubr.bf16.vlgmr.msra.gmra.mxu1 %v7975_v50 }
 0x757   :  { %2870 = vmatpush1.bf16.msra.mxu0 %v7979_v52  ;;  %2911 = vmatpush1.bf16.msra.mxu1 %v7982_v43 }
 0x758   :  { %2871 = vmatprep.subr.bf16.mxu0 %v7985_v22  ;;  %2912 = vmatprep.subr.bf16.mxu1 %v7988_v23 }
 0x759   :  { %2901 = vmatprep.mubr.bf16.mxu0 %v10111_v7  ;;  %2942 = vmatprep.mubr.bf16.mxu1 %v10111_v7 }
 0x75b   :  { %2872 = vmatpush1.bf16.msra.mxu0 %v7993_v24  ;;  %2913 = vmatpush1.bf16.msra.mxu1 %v7996_v55 }
 0x75c   :  { %2873 = vmatprep.subr.bf16.mxu0 %v7999_v61  ;;  %2914 = vmatprep.subr.bf16.mxu1 %v8002_v32 }
 0x75f   :  { %2874 = vmatpush1.bf16.msra.mxu0 %v8005_v25  ;;  %2915 = vmatpush1.bf16.msra.mxu1 %v8008_v4 }
 0x760   :  { %2875 = vmatprep.subr.bf16.mxu0 %v8011_v51  ;;  %2916 = vmatprep.subr.bf16.mxu1 %v8014_v0  ;;  %v8029_v51 = vld [vmem:[#allocation9 + $0x60] ss:$16 sps:$4 sm:$0xff]   ;;  %v8032_v0 = vld [vmem:[#allocation9 + $0x68] ss:$16 sps:$4 sm:$0xff]  }
 0x761   :  { %10338 = vst [vmem:[#allocation145_spill] sm:$0xff] %v8029_v51  ;;  %10339 = vst [vmem:[#allocation146_spill] sm:$0xff] %v8032_v0 }
 0x763   :  { %2876 = vmatpush1.bf16.msra.mxu0 %v8017_v28  ;;  %2917 = vmatpush1.bf16.msra.mxu1 %v8020_v19  ;;  %v8035_v28 = vld [vmem:[#allocation9 + $0x44] ss:$16 sps:$4 sm:$0xff]   ;;  %v8038_v19 = vld [vmem:[#allocation9 + $0x4c] ss:$16 sps:$4 sm:$0xff]  }
 0x764   :  { %2877 = vmatprep.subr.bf16.mxu0 %v8023_v49  ;;  %2918 = vmatprep.subr.bf16.mxu1 %v8026_v35  ;;  %10340 = vst [vmem:[#allocation147_spill] sm:$0xff] %v8035_v28  ;;  %10341 = vst [vmem:[#allocation148_spill] sm:$0xff] %v8038_v19  ;;  %v8041_v49 = vld [vmem:[#allocation9 + $0x40] ss:$16 sps:$4 sm:$0xff]   ;;  %v8044_v35 = vld [vmem:[#allocation9 + $0x48] ss:$16 sps:$4 sm:$0xff]  }
 0x765   :  { %10342 = vst [vmem:[#allocation149_spill] sm:$0xff] %v8041_v49  ;;  %10343 = vst [vmem:[#allocation150_spill] sm:$0xff] %v8044_v35 }
 0x767   :  { %2878 = vmatpush1.bf16.msra.mxu0 %v8029_v51  ;;  %2919 = vmatpush1.bf16.msra.mxu1 %v8032_v0  ;;  %v8047_v51 = vld [vmem:[#allocation9 + $0x24] ss:$16 sps:$4 sm:$0xff]   ;;  %v8050_v0 = vld [vmem:[#allocation9 + $0x2c] ss:$16 sps:$4 sm:$0xff]  }
 0x768   :  { %2879 = vmatprep.subr.bf16.mxu0 %v8035_v28  ;;  %2920 = vmatprep.subr.bf16.mxu1 %v8038_v19  ;;  %10344 = vst [vmem:[#allocation151_spill] sm:$0xff] %v8047_v51  ;;  %10345 = vst [vmem:[#allocation152_spill] sm:$0xff] %v8050_v0  ;;  %v8053_v28 = vld [vmem:[#allocation9 + $0x20] ss:$16 sps:$4 sm:$0xff]   ;;  %v8056_v19 = vld [vmem:[#allocation9 + $0x28] ss:$16 sps:$4 sm:$0xff]  }
 0x769   :  { %10346 = vst [vmem:[#allocation153_spill] sm:$0xff] %v8053_v28  ;;  %10347 = vst [vmem:[#allocation154_spill] sm:$0xff] %v8056_v19 }
 0x76b   :  { %2880 = vmatpush1.bf16.msra.mxu0 %v8041_v49  ;;  %2921 = vmatpush1.bf16.msra.mxu1 %v8044_v35  ;;  %v8059_v49 = vld [vmem:[#allocation9 + $0x4] ss:$16 sps:$4 sm:$0xff]   ;;  %v8062_v35 = vld [vmem:[#allocation9 + $0xc] ss:$16 sps:$4 sm:$0xff]  }
 0x76c   :  { %2881 = vmatprep.subr.bf16.mxu0 %v8047_v51  ;;  %2922 = vmatprep.subr.bf16.mxu1 %v8050_v0  ;;  %v8065_v51 = vld [vmem:[#allocation9] ss:$16 sps:$4 sm:$0xff]   ;;  %v8068_v0 = vld [vmem:[#allocation9 + $0x8] ss:$16 sps:$4 sm:$0xff]  }
 0x76d   :  { %10348 = vst [vmem:[#allocation155_spill] sm:$0xff] %v8065_v51  ;;  %10349 = vst [vmem:[#allocation156_spill] sm:$0xff] %v8068_v0 }
 0x76f   :  { %2882 = vmatpush1.bf16.msra.mxu0 %v8053_v28  ;;  %2923 = vmatpush1.bf16.msra.mxu1 %v8056_v19  ;;  %v8071_v28 = vld [vmem:[#allocation3 + $0xe4] ss:$16 sps:$4 sm:$0xff]   ;;  %v8074_v19 = vld [vmem:[#allocation3 + $0xec] ss:$16 sps:$4 sm:$0xff]  }
 0x770   :  { %2883 = vmatprep.subr.bf16.mxu0 %v8059_v49  ;;  %2924 = vmatprep.subr.bf16.mxu1 %v8062_v35  ;;  %10350 = vst [vmem:[#allocation157_spill] sm:$0xff] %v8071_v28  ;;  %10351 = vst [vmem:[#allocation158_spill] sm:$0xff] %v8074_v19 }
 0x773   :  { %2884 = vmatpush1.bf16.msra.mxu0 %v8065_v51  ;;  %2925 = vmatpush1.bf16.msra.mxu1 %v8068_v0  ;;  %v8081_v51 = vld [vmem:[#allocation3 + $0xe0] ss:$16 sps:$4 sm:$0xff]   ;;  %v8084_v0 = vld [vmem:[#allocation3 + $0xe8] ss:$16 sps:$4 sm:$0xff]  }
 0x774   :  { %2980 = vmatprep.subr.bf16.mxu0 %v8071_v28  ;;  %3021 = vmatprep.subr.bf16.mxu1 %v8074_v19  ;;  %v8087_v28 = vld [vmem:[#allocation3 + $0xc4] ss:$16 sps:$4 sm:$0xff]   ;;  %v8091_v19 = vld [vmem:[#allocation3 + $0xc0] ss:$16 sps:$4 sm:$0xff]  }
 0x775   :  { %10352 = vst [vmem:[#allocation159_spill] sm:$0xff] %v8087_v28 }
 0x776   :  { %2902 = vmatmul.mubr.bf16.vlgmr.msra.gmra.mxu0 %v7769_v10  ;;  %2943 = vmatmul.mubr.bf16.vlgmr.msra.gmra.mxu1 %v7769_v10  ;;  %v8095_v10 = vld [vmem:[#allocation3 + $0xa4] ss:$16 sps:$4 sm:$0xff]  }
 0x777   :  { %3012 = vmatprep.mubr.bf16.mxu0 %v7975_v50  ;;  %3053 = vmatprep.mubr.bf16.mxu1 %v7975_v50  ;;  %v8099_v50 = vld [vmem:[#allocation3 + $0xa0] ss:$16 sps:$4 sm:$0xff]  }
 0x778   :  { %2981 = vmatpush1.bf16.msra.mxu0 %v8081_v51  ;;  %3022 = vmatpush1.bf16.msra.mxu1 %v8084_v0 }
 0x779   :  { %2982 = vmatprep.subr.bf16.mxu0 %v8087_v28  ;;  %3023 = vmatprep.subr.bf16.mxu1 %v7577_v63  ;;  %v8103_v28 = vld [vmem:[#allocation3 + $0x84] ss:$16 sps:$4 sm:$0xff]  }
 0x77a   :  { %v8109_v63 = vld [vmem:[#allocation3 + $0x64] ss:$16 sps:$4 sm:$0xff]  }
 0x77c   :  { %2983 = vmatpush1.bf16.msra.mxu0 %v8091_v19  ;;  %3024 = vmatpush1.bf16.msra.mxu1 %v7581_v5  ;;  %v10353_v5 = vld [vmem:[#allocation62_spill] sm:$0xff] }
 0x77d   :  { %2984 = vmatprep.subr.bf16.mxu0 %v8095_v10  ;;  %3025 = vmatprep.subr.bf16.mxu1 %v7585_v12  ;;  %v10354_v12 = vld [vmem:[#allocation65_spill] sm:$0xff] }
 0x780   :  { %2985 = vmatpush1.bf16.msra.mxu0 %v8099_v50  ;;  %3026 = vmatpush1.bf16.msra.mxu1 %v7589_v6  ;;  %v10355_v6 = vld [vmem:[#allocation63_spill] sm:$0xff] }
 0x781   :  { %2986 = vmatprep.subr.bf16.mxu0 %v8103_v28  ;;  %3027 = vmatprep.subr.bf16.mxu1 %v7593_v8  ;;  %v10356_v8 = vld [vmem:[#allocation68_spill] sm:$0xff] }
 0x784   :  { %2987 = vmatpush1.bf16.msra.mxu0 %v7596_v3  ;;  %3028 = vmatpush1.bf16.msra.mxu1 %v7599_v2  ;;  %v10357_v3 = vld [vmem:[#allocation64_spill] sm:$0xff]  ;;  %v10358_v2 = vld [vmem:[#allocation69_spill] sm:$0xff] }
 0x785   :  { %2988 = vmatprep.subr.bf16.mxu0 %v8109_v63  ;;  %3029 = vmatprep.subr.bf16.mxu1 %v7603_v1  ;;  %v10359_v1 = vld [vmem:[#allocation66_spill] sm:$0xff] }
 0x788   :  { %2989 = vmatpush1.bf16.msra.mxu0 %v7606_v62  ;;  %3030 = vmatpush1.bf16.msra.mxu1 %v7609_v9  ;;  %v10360_v62 = vld [vmem:[#allocation71_spill] sm:$0xff] }
 0x789   :  { %2990 = vmatprep.subr.bf16.mxu0 %v7612_v17  ;;  %3031 = vmatprep.subr.bf16.mxu1 %v7615_v53  ;;  %v10361_v9 = vld [vmem:[#allocation67_spill] sm:$0xff]  ;;  %v10362_v17 = vld [vmem:[#allocation73_spill] sm:$0xff]  ;;  %v10363_v53 = vld [vmem:[#allocation70_spill] sm:$0xff] }
 0x78c   :  { %2991 = vmatpush1.bf16.msra.mxu0 %v7618_v45  ;;  %3032 = vmatpush1.bf16.msra.mxu1 %v7621_v59  ;;  %v10364_v45 = vld [vmem:[#allocation75_spill] sm:$0xff]  ;;  %v10365_v59 = vld [vmem:[#allocation72_spill] sm:$0xff] }
 0x78d   :  { %2992 = vmatprep.subr.bf16.mxu0 %v7624_v30  ;;  %3033 = vmatprep.subr.bf16.mxu1 %v7627_v31  ;;  %v10366_v30 = vld [vmem:[#allocation77_spill] sm:$0xff] }
 0x78e   :  { %v10367_v31 = vld [vmem:[#allocation33_spill] sm:$0xff] }
 0x790   :  { %2993 = vmatpush1.bf16.msra.mxu0 %v7630_v33  ;;  %3034 = vmatpush1.bf16.msra.mxu1 %v7633_v58  ;;  %v10368_v33 = vld [vmem:[#allocation35_spill] sm:$0xff]  ;;  %v10369_v58 = vld [vmem:[#allocation34_spill] sm:$0xff] }
 0x791   :  { %2994 = vmatprep.subr.bf16.mxu0 %v7636_v36  ;;  %3035 = vmatprep.subr.bf16.mxu1 %v7639_v37  ;;  %v10370_v36 = vld [vmem:[#allocation36_spill] sm:$0xff]  ;;  %v10371_v37 = vld [vmem:[#allocation61_spill] sm:$0xff] }
 0x794   :  { %2995 = vmatpush1.bf16.msra.mxu0 %v7642_v38  ;;  %3036 = vmatpush1.bf16.msra.mxu1 %v7645_v39  ;;  %v10372_v38 = vld [vmem:[#allocation74_spill] sm:$0xff]  ;;  %v10373_v39 = vld [vmem:[#allocation79_spill] sm:$0xff] }
 0x795   :  { %2996 = vmatprep.subr.bf16.mxu0 %v7648_v40  ;;  %3037 = vmatprep.subr.bf16.mxu1 %v7651_v41  ;;  %v10374_v40 = vld [vmem:[#allocation76_spill] sm:$0xff] }
 0x796   :  { %v10375_v41 = vld [vmem:[#allocation80_spill] sm:$0xff] }
 0x798   :  { %2997 = vmatpush2.bf16.msra.mxu0 %v7654_v44  ;;  %3038 = vmatpush2.bf16.msra.mxu1 %v7657_v48  ;;  %v10376_v44 = vld [vmem:[#allocation78_spill] sm:$0xff] }
 0x799   :  { %2998 = vmatprep.subr.bf16.mxu0 %v7660_v18  ;;  %3039 = vmatprep.subr.bf16.mxu1 %v7663_v20  ;;  %v10377_v20 = vld [vmem:[#allocation28_spill] sm:$0xff] }
 0x79c   :  { %2999 = vmatpush2.bf16.msra.mxu0 %v7666_v34  ;;  %3040 = vmatpush2.bf16.msra.mxu1 %v7669_v14 }
 0x79d   :  { %3000 = vmatprep.subr.bf16.mxu0 %v7672_v21  ;;  %3041 = vmatprep.subr.bf16.mxu1 %v7675_v11 }
 0x7a0   :  { %3001 = vmatpush2.bf16.msra.mxu0 %v10353_v5  ;;  %3042 = vmatpush2.bf16.msra.mxu1 %v10354_v12  ;;  %v10378_v5 = vld [vmem:[#allocation29_spill] sm:$0xff] }
 0x7a1   :  { %3002 = vmatprep.subr.bf16.mxu0 %v10355_v6  ;;  %3043 = vmatprep.subr.bf16.mxu1 %v10356_v8 }
 0x7a4   :  { %3003 = vmatpush2.bf16.msra.mxu0 %v10357_v3  ;;  %3044 = vmatpush2.bf16.msra.mxu1 %v10358_v2 }
 0x7a5   :  { %3004 = vmatprep.subr.bf16.mxu0 %v10359_v1  ;;  %3045 = vmatprep.subr.bf16.mxu1 %v10360_v62  ;;  %v10379_v62 = vld [vmem:[#allocation30_spill] sm:$0xff] }
 0x7a8   :  { %3005 = vmatpush2.bf16.msra.mxu0 %v10361_v9  ;;  %3046 = vmatpush2.bf16.msra.mxu1 %v10362_v17 }
 0x7a9   :  { %3006 = vmatprep.subr.bf16.mxu0 %v10363_v53  ;;  %3047 = vmatprep.subr.bf16.mxu1 %v10364_v45  ;;  %v10380_v45 = vld [vmem:[#allocation31_spill] sm:$0xff] }
 0x7ac   :  { %3007 = vmatpush2.bf16.msra.mxu0 %v10365_v59  ;;  %3048 = vmatpush2.bf16.msra.mxu1 %v10366_v30 }
 0x7ad   :  { %3008 = vmatprep.subr.bf16.mxu0 %v10367_v31  ;;  %3049 = vmatprep.subr.bf16.mxu1 %v10368_v33 }
 0x7b0   :  { %3009 = vmatpush2.bf16.msra.mxu0 %v10369_v58  ;;  %3050 = vmatpush2.bf16.msra.mxu1 %v10370_v36 }
 0x7b1   :  { %3010 = vmatprep.subr.bf16.mxu0 %v10371_v37  ;;  %3051 = vmatprep.subr.bf16.mxu1 %v10372_v38  ;;  %v10381_v38 = vld [vmem:[#allocation41_spill] sm:$0xff] }
 0x7b4   :  { %3011 = vmatpush2.bf16.msra.mxu0 %v10373_v39  ;;  %3052 = vmatpush2.bf16.msra.mxu1 %v10374_v40 }
 0x7b5   :  { %3088 = vmatprep.subr.bf16.mxu0 %v10375_v41  ;;  %3129 = vmatprep.subr.bf16.mxu1 %v10376_v44 }
 0x816   :  { %v2786_v48 = vpop.f32.mrf.mxu0  ;;  %v2827_v18 = vpop.f32.mrf.mxu1 }
 0x817   :  { %v2787_v34 = vadd.f32 %v2786_v48, %v10377_v20  ;;  %v2828_v9 = vadd.f32 %v2827_v18, %v10379_v62 }
 0x818   :  { %v2788_v14 = vpop.f32.mrf.mxu0  ;;  %v2829_v21 = vpop.f32.mrf.mxu1 }
 0x819   :  { %v5094_v11 = vmul.f32 -1.442695, %v2787_v34  ;;  %v2789_v12 = vadd.f32 %v2788_v14, %v10378_v5  ;;  %v5096_v17 = vmul.f32 -1.442695, %v2828_v9  ;;  %v2830_v59 = vadd.f32 %v2829_v21, %v10380_v45  ;;  %v10382_v34 = vld [vmem:[#allocation43_spill] sm:$0xff] }
 0x81a   :  { %v2790_v6 = vpop.f32.mrf.mxu0  ;;  %v2831_v8 = vpop.f32.mrf.mxu1 }
 0x81b   :  { %5704 = vpow2.f32 %v5094_v11  ;;  %v5095_v3 = vmul.f32 -1.442695, %v2789_v12 }
 0x81c   :  { %v2791_v2 = vpop.f32.mrf.mxu0  ;;  %v2832_v1 = vpop.f32.mrf.mxu1 }
 0x81d   :  { %5706 = vpow2.f32 %v5095_v3 }
 0x81e   :  { %5708 = vpow2.f32 %v5096_v17 }
 0x828   :  { %v5705_v53 = vpop.eup %5704 }
 0x829   :  { %v2843_v30 = vadd.f32 1.0, %v5705_v53  ;;  %v10383_v53 = vld [vmem:[#allocation42_spill] sm:$0xff] }
 0x82a   :  { %v5707_v31 = vpop.eup %5706 }
 0x82b   :  { %5710 = vrcp.f32 %v2843_v30  ;;  %v2844_v33 = vadd.f32 1.0, %v5707_v31  ;;  %v5709_v37 = vpop.eup %5708 }
 0x82c   :  { %5712 = vtanh.f32 %v2830_v59  ;;  %v2845_v11 = vadd.f32 1.0, %v5709_v37 }
 0x82d   :  { %5714 = vrcp.f32 %v2844_v33  ;;  %v10384_v33 = vld [vmem:[#allocation44_spill] sm:$0xff] }
 0x836   :  { %v2903_v58 = vpop.f32.mrf.mxu0  ;;  %v2944_v36 = vpop.f32.mrf.mxu1 }
 0x837   :  { %v2951_v39 = vadd.f32 %v2903_v58, %v10381_v38  ;;  %v2953_v59 = vadd.f32 %v2944_v36, %v10383_v53  ;;  %v2862_v38 = vpop.permute.xlu1 %2861  ;;  %v10387_v53 = vld [vmem:[#allocation83_spill] sm:$0xff] }
 0x838   :  { %v5711_v40 = vpop.eup %5710  ;;  %v2905_v41 = vpop.f32.mrf.mxu0  ;;  %vm2863_vm1 = vcmp.eq.s32.totalorder %v2862_v38, 1  ;;  %v10399_v38 = vld [vmem:[#allocation95_spill] sm:$0xff] }
 0x839   :  { %v2946_v44 = vpop.f32.mrf.mxu1  ;;  %v5713_v48 = vpop.eup %5712  ;;  %v5097_v18 = vmul.f32 -1.442695, %v2951_v39  ;;  %v2952_v14 = vadd.f32 %v2905_v41, %v10382_v34  ;;  %v5099_v30 = vmul.f32 -1.442695, %v2953_v59  ;;  %v10388_v59 = vld [vmem:[#allocation84_spill] sm:$0xff] }
 0x83a   :  { %v5715_v21 = vpop.eup %5714  ;;  %v2907_v12 = vpop.f32.mrf.mxu0  ;;  %v2854_v3 = vmul.f32 %v5713_v48, %v5711_v40  ;;  %v2954_v58 = vadd.f32 %v2946_v44, %v10384_v33  ;;  %v10396_v33 = vld [vmem:[#allocation92_spill] sm:$0xff] }
 0x83b   :  { %v2948_v6 = vpop.f32.mrf.mxu1  ;;  %v2853_v8 = vmul.f32 %v5715_v21, %v7757_v16  ;;  %5716 = vpow2.f32 %v5097_v18  ;;  %v5098_v2 = vmul.f32 -1.442695, %v2952_v14 }
 0x83c   :  { %v2908_v1 = vpop.f32.mrf.mxu0 }
 0x83d   :  { %v2949_v9 = vpop.f32.mrf.mxu1  ;;  %v8168_v17 = vadd.f32 %v2854_v3, %v2853_v8  ;;  %5718 = vpow2.f32 %v5098_v2 }
 0x83e   :  { %5720 = vrcp.f32 %v2845_v11  ;;  %v10386_v9 = vld [vmem:[#allocation82_spill] sm:$0xff] }
 0x83f   :  { %5722 = vtanh.f32 %v8168_v17 }
 0x840   :  { %5724 = vpow2.f32 %v5099_v30  ;;  %v10389_v30 = vld [vmem:[#allocation85_spill] sm:$0xff] }
 0x848   :  { %v5717_v31 = vpop.eup %5716 }
 0x849   :  { %v2964_v37 = vadd.f32 1.0, %v5717_v31  ;;  %v10390_v31 = vld [vmem:[#allocation86_spill] sm:$0xff] }
 0x84a   :  { %v5719_v16 = vpop.eup %5718 }
 0x84b   :  { %v5721_v39 = vpop.eup %5720  ;;  %5726 = vrcp.f32 %v2964_v37  ;;  %v2965_v40 = vadd.f32 1.0, %v5719_v16  ;;  %v10398_v37 = vld [vmem:[#allocation94_spill] sm:$0xff]  ;;  %v10400_v16 = vld [vmem:[#allocation96_spill] sm:$0xff] }
 0x84c   :  { %v5723_v41 = vpop.eup %5722  ;;  %5728 = vtanh.f32 %v2954_v58  ;;  %v10397_v58 = vld [vmem:[#allocation93_spill] sm:$0xff] }
 0x84d   :  { %5730 = vrcp.f32 %v2965_v40  ;;  %v2857_v48 = vmul.f32 %v5723_v41, %v5721_v39  ;;  %v5725_v36 = vpop.eup %5724  ;;  %v10401_v39 = vld [vmem:[#allocation97_spill] sm:$0xff]  ;;  %v10402_v40 = vld [vmem:[#allocation98_spill] sm:$0xff]  ;;  %v10403_v41 = vld [vmem:[#allocation99_spill] sm:$0xff] }
 0x84e   :  { %v2966_v44 = vadd.f32 1.0, %v5725_v36  ;;  %v10405_v36 = vld [vmem:[#allocation101_spill] sm:$0xff] }
 0x84f   :  { %v8174_v18 = vsel %vm2863_vm1, %v2857_v48, %v7763_v27  ;;  %v3087_v27 = vpack.c.bf16 %v2857_v48, %v2857_v48  ;;  %v10404_v48 = vld [vmem:[#allocation100_spill] sm:$0xff] }
 0x850   :  { %5732 = vrcp.f32 %v2966_v44  ;;  %v10409_v44 = vld [vmem:[#allocation105_spill] sm:$0xff] }
 0x858   :  { %v5727_v34 = vpop.eup %5726 }
 0x859   :  { %v5729_v14 = vpop.eup %5728 }
 0x85a   :  { %v5731_v21 = vpop.eup %5730  ;;  %v2975_v12 = vmul.f32 %v5729_v14, %v5727_v34  ;;  %v10406_v34 = vld [vmem:[#allocation102_spill] sm:$0xff]  ;;  %v10407_v14 = vld [vmem:[#allocation103_spill] sm:$0xff] }
 0x85b   :  { %v2974_v11 = vmul.f32 %v5731_v21, %v7766_v29  ;;  %v10385_v29 = vld [vmem:[#allocation81_spill] sm:$0xff]  ;;  %v10408_v21 = vld [vmem:[#allocation104_spill] sm:$0xff] }
 0x85d   :  { %v8177_v6 = vadd.f32 %v2975_v12, %v2974_v11  ;;  %v5733_v8 = vpop.eup %5732  ;;  %v10410_v11 = vld [vmem:[#allocation106_spill] sm:$0xff]  ;;  %v10411_v12 = vld [vmem:[#allocation107_spill] sm:$0xff] }
 0x85f   :  { %5734 = vtanh.f32 %v8177_v6 }
 0x86c   :  { %v5735_v3 = vpop.eup %5734 }
 0x86d   :  { %v2978_v2 = vmul.f32 %v5735_v3, %v5733_v8  ;;  %v10412_v8 = vld [vmem:[#allocation108_spill] sm:$0xff]  ;;  %v10413_v3 = vld [vmem:[#allocation109_spill] sm:$0xff] }
 0x86f   :  { %v8180_v1 = vpack.c.bf16 %v2978_v2, %v2978_v2  ;;  %v10414_v2 = vld [vmem:[#allocation110_spill] sm:$0xff] }
 0x871   :  { %3013 = vmatmul.mubr.bf16.vlgmr.msra.gmra.mxu0 %v8180_v1  ;;  %3054 = vmatmul.mubr.bf16.vlgmr.msra.gmra.mxu1 %v8180_v1 }
 0x872   :  { %3120 = vmatprep.mubr.bf16.mxu0 %v3087_v27  ;;  %3161 = vmatprep.mubr.bf16.mxu1 %v3087_v27  ;;  %v10415_v27 = vld [vmem:[#allocation111_spill] sm:$0xff] }
 0x873   :  { %3089 = vmatpush1.bf16.msra.mxu0 %v7773_v47  ;;  %3130 = vmatpush1.bf16.msra.mxu1 %v7776_v42  ;;  %v10391_v47 = vld [vmem:[#allocation87_spill] sm:$0xff]  ;;  %v10392_v42 = vld [vmem:[#allocation88_spill] sm:$0xff] }
 0x874   :  { %3090 = vmatprep.subr.bf16.mxu0 %v7779_v13  ;;  %3131 = vmatprep.subr.bf16.mxu1 %v7782_v60  ;;  %v10393_v13 = vld [vmem:[#allocation89_spill] sm:$0xff]  ;;  %v10394_v60 = vld [vmem:[#allocation90_spill] sm:$0xff] }
 0x877   :  { %3091 = vmatpush1.bf16.msra.mxu0 %v7785_v15  ;;  %3132 = vmatpush1.bf16.msra.mxu1 %v10385_v29  ;;  %v10395_v15 = vld [vmem:[#allocation91_spill] sm:$0xff]  ;;  %v10416_v29 = vld [vmem:[#allocation112_spill] sm:$0xff] }
 0x878   :  { %3092 = vmatprep.subr.bf16.mxu0 %v10386_v9  ;;  %3133 = vmatprep.subr.bf16.mxu1 %v10387_v53  ;;  %v10417_v9 = vld [vmem:[#allocation113_spill] sm:$0xff]  ;;  %v10418_v53 = vld [vmem:[#allocation114_spill] sm:$0xff] }
 0x87b   :  { %3093 = vmatpush1.bf16.msra.mxu0 %v10388_v59  ;;  %3134 = vmatpush1.bf16.msra.mxu1 %v10389_v30  ;;  %v10419_v59 = vld [vmem:[#allocation115_spill] sm:$0xff]  ;;  %v10420_v30 = vld [vmem:[#allocation116_spill] sm:$0xff] }
 0x87c   :  { %3094 = vmatprep.subr.bf16.mxu0 %v10390_v31  ;;  %3135 = vmatprep.subr.bf16.mxu1 %v10391_v47  ;;  %v10421_v31 = vld [vmem:[#allocation117_spill] sm:$0xff]  ;;  %v10422_v47 = vld [vmem:[#allocation118_spill] sm:$0xff] }
 0x87f   :  { %3095 = vmatpush1.bf16.msra.mxu0 %v10392_v42  ;;  %3136 = vmatpush1.bf16.msra.mxu1 %v10393_v13  ;;  %v10423_v42 = vld [vmem:[#allocation119_spill] sm:$0xff]  ;;  %v10424_v13 = vld [vmem:[#allocation120_spill] sm:$0xff] }
 0x880   :  { %3096 = vmatprep.subr.bf16.mxu0 %v10394_v60  ;;  %3137 = vmatprep.subr.bf16.mxu1 %v10395_v15  ;;  %v10425_v60 = vld [vmem:[#allocation121_spill] sm:$0xff]  ;;  %v10426_v15 = vld [vmem:[#allocation122_spill] sm:$0xff] }
 0x883   :  { %3097 = vmatpush1.bf16.msra.mxu0 %v10396_v33  ;;  %3138 = vmatpush1.bf16.msra.mxu1 %v10397_v58  ;;  %v10427_v33 = vld [vmem:[#allocation123_spill] sm:$0xff]  ;;  %v10428_v58 = vld [vmem:[#allocation124_spill] sm:$0xff] }
 0x884   :  { %3098 = vmatprep.subr.bf16.mxu0 %v10398_v37  ;;  %3139 = vmatprep.subr.bf16.mxu1 %v10399_v38  ;;  %v10429_v37 = vld [vmem:[#allocation125_spill] sm:$0xff]  ;;  %v10430_v38 = vld [vmem:[#allocation126_spill] sm:$0xff] }
 0x887   :  { %3099 = vmatpush1.bf16.msra.mxu0 %v10400_v16  ;;  %3140 = vmatpush1.bf16.msra.mxu1 %v10401_v39  ;;  %v10431_v16 = vld [vmem:[#allocation127_spill] sm:$0xff]  ;;  %v10432_v39 = vld [vmem:[#allocation128_spill] sm:$0xff] }
 0x888   :  { %3100 = vmatprep.subr.bf16.mxu0 %v10402_v40  ;;  %3141 = vmatprep.subr.bf16.mxu1 %v10403_v41  ;;  %v10433_v40 = vld [vmem:[#allocation129_spill] sm:$0xff]  ;;  %v10434_v41 = vld [vmem:[#allocation130_spill] sm:$0xff] }
 0x88b   :  { %3101 = vmatpush1.bf16.msra.mxu0 %v10404_v48  ;;  %3142 = vmatpush1.bf16.msra.mxu1 %v10405_v36  ;;  %v10435_v48 = vld [vmem:[#allocation131_spill] sm:$0xff]  ;;  %v10436_v36 = vld [vmem:[#allocation132_spill] sm:$0xff] }
 0x88c   :  { %3102 = vmatprep.subr.bf16.mxu0 %v10406_v34  ;;  %3143 = vmatprep.subr.bf16.mxu1 %v10407_v14  ;;  %v10437_v34 = vld [vmem:[#allocation133_spill] sm:$0xff]  ;;  %v10438_v14 = vld [vmem:[#allocation134_spill] sm:$0xff] }
 0x88f   :  { %3103 = vmatpush1.bf16.msra.mxu0 %v10408_v21  ;;  %3144 = vmatpush1.bf16.msra.mxu1 %v10409_v44  ;;  %v10439_v21 = vld [vmem:[#allocation135_spill] sm:$0xff]  ;;  %v10440_v44 = vld [vmem:[#allocation136_spill] sm:$0xff] }
 0x890   :  { %3104 = vmatprep.subr.bf16.mxu0 %v10410_v11  ;;  %3145 = vmatprep.subr.bf16.mxu1 %v10411_v12  ;;  %v10441_v11 = vld [vmem:[#allocation137_spill] sm:$0xff]  ;;  %v10442_v12 = vld [vmem:[#allocation138_spill] sm:$0xff] }
 0x893   :  { %3105 = vmatpush2.bf16.msra.mxu0 %v10412_v8  ;;  %3146 = vmatpush2.bf16.msra.mxu1 %v10413_v3  ;;  %v10443_v8 = vld [vmem:[#allocation139_spill] sm:$0xff]  ;;  %v10444_v3 = vld [vmem:[#allocation32_spill] sm:$0xff] }
 0x894   :  { %3106 = vmatprep.subr.bf16.mxu0 %v10414_v2  ;;  %3147 = vmatprep.subr.bf16.mxu1 %v10415_v27  ;;  %vm3194_vm2 = vcmp.eq.s32.totalorder %v10444_v3, 3  ;;  %vm3530_vm4 = vcmp.eq.s32.totalorder %v10444_v3, 4 }
 0x895   :  { %v3195_v2 = vsel %vm3194_vm2, 1, %v10111_v7 }
 0x896   :  { %3197 = vperm.xlu1 %5351, %v3195_v2  }
 0x897   :  { %3107 = vmatpush2.bf16.msra.mxu0 %v10416_v29  ;;  %3148 = vmatpush2.bf16.msra.mxu1 %v10417_v9 }
 0x898   :  { %3108 = vmatprep.subr.bf16.mxu0 %v10418_v53  ;;  %3149 = vmatprep.subr.bf16.mxu1 %v10419_v59 }
 0x89b   :  { %3109 = vmatpush2.bf16.msra.mxu0 %v10420_v30  ;;  %3150 = vmatpush2.bf16.msra.mxu1 %v10421_v31 }
 0x89c   :  { %3110 = vmatprep.subr.bf16.mxu0 %v10422_v47  ;;  %3151 = vmatprep.subr.bf16.mxu1 %v10423_v42 }
 0x89f   :  { %3111 = vmatpush2.bf16.msra.mxu0 %v10424_v13  ;;  %3152 = vmatpush2.bf16.msra.mxu1 %v10425_v60 }
 0x8a0   :  { %3112 = vmatprep.subr.bf16.mxu0 %v10426_v15  ;;  %3153 = vmatprep.subr.bf16.mxu1 %v10427_v33 }
 0x8a3   :  { %3113 = vmatpush2.bf16.msra.mxu0 %v10428_v58  ;;  %3154 = vmatpush2.bf16.msra.mxu1 %v10429_v37 }
 0x8a4   :  { %3114 = vmatprep.subr.bf16.mxu0 %v10430_v38  ;;  %3155 = vmatprep.subr.bf16.mxu1 %v10431_v16 }
 0x8a7   :  { %3115 = vmatpush2.bf16.msra.mxu0 %v10432_v39  ;;  %3156 = vmatpush2.bf16.msra.mxu1 %v10433_v40 }
 0x8a8   :  { %3116 = vmatprep.subr.bf16.mxu0 %v10434_v41  ;;  %3157 = vmatprep.subr.bf16.mxu1 %v10435_v48 }
 0x8ab   :  { %3117 = vmatpush2.bf16.msra.mxu0 %v10436_v36  ;;  %3158 = vmatpush2.bf16.msra.mxu1 %v10437_v34 }
 0x8ac   :  { %3118 = vmatprep.subr.bf16.mxu0 %v10438_v14  ;;  %3159 = vmatprep.subr.bf16.mxu1 %v10439_v21 }
 0x8af   :  { %3119 = vmatpush2.bf16.msra.mxu0 %v10440_v44  ;;  %3160 = vmatpush2.bf16.msra.mxu1 %v10441_v11 }
 0x8b0   :  { %3205 = vmatprep.subr.bf16.mxu0 %v10442_v12  ;;  %3246 = vmatprep.subr.bf16.mxu1 %v10443_v8 }
 0x931   :  { %v3014_v27 = vpop.f32.mrf.mxu0  ;;  %v3055_v29 = vpop.f32.mrf.mxu1 }
 0x932   :  { %v3015_v9 = vadd.f32 %v3014_v27, %v6763_v54  ;;  %v3056_v33 = vadd.f32 %v3055_v29, %v6767_v56  ;;  %v10456_v29 = vld [vmem:[#allocation150_spill] sm:$0xff] }
 0x933   :  { %v3016_v53 = vpop.f32.mrf.mxu0  ;;  %v3057_v59 = vpop.f32.mrf.mxu1 }
 0x934   :  { %v5100_v30 = vmul.f32 -1.442695, %v3015_v9  ;;  %v3017_v31 = vadd.f32 %v3016_v53, %v10222_v26  ;;  %v5102_v58 = vmul.f32 -1.442695, %v3056_v33  ;;  %v3058_v38 = vadd.f32 %v3057_v59, %v6769_v57  ;;  %v10457_v9 = vld [vmem:[#allocation151_spill] sm:$0xff]  ;;  %v10458_v53 = vld [vmem:[#allocation152_spill] sm:$0xff] }
 0x935   :  { %v3018_v47 = vpop.f32.mrf.mxu0  ;;  %v3059_v42 = vpop.f32.mrf.mxu1  ;;  %v10459_v59 = vld [vmem:[#allocation153_spill] sm:$0xff]  ;;  %v8332_v33 = vld [vmem:[#allocation3 + $0x44] ss:$16 sps:$4 sm:$0xff]  }
 0x936   :  { %5736 = vpow2.f32 %v5100_v30  ;;  %v5101_v13 = vmul.f32 -1.442695, %v3017_v31  ;;  %v10460_v30 = vld [vmem:[#allocation154_spill] sm:$0xff]  ;;  %v10461_v31 = vld [vmem:[#allocation155_spill] sm:$0xff]  ;;  %v10462_v47 = vld [vmem:[#allocation156_spill] sm:$0xff] }
 0x937   :  { %v3019_v60 = vpop.f32.mrf.mxu0  ;;  %v3060_v15 = vpop.f32.mrf.mxu1  ;;  %v10463_v42 = vld [vmem:[#allocation157_spill] sm:$0xff] }
 0x938   :  { %5738 = vpow2.f32 %v5101_v13  ;;  %v10464_v13 = vld [vmem:[#allocation158_spill] sm:$0xff]  ;;  %v8326_v15 = vld [vmem:[#allocation3 + $0x60] ss:$16 sps:$4 sm:$0xff]  }
 0x939   :  { %5740 = vpow2.f32 %v5102_v58  ;;  %v8301_v60 = vld [vmem:[#allocation3 + $0xc8] ss:$16 sps:$4 sm:$0xff]   ;;  %v8335_v58 = vld [vmem:[#allocation3 + $0x4c] ss:$16 sps:$4 sm:$0xff]  }
 0x943   :  { %v5737_v37 = vpop.eup %5736 }
 0x944   :  { %v3071_v16 = vadd.f32 1.0, %v5737_v37  ;;  %v8341_v37 = vld [vmem:[#allocation3 + $0x48] ss:$16 sps:$4 sm:$0xff]  }
 0x945   :  { %v5739_v39 = vpop.eup %5738 }
 0x946   :  { %5742 = vrcp.f32 %v3071_v16  ;;  %v3072_v40 = vadd.f32 1.0, %v5739_v39  ;;  %v5741_v41 = vpop.eup %5740  ;;  %v8347_v16 = vld [vmem:[#allocation3 + $0x2c] ss:$16 sps:$4 sm:$0xff]   ;;  %v8350_v39 = vld [vmem:[#allocation3 + $0x20] ss:$16 sps:$4 sm:$0xff]  }
 0x947   :  { %5744 = vtanh.f32 %v3058_v38  ;;  %v3073_v14 = vadd.f32 1.0, %v5741_v41  ;;  %v8344_v38 = vld [vmem:[#allocation3 + $0x24] ss:$16 sps:$4 sm:$0xff]  }
 0x948   :  { %5746 = vrcp.f32 %v3072_v40  ;;  %v8353_v40 = vld [vmem:[#allocation3 + $0x28] ss:$16 sps:$4 sm:$0xff]   ;;  %v8356_v41 = vld [vmem:[#allocation3 + $0x4] ss:$16 sps:$4 sm:$0xff]  }
 0x949   :  { %5748 = vrcp.f32 %v3073_v14  ;;  %v8368_v14 = vld [vmem:[#allocation3 + $0x1e4] ss:$16 sps:$4 sm:$0xff]  }
 0x953   :  { %v5743_v48 = vpop.eup %5742 }
 0x954   :  { %v5745_v36 = vpop.eup %5744 }
 0x955   :  { %v5747_v34 = vpop.eup %5746  ;;  %v3082_v44 = vmul.f32 %v5745_v36, %v5743_v48  ;;  %v8359_v48 = vld [vmem:[#allocation3 + $0xc] ss:$16 sps:$4 sm:$0xff]   ;;  %v8362_v36 = vld [vmem:[#allocation3] ss:$16 sps:$4 sm:$0xff]  }
 0x956   :  { %v3081_v21 = vmul.f32 %v5747_v34, %v7972_v46  ;;  %v5749_v12 = vpop.eup %5748  ;;  %v10445_v46 = vld [vmem:[#allocation27_spill] sm:$0xff]  ;;  %v8365_v34 = vld [vmem:[#allocation3 + $0x8] ss:$16 sps:$4 sm:$0xff]  }
 0x958   :  { %v8255_v11 = vadd.f32 %v3082_v44, %v3081_v21  ;;  %v8371_v21 = vld [vmem:[#allocation3 + $0x1ec] ss:$16 sps:$4 sm:$0xff]   ;;  %v8374_v44 = vld [vmem:[#allocation3 + $0x1e0] ss:$16 sps:$4 sm:$0xff]  }
 0x95a   :  { %5750 = vtanh.f32 %v8255_v11 }
 0x967   :  { %v5751_v8 = vpop.eup %5750 }
 0x968   :  { %v3085_v2 = vmul.f32 %v5751_v8, %v5749_v12  ;;  %v8377_v12 = vld [vmem:[#allocation3 + $0x1e8] ss:$16 sps:$4 sm:$0xff]   ;;  %v8380_v8 = vld [vmem:[#allocation3 + $0x1c4] ss:$16 sps:$4 sm:$0xff]  }
 0x96a   :  { %v3086_v27 = vpack.c.bf16 %v3085_v2, %v3085_v2  ;;  %v8383_v2 = vld [vmem:[#allocation3 + $0x1cc] ss:$16 sps:$4 sm:$0xff]  }
 0x96c   :  { %3121 = vmatmul.mubr.bf16.vlgmr.msra.gmra.mxu0 %v3086_v27  ;;  %3162 = vmatmul.mubr.bf16.vlgmr.msra.gmra.mxu1 %v3086_v27 }
 0x96d   :  { %3206 = vmatpush1.bf16.msra.mxu0 %v7979_v52  ;;  %3247 = vmatpush1.bf16.msra.mxu1 %v7982_v43  ;;  %v10446_v52 = vld [vmem:[#allocation140_spill] sm:$0xff]  ;;  %v10447_v43 = vld [vmem:[#allocation141_spill] sm:$0xff] }
 0x96e   :  { %3207 = vmatprep.subr.bf16.mxu0 %v7985_v22  ;;  %3248 = vmatprep.subr.bf16.mxu1 %v7988_v23  ;;  %v10448_v22 = vld [vmem:[#allocation142_spill] sm:$0xff]  ;;  %v10449_v23 = vld [vmem:[#allocation143_spill] sm:$0xff] }
 0x96f   :  { %3237 = vmatprep.mubr.bf16.mxu0 %v10111_v7  ;;  %3278 = vmatprep.mubr.bf16.mxu1 %v10111_v7 }
 0x971   :  { %3208 = vmatpush1.bf16.msra.mxu0 %v7993_v24  ;;  %3249 = vmatpush1.bf16.msra.mxu1 %v7996_v55  ;;  %v10450_v24 = vld [vmem:[#allocation144_spill] sm:$0xff]  ;;  %v10451_v55 = vld [vmem:[#allocation145_spill] sm:$0xff] }
 0x972   :  { %3209 = vmatprep.subr.bf16.mxu0 %v7999_v61  ;;  %3250 = vmatprep.subr.bf16.mxu1 %v8002_v32  ;;  %v10452_v61 = vld [vmem:[#allocation146_spill] sm:$0xff]  ;;  %v10453_v32 = vld [vmem:[#allocation147_spill] sm:$0xff] }
 0x975   :  { %3210 = vmatpush1.bf16.msra.mxu0 %v8005_v25  ;;  %3251 = vmatpush1.bf16.msra.mxu1 %v8008_v4  ;;  %v10454_v25 = vld [vmem:[#allocation148_spill] sm:$0xff]  ;;  %v10455_v4 = vld [vmem:[#allocation149_spill] sm:$0xff] }
 0x976   :  { %3211 = vmatprep.subr.bf16.mxu0 %v10445_v46  ;;  %3252 = vmatprep.subr.bf16.mxu1 %v10446_v52  ;;  %v8389_v46 = vld [vmem:[#allocation3 + $0x1c8] ss:$16 sps:$4 sm:$0xff]   ;;  %v8392_v52 = vld [vmem:[#allocation3 + $0x1a4] ss:$16 sps:$4 sm:$0xff]  }
 0x979   :  { %3212 = vmatpush1.bf16.msra.mxu0 %v10447_v43  ;;  %3253 = vmatpush1.bf16.msra.mxu1 %v10448_v22  ;;  %v8395_v43 = vld [vmem:[#allocation3 + $0x1ac] ss:$16 sps:$4 sm:$0xff]   ;;  %v8398_v22 = vld [vmem:[#allocation3 + $0x1a0] ss:$16 sps:$4 sm:$0xff]  }
 0x97a   :  { %3213 = vmatprep.subr.bf16.mxu0 %v10449_v23  ;;  %3254 = vmatprep.subr.bf16.mxu1 %v10450_v24  ;;  %10466 = vst [vmem:[#allocation160_spill] sm:$0xff] %v8398_v22  ;;  %v8401_v23 = vld [vmem:[#allocation3 + $0x1a8] ss:$16 sps:$4 sm:$0xff]   ;;  %v8404_v24 = vld [vmem:[#allocation3 + $0x184] ss:$16 sps:$4 sm:$0xff]  }
 0x97b   :  { %10467 = vst [vmem:[#allocation161_spill] sm:$0xff] %v8401_v23  ;;  %10468 = vst [vmem:[#allocation37_spill] sm:$0xff] %v8404_v24 }
 0x97d   :  { %3214 = vmatpush1.bf16.msra.mxu0 %v10451_v55  ;;  %3255 = vmatpush1.bf16.msra.mxu1 %v10452_v61  ;;  %v8407_v55 = vld [vmem:[#allocation3 + $0x18c] ss:$16 sps:$4 sm:$0xff]   ;;  %v8410_v61 = vld [vmem:[#allocation3 + $0x180] ss:$16 sps:$4 sm:$0xff]  }
 0x97e   :  { %3215 = vmatprep.subr.bf16.mxu0 %v10453_v32  ;;  %3256 = vmatprep.subr.bf16.mxu1 %v10454_v25  ;;  %10469 = vst [vmem:[#allocation39_spill] sm:$0xff] %v8407_v55  ;;  %10470 = vst [vmem:[#allocation38_spill] sm:$0xff] %v8410_v61  ;;  %v8413_v32 = vld [vmem:[#allocation3 + $0x188] ss:$16 sps:$4 sm:$0xff]   ;;  %v8416_v25 = vld [vmem:[#allocation3 + $0x164] ss:$16 sps:$4 sm:$0xff]  }
 0x97f   :  { %10471 = vst [vmem:[#allocation40_spill] sm:$0xff] %v8413_v32  ;;  %10472 = vst [vmem:[#allocation62_spill] sm:$0xff] %v8416_v25 }
 0x981   :  { %3216 = vmatpush1.bf16.msra.mxu0 %v10455_v4  ;;  %3257 = vmatpush1.bf16.msra.mxu1 %v10456_v29  ;;  %v8419_v4 = vld [vmem:[#allocation3 + $0x16c] ss:$16 sps:$4 sm:$0xff]   ;;  %v8422_v29 = vld [vmem:[#allocation3 + $0x160] ss:$16 sps:$4 sm:$0xff]  }
 0x982   :  { %3217 = vmatprep.subr.bf16.mxu0 %v10457_v9  ;;  %3258 = vmatprep.subr.bf16.mxu1 %v10458_v53  ;;  %10473 = vst [vmem:[#allocation65_spill] sm:$0xff] %v8419_v4  ;;  %10474 = vst [vmem:[#allocation63_spill] sm:$0xff] %v8422_v29  ;;  %v8425_v9 = vld [vmem:[#allocation3 + $0x168] ss:$16 sps:$4 sm:$0xff]   ;;  %v8428_v53 = vld [vmem:[#allocation3 + $0x144] ss:$16 sps:$4 sm:$0xff]  }
 0x983   :  { %10475 = vst [vmem:[#allocation68_spill] sm:$0xff] %v8425_v9  ;;  %10476 = vst [vmem:[#allocation64_spill] sm:$0xff] %v8428_v53 }
 0x985   :  { %3218 = vmatpush1.bf16.msra.mxu0 %v10459_v59  ;;  %3259 = vmatpush1.bf16.msra.mxu1 %v10460_v30  ;;  %v8431_v59 = vld [vmem:[#allocation3 + $0x14c] ss:$16 sps:$4 sm:$0xff]   ;;  %v8434_v30 = vld [vmem:[#allocation3 + $0x140] ss:$16 sps:$4 sm:$0xff]  }
 0x986   :  { %3219 = vmatprep.subr.bf16.mxu0 %v8059_v49  ;;  %3260 = vmatprep.subr.bf16.mxu1 %v8062_v35  ;;  %v10465_v49 = vld [vmem:[#allocation159_spill] sm:$0xff]  ;;  %10477 = vst [vmem:[#allocation69_spill] sm:$0xff] %v8431_v59  ;;  %10478 = vst [vmem:[#allocation66_spill] sm:$0xff] %v8434_v30 }
 0x987   :  { %v8297_v35 = vld [vmem:[#allocation3 + $0xcc] ss:$16 sps:$4 sm:$0xff]  }
 0x989   :  { %3220 = vmatpush1.bf16.msra.mxu0 %v10461_v31  ;;  %3261 = vmatpush1.bf16.msra.mxu1 %v10462_v47  ;;  %v8437_v31 = vld [vmem:[#allocation3 + $0x148] ss:$16 sps:$4 sm:$0xff]   ;;  %v8440_v47 = vld [vmem:[#allocation3 + $0x124] ss:$16 sps:$4 sm:$0xff]  }
 0x98a   :  { %3316 = vmatprep.subr.bf16.mxu0 %v10463_v42  ;;  %3357 = vmatprep.subr.bf16.mxu1 %v10464_v13  ;;  %10479 = vst [vmem:[#allocation71_spill] sm:$0xff] %v8437_v31  ;;  %10480 = vst [vmem:[#allocation67_spill] sm:$0xff] %v8440_v47  ;;  %v8443_v42 = vld [vmem:[#allocation3 + $0x12c] ss:$16 sps:$4 sm:$0xff]   ;;  %v8446_v13 = vld [vmem:[#allocation3 + $0x120] ss:$16 sps:$4 sm:$0xff]  }
 0x98b   :  { %10481 = vst [vmem:[#allocation73_spill] sm:$0xff] %v8443_v42  ;;  %10482 = vst [vmem:[#allocation70_spill] sm:$0xff] %v8446_v13 }
 0x98c   :  { %3238 = vmatmul.mubr.bf16.vlgmr.msra.gmra.mxu0 %v8180_v1  ;;  %3279 = vmatmul.mubr.bf16.vlgmr.msra.gmra.mxu1 %v8180_v1  ;;  %v8305_v1 = vld [vmem:[#allocation3 + $0xac] ss:$16 sps:$4 sm:$0xff]  }
 0x98d   :  { %3348 = vmatprep.mubr.bf16.mxu0 %v3086_v27  ;;  %3389 = vmatprep.mubr.bf16.mxu1 %v3086_v27  ;;  %v8386_v27 = vld [vmem:[#allocation3 + $0x1c0] ss:$16 sps:$4 sm:$0xff]  }
 0x98e   :  { %3317 = vmatpush1.bf16.msra.mxu0 %v8081_v51  ;;  %3358 = vmatpush1.bf16.msra.mxu1 %v8084_v0  ;;  %v8309_v51 = vld [vmem:[#allocation3 + $0xa8] ss:$16 sps:$4 sm:$0xff]   ;;  %v8313_v0 = vld [vmem:[#allocation3 + $0x8c] ss:$16 sps:$4 sm:$0xff]  }
 0x98f   :  { %3318 = vmatprep.subr.bf16.mxu0 %v10465_v49  ;;  %3359 = vmatprep.subr.bf16.mxu1 %v8297_v35  ;;  %v8449_v49 = vld [vmem:[#allocation3 + $0x128] ss:$16 sps:$4 sm:$0xff]  }
 0x990   :  { %10483 = vst [vmem:[#allocation75_spill] sm:$0xff] %v8449_v49 }
 0x992   :  { %3319 = vmatpush1.bf16.msra.mxu0 %v8091_v19  ;;  %3360 = vmatpush1.bf16.msra.mxu1 %v8301_v60  ;;  %v8316_v19 = vld [vmem:[#allocation3 + $0x80] ss:$16 sps:$4 sm:$0xff]  }
 0x993   :  { %3320 = vmatprep.subr.bf16.mxu0 %v8095_v10  ;;  %3361 = vmatprep.subr.bf16.mxu1 %v8305_v1  ;;  %v8319_v10 = vld [vmem:[#allocation3 + $0x88] ss:$16 sps:$4 sm:$0xff]  }
 0x996   :  { %3321 = vmatpush1.bf16.msra.mxu0 %v8099_v50  ;;  %3362 = vmatpush1.bf16.msra.mxu1 %v8309_v51  ;;  %v8323_v50 = vld [vmem:[#allocation3 + $0x6c] ss:$16 sps:$4 sm:$0xff]  }
 0x997   :  { %3322 = vmatprep.subr.bf16.mxu0 %v8103_v28  ;;  %3363 = vmatprep.subr.bf16.mxu1 %v8313_v0  ;;  %v8329_v28 = vld [vmem:[#allocation3 + $0x68] ss:$16 sps:$4 sm:$0xff]  }
 0x99a   :  { %3323 = vmatpush1.bf16.msra.mxu0 %v8316_v19  ;;  %3364 = vmatpush1.bf16.msra.mxu1 %v8319_v10 }
 0x99b   :  { %3324 = vmatprep.subr.bf16.mxu0 %v8109_v63  ;;  %3365 = vmatprep.subr.bf16.mxu1 %v8323_v50  ;;  %v8338_v63 = vld [vmem:[#allocation3 + $0x40] ss:$16 sps:$4 sm:$0xff]  }
 0x99e   :  { %3325 = vmatpush1.bf16.msra.mxu0 %v8326_v15  ;;  %3366 = vmatpush1.bf16.msra.mxu1 %v8329_v28 }
 0x99f   :  { %3326 = vmatprep.subr.bf16.mxu0 %v8332_v33  ;;  %3367 = vmatprep.subr.bf16.mxu1 %v8335_v58 }
 0x9a2   :  { %3327 = vmatpush1.bf16.msra.mxu0 %v8338_v63  ;;  %3368 = vmatpush1.bf16.msra.mxu1 %v8341_v37 }
 0x9a3   :  { %3328 = vmatprep.subr.bf16.mxu0 %v8344_v38  ;;  %3369 = vmatprep.subr.bf16.mxu1 %v8347_v16 }
 0x9a6   :  { %3329 = vmatpush1.bf16.msra.mxu0 %v8350_v39  ;;  %3370 = vmatpush1.bf16.msra.mxu1 %v8353_v40 }
 0x9a7   :  { %3330 = vmatprep.subr.bf16.mxu0 %v8356_v41  ;;  %3371 = vmatprep.subr.bf16.mxu1 %v8359_v48 }
 0x9aa   :  { %3331 = vmatpush1.bf16.msra.mxu0 %v8362_v36  ;;  %3372 = vmatpush1.bf16.msra.mxu1 %v8365_v34 }
 0x9ab   :  { %3332 = vmatprep.subr.bf16.mxu0 %v8368_v14  ;;  %3373 = vmatprep.subr.bf16.mxu1 %v8371_v21 }
 0x9ae   :  { %3333 = vmatpush2.bf16.msra.mxu0 %v8374_v44  ;;  %3374 = vmatpush2.bf16.msra.mxu1 %v8377_v12 }
 0x9af   :  { %3334 = vmatprep.subr.bf16.mxu0 %v8380_v8  ;;  %3375 = vmatprep.subr.bf16.mxu1 %v8383_v2 }
 0x9b2   :  { %3335 = vmatpush2.bf16.msra.mxu0 %v8386_v27  ;;  %3376 = vmatpush2.bf16.msra.mxu1 %v8389_v46 }
 0x9b3   :  { %3336 = vmatprep.subr.bf16.mxu0 %v8392_v52  ;;  %3377 = vmatprep.subr.bf16.mxu1 %v8395_v43 }
 0x9b6   :  { %3337 = vmatpush2.bf16.msra.mxu0 %v8398_v22  ;;  %3378 = vmatpush2.bf16.msra.mxu1 %v8401_v23 }
 0x9b7   :  { %3338 = vmatprep.subr.bf16.mxu0 %v8404_v24  ;;  %3379 = vmatprep.subr.bf16.mxu1 %v8407_v55 }
 0x9ba   :  { %3339 = vmatpush2.bf16.msra.mxu0 %v8410_v61  ;;  %3380 = vmatpush2.bf16.msra.mxu1 %v8413_v32 }
 0x9bb   :  { %3340 = vmatprep.subr.bf16.mxu0 %v8416_v25  ;;  %3381 = vmatprep.subr.bf16.mxu1 %v8419_v4 }
 0x9be   :  { %3341 = vmatpush2.bf16.msra.mxu0 %v8422_v29  ;;  %3382 = vmatpush2.bf16.msra.mxu1 %v8425_v9 }
 0x9bf   :  { %3342 = vmatprep.subr.bf16.mxu0 %v8428_v53  ;;  %3383 = vmatprep.subr.bf16.mxu1 %v8431_v59 }
 0x9c2   :  { %3343 = vmatpush2.bf16.msra.mxu0 %v8434_v30  ;;  %3384 = vmatpush2.bf16.msra.mxu1 %v8437_v31  ;;  %v8452_v30 = vld [vmem:[#allocation3 + $0x104] ss:$16 sps:$4 sm:$0xff]   ;;  %v8455_v31 = vld [vmem:[#allocation3 + $0x10c] ss:$16 sps:$4 sm:$0xff]  }
 0x9c3   :  { %3344 = vmatprep.subr.bf16.mxu0 %v8440_v47  ;;  %3385 = vmatprep.subr.bf16.mxu1 %v8443_v42  ;;  %10484 = vst [vmem:[#allocation72_spill] sm:$0xff] %v8452_v30  ;;  %10485 = vst [vmem:[#allocation77_spill] sm:$0xff] %v8455_v31  ;;  %v8458_v47 = vld [vmem:[#allocation3 + $0x100] ss:$16 sps:$4 sm:$0xff]   ;;  %v8461_v42 = vld [vmem:[#allocation3 + $0x108] ss:$16 sps:$4 sm:$0xff]  }
 0x9c4   :  { %10486 = vst [vmem:[#allocation33_spill] sm:$0xff] %v8458_v47  ;;  %10487 = vst [vmem:[#allocation35_spill] sm:$0xff] %v8461_v42 }
 0x9c6   :  { %3345 = vmatpush2.bf16.msra.mxu0 %v8446_v13  ;;  %3386 = vmatpush2.bf16.msra.mxu1 %v8449_v49  ;;  %v8464_v13 = vld [vmem:[#allocation3 + $0x2e4] ss:$16 sps:$4 sm:$0xff]   ;;  %v8467_v49 = vld [vmem:[#allocation3 + $0x2ec] ss:$16 sps:$4 sm:$0xff]  }
 0x9c7   :  { %3346 = vmatprep.subr.bf16.mxu0 %v8452_v30  ;;  %3387 = vmatprep.subr.bf16.mxu1 %v8455_v31  ;;  %10488 = vst [vmem:[#allocation34_spill] sm:$0xff] %v8464_v13  ;;  %10489 = vst [vmem:[#allocation36_spill] sm:$0xff] %v8467_v49 }
 0x9ca   :  { %3347 = vmatpush2.bf16.msra.mxu0 %v8458_v47  ;;  %3388 = vmatpush2.bf16.msra.mxu1 %v8461_v42 }
 0x9cb   :  { %3424 = vmatprep.subr.bf16.mxu0 %v8464_v13  ;;  %3465 = vmatprep.subr.bf16.mxu1 %v8467_v49 }
 0xa2c   :  { %v3122_v30 = vpop.f32.mrf.mxu0  ;;  %v3163_v59 = vpop.f32.mrf.mxu1 }
 0xa2d   :  { %v3123_v31 = vadd.f32 %v3122_v30, %v10377_v20  ;;  %v3164_v13 = vadd.f32 %v3163_v59, %v10379_v62  ;;  %v10491_v62 = vld [vmem:[#allocation47_spill] sm:$0xff] }
 0xa2e   :  { %v3124_v53 = vpop.f32.mrf.mxu0  ;;  %v3165_v9 = vpop.f32.mrf.mxu1 }
 0xa2f   :  { %v5103_v29 = vmul.f32 -1.442695, %v3123_v31  ;;  %v3125_v47 = vadd.f32 %v3124_v53, %v10378_v5  ;;  %v5105_v55 = vmul.f32 -1.442695, %v3164_v13  ;;  %v3166_v24 = vadd.f32 %v3165_v9, %v10380_v45  ;;  %v10490_v53 = vld [vmem:[#allocation45_spill] sm:$0xff] }
 0xa30   :  { %v3126_v4 = vpop.f32.mrf.mxu0  ;;  %v3167_v25 = vpop.f32.mrf.mxu1 }
 0xa31   :  { %5752 = vpow2.f32 %v5103_v29  ;;  %v5104_v42 = vmul.f32 -1.442695, %v3125_v47 }
 0xa32   :  { %v3127_v32 = vpop.f32.mrf.mxu0  ;;  %v3168_v61 = vpop.f32.mrf.mxu1 }
 0xa33   :  { %5754 = vpow2.f32 %v5104_v42 }
 0xa34   :  { %5756 = vpow2.f32 %v5105_v55 }
 0xa3e   :  { %v5753_v49 = vpop.eup %5752 }
 0xa3f   :  { %v3179_v23 = vadd.f32 1.0, %v5753_v49 }
 0xa40   :  { %v5755_v30 = vpop.eup %5754 }
 0xa41   :  { %5758 = vrcp.f32 %v3179_v23  ;;  %v3180_v31 = vadd.f32 1.0, %v5755_v30  ;;  %v5757_v29 = vpop.eup %5756 }
 0xa42   :  { %5760 = vtanh.f32 %v3166_v24  ;;  %v3181_v49 = vadd.f32 1.0, %v5757_v29  ;;  %v10493_v29 = vld [vmem:[#allocation48_spill] sm:$0xff] }
 0xa43   :  { %5762 = vrcp.f32 %v3180_v31 }
 0xa4c   :  { %v3239_v4 = vpop.f32.mrf.mxu0  ;;  %v3280_v25 = vpop.f32.mrf.mxu1 }
 0xa4d   :  { %v3287_v32 = vadd.f32 %v3239_v4, %v10490_v53  ;;  %v10492_v4 = vld [vmem:[#allocation46_spill] sm:$0xff] }
 0xa4e   :  { %v5759_v61 = vpop.eup %5758  ;;  %v3241_v47 = vpop.f32.mrf.mxu0  ;;  %v3289_v53 = vadd.f32 %v3280_v25, %v10492_v4 }
 0xa4f   :  { %v3282_v42 = vpop.f32.mrf.mxu1  ;;  %v5761_v59 = vpop.eup %5760  ;;  %v5106_v13 = vmul.f32 -1.442695, %v3287_v32  ;;  %v3288_v5 = vadd.f32 %v3241_v47, %v10491_v62 }
 0xa50   :  { %v5763_v9 = vpop.eup %5762  ;;  %v3243_v45 = vpop.f32.mrf.mxu0  ;;  %v3190_v24 = vmul.f32 %v5761_v59, %v5759_v61  ;;  %v5108_v62 = vmul.f32 -1.442695, %v3289_v53 }
 0xa51   :  { %v3284_v55 = vpop.f32.mrf.mxu1  ;;  %v3189_v23 = vmul.f32 %v5763_v9, %v8168_v17  ;;  %5764 = vpow2.f32 %v5106_v13  ;;  %v5107_v30 = vmul.f32 -1.442695, %v3288_v5  ;;  %v3290_v45 = vadd.f32 %v3282_v42, %v10493_v29  ;;  %v8493_v29 = vld [vmem:[#allocation3 + $0x2e0] ss:$16 sps:$4 sm:$0xff]  }
 0xa52   :  { %v3244_v31 = vpop.f32.mrf.mxu0  ;;  %v3198_v55 = vpop.permute.xlu1 %3197 }
 0xa53   :  { %v3285_v20 = vpop.f32.mrf.mxu1  ;;  %v8477_v22 = vadd.f32 %v3190_v24, %v3189_v23  ;;  %5766 = vpow2.f32 %v5107_v30  ;;  %vm3199_vm3 = vcmp.eq.s32.totalorder %v3198_v55, 1  ;;  %v8505_v55 = vld [vmem:[#allocation3 + $0x2c0] ss:$16 sps:$4 sm:$0xff]  }
 0xa54   :  { %5768 = vrcp.f32 %v3181_v49 }
 0xa55   :  { %5770 = vtanh.f32 %v8477_v22 }
 0xa56   :  { %5772 = vpow2.f32 %v5108_v62 }
 0xa5e   :  { %v5765_v32 = vpop.eup %5764 }
 0xa5f   :  { %v3300_v47 = vadd.f32 1.0, %v5765_v32 }
 0xa60   :  { %v5767_v17 = vpop.eup %5766 }
 0xa61   :  { %v5769_v61 = vpop.eup %5768  ;;  %5774 = vrcp.f32 %v3300_v47  ;;  %v3301_v5 = vadd.f32 1.0, %v5767_v17  ;;  %v8502_v47 = vld [vmem:[#allocation3 + $0x2cc] ss:$16 sps:$4 sm:$0xff]   ;;  %v8508_v17 = vld [vmem:[#allocation3 + $0x2c8] ss:$16 sps:$4 sm:$0xff]  }
 0xa62   :  { %v5771_v20 = vpop.eup %5770  ;;  %5776 = vtanh.f32 %v3290_v45  ;;  %v8499_v45 = vld [vmem:[#allocation3 + $0x2c4] ss:$16 sps:$4 sm:$0xff]   ;;  %10494 = vst [vmem:[#allocation61_spill] sm:$0xff] %v8508_v17 }
 0xa63   :  { %5778 = vrcp.f32 %v3301_v5  ;;  %v3193_v59 = vmul.f32 %v5771_v20, %v5769_v61  ;;  %v5773_v25 = vpop.eup %5772  ;;  %v8511_v61 = vld [vmem:[#allocation3 + $0x2a4] ss:$16 sps:$4 sm:$0xff]   ;;  %v8514_v5 = vld [vmem:[#allocation3 + $0x2ac] ss:$16 sps:$4 sm:$0xff]   ;;  %v8517_v20 = vld [vmem:[#allocation3 + $0x2a0] ss:$16 sps:$4 sm:$0xff]  }
 0xa64   :  { %v3302_v42 = vadd.f32 1.0, %v5773_v25  ;;  %10495 = vst [vmem:[#allocation74_spill] sm:$0xff] %v8511_v61  ;;  %10496 = vst [vmem:[#allocation79_spill] sm:$0xff] %v8514_v5  ;;  %v8523_v25 = vld [vmem:[#allocation3 + $0x284] ss:$16 sps:$4 sm:$0xff]  }
 0xa65   :  { %v8483_v13 = vsel %vm3199_vm3, %v3193_v59, %v8174_v18  ;;  %v3423_v18 = vpack.c.bf16 %v3193_v59, %v3193_v59  ;;  %10497 = vst [vmem:[#allocation76_spill] sm:$0xff] %v8517_v20  ;;  %v8520_v59 = vld [vmem:[#allocation3 + $0x2a8] ss:$16 sps:$4 sm:$0xff]   ;;  %10499 = vst [vmem:[#allocation78_spill] sm:$0xff] %v8523_v25 }
 0xa66   :  { %5780 = vrcp.f32 %v3302_v42  ;;  %10498 = vst [vmem:[#allocation80_spill] sm:$0xff] %v8520_v59  ;;  %v8535_v42 = vld [vmem:[#allocation3 + $0x264] ss:$16 sps:$4 sm:$0xff]  }
 0xa67   :  { %10503 = vst [vmem:[#allocation44_spill] sm:$0xff] %v8535_v42 }
 0xa6e   :  { %v5775_v9 = vpop.eup %5774 }
 0xa6f   :  { %v5777_v49 = vpop.eup %5776 }
 0xa70   :  { %v5779_v23 = vpop.eup %5778  ;;  %v3311_v30 = vmul.f32 %v5777_v49, %v5775_v9  ;;  %v8526_v9 = vld [vmem:[#allocation3 + $0x28c] ss:$16 sps:$4 sm:$0xff]   ;;  %v8529_v49 = vld [vmem:[#allocation3 + $0x280] ss:$16 sps:$4 sm:$0xff]  }
 0xa71   :  { %v3310_v24 = vmul.f32 %v5779_v23, %v8177_v6  ;;  %v8496_v6 = vld [vmem:[#allocation3 + $0x2e8] ss:$16 sps:$4 sm:$0xff]   ;;  %10500 = vst [vmem:[#allocation41_spill] sm:$0xff] %v8526_v9  ;;  %10501 = vst [vmem:[#allocation43_spill] sm:$0xff] %v8529_v49 }
 0xa72   :  { %v8532_v23 = vld [vmem:[#allocation3 + $0x288] ss:$16 sps:$4 sm:$0xff]  }
 0xa73   :  { %v8486_v31 = vadd.f32 %v3311_v30, %v3310_v24  ;;  %v5781_v4 = vpop.eup %5780  ;;  %10502 = vst [vmem:[#allocation42_spill] sm:$0xff] %v8532_v23  ;;  %v8538_v24 = vld [vmem:[#allocation3 + $0x26c] ss:$16 sps:$4 sm:$0xff]   ;;  %v8541_v30 = vld [vmem:[#allocation3 + $0x260] ss:$16 sps:$4 sm:$0xff]  }
 0xa74   :  { %10504 = vst [vmem:[#allocation81_spill] sm:$0xff] %v8538_v24  ;;  %10505 = vst [vmem:[#allocation82_spill] sm:$0xff] %v8541_v30 }
 0xa75   :  { %5782 = vtanh.f32 %v8486_v31 }
 0xa82   :  { %v5783_v53 = vpop.eup %5782 }
 0xa83   :  { %v3314_v62 = vmul.f32 %v5783_v53, %v5781_v4  ;;  %v8544_v4 = vld [vmem:[#allocation3 + $0x268] ss:$16 sps:$4 sm:$0xff]   ;;  %v8547_v53 = vld [vmem:[#allocation3 + $0x244] ss:$16 sps:$4 sm:$0xff]  }
 0xa84   :  { %10506 = vst [vmem:[#allocation83_spill] sm:$0xff] %v8544_v4  ;;  %10507 = vst [vmem:[#allocation84_spill] sm:$0xff] %v8547_v53 }
 0xa85   :  { %v8489_v32 = vpack.c.bf16 %v3314_v62, %v3314_v62  ;;  %v8550_v62 = vld [vmem:[#allocation3 + $0x24c] ss:$16 sps:$4 sm:$0xff]  }
 0xa86   :  { %10508 = vst [vmem:[#allocation85_spill] sm:$0xff] %v8550_v62 }
 0xa87   :  { %3349 = vmatmul.mubr.bf16.vlgmr.msra.gmra.mxu0 %v8489_v32  ;;  %3390 = vmatmul.mubr.bf16.vlgmr.msra.gmra.mxu1 %v8489_v32 }
 0xa88   :  { %3456 = vmatprep.mubr.bf16.mxu0 %v3423_v18  ;;  %3497 = vmatprep.mubr.bf16.mxu1 %v3423_v18  ;;  %v8553_v18 = vld [vmem:[#allocation3 + $0x240] ss:$16 sps:$4 sm:$0xff]  }
 0xa89   :  { %3425 = vmatpush1.bf16.msra.mxu0 %v8493_v29  ;;  %3466 = vmatpush1.bf16.msra.mxu1 %v8496_v6  ;;  %10509 = vst [vmem:[#allocation86_spill] sm:$0xff] %v8553_v18 }
 0xa8a   :  { %3426 = vmatprep.subr.bf16.mxu0 %v8499_v45  ;;  %3467 = vmatprep.subr.bf16.mxu1 %v8502_v47 }
 0xa8d   :  { %3427 = vmatpush1.bf16.msra.mxu0 %v8505_v55  ;;  %3468 = vmatpush1.bf16.msra.mxu1 %v8508_v17 }
 0xa8e   :  { %3428 = vmatprep.subr.bf16.mxu0 %v8511_v61  ;;  %3469 = vmatprep.subr.bf16.mxu1 %v8514_v5 }
 0xa91   :  { %3429 = vmatpush1.bf16.msra.mxu0 %v8517_v20  ;;  %3470 = vmatpush1.bf16.msra.mxu1 %v8520_v59 }
 0xa92   :  { %3430 = vmatprep.subr.bf16.mxu0 %v8523_v25  ;;  %3471 = vmatprep.subr.bf16.mxu1 %v8526_v9 }
 0xa95   :  { %3431 = vmatpush1.bf16.msra.mxu0 %v8529_v49  ;;  %3472 = vmatpush1.bf16.msra.mxu1 %v8532_v23 }
 0xa96   :  { %3432 = vmatprep.subr.bf16.mxu0 %v8535_v42  ;;  %3473 = vmatprep.subr.bf16.mxu1 %v8538_v24  ;;  %v8556_v24 = vld [vmem:[#allocation3 + $0x248] ss:$16 sps:$4 sm:$0xff]  }
 0xa97   :  { %10510 = vst [vmem:[#allocation87_spill] sm:$0xff] %v8556_v24 }
 0xa99   :  { %3433 = vmatpush1.bf16.msra.mxu0 %v8541_v30  ;;  %3474 = vmatpush1.bf16.msra.mxu1 %v8544_v4  ;;  %v8559_v30 = vld [vmem:[#allocation3 + $0x224] ss:$16 sps:$4 sm:$0xff]   ;;  %v8562_v4 = vld [vmem:[#allocation3 + $0x22c] ss:$16 sps:$4 sm:$0xff]  }
 0xa9a   :  { %3434 = vmatprep.subr.bf16.mxu0 %v8547_v53  ;;  %3475 = vmatprep.subr.bf16.mxu1 %v8550_v62  ;;  %10511 = vst [vmem:[#allocation88_spill] sm:$0xff] %v8559_v30  ;;  %10512 = vst [vmem:[#allocation89_spill] sm:$0xff] %v8562_v4  ;;  %v8565_v53 = vld [vmem:[#allocation3 + $0x220] ss:$16 sps:$4 sm:$0xff]   ;;  %v8568_v62 = vld [vmem:[#allocation3 + $0x228] ss:$16 sps:$4 sm:$0xff]  }
 0xa9b   :  { %10513 = vst [vmem:[#allocation90_spill] sm:$0xff] %v8565_v53  ;;  %10514 = vst [vmem:[#allocation91_spill] sm:$0xff] %v8568_v62 }
 0xa9d   :  { %3435 = vmatpush1.bf16.msra.mxu0 %v8553_v18  ;;  %3476 = vmatpush1.bf16.msra.mxu1 %v8556_v24  ;;  %v8571_v18 = vld [vmem:[#allocation3 + $0x204] ss:$16 sps:$4 sm:$0xff]   ;;  %v8574_v24 = vld [vmem:[#allocation3 + $0x20c] ss:$16 sps:$4 sm:$0xff]  }
 0xa9e   :  { %3436 = vmatprep.subr.bf16.mxu0 %v8559_v30  ;;  %3477 = vmatprep.subr.bf16.mxu1 %v8562_v4  ;;  %10515 = vst [vmem:[#allocation92_spill] sm:$0xff] %v8571_v18  ;;  %10516 = vst [vmem:[#allocation93_spill] sm:$0xff] %v8574_v24  ;;  %v8577_v30 = vld [vmem:[#allocation3 + $0x200] ss:$16 sps:$4 sm:$0xff]   ;;  %v8580_v4 = vld [vmem:[#allocation3 + $0x208] ss:$16 sps:$4 sm:$0xff]  }
 0xa9f   :  { %10517 = vst [vmem:[#allocation94_spill] sm:$0xff] %v8577_v30  ;;  %10518 = vst [vmem:[#allocation95_spill] sm:$0xff] %v8580_v4 }
 0xaa1   :  { %3437 = vmatpush1.bf16.msra.mxu0 %v8565_v53  ;;  %3478 = vmatpush1.bf16.msra.mxu1 %v8568_v62  ;;  %v8583_v53 = vld [vmem:[#allocation3 + $0x3e4] ss:$16 sps:$4 sm:$0xff]   ;;  %v8586_v62 = vld [vmem:[#allocation3 + $0x3ec] ss:$16 sps:$4 sm:$0xff]  }
 0xaa2   :  { %3438 = vmatprep.subr.bf16.mxu0 %v8571_v18  ;;  %3479 = vmatprep.subr.bf16.mxu1 %v8574_v24  ;;  %10519 = vst [vmem:[#allocation96_spill] sm:$0xff] %v8583_v53  ;;  %10520 = vst [vmem:[#allocation97_spill] sm:$0xff] %v8586_v62  ;;  %v8589_v18 = vld [vmem:[#allocation3 + $0x3e0] ss:$16 sps:$4 sm:$0xff]   ;;  %v8592_v24 = vld [vmem:[#allocation3 + $0x3e8] ss:$16 sps:$4 sm:$0xff]  }
 0xaa3   :  { %10521 = vst [vmem:[#allocation98_spill] sm:$0xff] %v8589_v18  ;;  %10522 = vst [vmem:[#allocation99_spill] sm:$0xff] %v8592_v24 }
 0xaa5   :  { %3439 = vmatpush1.bf16.msra.mxu0 %v8577_v30  ;;  %3480 = vmatpush1.bf16.msra.mxu1 %v8580_v4  ;;  %v8595_v30 = vld [vmem:[#allocation3 + $0x3c4] ss:$16 sps:$4 sm:$0xff]   ;;  %v8598_v4 = vld [vmem:[#allocation3 + $0x3cc] ss:$16 sps:$4 sm:$0xff]  }
 0xaa6   :  { %3440 = vmatprep.subr.bf16.mxu0 %v8583_v53  ;;  %3481 = vmatprep.subr.bf16.mxu1 %v8586_v62  ;;  %10523 = vst [vmem:[#allocation100_spill] sm:$0xff] %v8595_v30  ;;  %10524 = vst [vmem:[#allocation101_spill] sm:$0xff] %v8598_v4  ;;  %v8601_v53 = vld [vmem:[#allocation3 + $0x3c0] ss:$16 sps:$4 sm:$0xff]   ;;  %v8604_v62 = vld [vmem:[#allocation3 + $0x3c8] ss:$16 sps:$4 sm:$0xff]  }
 0xaa7   :  { %10525 = vst [vmem:[#allocation102_spill] sm:$0xff] %v8601_v53  ;;  %10526 = vst [vmem:[#allocation103_spill] sm:$0xff] %v8604_v62 }
 0xaa9   :  { %3441 = vmatpush2.bf16.msra.mxu0 %v8589_v18  ;;  %3482 = vmatpush2.bf16.msra.mxu1 %v8592_v24  ;;  %v8607_v18 = vld [vmem:[#allocation3 + $0x3a4] ss:$16 sps:$4 sm:$0xff]   ;;  %v8610_v24 = vld [vmem:[#allocation3 + $0x3ac] ss:$16 sps:$4 sm:$0xff]  }
 0xaaa   :  { %3442 = vmatprep.subr.bf16.mxu0 %v8595_v30  ;;  %3483 = vmatprep.subr.bf16.mxu1 %v8598_v4  ;;  %10527 = vst [vmem:[#allocation104_spill] sm:$0xff] %v8607_v18  ;;  %10528 = vst [vmem:[#allocation105_spill] sm:$0xff] %v8610_v24  ;;  %v8613_v30 = vld [vmem:[#allocation3 + $0x3a0] ss:$16 sps:$4 sm:$0xff]   ;;  %v8616_v4 = vld [vmem:[#allocation3 + $0x3a8] ss:$16 sps:$4 sm:$0xff]  }
 0xaab   :  { %10529 = vst [vmem:[#allocation106_spill] sm:$0xff] %v8613_v30  ;;  %10530 = vst [vmem:[#allocation107_spill] sm:$0xff] %v8616_v4 }
 0xaad   :  { %3443 = vmatpush2.bf16.msra.mxu0 %v8601_v53  ;;  %3484 = vmatpush2.bf16.msra.mxu1 %v8604_v62  ;;  %v8619_v53 = vld [vmem:[#allocation3 + $0x384] ss:$16 sps:$4 sm:$0xff]   ;;  %v8622_v62 = vld [vmem:[#allocation3 + $0x38c] ss:$16 sps:$4 sm:$0xff]  }
 0xaae   :  { %3444 = vmatprep.subr.bf16.mxu0 %v8607_v18  ;;  %3485 = vmatprep.subr.bf16.mxu1 %v8610_v24  ;;  %10531 = vst [vmem:[#allocation108_spill] sm:$0xff] %v8619_v53  ;;  %10532 = vst [vmem:[#allocation109_spill] sm:$0xff] %v8622_v62  ;;  %v8625_v18 = vld [vmem:[#allocation3 + $0x380] ss:$16 sps:$4 sm:$0xff]   ;;  %v8628_v24 = vld [vmem:[#allocation3 + $0x388] ss:$16 sps:$4 sm:$0xff]  }
 0xaaf   :  { %10533 = vst [vmem:[#allocation110_spill] sm:$0xff] %v8625_v18  ;;  %10534 = vst [vmem:[#allocation111_spill] sm:$0xff] %v8628_v24 }
 0xab1   :  { %3445 = vmatpush2.bf16.msra.mxu0 %v8613_v30  ;;  %3486 = vmatpush2.bf16.msra.mxu1 %v8616_v4  ;;  %v8631_v30 = vld [vmem:[#allocation3 + $0x364] ss:$16 sps:$4 sm:$0xff]   ;;  %v8634_v4 = vld [vmem:[#allocation3 + $0x36c] ss:$16 sps:$4 sm:$0xff]  }
 0xab2   :  { %3446 = vmatprep.subr.bf16.mxu0 %v8619_v53  ;;  %3487 = vmatprep.subr.bf16.mxu1 %v8622_v62  ;;  %10535 = vst [vmem:[#allocation112_spill] sm:$0xff] %v8631_v30  ;;  %10536 = vst [vmem:[#allocation113_spill] sm:$0xff] %v8634_v4  ;;  %v8637_v53 = vld [vmem:[#allocation3 + $0x360] ss:$16 sps:$4 sm:$0xff]   ;;  %v8640_v62 = vld [vmem:[#allocation3 + $0x368] ss:$16 sps:$4 sm:$0xff]  }
 0xab3   :  { %10537 = vst [vmem:[#allocation114_spill] sm:$0xff] %v8637_v53  ;;  %10538 = vst [vmem:[#allocation115_spill] sm:$0xff] %v8640_v62 }
 0xab5   :  { %3447 = vmatpush2.bf16.msra.mxu0 %v8625_v18  ;;  %3488 = vmatpush2.bf16.msra.mxu1 %v8628_v24  ;;  %v8643_v18 = vld [vmem:[#allocation3 + $0x344] ss:$16 sps:$4 sm:$0xff]   ;;  %v8646_v24 = vld [vmem:[#allocation3 + $0x34c] ss:$16 sps:$4 sm:$0xff]  }
 0xab6   :  { %3448 = vmatprep.subr.bf16.mxu0 %v8631_v30  ;;  %3489 = vmatprep.subr.bf16.mxu1 %v8634_v4  ;;  %10539 = vst [vmem:[#allocation116_spill] sm:$0xff] %v8643_v18  ;;  %10540 = vst [vmem:[#allocation117_spill] sm:$0xff] %v8646_v24  ;;  %v8649_v30 = vld [vmem:[#allocation3 + $0x340] ss:$16 sps:$4 sm:$0xff]   ;;  %v8652_v4 = vld [vmem:[#allocation3 + $0x348] ss:$16 sps:$4 sm:$0xff]  }
 0xab7   :  { %10541 = vst [vmem:[#allocation118_spill] sm:$0xff] %v8649_v30  ;;  %10542 = vst [vmem:[#allocation119_spill] sm:$0xff] %v8652_v4 }
 0xab9   :  { %3449 = vmatpush2.bf16.msra.mxu0 %v8637_v53  ;;  %3490 = vmatpush2.bf16.msra.mxu1 %v8640_v62  ;;  %v8655_v53 = vld [vmem:[#allocation3 + $0x324] ss:$16 sps:$4 sm:$0xff]   ;;  %v8658_v62 = vld [vmem:[#allocation3 + $0x32c] ss:$16 sps:$4 sm:$0xff]  }
 0xaba   :  { %3450 = vmatprep.subr.bf16.mxu0 %v8643_v18  ;;  %3491 = vmatprep.subr.bf16.mxu1 %v8646_v24  ;;  %10543 = vst [vmem:[#allocation120_spill] sm:$0xff] %v8655_v53  ;;  %10544 = vst [vmem:[#allocation121_spill] sm:$0xff] %v8658_v62  ;;  %v8661_v18 = vld [vmem:[#allocation3 + $0x320] ss:$16 sps:$4 sm:$0xff]   ;;  %v8664_v24 = vld [vmem:[#allocation3 + $0x328] ss:$16 sps:$4 sm:$0xff]  }
 0xabb   :  { %10545 = vst [vmem:[#allocation122_spill] sm:$0xff] %v8661_v18  ;;  %10546 = vst [vmem:[#allocation123_spill] sm:$0xff] %v8664_v24 }
 0xabd   :  { %3451 = vmatpush2.bf16.msra.mxu0 %v8649_v30  ;;  %3492 = vmatpush2.bf16.msra.mxu1 %v8652_v4  ;;  %v8667_v30 = vld [vmem:[#allocation3 + $0x304] ss:$16 sps:$4 sm:$0xff]   ;;  %v8670_v4 = vld [vmem:[#allocation3 + $0x30c] ss:$16 sps:$4 sm:$0xff]  }
 0xabe   :  { %3452 = vmatprep.subr.bf16.mxu0 %v8655_v53  ;;  %3493 = vmatprep.subr.bf16.mxu1 %v8658_v62  ;;  %10547 = vst [vmem:[#allocation124_spill] sm:$0xff] %v8667_v30  ;;  %10548 = vst [vmem:[#allocation125_spill] sm:$0xff] %v8670_v4  ;;  %v8673_v53 = vld [vmem:[#allocation3 + $0x300] ss:$16 sps:$4 sm:$0xff]   ;;  %v8676_v62 = vld [vmem:[#allocation3 + $0x308] ss:$16 sps:$4 sm:$0xff]  }
 0xabf   :  { %10549 = vst [vmem:[#allocation126_spill] sm:$0xff] %v8673_v53  ;;  %10550 = vst [vmem:[#allocation127_spill] sm:$0xff] %v8676_v62 }
 0xac1   :  { %3453 = vmatpush2.bf16.msra.mxu0 %v8661_v18  ;;  %3494 = vmatpush2.bf16.msra.mxu1 %v8664_v24  ;;  %v8679_v18 = vld [vmem:[#allocation9 + $0xe4] ss:$16 sps:$4 sm:$0xff]   ;;  %v8682_v24 = vld [vmem:[#allocation9 + $0xec] ss:$16 sps:$4 sm:$0xff]  }
 0xac2   :  { %3454 = vmatprep.subr.bf16.mxu0 %v8667_v30  ;;  %3495 = vmatprep.subr.bf16.mxu1 %v8670_v4  ;;  %10551 = vst [vmem:[#allocation128_spill] sm:$0xff] %v8679_v18  ;;  %10552 = vst [vmem:[#allocation129_spill] sm:$0xff] %v8682_v24  ;;  %v3531_v4 = vsel %vm3530_vm4, 1, %v10111_v7 }
 0xac3   :  { %3533 = vperm.xlu0 %5350, %v3531_v4  }
 0xac5   :  { %3455 = vmatpush2.bf16.msra.mxu0 %v8673_v53  ;;  %3496 = vmatpush2.bf16.msra.mxu1 %v8676_v62 }
 0xac6   :  { %3541 = vmatprep.subr.bf16.mxu0 %v8679_v18  ;;  %3582 = vmatprep.subr.bf16.mxu1 %v8682_v24 }
 0xb47   :  { %v3350_v30 = vpop.f32.mrf.mxu0  ;;  %v3391_v42 = vpop.f32.mrf.mxu1 }
 0xb48   :  { %v3351_v53 = vadd.f32 %v3350_v30, %v6763_v54  ;;  %v3392_v3 = vadd.f32 %v3391_v42, %v6767_v56 }
 0xb49   :  { %v3352_v23 = vpop.f32.mrf.mxu0  ;;  %v3393_v49 = vpop.f32.mrf.mxu1 }
 0xb4a   :  { %v5109_v62 = vmul.f32 -1.442695, %v3351_v53  ;;  %v3353_v9 = vadd.f32 %v3352_v23, %v10222_v26  ;;  %v5111_v5 = vmul.f32 -1.442695, %v3392_v3  ;;  %v3394_v61 = vadd.f32 %v3393_v49, %v6769_v57 }
 0xb4b   :  { %v3354_v25 = vpop.f32.mrf.mxu0  ;;  %v3395_v18 = vpop.f32.mrf.mxu1 }
 0xb4c   :  { %5784 = vpow2.f32 %v5109_v62  ;;  %v5110_v59 = vmul.f32 -1.442695, %v3353_v9  ;;  %v8705_v18 = vld [vmem:[#allocation9 + $0xc4] ss:$16 sps:$4 sm:$0xff]  }
 0xb4d   :  { %v3355_v20 = vpop.f32.mrf.mxu0  ;;  %v3396_v24 = vpop.f32.mrf.mxu1 }
 0xb4e   :  { %5786 = vpow2.f32 %v5110_v59 }
 0xb4f   :  { %5788 = vpow2.f32 %v5111_v5 }
 0xb59   :  { %v5785_v4 = vpop.eup %5784 }
 0xb5a   :  { %v3407_v17 = vadd.f32 1.0, %v5785_v4  ;;  %v8708_v4 = vld [vmem:[#allocation9 + $0xcc] ss:$16 sps:$4 sm:$0xff]  }
 0xb5b   :  { %v5787_v30 = vpop.eup %5786 }
 0xb5c   :  { %5790 = vrcp.f32 %v3407_v17  ;;  %v3408_v53 = vadd.f32 1.0, %v5787_v30  ;;  %v5789_v25 = vpop.eup %5788  ;;  %v8713_v30 = vld [vmem:[#allocation9 + $0xc0] ss:$16 sps:$4 sm:$0xff]  }
 0xb5d   :  { %5792 = vtanh.f32 %v3394_v61  ;;  %v3409_v20 = vadd.f32 1.0, %v5789_v25  ;;  %v8699_v61 = vld [vmem:[#allocation9 + $0xe0] ss:$16 sps:$4 sm:$0xff]   ;;  %v8719_v25 = vld [vmem:[#allocation9 + $0xa4] ss:$16 sps:$4 sm:$0xff]  }
 0xb5e   :  { %5794 = vrcp.f32 %v3408_v53  ;;  %v8716_v53 = vld [vmem:[#allocation9 + $0xc8] ss:$16 sps:$4 sm:$0xff]  }
 0xb5f   :  { %5796 = vrcp.f32 %v3409_v20  ;;  %v8731_v20 = vld [vmem:[#allocation9 + $0x84] ss:$16 sps:$4 sm:$0xff]  }
 0xb60   :  { %10553 = vst [vmem:[#allocation130_spill] sm:$0xff] %v8731_v20 }
 0xb69   :  { %v5791_v23 = vpop.eup %5790 }
 0xb6a   :  { %v5793_v62 = vpop.eup %5792 }
 0xb6b   :  { %v5795_v9 = vpop.eup %5794  ;;  %v3418_v24 = vmul.f32 %v5793_v62, %v5791_v23  ;;  %v8722_v23 = vld [vmem:[#allocation9 + $0xac] ss:$16 sps:$4 sm:$0xff]   ;;  %v8725_v62 = vld [vmem:[#allocation9 + $0xa0] ss:$16 sps:$4 sm:$0xff]  }
 0xb6c   :  { %v3417_v59 = vmul.f32 %v5795_v9, %v8255_v11  ;;  %v5797_v3 = vpop.eup %5796  ;;  %v8702_v11 = vld [vmem:[#allocation9 + $0xe8] ss:$16 sps:$4 sm:$0xff]  }
 0xb6d   :  { %v8728_v9 = vld [vmem:[#allocation9 + $0xa8] ss:$16 sps:$4 sm:$0xff]  }
 0xb6e   :  { %v8692_v42 = vadd.f32 %v3418_v24, %v3417_v59  ;;  %v8734_v59 = vld [vmem:[#allocation9 + $0x8c] ss:$16 sps:$4 sm:$0xff]   ;;  %v8737_v24 = vld [vmem:[#allocation9 + $0x80] ss:$16 sps:$4 sm:$0xff]  }
 0xb6f   :  { %10554 = vst [vmem:[#allocation131_spill] sm:$0xff] %v8734_v59  ;;  %10555 = vst [vmem:[#allocation132_spill] sm:$0xff] %v8737_v24 }
 0xb70   :  { %5798 = vtanh.f32 %v8692_v42 }
 0xb7d   :  { %v5799_v49 = vpop.eup %5798 }
 0xb7e   :  { %v3421_v5 = vmul.f32 %v5799_v49, %v5797_v3  ;;  %v8740_v3 = vld [vmem:[#allocation9 + $0x88] ss:$16 sps:$4 sm:$0xff]   ;;  %v8743_v49 = vld [vmem:[#allocation9 + $0x64] ss:$16 sps:$4 sm:$0xff]  }
 0xb7f   :  { %10556 = vst [vmem:[#allocation133_spill] sm:$0xff] %v8740_v3  ;;  %10557 = vst [vmem:[#allocation134_spill] sm:$0xff] %v8743_v49 }
 0xb80   :  { %v8695_v17 = vpack.c.bf16 %v3421_v5, %v3421_v5  ;;  %v8746_v5 = vld [vmem:[#allocation9 + $0x6c] ss:$16 sps:$4 sm:$0xff]  }
 0xb81   :  { %10558 = vst [vmem:[#allocation135_spill] sm:$0xff] %v8746_v5 }
 0xb82   :  { %3457 = vmatmul.mubr.bf16.vlgmr.msra.gmra.mxu0 %v8695_v17  ;;  %3498 = vmatmul.mubr.bf16.vlgmr.msra.gmra.mxu1 %v8695_v17 }
 0xb83   :  { %3542 = vmatpush1.bf16.msra.mxu0 %v8699_v61  ;;  %3583 = vmatpush1.bf16.msra.mxu1 %v8702_v11 }
 0xb84   :  { %3543 = vmatprep.subr.bf16.mxu0 %v8705_v18  ;;  %3584 = vmatprep.subr.bf16.mxu1 %v8708_v4 }
 0xb85   :  { %3573 = vmatprep.mubr.bf16.mxu0 %v10111_v7  ;;  %3614 = vmatprep.mubr.bf16.mxu1 %v10111_v7 }
 0xb87   :  { %3544 = vmatpush1.bf16.msra.mxu0 %v8713_v30  ;;  %3585 = vmatpush1.bf16.msra.mxu1 %v8716_v53 }
 0xb88   :  { %3545 = vmatprep.subr.bf16.mxu0 %v8719_v25  ;;  %3586 = vmatprep.subr.bf16.mxu1 %v8722_v23 }
 0xb8b   :  { %3546 = vmatpush1.bf16.msra.mxu0 %v8725_v62  ;;  %3587 = vmatpush1.bf16.msra.mxu1 %v8728_v9 }
 0xb8c   :  { %3547 = vmatprep.subr.bf16.mxu0 %v8731_v20  ;;  %3588 = vmatprep.subr.bf16.mxu1 %v8734_v59  ;;  %v8749_v20 = vld [vmem:[#allocation9 + $0x60] ss:$16 sps:$4 sm:$0xff]   ;;  %v8752_v59 = vld [vmem:[#allocation9 + $0x68] ss:$16 sps:$4 sm:$0xff]  }
 0xb8d   :  { %10559 = vst [vmem:[#allocation136_spill] sm:$0xff] %v8749_v20  ;;  %10560 = vst [vmem:[#allocation137_spill] sm:$0xff] %v8752_v59 }
 0xb8f   :  { %3548 = vmatpush1.bf16.msra.mxu0 %v8737_v24  ;;  %3589 = vmatpush1.bf16.msra.mxu1 %v8740_v3  ;;  %v8755_v24 = vld [vmem:[#allocation9 + $0x44] ss:$16 sps:$4 sm:$0xff]   ;;  %v8758_v3 = vld [vmem:[#allocation9 + $0x4c] ss:$16 sps:$4 sm:$0xff]  }
 0xb90   :  { %3549 = vmatprep.subr.bf16.mxu0 %v8743_v49  ;;  %3590 = vmatprep.subr.bf16.mxu1 %v8746_v5  ;;  %10561 = vst [vmem:[#allocation138_spill] sm:$0xff] %v8755_v24  ;;  %10562 = vst [vmem:[#allocation139_spill] sm:$0xff] %v8758_v3  ;;  %v8761_v49 = vld [vmem:[#allocation9 + $0x40] ss:$16 sps:$4 sm:$0xff]   ;;  %v8764_v5 = vld [vmem:[#allocation9 + $0x48] ss:$16 sps:$4 sm:$0xff]  }
 0xb91   :  { %10563 = vst [vmem:[#allocation27_spill] sm:$0xff] %v8761_v49  ;;  %10564 = vst [vmem:[#allocation140_spill] sm:$0xff] %v8764_v5 }
 0xb93   :  { %3550 = vmatpush1.bf16.msra.mxu0 %v8749_v20  ;;  %3591 = vmatpush1.bf16.msra.mxu1 %v8752_v59  ;;  %v8767_v20 = vld [vmem:[#allocation9 + $0x24] ss:$16 sps:$4 sm:$0xff]   ;;  %v8770_v59 = vld [vmem:[#allocation9 + $0x2c] ss:$16 sps:$4 sm:$0xff]  }
 0xb94   :  { %3551 = vmatprep.subr.bf16.mxu0 %v8755_v24  ;;  %3592 = vmatprep.subr.bf16.mxu1 %v8758_v3  ;;  %10565 = vst [vmem:[#allocation141_spill] sm:$0xff] %v8767_v20  ;;  %10566 = vst [vmem:[#allocation142_spill] sm:$0xff] %v8770_v59  ;;  %v8773_v24 = vld [vmem:[#allocation9 + $0x20] ss:$16 sps:$4 sm:$0xff]   ;;  %v8776_v3 = vld [vmem:[#allocation9 + $0x28] ss:$16 sps:$4 sm:$0xff]  }
 0xb95   :  { %10567 = vst [vmem:[#allocation143_spill] sm:$0xff] %v8773_v24  ;;  %10568 = vst [vmem:[#allocation144_spill] sm:$0xff] %v8776_v3 }
 0xb97   :  { %3552 = vmatpush1.bf16.msra.mxu0 %v8761_v49  ;;  %3593 = vmatpush1.bf16.msra.mxu1 %v8764_v5  ;;  %v8779_v49 = vld [vmem:[#allocation9 + $0x4] ss:$16 sps:$4 sm:$0xff]   ;;  %v8782_v5 = vld [vmem:[#allocation9 + $0xc] ss:$16 sps:$4 sm:$0xff]  }
 0xb98   :  { %3553 = vmatprep.subr.bf16.mxu0 %v8767_v20  ;;  %3594 = vmatprep.subr.bf16.mxu1 %v8770_v59  ;;  %v8785_v20 = vld [vmem:[#allocation9] ss:$16 sps:$4 sm:$0xff]   ;;  %v8788_v59 = vld [vmem:[#allocation9 + $0x8] ss:$16 sps:$4 sm:$0xff]  }
 0xb99   :  { %10569 = vst [vmem:[#allocation145_spill] sm:$0xff] %v8785_v20  ;;  %10570 = vst [vmem:[#allocation146_spill] sm:$0xff] %v8788_v59 }
 0xb9b   :  { %3554 = vmatpush1.bf16.msra.mxu0 %v8773_v24  ;;  %3595 = vmatpush1.bf16.msra.mxu1 %v8776_v3  ;;  %v8791_v24 = vld [vmem:[#allocation3 + $0xe4] ss:$16 sps:$4 sm:$0xff]   ;;  %v8794_v3 = vld [vmem:[#allocation3 + $0xec] ss:$16 sps:$4 sm:$0xff]  }
 0xb9c   :  { %3555 = vmatprep.subr.bf16.mxu0 %v8779_v49  ;;  %3596 = vmatprep.subr.bf16.mxu1 %v8782_v5  ;;  %10571 = vst [vmem:[#allocation147_spill] sm:$0xff] %v8791_v24  ;;  %10572 = vst [vmem:[#allocation148_spill] sm:$0xff] %v8794_v3 }
 0xb9f   :  { %3556 = vmatpush1.bf16.msra.mxu0 %v8785_v20  ;;  %3597 = vmatpush1.bf16.msra.mxu1 %v8788_v59  ;;  %v8801_v20 = vld [vmem:[#allocation3 + $0xe0] ss:$16 sps:$4 sm:$0xff]   ;;  %v8804_v59 = vld [vmem:[#allocation3 + $0xe8] ss:$16 sps:$4 sm:$0xff]  }
 0xba0   :  { %3652 = vmatprep.subr.bf16.mxu0 %v8791_v24  ;;  %3693 = vmatprep.subr.bf16.mxu1 %v8794_v3  ;;  %v8807_v24 = vld [vmem:[#allocation3 + $0xc4] ss:$16 sps:$4 sm:$0xff]   ;;  %v8811_v3 = vld [vmem:[#allocation3 + $0xc0] ss:$16 sps:$4 sm:$0xff]  }
 0xba1   :  { %10573 = vst [vmem:[#allocation149_spill] sm:$0xff] %v8807_v24 }
 0xba2   :  { %3574 = vmatmul.mubr.bf16.vlgmr.msra.gmra.mxu0 %v8489_v32  ;;  %3615 = vmatmul.mubr.bf16.vlgmr.msra.gmra.mxu1 %v8489_v32  ;;  %v8815_v32 = vld [vmem:[#allocation3 + $0xa4] ss:$16 sps:$4 sm:$0xff]  }
 0xba3   :  { %3684 = vmatprep.mubr.bf16.mxu0 %v8695_v17  ;;  %3725 = vmatprep.mubr.bf16.mxu1 %v8695_v17  ;;  %v8819_v17 = vld [vmem:[#allocation3 + $0xa0] ss:$16 sps:$4 sm:$0xff]  }
 0xba4   :  { %3653 = vmatpush1.bf16.msra.mxu0 %v8801_v20  ;;  %3694 = vmatpush1.bf16.msra.mxu1 %v8804_v59 }
 0xba5   :  { %3654 = vmatprep.subr.bf16.mxu0 %v8807_v24  ;;  %3695 = vmatprep.subr.bf16.mxu1 %v8297_v35  ;;  %v8823_v24 = vld [vmem:[#allocation3 + $0x84] ss:$16 sps:$4 sm:$0xff]  }
 0xba6   :  { %v8829_v35 = vld [vmem:[#allocation3 + $0x64] ss:$16 sps:$4 sm:$0xff]  }
 0xba8   :  { %3655 = vmatpush1.bf16.msra.mxu0 %v8811_v3  ;;  %3696 = vmatpush1.bf16.msra.mxu1 %v8301_v60  ;;  %v10574_v60 = vld [vmem:[#allocation160_spill] sm:$0xff] }
 0xba9   :  { %3656 = vmatprep.subr.bf16.mxu0 %v8815_v32  ;;  %3697 = vmatprep.subr.bf16.mxu1 %v8305_v1  ;;  %v10575_v1 = vld [vmem:[#allocation161_spill] sm:$0xff] }
 0xbac   :  { %3657 = vmatpush1.bf16.msra.mxu0 %v8819_v17  ;;  %3698 = vmatpush1.bf16.msra.mxu1 %v8309_v51  ;;  %v10576_v51 = vld [vmem:[#allocation37_spill] sm:$0xff] }
 0xbad   :  { %3658 = vmatprep.subr.bf16.mxu0 %v8823_v24  ;;  %3699 = vmatprep.subr.bf16.mxu1 %v8313_v0  ;;  %v10577_v0 = vld [vmem:[#allocation39_spill] sm:$0xff] }
 0xbb0   :  { %3659 = vmatpush1.bf16.msra.mxu0 %v8316_v19  ;;  %3700 = vmatpush1.bf16.msra.mxu1 %v8319_v10  ;;  %v10578_v19 = vld [vmem:[#allocation38_spill] sm:$0xff]  ;;  %v10579_v10 = vld [vmem:[#allocation40_spill] sm:$0xff] }
 0xbb1   :  { %3660 = vmatprep.subr.bf16.mxu0 %v8829_v35  ;;  %3701 = vmatprep.subr.bf16.mxu1 %v8323_v50  ;;  %v10580_v50 = vld [vmem:[#allocation62_spill] sm:$0xff] }
 0xbb4   :  { %3661 = vmatpush1.bf16.msra.mxu0 %v8326_v15  ;;  %3702 = vmatpush1.bf16.msra.mxu1 %v8329_v28  ;;  %v10581_v15 = vld [vmem:[#allocation65_spill] sm:$0xff]  ;;  %v10582_v28 = vld [vmem:[#allocation63_spill] sm:$0xff] }
 0xbb5   :  { %3662 = vmatprep.subr.bf16.mxu0 %v8332_v33  ;;  %3703 = vmatprep.subr.bf16.mxu1 %v8335_v58  ;;  %v10583_v33 = vld [vmem:[#allocation68_spill] sm:$0xff] }
 0xbb6   :  { %v10584_v58 = vld [vmem:[#allocation64_spill] sm:$0xff] }
 0xbb8   :  { %3663 = vmatpush1.bf16.msra.mxu0 %v8338_v63  ;;  %3704 = vmatpush1.bf16.msra.mxu1 %v8341_v37  ;;  %v10585_v63 = vld [vmem:[#allocation69_spill] sm:$0xff]  ;;  %v10586_v37 = vld [vmem:[#allocation66_spill] sm:$0xff] }
 0xbb9   :  { %3664 = vmatprep.subr.bf16.mxu0 %v8344_v38  ;;  %3705 = vmatprep.subr.bf16.mxu1 %v8347_v16  ;;  %v10587_v38 = vld [vmem:[#allocation71_spill] sm:$0xff] }
 0xbba   :  { %v10588_v16 = vld [vmem:[#allocation67_spill] sm:$0xff] }
 0xbbc   :  { %3665 = vmatpush1.bf16.msra.mxu0 %v8350_v39  ;;  %3706 = vmatpush1.bf16.msra.mxu1 %v8353_v40  ;;  %v10589_v39 = vld [vmem:[#allocation73_spill] sm:$0xff]  ;;  %v10590_v40 = vld [vmem:[#allocation70_spill] sm:$0xff] }
 0xbbd   :  { %3666 = vmatprep.subr.bf16.mxu0 %v8356_v41  ;;  %3707 = vmatprep.subr.bf16.mxu1 %v8359_v48  ;;  %v10591_v41 = vld [vmem:[#allocation75_spill] sm:$0xff]  ;;  %v10592_v48 = vld [vmem:[#allocation72_spill] sm:$0xff] }
 0xbc0   :  { %3667 = vmatpush1.bf16.msra.mxu0 %v8362_v36  ;;  %3708 = vmatpush1.bf16.msra.mxu1 %v8365_v34  ;;  %v10593_v36 = vld [vmem:[#allocation77_spill] sm:$0xff] }
 0xbc1   :  { %3668 = vmatprep.subr.bf16.mxu0 %v8368_v14  ;;  %3709 = vmatprep.subr.bf16.mxu1 %v8371_v21  ;;  %v10594_v34 = vld [vmem:[#allocation33_spill] sm:$0xff]  ;;  %v10595_v14 = vld [vmem:[#allocation35_spill] sm:$0xff]  ;;  %v10596_v21 = vld [vmem:[#allocation34_spill] sm:$0xff] }
 0xbc4   :  { %3669 = vmatpush2.bf16.msra.mxu0 %v8374_v44  ;;  %3710 = vmatpush2.bf16.msra.mxu1 %v8377_v12  ;;  %v10597_v44 = vld [vmem:[#allocation36_spill] sm:$0xff] }
 0xbc5   :  { %3670 = vmatprep.subr.bf16.mxu0 %v8380_v8  ;;  %3711 = vmatprep.subr.bf16.mxu1 %v8383_v2  ;;  %v10598_v2 = vld [vmem:[#allocation28_spill] sm:$0xff] }
 0xbc8   :  { %3671 = vmatpush2.bf16.msra.mxu0 %v8386_v27  ;;  %3712 = vmatpush2.bf16.msra.mxu1 %v8389_v46 }
 0xbc9   :  { %3672 = vmatprep.subr.bf16.mxu0 %v8392_v52  ;;  %3713 = vmatprep.subr.bf16.mxu1 %v8395_v43 }
 0xbcc   :  { %3673 = vmatpush2.bf16.msra.mxu0 %v10574_v60  ;;  %3714 = vmatpush2.bf16.msra.mxu1 %v10575_v1  ;;  %v10599_v60 = vld [vmem:[#allocation29_spill] sm:$0xff] }
 0xbcd   :  { %3674 = vmatprep.subr.bf16.mxu0 %v10576_v51  ;;  %3715 = vmatprep.subr.bf16.mxu1 %v10577_v0 }
 0xbd0   :  { %3675 = vmatpush2.bf16.msra.mxu0 %v10578_v19  ;;  %3716 = vmatpush2.bf16.msra.mxu1 %v10579_v10 }
 0xbd1   :  { %3676 = vmatprep.subr.bf16.mxu0 %v10580_v50  ;;  %3717 = vmatprep.subr.bf16.mxu1 %v10581_v15  ;;  %v10600_v15 = vld [vmem:[#allocation30_spill] sm:$0xff] }
 0xbd4   :  { %3677 = vmatpush2.bf16.msra.mxu0 %v10582_v28  ;;  %3718 = vmatpush2.bf16.msra.mxu1 %v10583_v33 }
 0xbd5   :  { %3678 = vmatprep.subr.bf16.mxu0 %v10584_v58  ;;  %3719 = vmatprep.subr.bf16.mxu1 %v10585_v63  ;;  %v10601_v63 = vld [vmem:[#allocation31_spill] sm:$0xff] }
 0xbd8   :  { %3679 = vmatpush2.bf16.msra.mxu0 %v10586_v37  ;;  %3720 = vmatpush2.bf16.msra.mxu1 %v10587_v38 }
 0xbd9   :  { %3680 = vmatprep.subr.bf16.mxu0 %v10588_v16  ;;  %3721 = vmatprep.subr.bf16.mxu1 %v10589_v39 }
 0xbdc   :  { %3681 = vmatpush2.bf16.msra.mxu0 %v10590_v40  ;;  %3722 = vmatpush2.bf16.msra.mxu1 %v10591_v41 }
 0xbdd   :  { %3682 = vmatprep.subr.bf16.mxu0 %v10592_v48  ;;  %3723 = vmatprep.subr.bf16.mxu1 %v10593_v36  ;;  %v10602_v36 = vld [vmem:[#allocation49_spill] sm:$0xff] }
 0xbe0   :  { %3683 = vmatpush2.bf16.msra.mxu0 %v10594_v34  ;;  %3724 = vmatpush2.bf16.msra.mxu1 %v10595_v14 }
 0xbe1   :  { %3760 = vmatprep.subr.bf16.mxu0 %v10596_v21  ;;  %3801 = vmatprep.subr.bf16.mxu1 %v10597_v44 }
 0xc42   :  { %v3458_v12 = vpop.f32.mrf.mxu0  ;;  %v3499_v8 = vpop.f32.mrf.mxu1 }
 0xc43   :  { %v3459_v27 = vadd.f32 %v3458_v12, %v10598_v2  ;;  %v3500_v28 = vadd.f32 %v3499_v8, %v10600_v15 }
 0xc44   :  { %v3460_v46 = vpop.f32.mrf.mxu0  ;;  %v3501_v52 = vpop.f32.mrf.mxu1 }
 0xc45   :  { %v5112_v43 = vmul.f32 -1.442695, %v3459_v27  ;;  %v3461_v1 = vadd.f32 %v3460_v46, %v10599_v60  ;;  %v5114_v33 = vmul.f32 -1.442695, %v3500_v28  ;;  %v3502_v37 = vadd.f32 %v3501_v52, %v10601_v63  ;;  %v10603_v27 = vld [vmem:[#allocation51_spill] sm:$0xff] }
 0xc46   :  { %v3462_v51 = vpop.f32.mrf.mxu0  ;;  %v3503_v0 = vpop.f32.mrf.mxu1 }
 0xc47   :  { %5800 = vpow2.f32 %v5112_v43  ;;  %v5113_v19 = vmul.f32 -1.442695, %v3461_v1 }
 0xc48   :  { %v3463_v10 = vpop.f32.mrf.mxu0  ;;  %v3504_v50 = vpop.f32.mrf.mxu1 }
 0xc49   :  { %5802 = vpow2.f32 %v5113_v19 }
 0xc4a   :  { %5804 = vpow2.f32 %v5114_v33 }
 0xc54   :  { %v5801_v58 = vpop.eup %5800 }
 0xc55   :  { %v3515_v38 = vadd.f32 1.0, %v5801_v58  ;;  %v10604_v58 = vld [vmem:[#allocation50_spill] sm:$0xff] }
 0xc56   :  { %v5803_v16 = vpop.eup %5802 }
 0xc57   :  { %5806 = vrcp.f32 %v3515_v38  ;;  %v3516_v39 = vadd.f32 1.0, %v5803_v16  ;;  %v5805_v48 = vpop.eup %5804 }
 0xc58   :  { %5808 = vtanh.f32 %v3502_v37  ;;  %v3517_v43 = vadd.f32 1.0, %v5805_v48 }
 0xc59   :  { %5810 = vrcp.f32 %v3516_v39  ;;  %v10605_v39 = vld [vmem:[#allocation52_spill] sm:$0xff] }
 0xc62   :  { %v3575_v40 = vpop.f32.mrf.mxu0  ;;  %v3616_v41 = vpop.f32.mrf.mxu1 }
 0xc63   :  { %v3623_v34 = vadd.f32 %v3575_v40, %v10602_v36  ;;  %v3625_v37 = vadd.f32 %v3616_v41, %v10604_v58  ;;  %v3534_v36 = vpop.permute.xlu0 %3533  ;;  %v10608_v58 = vld [vmem:[#allocation79_spill] sm:$0xff] }
 0xc64   :  { %v5807_v14 = vpop.eup %5806  ;;  %v3577_v21 = vpop.f32.mrf.mxu0  ;;  %vm3535_vm5 = vcmp.eq.s32.totalorder %v3534_v36, 1  ;;  %v10620_v36 = vld [vmem:[#allocation85_spill] sm:$0xff] }
 0xc65   :  { %v3618_v44 = vpop.f32.mrf.mxu1  ;;  %v5809_v12 = vpop.eup %5808  ;;  %v5115_v8 = vmul.f32 -1.442695, %v3623_v34  ;;  %v3624_v46 = vadd.f32 %v3577_v21, %v10603_v27  ;;  %v5117_v38 = vmul.f32 -1.442695, %v3625_v37  ;;  %v10609_v37 = vld [vmem:[#allocation76_spill] sm:$0xff] }
 0xc66   :  { %v5811_v52 = vpop.eup %5810  ;;  %v3579_v1 = vpop.f32.mrf.mxu0  ;;  %v3526_v19 = vmul.f32 %v5809_v12, %v5807_v14  ;;  %v3626_v40 = vadd.f32 %v3618_v44, %v10605_v39  ;;  %v10617_v39 = vld [vmem:[#allocation82_spill] sm:$0xff] }
 0xc67   :  { %v3620_v51 = vpop.f32.mrf.mxu1  ;;  %v3525_v0 = vmul.f32 %v5811_v52, %v8477_v22  ;;  %5812 = vpow2.f32 %v5115_v8  ;;  %v5116_v10 = vmul.f32 -1.442695, %v3624_v46 }
 0xc68   :  { %v3580_v50 = vpop.f32.mrf.mxu0 }
 0xc69   :  { %v3621_v28 = vpop.f32.mrf.mxu1  ;;  %v8888_v33 = vadd.f32 %v3526_v19, %v3525_v0  ;;  %5814 = vpow2.f32 %v5116_v10 }
 0xc6a   :  { %5816 = vrcp.f32 %v3517_v43  ;;  %v10607_v28 = vld [vmem:[#allocation74_spill] sm:$0xff] }
 0xc6b   :  { %5818 = vtanh.f32 %v8888_v33 }
 0xc6c   :  { %5820 = vpow2.f32 %v5117_v38  ;;  %v10610_v38 = vld [vmem:[#allocation80_spill] sm:$0xff] }
 0xc74   :  { %v5813_v16 = vpop.eup %5812 }
 0xc75   :  { %v3636_v48 = vadd.f32 1.0, %v5813_v16  ;;  %v10611_v16 = vld [vmem:[#allocation78_spill] sm:$0xff] }
 0xc76   :  { %v5815_v22 = vpop.eup %5814 }
 0xc77   :  { %v5817_v34 = vpop.eup %5816  ;;  %5822 = vrcp.f32 %v3636_v48  ;;  %v3637_v14 = vadd.f32 1.0, %v5815_v22  ;;  %v10619_v48 = vld [vmem:[#allocation84_spill] sm:$0xff]  ;;  %v10621_v22 = vld [vmem:[#allocation86_spill] sm:$0xff] }
 0xc78   :  { %v5819_v21 = vpop.eup %5818  ;;  %5824 = vtanh.f32 %v3626_v40  ;;  %v10618_v40 = vld [vmem:[#allocation83_spill] sm:$0xff] }
 0xc79   :  { %5826 = vrcp.f32 %v3637_v14  ;;  %v3529_v12 = vmul.f32 %v5819_v21, %v5817_v34  ;;  %v5821_v41 = vpop.eup %5820  ;;  %v10622_v34 = vld [vmem:[#allocation87_spill] sm:$0xff]  ;;  %v10623_v14 = vld [vmem:[#allocation88_spill] sm:$0xff]  ;;  %v10624_v21 = vld [vmem:[#allocation89_spill] sm:$0xff] }
 0xc7a   :  { %v3638_v44 = vadd.f32 1.0, %v5821_v41  ;;  %v10626_v41 = vld [vmem:[#allocation91_spill] sm:$0xff] }
 0xc7b   :  { %v8894_v8 = vsel %vm3535_vm5, %v3529_v12, %v8483_v13  ;;  %v3759_v13 = vpack.c.bf16 %v3529_v12, %v3529_v12  ;;  %v10625_v12 = vld [vmem:[#allocation90_spill] sm:$0xff] }
 0xc7c   :  { %5828 = vrcp.f32 %v3638_v44  ;;  %v10630_v44 = vld [vmem:[#allocation95_spill] sm:$0xff] }
 0xc84   :  { %v5823_v27 = vpop.eup %5822 }
 0xc85   :  { %v5825_v46 = vpop.eup %5824 }
 0xc86   :  { %v5827_v52 = vpop.eup %5826  ;;  %v3647_v1 = vmul.f32 %v5825_v46, %v5823_v27  ;;  %v10627_v27 = vld [vmem:[#allocation92_spill] sm:$0xff]  ;;  %v10628_v46 = vld [vmem:[#allocation93_spill] sm:$0xff] }
 0xc87   :  { %v3646_v43 = vmul.f32 %v5827_v52, %v8486_v31  ;;  %v10606_v31 = vld [vmem:[#allocation61_spill] sm:$0xff]  ;;  %v10629_v52 = vld [vmem:[#allocation94_spill] sm:$0xff] }
 0xc89   :  { %v8897_v51 = vadd.f32 %v3647_v1, %v3646_v43  ;;  %v5829_v0 = vpop.eup %5828  ;;  %v10631_v43 = vld [vmem:[#allocation96_spill] sm:$0xff]  ;;  %v10632_v1 = vld [vmem:[#allocation97_spill] sm:$0xff] }
 0xc8b   :  { %5830 = vtanh.f32 %v8897_v51 }
 0xc98   :  { %v5831_v19 = vpop.eup %5830 }
 0xc99   :  { %v3650_v10 = vmul.f32 %v5831_v19, %v5829_v0  ;;  %v10633_v0 = vld [vmem:[#allocation98_spill] sm:$0xff]  ;;  %v10634_v19 = vld [vmem:[#allocation99_spill] sm:$0xff] }
 0xc9b   :  { %v8900_v50 = vpack.c.bf16 %v3650_v10, %v3650_v10  ;;  %v10635_v10 = vld [vmem:[#allocation100_spill] sm:$0xff] }
 0xc9d   :  { %3685 = vmatmul.mubr.bf16.vlgmr.msra.gmra.mxu0 %v8900_v50  ;;  %3726 = vmatmul.mubr.bf16.vlgmr.msra.gmra.mxu1 %v8900_v50 }
 0xc9e   :  { %3792 = vmatprep.mubr.bf16.mxu0 %v3759_v13  ;;  %3833 = vmatprep.mubr.bf16.mxu1 %v3759_v13  ;;  %v10636_v13 = vld [vmem:[#allocation101_spill] sm:$0xff] }
 0xc9f   :  { %3761 = vmatpush1.bf16.msra.mxu0 %v8493_v29  ;;  %3802 = vmatpush1.bf16.msra.mxu1 %v8496_v6  ;;  %v10612_v29 = vld [vmem:[#allocation41_spill] sm:$0xff]  ;;  %v10613_v6 = vld [vmem:[#allocation43_spill] sm:$0xff] }
 0xca0   :  { %3762 = vmatprep.subr.bf16.mxu0 %v8499_v45  ;;  %3803 = vmatprep.subr.bf16.mxu1 %v8502_v47  ;;  %v10614_v45 = vld [vmem:[#allocation42_spill] sm:$0xff]  ;;  %v10615_v47 = vld [vmem:[#allocation44_spill] sm:$0xff] }
 0xca3   :  { %3763 = vmatpush1.bf16.msra.mxu0 %v8505_v55  ;;  %3804 = vmatpush1.bf16.msra.mxu1 %v10606_v31  ;;  %v10616_v55 = vld [vmem:[#allocation81_spill] sm:$0xff]  ;;  %v10637_v31 = vld [vmem:[#allocation102_spill] sm:$0xff] }
 0xca4   :  { %3764 = vmatprep.subr.bf16.mxu0 %v10607_v28  ;;  %3805 = vmatprep.subr.bf16.mxu1 %v10608_v58  ;;  %v10638_v28 = vld [vmem:[#allocation103_spill] sm:$0xff]  ;;  %v10639_v58 = vld [vmem:[#allocation104_spill] sm:$0xff] }
 0xca7   :  { %3765 = vmatpush1.bf16.msra.mxu0 %v10609_v37  ;;  %3806 = vmatpush1.bf16.msra.mxu1 %v10610_v38  ;;  %v10640_v37 = vld [vmem:[#allocation105_spill] sm:$0xff]  ;;  %v10641_v38 = vld [vmem:[#allocation106_spill] sm:$0xff] }
 0xca8   :  { %3766 = vmatprep.subr.bf16.mxu0 %v10611_v16  ;;  %3807 = vmatprep.subr.bf16.mxu1 %v10612_v29  ;;  %v10642_v16 = vld [vmem:[#allocation107_spill] sm:$0xff]  ;;  %v10643_v29 = vld [vmem:[#allocation108_spill] sm:$0xff] }
 0xcab   :  { %3767 = vmatpush1.bf16.msra.mxu0 %v10613_v6  ;;  %3808 = vmatpush1.bf16.msra.mxu1 %v10614_v45  ;;  %v10644_v6 = vld [vmem:[#allocation109_spill] sm:$0xff]  ;;  %v10645_v45 = vld [vmem:[#allocation110_spill] sm:$0xff] }
 0xcac   :  { %3768 = vmatprep.subr.bf16.mxu0 %v10615_v47  ;;  %3809 = vmatprep.subr.bf16.mxu1 %v10616_v55  ;;  %v10646_v47 = vld [vmem:[#allocation111_spill] sm:$0xff]  ;;  %v10647_v55 = vld [vmem:[#allocation112_spill] sm:$0xff] }
 0xcaf   :  { %3769 = vmatpush1.bf16.msra.mxu0 %v10617_v39  ;;  %3810 = vmatpush1.bf16.msra.mxu1 %v10618_v40  ;;  %v10648_v39 = vld [vmem:[#allocation113_spill] sm:$0xff]  ;;  %v10649_v40 = vld [vmem:[#allocation114_spill] sm:$0xff] }
 0xcb0   :  { %3770 = vmatprep.subr.bf16.mxu0 %v10619_v48  ;;  %3811 = vmatprep.subr.bf16.mxu1 %v10620_v36  ;;  %v10650_v48 = vld [vmem:[#allocation115_spill] sm:$0xff]  ;;  %v10651_v36 = vld [vmem:[#allocation116_spill] sm:$0xff] }
 0xcb3   :  { %3771 = vmatpush1.bf16.msra.mxu0 %v10621_v22  ;;  %3812 = vmatpush1.bf16.msra.mxu1 %v10622_v34  ;;  %v10652_v22 = vld [vmem:[#allocation117_spill] sm:$0xff]  ;;  %v10653_v34 = vld [vmem:[#allocation118_spill] sm:$0xff] }
 0xcb4   :  { %3772 = vmatprep.subr.bf16.mxu0 %v10623_v14  ;;  %3813 = vmatprep.subr.bf16.mxu1 %v10624_v21  ;;  %v10654_v14 = vld [vmem:[#allocation119_spill] sm:$0xff]  ;;  %v10655_v21 = vld [vmem:[#allocation120_spill] sm:$0xff] }
 0xcb7   :  { %3773 = vmatpush1.bf16.msra.mxu0 %v10625_v12  ;;  %3814 = vmatpush1.bf16.msra.mxu1 %v10626_v41  ;;  %v10656_v12 = vld [vmem:[#allocation121_spill] sm:$0xff]  ;;  %v10657_v41 = vld [vmem:[#allocation122_spill] sm:$0xff] }
 0xcb8   :  { %3774 = vmatprep.subr.bf16.mxu0 %v10627_v27  ;;  %3815 = vmatprep.subr.bf16.mxu1 %v10628_v46  ;;  %v10658_v27 = vld [vmem:[#allocation123_spill] sm:$0xff]  ;;  %v10659_v46 = vld [vmem:[#allocation124_spill] sm:$0xff] }
 0xcbb   :  { %3775 = vmatpush1.bf16.msra.mxu0 %v10629_v52  ;;  %3816 = vmatpush1.bf16.msra.mxu1 %v10630_v44  ;;  %v10660_v52 = vld [vmem:[#allocation125_spill] sm:$0xff]  ;;  %v10661_v44 = vld [vmem:[#allocation126_spill] sm:$0xff] }
 0xcbc   :  { %3776 = vmatprep.subr.bf16.mxu0 %v10631_v43  ;;  %3817 = vmatprep.subr.bf16.mxu1 %v10632_v1  ;;  %v10662_v43 = vld [vmem:[#allocation127_spill] sm:$0xff]  ;;  %v10663_v1 = vld [vmem:[#allocation128_spill] sm:$0xff] }
 0xcbf   :  { %3777 = vmatpush2.bf16.msra.mxu0 %v10633_v0  ;;  %3818 = vmatpush2.bf16.msra.mxu1 %v10634_v19  ;;  %v10664_v0 = vld [vmem:[#allocation129_spill] sm:$0xff]  ;;  %v10665_v19 = vld [vmem:[#allocation32_spill] sm:$0xff] }
 0xcc0   :  { %3778 = vmatprep.subr.bf16.mxu0 %v10635_v10  ;;  %3819 = vmatprep.subr.bf16.mxu1 %v10636_v13  ;;  %vm3866_vm6 = vcmp.eq.s32.totalorder %v10665_v19, 5  ;;  %vm4202_vm8 = vcmp.eq.s32.totalorder %v10665_v19, 6 }
 0xcc1   :  { %v3867_v10 = vsel %vm3866_vm6, 1, %v10111_v7 }
 0xcc2   :  { %3869 = vperm.xlu1 %5351, %v3867_v10  }
 0xcc3   :  { %3779 = vmatpush2.bf16.msra.mxu0 %v10637_v31  ;;  %3820 = vmatpush2.bf16.msra.mxu1 %v10638_v28 }
 0xcc4   :  { %3780 = vmatprep.subr.bf16.mxu0 %v10639_v58  ;;  %3821 = vmatprep.subr.bf16.mxu1 %v10640_v37 }
 0xcc7   :  { %3781 = vmatpush2.bf16.msra.mxu0 %v10641_v38  ;;  %3822 = vmatpush2.bf16.msra.mxu1 %v10642_v16 }
 0xcc8   :  { %3782 = vmatprep.subr.bf16.mxu0 %v10643_v29  ;;  %3823 = vmatprep.subr.bf16.mxu1 %v10644_v6 }
 0xccb   :  { %3783 = vmatpush2.bf16.msra.mxu0 %v10645_v45  ;;  %3824 = vmatpush2.bf16.msra.mxu1 %v10646_v47 }
 0xccc   :  { %3784 = vmatprep.subr.bf16.mxu0 %v10647_v55  ;;  %3825 = vmatprep.subr.bf16.mxu1 %v10648_v39 }
 0xccf   :  { %3785 = vmatpush2.bf16.msra.mxu0 %v10649_v40  ;;  %3826 = vmatpush2.bf16.msra.mxu1 %v10650_v48 }
 0xcd0   :  { %3786 = vmatprep.subr.bf16.mxu0 %v10651_v36  ;;  %3827 = vmatprep.subr.bf16.mxu1 %v10652_v22 }
 0xcd3   :  { %3787 = vmatpush2.bf16.msra.mxu0 %v10653_v34  ;;  %3828 = vmatpush2.bf16.msra.mxu1 %v10654_v14 }
 0xcd4   :  { %3788 = vmatprep.subr.bf16.mxu0 %v10655_v21  ;;  %3829 = vmatprep.subr.bf16.mxu1 %v10656_v12 }
 0xcd7   :  { %3789 = vmatpush2.bf16.msra.mxu0 %v10657_v41  ;;  %3830 = vmatpush2.bf16.msra.mxu1 %v10658_v27 }
 0xcd8   :  { %3790 = vmatprep.subr.bf16.mxu0 %v10659_v46  ;;  %3831 = vmatprep.subr.bf16.mxu1 %v10660_v52 }
 0xcdb   :  { %3791 = vmatpush2.bf16.msra.mxu0 %v10661_v44  ;;  %3832 = vmatpush2.bf16.msra.mxu1 %v10662_v43 }
 0xcdc   :  { %3877 = vmatprep.subr.bf16.mxu0 %v10663_v1  ;;  %3918 = vmatprep.subr.bf16.mxu1 %v10664_v0 }
 0xd5d   :  { %v3686_v13 = vpop.f32.mrf.mxu0  ;;  %v3727_v31 = vpop.f32.mrf.mxu1 }
 0xd5e   :  { %v3687_v28 = vadd.f32 %v3686_v13, %v6763_v54  ;;  %v3728_v39 = vadd.f32 %v3727_v31, %v6767_v56  ;;  %v10677_v31 = vld [vmem:[#allocation140_spill] sm:$0xff] }
 0xd5f   :  { %v3688_v58 = vpop.f32.mrf.mxu0  ;;  %v3729_v37 = vpop.f32.mrf.mxu1 }
 0xd60   :  { %v5118_v38 = vmul.f32 -1.442695, %v3687_v28  ;;  %v3689_v16 = vadd.f32 %v3688_v58, %v10222_v26  ;;  %v5120_v40 = vmul.f32 -1.442695, %v3728_v39  ;;  %v3730_v36 = vadd.f32 %v3729_v37, %v6769_v57  ;;  %v10678_v28 = vld [vmem:[#allocation141_spill] sm:$0xff]  ;;  %v10679_v58 = vld [vmem:[#allocation142_spill] sm:$0xff] }
 0xd61   :  { %v3690_v29 = vpop.f32.mrf.mxu0  ;;  %v3731_v6 = vpop.f32.mrf.mxu1  ;;  %v10680_v37 = vld [vmem:[#allocation143_spill] sm:$0xff]  ;;  %v9052_v39 = vld [vmem:[#allocation3 + $0x44] ss:$16 sps:$4 sm:$0xff]  }
 0xd62   :  { %5832 = vpow2.f32 %v5118_v38  ;;  %v5119_v45 = vmul.f32 -1.442695, %v3689_v16  ;;  %v10681_v38 = vld [vmem:[#allocation144_spill] sm:$0xff]  ;;  %v10682_v16 = vld [vmem:[#allocation145_spill] sm:$0xff]  ;;  %v10683_v29 = vld [vmem:[#allocation146_spill] sm:$0xff] }
 0xd63   :  { %v3691_v47 = vpop.f32.mrf.mxu0  ;;  %v3732_v55 = vpop.f32.mrf.mxu1  ;;  %v10684_v6 = vld [vmem:[#allocation147_spill] sm:$0xff] }
 0xd64   :  { %5834 = vpow2.f32 %v5119_v45  ;;  %v10685_v45 = vld [vmem:[#allocation148_spill] sm:$0xff]  ;;  %v9046_v55 = vld [vmem:[#allocation3 + $0x60] ss:$16 sps:$4 sm:$0xff]  }
 0xd65   :  { %5836 = vpow2.f32 %v5120_v40  ;;  %v9021_v47 = vld [vmem:[#allocation3 + $0xc8] ss:$16 sps:$4 sm:$0xff]   ;;  %v9055_v40 = vld [vmem:[#allocation3 + $0x4c] ss:$16 sps:$4 sm:$0xff]  }
 0xd6f   :  { %v5833_v48 = vpop.eup %5832 }
 0xd70   :  { %v3743_v22 = vadd.f32 1.0, %v5833_v48  ;;  %v9061_v48 = vld [vmem:[#allocation3 + $0x48] ss:$16 sps:$4 sm:$0xff]  }
 0xd71   :  { %v5835_v34 = vpop.eup %5834 }
 0xd72   :  { %5838 = vrcp.f32 %v3743_v22  ;;  %v3744_v14 = vadd.f32 1.0, %v5835_v34  ;;  %v5837_v21 = vpop.eup %5836  ;;  %v9067_v22 = vld [vmem:[#allocation3 + $0x2c] ss:$16 sps:$4 sm:$0xff]   ;;  %v9070_v34 = vld [vmem:[#allocation3 + $0x20] ss:$16 sps:$4 sm:$0xff]  }
 0xd73   :  { %5840 = vtanh.f32 %v3730_v36  ;;  %v3745_v46 = vadd.f32 1.0, %v5837_v21  ;;  %v9064_v36 = vld [vmem:[#allocation3 + $0x24] ss:$16 sps:$4 sm:$0xff]  }
 0xd74   :  { %5842 = vrcp.f32 %v3744_v14  ;;  %v9073_v14 = vld [vmem:[#allocation3 + $0x28] ss:$16 sps:$4 sm:$0xff]   ;;  %v9076_v21 = vld [vmem:[#allocation3 + $0x4] ss:$16 sps:$4 sm:$0xff]  }
 0xd75   :  { %5844 = vrcp.f32 %v3745_v46  ;;  %v9088_v46 = vld [vmem:[#allocation3 + $0x1e4] ss:$16 sps:$4 sm:$0xff]  }
 0xd7f   :  { %v5839_v12 = vpop.eup %5838 }
 0xd80   :  { %v5841_v41 = vpop.eup %5840 }
 0xd81   :  { %v5843_v27 = vpop.eup %5842  ;;  %v3754_v44 = vmul.f32 %v5841_v41, %v5839_v12  ;;  %v9079_v12 = vld [vmem:[#allocation3 + $0xc] ss:$16 sps:$4 sm:$0xff]   ;;  %v9082_v41 = vld [vmem:[#allocation3] ss:$16 sps:$4 sm:$0xff]  }
 0xd82   :  { %v3753_v52 = vmul.f32 %v5843_v27, %v8692_v42  ;;  %v5845_v1 = vpop.eup %5844  ;;  %v10666_v42 = vld [vmem:[#allocation130_spill] sm:$0xff] }
 0xd83   :  { %v9085_v27 = vld [vmem:[#allocation3 + $0x8] ss:$16 sps:$4 sm:$0xff]  }
 0xd84   :  { %v8975_v43 = vadd.f32 %v3754_v44, %v3753_v52  ;;  %v9091_v52 = vld [vmem:[#allocation3 + $0x1ec] ss:$16 sps:$4 sm:$0xff]   ;;  %v9094_v44 = vld [vmem:[#allocation3 + $0x1e0] ss:$16 sps:$4 sm:$0xff]  }
 0xd86   :  { %5846 = vtanh.f32 %v8975_v43 }
 0xd93   :  { %v5847_v0 = vpop.eup %5846 }
 0xd94   :  { %v3757_v10 = vmul.f32 %v5847_v0, %v5845_v1  ;;  %v9097_v1 = vld [vmem:[#allocation3 + $0x1e8] ss:$16 sps:$4 sm:$0xff]   ;;  %v9100_v0 = vld [vmem:[#allocation3 + $0x1c4] ss:$16 sps:$4 sm:$0xff]  }
 0xd96   :  { %v3758_v13 = vpack.c.bf16 %v3757_v10, %v3757_v10  ;;  %v9103_v10 = vld [vmem:[#allocation3 + $0x1cc] ss:$16 sps:$4 sm:$0xff]  }
 0xd98   :  { %3793 = vmatmul.mubr.bf16.vlgmr.msra.gmra.mxu0 %v3758_v13  ;;  %3834 = vmatmul.mubr.bf16.vlgmr.msra.gmra.mxu1 %v3758_v13 }
 0xd99   :  { %3878 = vmatpush1.bf16.msra.mxu0 %v8699_v61  ;;  %3919 = vmatpush1.bf16.msra.mxu1 %v8702_v11  ;;  %v10667_v61 = vld [vmem:[#allocation131_spill] sm:$0xff]  ;;  %v10668_v11 = vld [vmem:[#allocation132_spill] sm:$0xff] }
 0xd9a   :  { %3879 = vmatprep.subr.bf16.mxu0 %v8705_v18  ;;  %3920 = vmatprep.subr.bf16.mxu1 %v8708_v4  ;;  %v10669_v18 = vld [vmem:[#allocation133_spill] sm:$0xff]  ;;  %v10670_v4 = vld [vmem:[#allocation134_spill] sm:$0xff] }
 0xd9b   :  { %3909 = vmatprep.mubr.bf16.mxu0 %v10111_v7  ;;  %3950 = vmatprep.mubr.bf16.mxu1 %v10111_v7 }
 0xd9d   :  { %3880 = vmatpush1.bf16.msra.mxu0 %v8713_v30  ;;  %3921 = vmatpush1.bf16.msra.mxu1 %v8716_v53  ;;  %v10671_v30 = vld [vmem:[#allocation135_spill] sm:$0xff]  ;;  %v10672_v53 = vld [vmem:[#allocation136_spill] sm:$0xff] }
 0xd9e   :  { %3881 = vmatprep.subr.bf16.mxu0 %v8719_v25  ;;  %3922 = vmatprep.subr.bf16.mxu1 %v8722_v23  ;;  %v10673_v25 = vld [vmem:[#allocation137_spill] sm:$0xff]  ;;  %v10674_v23 = vld [vmem:[#allocation138_spill] sm:$0xff] }
 0xda1   :  { %3882 = vmatpush1.bf16.msra.mxu0 %v8725_v62  ;;  %3923 = vmatpush1.bf16.msra.mxu1 %v8728_v9  ;;  %v10675_v62 = vld [vmem:[#allocation139_spill] sm:$0xff] }
 0xda2   :  { %3883 = vmatprep.subr.bf16.mxu0 %v10666_v42  ;;  %3924 = vmatprep.subr.bf16.mxu1 %v10667_v61  ;;  %v10676_v9 = vld [vmem:[#allocation27_spill] sm:$0xff]  ;;  %v9109_v42 = vld [vmem:[#allocation3 + $0x1c8] ss:$16 sps:$4 sm:$0xff]   ;;  %v9112_v61 = vld [vmem:[#allocation3 + $0x1a4] ss:$16 sps:$4 sm:$0xff]  }
 0xda5   :  { %3884 = vmatpush1.bf16.msra.mxu0 %v10668_v11  ;;  %3925 = vmatpush1.bf16.msra.mxu1 %v10669_v18  ;;  %v9115_v11 = vld [vmem:[#allocation3 + $0x1ac] ss:$16 sps:$4 sm:$0xff]   ;;  %v9118_v18 = vld [vmem:[#allocation3 + $0x1a0] ss:$16 sps:$4 sm:$0xff]  }
 0xda6   :  { %3885 = vmatprep.subr.bf16.mxu0 %v10670_v4  ;;  %3926 = vmatprep.subr.bf16.mxu1 %v10671_v30  ;;  %10687 = vst [vmem:[#allocation150_spill] sm:$0xff] %v9118_v18  ;;  %v9121_v4 = vld [vmem:[#allocation3 + $0x1a8] ss:$16 sps:$4 sm:$0xff]   ;;  %v9124_v30 = vld [vmem:[#allocation3 + $0x184] ss:$16 sps:$4 sm:$0xff]  }
 0xda7   :  { %10688 = vst [vmem:[#allocation151_spill] sm:$0xff] %v9121_v4  ;;  %10689 = vst [vmem:[#allocation152_spill] sm:$0xff] %v9124_v30 }
 0xda9   :  { %3886 = vmatpush1.bf16.msra.mxu0 %v10672_v53  ;;  %3927 = vmatpush1.bf16.msra.mxu1 %v10673_v25  ;;  %v9127_v53 = vld [vmem:[#allocation3 + $0x18c] ss:$16 sps:$4 sm:$0xff]   ;;  %v9130_v25 = vld [vmem:[#allocation3 + $0x180] ss:$16 sps:$4 sm:$0xff]  }
 0xdaa   :  { %3887 = vmatprep.subr.bf16.mxu0 %v10674_v23  ;;  %3928 = vmatprep.subr.bf16.mxu1 %v10675_v62  ;;  %10690 = vst [vmem:[#allocation153_spill] sm:$0xff] %v9127_v53  ;;  %10691 = vst [vmem:[#allocation154_spill] sm:$0xff] %v9130_v25  ;;  %v9133_v23 = vld [vmem:[#allocation3 + $0x188] ss:$16 sps:$4 sm:$0xff]   ;;  %v9136_v62 = vld [vmem:[#allocation3 + $0x164] ss:$16 sps:$4 sm:$0xff]  }
 0xdab   :  { %10692 = vst [vmem:[#allocation155_spill] sm:$0xff] %v9133_v23  ;;  %10693 = vst [vmem:[#allocation156_spill] sm:$0xff] %v9136_v62 }
 0xdad   :  { %3888 = vmatpush1.bf16.msra.mxu0 %v10676_v9  ;;  %3929 = vmatpush1.bf16.msra.mxu1 %v10677_v31  ;;  %v9139_v9 = vld [vmem:[#allocation3 + $0x16c] ss:$16 sps:$4 sm:$0xff]   ;;  %v9142_v31 = vld [vmem:[#allocation3 + $0x160] ss:$16 sps:$4 sm:$0xff]  }
 0xdae   :  { %3889 = vmatprep.subr.bf16.mxu0 %v10678_v28  ;;  %3930 = vmatprep.subr.bf16.mxu1 %v10679_v58  ;;  %10694 = vst [vmem:[#allocation157_spill] sm:$0xff] %v9139_v9  ;;  %10695 = vst [vmem:[#allocation158_spill] sm:$0xff] %v9142_v31  ;;  %v9145_v28 = vld [vmem:[#allocation3 + $0x168] ss:$16 sps:$4 sm:$0xff]   ;;  %v9148_v58 = vld [vmem:[#allocation3 + $0x144] ss:$16 sps:$4 sm:$0xff]  }
 0xdaf   :  { %10696 = vst [vmem:[#allocation159_spill] sm:$0xff] %v9145_v28  ;;  %10697 = vst [vmem:[#allocation45_spill] sm:$0xff] %v9148_v58 }
 0xdb1   :  { %3890 = vmatpush1.bf16.msra.mxu0 %v10680_v37  ;;  %3931 = vmatpush1.bf16.msra.mxu1 %v10681_v38  ;;  %v9151_v37 = vld [vmem:[#allocation3 + $0x14c] ss:$16 sps:$4 sm:$0xff]   ;;  %v9154_v38 = vld [vmem:[#allocation3 + $0x140] ss:$16 sps:$4 sm:$0xff]  }
 0xdb2   :  { %3891 = vmatprep.subr.bf16.mxu0 %v8779_v49  ;;  %3932 = vmatprep.subr.bf16.mxu1 %v8782_v5  ;;  %v10686_v49 = vld [vmem:[#allocation149_spill] sm:$0xff]  ;;  %10698 = vst [vmem:[#allocation47_spill] sm:$0xff] %v9151_v37  ;;  %10699 = vst [vmem:[#allocation46_spill] sm:$0xff] %v9154_v38 }
 0xdb3   :  { %v9017_v5 = vld [vmem:[#allocation3 + $0xcc] ss:$16 sps:$4 sm:$0xff]  }
 0xdb5   :  { %3892 = vmatpush1.bf16.msra.mxu0 %v10682_v16  ;;  %3933 = vmatpush1.bf16.msra.mxu1 %v10683_v29  ;;  %v9157_v16 = vld [vmem:[#allocation3 + $0x148] ss:$16 sps:$4 sm:$0xff]   ;;  %v9160_v29 = vld [vmem:[#allocation3 + $0x124] ss:$16 sps:$4 sm:$0xff]  }
 0xdb6   :  { %3988 = vmatprep.subr.bf16.mxu0 %v10684_v6  ;;  %4029 = vmatprep.subr.bf16.mxu1 %v10685_v45  ;;  %10700 = vst [vmem:[#allocation48_spill] sm:$0xff] %v9157_v16  ;;  %10701 = vst [vmem:[#allocation160_spill] sm:$0xff] %v9160_v29  ;;  %v9163_v6 = vld [vmem:[#allocation3 + $0x12c] ss:$16 sps:$4 sm:$0xff]   ;;  %v9166_v45 = vld [vmem:[#allocation3 + $0x120] ss:$16 sps:$4 sm:$0xff]  }
 0xdb7   :  { %10702 = vst [vmem:[#allocation161_spill] sm:$0xff] %v9163_v6  ;;  %10703 = vst [vmem:[#allocation37_spill] sm:$0xff] %v9166_v45 }
 0xdb8   :  { %3910 = vmatmul.mubr.bf16.vlgmr.msra.gmra.mxu0 %v8900_v50  ;;  %3951 = vmatmul.mubr.bf16.vlgmr.msra.gmra.mxu1 %v8900_v50  ;;  %v9025_v50 = vld [vmem:[#allocation3 + $0xac] ss:$16 sps:$4 sm:$0xff]  }
 0xdb9   :  { %4020 = vmatprep.mubr.bf16.mxu0 %v3758_v13  ;;  %4061 = vmatprep.mubr.bf16.mxu1 %v3758_v13  ;;  %v9106_v13 = vld [vmem:[#allocation3 + $0x1c0] ss:$16 sps:$4 sm:$0xff]  }
 0xdba   :  { %3989 = vmatpush1.bf16.msra.mxu0 %v8801_v20  ;;  %4030 = vmatpush1.bf16.msra.mxu1 %v8804_v59  ;;  %v9029_v20 = vld [vmem:[#allocation3 + $0xa8] ss:$16 sps:$4 sm:$0xff]   ;;  %v9033_v59 = vld [vmem:[#allocation3 + $0x8c] ss:$16 sps:$4 sm:$0xff]  }
 0xdbb   :  { %3990 = vmatprep.subr.bf16.mxu0 %v10686_v49  ;;  %4031 = vmatprep.subr.bf16.mxu1 %v9017_v5  ;;  %v9169_v49 = vld [vmem:[#allocation3 + $0x128] ss:$16 sps:$4 sm:$0xff]  }
 0xdbc   :  { %10704 = vst [vmem:[#allocation39_spill] sm:$0xff] %v9169_v49 }
 0xdbe   :  { %3991 = vmatpush1.bf16.msra.mxu0 %v8811_v3  ;;  %4032 = vmatpush1.bf16.msra.mxu1 %v9021_v47  ;;  %v9036_v3 = vld [vmem:[#allocation3 + $0x80] ss:$16 sps:$4 sm:$0xff]  }
 0xdbf   :  { %3992 = vmatprep.subr.bf16.mxu0 %v8815_v32  ;;  %4033 = vmatprep.subr.bf16.mxu1 %v9025_v50  ;;  %v9039_v32 = vld [vmem:[#allocation3 + $0x88] ss:$16 sps:$4 sm:$0xff]  }
 0xdc2   :  { %3993 = vmatpush1.bf16.msra.mxu0 %v8819_v17  ;;  %4034 = vmatpush1.bf16.msra.mxu1 %v9029_v20  ;;  %v9043_v17 = vld [vmem:[#allocation3 + $0x6c] ss:$16 sps:$4 sm:$0xff]  }
 0xdc3   :  { %3994 = vmatprep.subr.bf16.mxu0 %v8823_v24  ;;  %4035 = vmatprep.subr.bf16.mxu1 %v9033_v59  ;;  %v9049_v24 = vld [vmem:[#allocation3 + $0x68] ss:$16 sps:$4 sm:$0xff]  }
 0xdc6   :  { %3995 = vmatpush1.bf16.msra.mxu0 %v9036_v3  ;;  %4036 = vmatpush1.bf16.msra.mxu1 %v9039_v32 }
 0xdc7   :  { %3996 = vmatprep.subr.bf16.mxu0 %v8829_v35  ;;  %4037 = vmatprep.subr.bf16.mxu1 %v9043_v17  ;;  %v9058_v35 = vld [vmem:[#allocation3 + $0x40] ss:$16 sps:$4 sm:$0xff]  }
 0xdca   :  { %3997 = vmatpush1.bf16.msra.mxu0 %v9046_v55  ;;  %4038 = vmatpush1.bf16.msra.mxu1 %v9049_v24 }
 0xdcb   :  { %3998 = vmatprep.subr.bf16.mxu0 %v9052_v39  ;;  %4039 = vmatprep.subr.bf16.mxu1 %v9055_v40 }
 0xdce   :  { %3999 = vmatpush1.bf16.msra.mxu0 %v9058_v35  ;;  %4040 = vmatpush1.bf16.msra.mxu1 %v9061_v48 }
 0xdcf   :  { %4000 = vmatprep.subr.bf16.mxu0 %v9064_v36  ;;  %4041 = vmatprep.subr.bf16.mxu1 %v9067_v22 }
 0xdd2   :  { %4001 = vmatpush1.bf16.msra.mxu0 %v9070_v34  ;;  %4042 = vmatpush1.bf16.msra.mxu1 %v9073_v14 }
 0xdd3   :  { %4002 = vmatprep.subr.bf16.mxu0 %v9076_v21  ;;  %4043 = vmatprep.subr.bf16.mxu1 %v9079_v12 }
 0xdd6   :  { %4003 = vmatpush1.bf16.msra.mxu0 %v9082_v41  ;;  %4044 = vmatpush1.bf16.msra.mxu1 %v9085_v27 }
 0xdd7   :  { %4004 = vmatprep.subr.bf16.mxu0 %v9088_v46  ;;  %4045 = vmatprep.subr.bf16.mxu1 %v9091_v52 }
 0xdda   :  { %4005 = vmatpush2.bf16.msra.mxu0 %v9094_v44  ;;  %4046 = vmatpush2.bf16.msra.mxu1 %v9097_v1 }
 0xddb   :  { %4006 = vmatprep.subr.bf16.mxu0 %v9100_v0  ;;  %4047 = vmatprep.subr.bf16.mxu1 %v9103_v10 }
 0xdde   :  { %4007 = vmatpush2.bf16.msra.mxu0 %v9106_v13  ;;  %4048 = vmatpush2.bf16.msra.mxu1 %v9109_v42 }
 0xddf   :  { %4008 = vmatprep.subr.bf16.mxu0 %v9112_v61  ;;  %4049 = vmatprep.subr.bf16.mxu1 %v9115_v11 }
 0xde2   :  { %4009 = vmatpush2.bf16.msra.mxu0 %v9118_v18  ;;  %4050 = vmatpush2.bf16.msra.mxu1 %v9121_v4 }
 0xde3   :  { %4010 = vmatprep.subr.bf16.mxu0 %v9124_v30  ;;  %4051 = vmatprep.subr.bf16.mxu1 %v9127_v53 }
 0xde6   :  { %4011 = vmatpush2.bf16.msra.mxu0 %v9130_v25  ;;  %4052 = vmatpush2.bf16.msra.mxu1 %v9133_v23 }
 0xde7   :  { %4012 = vmatprep.subr.bf16.mxu0 %v9136_v62  ;;  %4053 = vmatprep.subr.bf16.mxu1 %v9139_v9 }
 0xdea   :  { %4013 = vmatpush2.bf16.msra.mxu0 %v9142_v31  ;;  %4054 = vmatpush2.bf16.msra.mxu1 %v9145_v28 }
 0xdeb   :  { %4014 = vmatprep.subr.bf16.mxu0 %v9148_v58  ;;  %4055 = vmatprep.subr.bf16.mxu1 %v9151_v37 }
 0xdee   :  { %4015 = vmatpush2.bf16.msra.mxu0 %v9154_v38  ;;  %4056 = vmatpush2.bf16.msra.mxu1 %v9157_v16  ;;  %v9172_v38 = vld [vmem:[#allocation3 + $0x104] ss:$16 sps:$4 sm:$0xff]   ;;  %v9175_v16 = vld [vmem:[#allocation3 + $0x10c] ss:$16 sps:$4 sm:$0xff]  }
 0xdef   :  { %4016 = vmatprep.subr.bf16.mxu0 %v9160_v29  ;;  %4057 = vmatprep.subr.bf16.mxu1 %v9163_v6  ;;  %10705 = vst [vmem:[#allocation38_spill] sm:$0xff] %v9172_v38  ;;  %10706 = vst [vmem:[#allocation40_spill] sm:$0xff] %v9175_v16  ;;  %v9178_v29 = vld [vmem:[#allocation3 + $0x100] ss:$16 sps:$4 sm:$0xff]   ;;  %v9181_v6 = vld [vmem:[#allocation3 + $0x108] ss:$16 sps:$4 sm:$0xff]  }
 0xdf0   :  { %10707 = vst [vmem:[#allocation62_spill] sm:$0xff] %v9178_v29  ;;  %10708 = vst [vmem:[#allocation65_spill] sm:$0xff] %v9181_v6 }
 0xdf2   :  { %4017 = vmatpush2.bf16.msra.mxu0 %v9166_v45  ;;  %4058 = vmatpush2.bf16.msra.mxu1 %v9169_v49  ;;  %v9184_v45 = vld [vmem:[#allocation3 + $0x2e4] ss:$16 sps:$4 sm:$0xff]   ;;  %v9187_v49 = vld [vmem:[#allocation3 + $0x2ec] ss:$16 sps:$4 sm:$0xff]  }
 0xdf3   :  { %4018 = vmatprep.subr.bf16.mxu0 %v9172_v38  ;;  %4059 = vmatprep.subr.bf16.mxu1 %v9175_v16  ;;  %10709 = vst [vmem:[#allocation63_spill] sm:$0xff] %v9184_v45  ;;  %10710 = vst [vmem:[#allocation68_spill] sm:$0xff] %v9187_v49 }
 0xdf6   :  { %4019 = vmatpush2.bf16.msra.mxu0 %v9178_v29  ;;  %4060 = vmatpush2.bf16.msra.mxu1 %v9181_v6 }
 0xdf7   :  { %4096 = vmatprep.subr.bf16.mxu0 %v9184_v45  ;;  %4137 = vmatprep.subr.bf16.mxu1 %v9187_v49 }
 0xe58   :  { %v3794_v38 = vpop.f32.mrf.mxu0  ;;  %v3835_v37 = vpop.f32.mrf.mxu1 }
 0xe59   :  { %v3795_v16 = vadd.f32 %v3794_v38, %v10598_v2  ;;  %v3836_v45 = vadd.f32 %v3835_v37, %v10600_v15  ;;  %v10712_v15 = vld [vmem:[#allocation55_spill] sm:$0xff] }
 0xe5a   :  { %v3796_v58 = vpop.f32.mrf.mxu0  ;;  %v3837_v28 = vpop.f32.mrf.mxu1 }
 0xe5b   :  { %v5121_v31 = vmul.f32 -1.442695, %v3795_v16  ;;  %v3797_v29 = vadd.f32 %v3796_v58, %v10599_v60  ;;  %v5123_v53 = vmul.f32 -1.442695, %v3836_v45  ;;  %v3838_v30 = vadd.f32 %v3837_v28, %v10601_v63  ;;  %v10711_v58 = vld [vmem:[#allocation53_spill] sm:$0xff] }
 0xe5c   :  { %v3798_v9 = vpop.f32.mrf.mxu0  ;;  %v3839_v62 = vpop.f32.mrf.mxu1 }
 0xe5d   :  { %5848 = vpow2.f32 %v5121_v31  ;;  %v5122_v6 = vmul.f32 -1.442695, %v3797_v29 }
 0xe5e   :  { %v3799_v23 = vpop.f32.mrf.mxu0  ;;  %v3840_v25 = vpop.f32.mrf.mxu1 }
 0xe5f   :  { %5850 = vpow2.f32 %v5122_v6 }
 0xe60   :  { %5852 = vpow2.f32 %v5123_v53 }
 0xe6a   :  { %v5849_v49 = vpop.eup %5848 }
 0xe6b   :  { %v3851_v4 = vadd.f32 1.0, %v5849_v49 }
 0xe6c   :  { %v5851_v38 = vpop.eup %5850 }
 0xe6d   :  { %5854 = vrcp.f32 %v3851_v4  ;;  %v3852_v16 = vadd.f32 1.0, %v5851_v38  ;;  %v5853_v31 = vpop.eup %5852 }
 0xe6e   :  { %5856 = vtanh.f32 %v3838_v30  ;;  %v3853_v49 = vadd.f32 1.0, %v5853_v31  ;;  %v10714_v31 = vld [vmem:[#allocation56_spill] sm:$0xff] }
 0xe6f   :  { %5858 = vrcp.f32 %v3852_v16 }
 0xe78   :  { %v3911_v9 = vpop.f32.mrf.mxu0  ;;  %v3952_v62 = vpop.f32.mrf.mxu1 }
 0xe79   :  { %v3959_v23 = vadd.f32 %v3911_v9, %v10711_v58  ;;  %v10713_v9 = vld [vmem:[#allocation54_spill] sm:$0xff] }
 0xe7a   :  { %v5855_v25 = vpop.eup %5854  ;;  %v3913_v29 = vpop.f32.mrf.mxu0  ;;  %v3961_v58 = vadd.f32 %v3952_v62, %v10713_v9 }
 0xe7b   :  { %v3954_v6 = vpop.f32.mrf.mxu1  ;;  %v5857_v37 = vpop.eup %5856  ;;  %v5124_v45 = vmul.f32 -1.442695, %v3959_v23  ;;  %v3960_v60 = vadd.f32 %v3913_v29, %v10712_v15 }
 0xe7c   :  { %v5859_v28 = vpop.eup %5858  ;;  %v3915_v63 = vpop.f32.mrf.mxu0  ;;  %v3862_v30 = vmul.f32 %v5857_v37, %v5855_v25  ;;  %v5126_v15 = vmul.f32 -1.442695, %v3961_v58 }
 0xe7d   :  { %v3956_v53 = vpop.f32.mrf.mxu1  ;;  %v3861_v4 = vmul.f32 %v5859_v28, %v8888_v33  ;;  %5860 = vpow2.f32 %v5124_v45  ;;  %v5125_v38 = vmul.f32 -1.442695, %v3960_v60  ;;  %v3962_v63 = vadd.f32 %v3954_v6, %v10714_v31  ;;  %v9213_v31 = vld [vmem:[#allocation3 + $0x2e0] ss:$16 sps:$4 sm:$0xff]  }
 0xe7e   :  { %v3916_v16 = vpop.f32.mrf.mxu0  ;;  %v3870_v53 = vpop.permute.xlu1 %3869 }
 0xe7f   :  { %v3957_v2 = vpop.f32.mrf.mxu1  ;;  %v9197_v18 = vadd.f32 %v3862_v30, %v3861_v4  ;;  %5862 = vpow2.f32 %v5125_v38  ;;  %vm3871_vm7 = vcmp.eq.s32.totalorder %v3870_v53, 1  ;;  %v9225_v53 = vld [vmem:[#allocation3 + $0x2c0] ss:$16 sps:$4 sm:$0xff]  }
 0xe80   :  { %5864 = vrcp.f32 %v3853_v49 }
 0xe81   :  { %5866 = vtanh.f32 %v9197_v18 }
 0xe82   :  { %5868 = vpow2.f32 %v5126_v15 }
 0xe8a   :  { %v5861_v23 = vpop.eup %5860 }
 0xe8b   :  { %v3972_v29 = vadd.f32 1.0, %v5861_v23 }
 0xe8c   :  { %v5863_v33 = vpop.eup %5862 }
 0xe8d   :  { %v5865_v25 = vpop.eup %5864  ;;  %5870 = vrcp.f32 %v3972_v29  ;;  %v3973_v60 = vadd.f32 1.0, %v5863_v33  ;;  %v9222_v29 = vld [vmem:[#allocation3 + $0x2cc] ss:$16 sps:$4 sm:$0xff]   ;;  %v9228_v33 = vld [vmem:[#allocation3 + $0x2c8] ss:$16 sps:$4 sm:$0xff]  }
 0xe8e   :  { %v5867_v2 = vpop.eup %5866  ;;  %5872 = vtanh.f32 %v3962_v63  ;;  %v9219_v63 = vld [vmem:[#allocation3 + $0x2c4] ss:$16 sps:$4 sm:$0xff]   ;;  %10715 = vst [vmem:[#allocation64_spill] sm:$0xff] %v9228_v33 }
 0xe8f   :  { %5874 = vrcp.f32 %v3973_v60  ;;  %v3865_v37 = vmul.f32 %v5867_v2, %v5865_v25  ;;  %v5869_v62 = vpop.eup %5868  ;;  %v9231_v25 = vld [vmem:[#allocation3 + $0x2a4] ss:$16 sps:$4 sm:$0xff]   ;;  %v9234_v60 = vld [vmem:[#allocation3 + $0x2ac] ss:$16 sps:$4 sm:$0xff]   ;;  %v9237_v2 = vld [vmem:[#allocation3 + $0x2a0] ss:$16 sps:$4 sm:$0xff]  }
 0xe90   :  { %v3974_v6 = vadd.f32 1.0, %v5869_v62  ;;  %10716 = vst [vmem:[#allocation69_spill] sm:$0xff] %v9231_v25  ;;  %10717 = vst [vmem:[#allocation66_spill] sm:$0xff] %v9234_v60  ;;  %v9243_v62 = vld [vmem:[#allocation3 + $0x284] ss:$16 sps:$4 sm:$0xff]  }
 0xe91   :  { %v9203_v45 = vsel %vm3871_vm7, %v3865_v37, %v8894_v8  ;;  %v4095_v8 = vpack.c.bf16 %v3865_v37, %v3865_v37  ;;  %10718 = vst [vmem:[#allocation71_spill] sm:$0xff] %v9237_v2  ;;  %v9240_v37 = vld [vmem:[#allocation3 + $0x2a8] ss:$16 sps:$4 sm:$0xff]   ;;  %10720 = vst [vmem:[#allocation73_spill] sm:$0xff] %v9243_v62 }
 0xe92   :  { %5876 = vrcp.f32 %v3974_v6  ;;  %10719 = vst [vmem:[#allocation67_spill] sm:$0xff] %v9240_v37  ;;  %v9255_v6 = vld [vmem:[#allocation3 + $0x264] ss:$16 sps:$4 sm:$0xff]  }
 0xe93   :  { %10724 = vst [vmem:[#allocation77_spill] sm:$0xff] %v9255_v6 }
 0xe9a   :  { %v5871_v28 = vpop.eup %5870 }
 0xe9b   :  { %v5873_v49 = vpop.eup %5872 }
 0xe9c   :  { %v5875_v4 = vpop.eup %5874  ;;  %v3983_v38 = vmul.f32 %v5873_v49, %v5871_v28  ;;  %v9246_v28 = vld [vmem:[#allocation3 + $0x28c] ss:$16 sps:$4 sm:$0xff]   ;;  %v9249_v49 = vld [vmem:[#allocation3 + $0x280] ss:$16 sps:$4 sm:$0xff]  }
 0xe9d   :  { %v3982_v30 = vmul.f32 %v5875_v4, %v8897_v51  ;;  %v9216_v51 = vld [vmem:[#allocation3 + $0x2e8] ss:$16 sps:$4 sm:$0xff]   ;;  %10721 = vst [vmem:[#allocation70_spill] sm:$0xff] %v9246_v28  ;;  %10722 = vst [vmem:[#allocation75_spill] sm:$0xff] %v9249_v49 }
 0xe9e   :  { %v9252_v4 = vld [vmem:[#allocation3 + $0x288] ss:$16 sps:$4 sm:$0xff]  }
 0xe9f   :  { %v9206_v16 = vadd.f32 %v3983_v38, %v3982_v30  ;;  %v5877_v9 = vpop.eup %5876  ;;  %10723 = vst [vmem:[#allocation72_spill] sm:$0xff] %v9252_v4  ;;  %v9258_v30 = vld [vmem:[#allocation3 + $0x26c] ss:$16 sps:$4 sm:$0xff]   ;;  %v9261_v38 = vld [vmem:[#allocation3 + $0x260] ss:$16 sps:$4 sm:$0xff]  }
 0xea0   :  { %10725 = vst [vmem:[#allocation33_spill] sm:$0xff] %v9258_v30  ;;  %10726 = vst [vmem:[#allocation35_spill] sm:$0xff] %v9261_v38 }
 0xea1   :  { %5878 = vtanh.f32 %v9206_v16 }
 0xeae   :  { %v5879_v58 = vpop.eup %5878 }
 0xeaf   :  { %v3986_v15 = vmul.f32 %v5879_v58, %v5877_v9  ;;  %v9264_v9 = vld [vmem:[#allocation3 + $0x268] ss:$16 sps:$4 sm:$0xff]   ;;  %v9267_v58 = vld [vmem:[#allocation3 + $0x244] ss:$16 sps:$4 sm:$0xff]  }
 0xeb0   :  { %10727 = vst [vmem:[#allocation34_spill] sm:$0xff] %v9264_v9  ;;  %10728 = vst [vmem:[#allocation36_spill] sm:$0xff] %v9267_v58 }
 0xeb1   :  { %v9209_v23 = vpack.c.bf16 %v3986_v15, %v3986_v15  ;;  %v9270_v15 = vld [vmem:[#allocation3 + $0x24c] ss:$16 sps:$4 sm:$0xff]  }
 0xeb2   :  { %10729 = vst [vmem:[#allocation49_spill] sm:$0xff] %v9270_v15 }
 0xeb3   :  { %4021 = vmatmul.mubr.bf16.vlgmr.msra.gmra.mxu0 %v9209_v23  ;;  %4062 = vmatmul.mubr.bf16.vlgmr.msra.gmra.mxu1 %v9209_v23 }
 0xeb4   :  { %4128 = vmatprep.mubr.bf16.mxu0 %v4095_v8  ;;  %4169 = vmatprep.mubr.bf16.mxu1 %v4095_v8  ;;  %v9273_v8 = vld [vmem:[#allocation3 + $0x240] ss:$16 sps:$4 sm:$0xff]  }
 0xeb5   :  { %4097 = vmatpush1.bf16.msra.mxu0 %v9213_v31  ;;  %4138 = vmatpush1.bf16.msra.mxu1 %v9216_v51  ;;  %10730 = vst [vmem:[#allocation51_spill] sm:$0xff] %v9273_v8 }
 0xeb6   :  { %4098 = vmatprep.subr.bf16.mxu0 %v9219_v63  ;;  %4139 = vmatprep.subr.bf16.mxu1 %v9222_v29 }
 0xeb9   :  { %4099 = vmatpush1.bf16.msra.mxu0 %v9225_v53  ;;  %4140 = vmatpush1.bf16.msra.mxu1 %v9228_v33 }
 0xeba   :  { %4100 = vmatprep.subr.bf16.mxu0 %v9231_v25  ;;  %4141 = vmatprep.subr.bf16.mxu1 %v9234_v60 }
 0xebd   :  { %4101 = vmatpush1.bf16.msra.mxu0 %v9237_v2  ;;  %4142 = vmatpush1.bf16.msra.mxu1 %v9240_v37 }
 0xebe   :  { %4102 = vmatprep.subr.bf16.mxu0 %v9243_v62  ;;  %4143 = vmatprep.subr.bf16.mxu1 %v9246_v28 }
 0xec1   :  { %4103 = vmatpush1.bf16.msra.mxu0 %v9249_v49  ;;  %4144 = vmatpush1.bf16.msra.mxu1 %v9252_v4 }
 0xec2   :  { %4104 = vmatprep.subr.bf16.mxu0 %v9255_v6  ;;  %4145 = vmatprep.subr.bf16.mxu1 %v9258_v30  ;;  %v9276_v30 = vld [vmem:[#allocation3 + $0x248] ss:$16 sps:$4 sm:$0xff]   ;;  %v6409_v6 = vld [vmem:[#allocation9 + $0xec] ss:$16 sps:$4 sm:$0xff]  }
 0xec3   :  { %10731 = vst [vmem:[#allocation50_spill] sm:$0xff] %v9276_v30 }
 0xec5   :  { %4105 = vmatpush1.bf16.msra.mxu0 %v9261_v38  ;;  %4146 = vmatpush1.bf16.msra.mxu1 %v9264_v9  ;;  %v9279_v38 = vld [vmem:[#allocation3 + $0x224] ss:$16 sps:$4 sm:$0xff]   ;;  %v9282_v9 = vld [vmem:[#allocation3 + $0x22c] ss:$16 sps:$4 sm:$0xff]  }
 0xec6   :  { %4106 = vmatprep.subr.bf16.mxu0 %v9267_v58  ;;  %4147 = vmatprep.subr.bf16.mxu1 %v9270_v15  ;;  %10732 = vst [vmem:[#allocation52_spill] sm:$0xff] %v9279_v38  ;;  %10733 = vst [vmem:[#allocation61_spill] sm:$0xff] %v9282_v9  ;;  %v9285_v58 = vld [vmem:[#allocation3 + $0x220] ss:$16 sps:$4 sm:$0xff]   ;;  %v9288_v15 = vld [vmem:[#allocation3 + $0x228] ss:$16 sps:$4 sm:$0xff]  }
 0xec7   :  { %10734 = vst [vmem:[#allocation74_spill] sm:$0xff] %v9285_v58  ;;  %10735 = vst [vmem:[#allocation79_spill] sm:$0xff] %v9288_v15 }
 0xec9   :  { %4107 = vmatpush1.bf16.msra.mxu0 %v9273_v8  ;;  %4148 = vmatpush1.bf16.msra.mxu1 %v9276_v30  ;;  %v9291_v8 = vld [vmem:[#allocation3 + $0x204] ss:$16 sps:$4 sm:$0xff]   ;;  %v9294_v30 = vld [vmem:[#allocation3 + $0x20c] ss:$16 sps:$4 sm:$0xff]  }
 0xeca   :  { %4108 = vmatprep.subr.bf16.mxu0 %v9279_v38  ;;  %4149 = vmatprep.subr.bf16.mxu1 %v9282_v9  ;;  %10736 = vst [vmem:[#allocation76_spill] sm:$0xff] %v9291_v8  ;;  %10737 = vst [vmem:[#allocation80_spill] sm:$0xff] %v9294_v30  ;;  %v9297_v38 = vld [vmem:[#allocation3 + $0x200] ss:$16 sps:$4 sm:$0xff]   ;;  %v9300_v9 = vld [vmem:[#allocation3 + $0x208] ss:$16 sps:$4 sm:$0xff]  }
 0xecb   :  { %10738 = vst [vmem:[#allocation78_spill] sm:$0xff] %v9297_v38  ;;  %10739 = vst [vmem:[#allocation41_spill] sm:$0xff] %v9300_v9 }
 0xecd   :  { %4109 = vmatpush1.bf16.msra.mxu0 %v9285_v58  ;;  %4150 = vmatpush1.bf16.msra.mxu1 %v9288_v15  ;;  %v9303_v58 = vld [vmem:[#allocation3 + $0x3e4] ss:$16 sps:$4 sm:$0xff]   ;;  %v9306_v15 = vld [vmem:[#allocation3 + $0x3ec] ss:$16 sps:$4 sm:$0xff]  }
 0xece   :  { %4110 = vmatprep.subr.bf16.mxu0 %v9291_v8  ;;  %4151 = vmatprep.subr.bf16.mxu1 %v9294_v30  ;;  %10740 = vst [vmem:[#allocation43_spill] sm:$0xff] %v9303_v58  ;;  %10741 = vst [vmem:[#allocation42_spill] sm:$0xff] %v9306_v15  ;;  %v9309_v8 = vld [vmem:[#allocation3 + $0x3e0] ss:$16 sps:$4 sm:$0xff]   ;;  %v9312_v30 = vld [vmem:[#allocation3 + $0x3e8] ss:$16 sps:$4 sm:$0xff]  }
 0xecf   :  { %10742 = vst [vmem:[#allocation44_spill] sm:$0xff] %v9309_v8  ;;  %10743 = vst [vmem:[#allocation81_spill] sm:$0xff] %v9312_v30 }
 0xed1   :  { %4111 = vmatpush1.bf16.msra.mxu0 %v9297_v38  ;;  %4152 = vmatpush1.bf16.msra.mxu1 %v9300_v9  ;;  %v9315_v38 = vld [vmem:[#allocation3 + $0x3c4] ss:$16 sps:$4 sm:$0xff]   ;;  %v9318_v9 = vld [vmem:[#allocation3 + $0x3cc] ss:$16 sps:$4 sm:$0xff]  }
 0xed2   :  { %4112 = vmatprep.subr.bf16.mxu0 %v9303_v58  ;;  %4153 = vmatprep.subr.bf16.mxu1 %v9306_v15  ;;  %10744 = vst [vmem:[#allocation82_spill] sm:$0xff] %v9315_v38  ;;  %10745 = vst [vmem:[#allocation83_spill] sm:$0xff] %v9318_v9  ;;  %v9321_v58 = vld [vmem:[#allocation3 + $0x3c0] ss:$16 sps:$4 sm:$0xff]   ;;  %v9324_v15 = vld [vmem:[#allocation3 + $0x3c8] ss:$16 sps:$4 sm:$0xff]  }
 0xed3   :  { %10746 = vst [vmem:[#allocation84_spill] sm:$0xff] %v9321_v58  ;;  %10747 = vst [vmem:[#allocation85_spill] sm:$0xff] %v9324_v15 }
 0xed5   :  { %4113 = vmatpush2.bf16.msra.mxu0 %v9309_v8  ;;  %4154 = vmatpush2.bf16.msra.mxu1 %v9312_v30  ;;  %v9327_v8 = vld [vmem:[#allocation3 + $0x3a4] ss:$16 sps:$4 sm:$0xff]   ;;  %v9330_v30 = vld [vmem:[#allocation3 + $0x3ac] ss:$16 sps:$4 sm:$0xff]  }
 0xed6   :  { %4114 = vmatprep.subr.bf16.mxu0 %v9315_v38  ;;  %4155 = vmatprep.subr.bf16.mxu1 %v9318_v9  ;;  %10748 = vst [vmem:[#allocation86_spill] sm:$0xff] %v9327_v8  ;;  %10749 = vst [vmem:[#allocation87_spill] sm:$0xff] %v9330_v30  ;;  %v9333_v38 = vld [vmem:[#allocation3 + $0x3a0] ss:$16 sps:$4 sm:$0xff]   ;;  %v9336_v9 = vld [vmem:[#allocation3 + $0x3a8] ss:$16 sps:$4 sm:$0xff]  }
 0xed7   :  { %10750 = vst [vmem:[#allocation88_spill] sm:$0xff] %v9333_v38  ;;  %10751 = vst [vmem:[#allocation89_spill] sm:$0xff] %v9336_v9 }
 0xed9   :  { %4115 = vmatpush2.bf16.msra.mxu0 %v9321_v58  ;;  %4156 = vmatpush2.bf16.msra.mxu1 %v9324_v15  ;;  %v9339_v58 = vld [vmem:[#allocation3 + $0x384] ss:$16 sps:$4 sm:$0xff]   ;;  %v9342_v15 = vld [vmem:[#allocation3 + $0x38c] ss:$16 sps:$4 sm:$0xff]  }
 0xeda   :  { %4116 = vmatprep.subr.bf16.mxu0 %v9327_v8  ;;  %4157 = vmatprep.subr.bf16.mxu1 %v9330_v30  ;;  %10752 = vst [vmem:[#allocation90_spill] sm:$0xff] %v9339_v58  ;;  %10753 = vst [vmem:[#allocation91_spill] sm:$0xff] %v9342_v15  ;;  %v9345_v8 = vld [vmem:[#allocation3 + $0x380] ss:$16 sps:$4 sm:$0xff]   ;;  %v9348_v30 = vld [vmem:[#allocation3 + $0x388] ss:$16 sps:$4 sm:$0xff]  }
 0xedb   :  { %10754 = vst [vmem:[#allocation92_spill] sm:$0xff] %v9345_v8  ;;  %10755 = vst [vmem:[#allocation93_spill] sm:$0xff] %v9348_v30 }
 0xedd   :  { %4117 = vmatpush2.bf16.msra.mxu0 %v9333_v38  ;;  %4158 = vmatpush2.bf16.msra.mxu1 %v9336_v9  ;;  %v9351_v38 = vld [vmem:[#allocation3 + $0x364] ss:$16 sps:$4 sm:$0xff]   ;;  %v9354_v9 = vld [vmem:[#allocation3 + $0x36c] ss:$16 sps:$4 sm:$0xff]  }
 0xede   :  { %4118 = vmatprep.subr.bf16.mxu0 %v9339_v58  ;;  %4159 = vmatprep.subr.bf16.mxu1 %v9342_v15  ;;  %10756 = vst [vmem:[#allocation94_spill] sm:$0xff] %v9351_v38  ;;  %10757 = vst [vmem:[#allocation95_spill] sm:$0xff] %v9354_v9  ;;  %v9357_v58 = vld [vmem:[#allocation3 + $0x360] ss:$16 sps:$4 sm:$0xff]   ;;  %v9360_v15 = vld [vmem:[#allocation3 + $0x368] ss:$16 sps:$4 sm:$0xff]  }
 0xedf   :  { %10758 = vst [vmem:[#allocation96_spill] sm:$0xff] %v9357_v58  ;;  %10759 = vst [vmem:[#allocation97_spill] sm:$0xff] %v9360_v15 }
 0xee1   :  { %4119 = vmatpush2.bf16.msra.mxu0 %v9345_v8  ;;  %4160 = vmatpush2.bf16.msra.mxu1 %v9348_v30  ;;  %v9363_v8 = vld [vmem:[#allocation3 + $0x344] ss:$16 sps:$4 sm:$0xff]   ;;  %v9366_v30 = vld [vmem:[#allocation3 + $0x34c] ss:$16 sps:$4 sm:$0xff]  }
 0xee2   :  { %4120 = vmatprep.subr.bf16.mxu0 %v9351_v38  ;;  %4161 = vmatprep.subr.bf16.mxu1 %v9354_v9  ;;  %10760 = vst [vmem:[#allocation98_spill] sm:$0xff] %v9363_v8  ;;  %10761 = vst [vmem:[#allocation99_spill] sm:$0xff] %v9366_v30  ;;  %v9369_v38 = vld [vmem:[#allocation3 + $0x340] ss:$16 sps:$4 sm:$0xff]   ;;  %v9372_v9 = vld [vmem:[#allocation3 + $0x348] ss:$16 sps:$4 sm:$0xff]  }
 0xee3   :  { %10762 = vst [vmem:[#allocation100_spill] sm:$0xff] %v9369_v38  ;;  %10763 = vst [vmem:[#allocation101_spill] sm:$0xff] %v9372_v9 }
 0xee5   :  { %4121 = vmatpush2.bf16.msra.mxu0 %v9357_v58  ;;  %4162 = vmatpush2.bf16.msra.mxu1 %v9360_v15  ;;  %v9375_v58 = vld [vmem:[#allocation3 + $0x324] ss:$16 sps:$4 sm:$0xff]   ;;  %v9378_v15 = vld [vmem:[#allocation3 + $0x32c] ss:$16 sps:$4 sm:$0xff]  }
 0xee6   :  { %4122 = vmatprep.subr.bf16.mxu0 %v9363_v8  ;;  %4163 = vmatprep.subr.bf16.mxu1 %v9366_v30  ;;  %10764 = vst [vmem:[#allocation102_spill] sm:$0xff] %v9375_v58  ;;  %10765 = vst [vmem:[#allocation103_spill] sm:$0xff] %v9378_v15  ;;  %v9381_v8 = vld [vmem:[#allocation3 + $0x320] ss:$16 sps:$4 sm:$0xff]   ;;  %v9384_v30 = vld [vmem:[#allocation3 + $0x328] ss:$16 sps:$4 sm:$0xff]  }
 0xee7   :  { %10766 = vst [vmem:[#allocation104_spill] sm:$0xff] %v9381_v8  ;;  %10767 = vst [vmem:[#allocation105_spill] sm:$0xff] %v9384_v30 }
 0xee9   :  { %4123 = vmatpush2.bf16.msra.mxu0 %v9369_v38  ;;  %4164 = vmatpush2.bf16.msra.mxu1 %v9372_v9  ;;  %v9387_v38 = vld [vmem:[#allocation3 + $0x304] ss:$16 sps:$4 sm:$0xff]   ;;  %v9390_v9 = vld [vmem:[#allocation3 + $0x30c] ss:$16 sps:$4 sm:$0xff]  }
 0xeea   :  { %4124 = vmatprep.subr.bf16.mxu0 %v9375_v58  ;;  %4165 = vmatprep.subr.bf16.mxu1 %v9378_v15  ;;  %10768 = vst [vmem:[#allocation106_spill] sm:$0xff] %v9387_v38  ;;  %10769 = vst [vmem:[#allocation107_spill] sm:$0xff] %v9390_v9  ;;  %v9393_v58 = vld [vmem:[#allocation3 + $0x300] ss:$16 sps:$4 sm:$0xff]   ;;  %v9396_v15 = vld [vmem:[#allocation3 + $0x308] ss:$16 sps:$4 sm:$0xff]  }
 0xeeb   :  { %10770 = vst [vmem:[#allocation108_spill] sm:$0xff] %v9393_v58  ;;  %10771 = vst [vmem:[#allocation109_spill] sm:$0xff] %v9396_v15 }
 0xeed   :  { %4125 = vmatpush2.bf16.msra.mxu0 %v9381_v8  ;;  %4166 = vmatpush2.bf16.msra.mxu1 %v9384_v30  ;;  %v6408_v8 = vld [vmem:[#allocation9 + $0xe4] ss:$16 sps:$4 sm:$0xff]  }
 0xeee   :  { %4126 = vmatprep.subr.bf16.mxu0 %v9387_v38  ;;  %4167 = vmatprep.subr.bf16.mxu1 %v9390_v9  ;;  %v4203_v38 = vsel %vm4202_vm8, 1, %v10111_v7 }
 0xeef   :  { %4205 = vperm.xlu0 %5350, %v4203_v38  }
 0xef1   :  { %4127 = vmatpush2.bf16.msra.mxu0 %v9393_v58  ;;  %4168 = vmatpush2.bf16.msra.mxu1 %v9396_v15 }
 0xef2   :  { %4213 = vmatprep.subr.bf16.mxu0 %v6408_v8  ;;  %4254 = vmatprep.subr.bf16.mxu1 %v6409_v6 }
 0xf73   :  { %v4022_v30 = vpop.f32.mrf.mxu0  ;;  %v4063_v4 = vpop.f32.mrf.mxu1 }
 0xf74   :  { %v4023_v9 = vadd.f32 %v4022_v30, %v6763_v54  ;;  %v4064_v19 = vadd.f32 %v4063_v4, %v6767_v56 }
 0xf75   :  { %v4024_v49 = vpop.f32.mrf.mxu0  ;;  %v4065_v28 = vpop.f32.mrf.mxu1 }
 0xf76   :  { %v5127_v58 = vmul.f32 -1.442695, %v4023_v9  ;;  %v4025_v62 = vadd.f32 %v4024_v49, %v10222_v26  ;;  %v5129_v60 = vmul.f32 -1.442695, %v4064_v19  ;;  %v4066_v25 = vadd.f32 %v4065_v28, %v6769_v57 }
 0xf77   :  { %v4026_v37 = vpop.f32.mrf.mxu0  ;;  %v4067_v15 = vpop.f32.mrf.mxu1 }
 0xf78   :  { %5880 = vpow2.f32 %v5127_v58  ;;  %v5128_v8 = vmul.f32 -1.442695, %v4025_v62 }
 0xf79   :  { %v4027_v2 = vpop.f32.mrf.mxu0  ;;  %v4068_v6 = vpop.f32.mrf.mxu1 }
 0xf7a   :  { %5882 = vpow2.f32 %v5128_v8  ;;  %v6411_v6 = vld [vmem:[#allocation9 + $0xe8] ss:$16 sps:$4 sm:$0xff]  }
 0xf7b   :  { %5884 = vpow2.f32 %v5129_v60 }
 0xf85   :  { %v5881_v38 = vpop.eup %5880 }
 0xf86   :  { %v4079_v33 = vadd.f32 1.0, %v5881_v38  ;;  %v6413_v38 = vld [vmem:[#allocation9 + $0xcc] ss:$16 sps:$4 sm:$0xff]  }
 0xf87   :  { %v5883_v30 = vpop.eup %5882 }
 0xf88   :  { %5886 = vrcp.f32 %v4079_v33  ;;  %v4080_v9 = vadd.f32 1.0, %v5883_v30  ;;  %v5885_v37 = vpop.eup %5884  ;;  %v6414_v30 = vld [vmem:[#allocation9 + $0xc0] ss:$16 sps:$4 sm:$0xff]  }
 0xf89   :  { %5888 = vtanh.f32 %v4066_v25  ;;  %v4081_v2 = vadd.f32 1.0, %v5885_v37  ;;  %v6410_v25 = vld [vmem:[#allocation9 + $0xe0] ss:$16 sps:$4 sm:$0xff]   ;;  %v6416_v37 = vld [vmem:[#allocation9 + $0xa4] ss:$16 sps:$4 sm:$0xff]  }
 0xf8a   :  { %5890 = vrcp.f32 %v4080_v9  ;;  %v6415_v9 = vld [vmem:[#allocation9 + $0xc8] ss:$16 sps:$4 sm:$0xff]  }
 0xf8b   :  { %5892 = vrcp.f32 %v4081_v2  ;;  %v6420_v2 = vld [vmem:[#allocation9 + $0x84] ss:$16 sps:$4 sm:$0xff]  }
 0xf95   :  { %v5887_v49 = vpop.eup %5886 }
 0xf96   :  { %v5889_v58 = vpop.eup %5888 }
 0xf97   :  { %v5891_v62 = vpop.eup %5890  ;;  %v4090_v8 = vmul.f32 %v5889_v58, %v5887_v49  ;;  %v6417_v49 = vld [vmem:[#allocation9 + $0xac] ss:$16 sps:$4 sm:$0xff]   ;;  %v6418_v58 = vld [vmem:[#allocation9 + $0xa0] ss:$16 sps:$4 sm:$0xff]  }
 0xf98   :  { %v4089_v15 = vmul.f32 %v5891_v62, %v8975_v43  ;;  %v5893_v19 = vpop.eup %5892  ;;  %v6412_v43 = vld [vmem:[#allocation9 + $0xc4] ss:$16 sps:$4 sm:$0xff]   ;;  %v6419_v62 = vld [vmem:[#allocation9 + $0xa8] ss:$16 sps:$4 sm:$0xff]  }
 0xf9a   :  { %v9406_v4 = vadd.f32 %v4090_v8, %v4089_v15  ;;  %v6421_v15 = vld [vmem:[#allocation9 + $0x8c] ss:$16 sps:$4 sm:$0xff]   ;;  %v6422_v8 = vld [vmem:[#allocation9 + $0x80] ss:$16 sps:$4 sm:$0xff]  }
 0xf9c   :  { %5894 = vtanh.f32 %v9406_v4 }
 0xfa9   :  { %v5895_v28 = vpop.eup %5894 }
 0xfaa   :  { %v4093_v60 = vmul.f32 %v5895_v28, %v5893_v19  ;;  %v6423_v19 = vld [vmem:[#allocation9 + $0x88] ss:$16 sps:$4 sm:$0xff]   ;;  %v6424_v28 = vld [vmem:[#allocation9 + $0x64] ss:$16 sps:$4 sm:$0xff]  }
 0xfac   :  { %v9409_v33 = vpack.c.bf16 %v4093_v60, %v4093_v60  ;;  %v6425_v60 = vld [vmem:[#allocation9 + $0x6c] ss:$16 sps:$4 sm:$0xff]  }
 0xfae   :  { %4129 = vmatmul.mubr.bf16.vlgmr.msra.gmra.mxu0 %v9409_v33  ;;  %4170 = vmatmul.mubr.bf16.vlgmr.msra.gmra.mxu1 %v9409_v33 }
 0xfaf   :  { %4214 = vmatpush1.bf16.msra.mxu0 %v6410_v25  ;;  %4255 = vmatpush1.bf16.msra.mxu1 %v6411_v6  ;;  %v6426_v25 = vld [vmem:[#allocation9 + $0x60] ss:$16 sps:$4 sm:$0xff]   ;;  %v6427_v6 = vld [vmem:[#allocation9 + $0x68] ss:$16 sps:$4 sm:$0xff]  }
 0xfb0   :  { %4215 = vmatprep.subr.bf16.mxu0 %v6412_v43  ;;  %4256 = vmatprep.subr.bf16.mxu1 %v6413_v38  ;;  %v6428_v43 = vld [vmem:[#allocation9 + $0x44] ss:$16 sps:$4 sm:$0xff]   ;;  %v6429_v38 = vld [vmem:[#allocation9 + $0x4c] ss:$16 sps:$4 sm:$0xff]  }
 0xfb1   :  { %4245 = vmatprep.mubr.bf16.mxu0 %v10111_v7  ;;  %4286 = vmatprep.mubr.bf16.mxu1 %v10111_v7 }
 0xfb3   :  { %4216 = vmatpush1.bf16.msra.mxu0 %v6414_v30  ;;  %4257 = vmatpush1.bf16.msra.mxu1 %v6415_v9  ;;  %v6430_v30 = vld [vmem:[#allocation9 + $0x40] ss:$16 sps:$4 sm:$0xff]   ;;  %v6431_v9 = vld [vmem:[#allocation9 + $0x48] ss:$16 sps:$4 sm:$0xff]  }
 0xfb4   :  { %4217 = vmatprep.subr.bf16.mxu0 %v6416_v37  ;;  %4258 = vmatprep.subr.bf16.mxu1 %v6417_v49  ;;  %v6432_v37 = vld [vmem:[#allocation9 + $0x24] ss:$16 sps:$4 sm:$0xff]   ;;  %v6433_v49 = vld [vmem:[#allocation9 + $0x2c] ss:$16 sps:$4 sm:$0xff]  }
 0xfb7   :  { %4218 = vmatpush1.bf16.msra.mxu0 %v6418_v58  ;;  %4259 = vmatpush1.bf16.msra.mxu1 %v6419_v62  ;;  %v6434_v58 = vld [vmem:[#allocation9 + $0x20] ss:$16 sps:$4 sm:$0xff]   ;;  %v6435_v62 = vld [vmem:[#allocation9 + $0x28] ss:$16 sps:$4 sm:$0xff]  }
 0xfb8   :  { %4219 = vmatprep.subr.bf16.mxu0 %v6420_v2  ;;  %4260 = vmatprep.subr.bf16.mxu1 %v6421_v15  ;;  %v6436_v2 = vld [vmem:[#allocation9 + $0x4] ss:$16 sps:$4 sm:$0xff]   ;;  %v6437_v15 = vld [vmem:[#allocation9 + $0xc] ss:$16 sps:$4 sm:$0xff]  }
 0xfbb   :  { %4220 = vmatpush1.bf16.msra.mxu0 %v6422_v8  ;;  %4261 = vmatpush1.bf16.msra.mxu1 %v6423_v19  ;;  %v6438_v8 = vld [vmem:[#allocation9] ss:$16 sps:$4 sm:$0xff]   ;;  %v6439_v19 = vld [vmem:[#allocation9 + $0x8] ss:$16 sps:$4 sm:$0xff]  }
 0xfbc   :  { %4221 = vmatprep.subr.bf16.mxu0 %v6424_v28  ;;  %4262 = vmatprep.subr.bf16.mxu1 %v6425_v60  ;;  %v6440_v28 = vld [vmem:[#allocation3 + $0xe4] ss:$16 sps:$4 sm:$0xff]   ;;  %v6441_v60 = vld [vmem:[#allocation3 + $0xec] ss:$16 sps:$4 sm:$0xff]  }
 0xfbf   :  { %4222 = vmatpush1.bf16.msra.mxu0 %v6426_v25  ;;  %4263 = vmatpush1.bf16.msra.mxu1 %v6427_v6  ;;  %v6442_v25 = vld [vmem:[#allocation3 + $0xe0] ss:$16 sps:$4 sm:$0xff]   ;;  %v6443_v6 = vld [vmem:[#allocation3 + $0xe8] ss:$16 sps:$4 sm:$0xff]  }
 0xfc0   :  { %4223 = vmatprep.subr.bf16.mxu0 %v6428_v43  ;;  %4264 = vmatprep.subr.bf16.mxu1 %v6429_v38  ;;  %v6444_v43 = vld [vmem:[#allocation3 + $0xc4] ss:$16 sps:$4 sm:$0xff]   ;;  %v6445_v38 = vld [vmem:[#allocation3 + $0xc0] ss:$16 sps:$4 sm:$0xff]  }
 0xfc3   :  { %4224 = vmatpush1.bf16.msra.mxu0 %v6430_v30  ;;  %4265 = vmatpush1.bf16.msra.mxu1 %v6431_v9  ;;  %v6446_v30 = vld [vmem:[#allocation3 + $0xa4] ss:$16 sps:$4 sm:$0xff]   ;;  %v10797_v9 = vld [vmem:[#allocation29_spill] sm:$0xff] }
 0xfc4   :  { %4225 = vmatprep.subr.bf16.mxu0 %v6432_v37  ;;  %4266 = vmatprep.subr.bf16.mxu1 %v6433_v49 }
 0xfc7   :  { %4226 = vmatpush1.bf16.msra.mxu0 %v6434_v58  ;;  %4267 = vmatpush1.bf16.msra.mxu1 %v6435_v62 }
 0xfc8   :  { %4227 = vmatprep.subr.bf16.mxu0 %v6436_v2  ;;  %4268 = vmatprep.subr.bf16.mxu1 %v6437_v15 }
 0xfcb   :  { %4228 = vmatpush1.bf16.msra.mxu0 %v6438_v8  ;;  %4269 = vmatpush1.bf16.msra.mxu1 %v6439_v19  ;;  %v10798_v8 = vld [vmem:[#allocation30_spill] sm:$0xff] }
 0xfcc   :  { %4324 = vmatprep.subr.bf16.mxu0 %v6440_v28  ;;  %4365 = vmatprep.subr.bf16.mxu1 %v6441_v60 }
 0xfce   :  { %4246 = vmatmul.mubr.bf16.vlgmr.msra.gmra.mxu0 %v9209_v23  ;;  %4287 = vmatmul.mubr.bf16.vlgmr.msra.gmra.mxu1 %v9209_v23  ;;  %v6447_v23 = vld [vmem:[#allocation3 + $0xa0] ss:$16 sps:$4 sm:$0xff]  }
 0xfcf   :  { %4356 = vmatprep.mubr.bf16.mxu0 %v9409_v33  ;;  %4397 = vmatprep.mubr.bf16.mxu1 %v9409_v33  ;;  %v6448_v33 = vld [vmem:[#allocation3 + $0x84] ss:$16 sps:$4 sm:$0xff]  }
 0xfd0   :  { %4325 = vmatpush1.bf16.msra.mxu0 %v6442_v25  ;;  %4366 = vmatpush1.bf16.msra.mxu1 %v6443_v6  ;;  %v10799_v25 = vld [vmem:[#allocation31_spill] sm:$0xff] }
 0xfd1   :  { %4326 = vmatprep.subr.bf16.mxu0 %v6444_v43  ;;  %4367 = vmatprep.subr.bf16.mxu1 %v9017_v5  ;;  %v6449_v5 = vld [vmem:[#allocation3 + $0x64] ss:$16 sps:$4 sm:$0xff]  }
 0xfd4   :  { %4327 = vmatpush1.bf16.msra.mxu0 %v6445_v38  ;;  %4368 = vmatpush1.bf16.msra.mxu1 %v9021_v47  ;;  %v10772_v47 = vld [vmem:[#allocation150_spill] sm:$0xff] }
 0xfd5   :  { %4328 = vmatprep.subr.bf16.mxu0 %v6446_v30  ;;  %4369 = vmatprep.subr.bf16.mxu1 %v9025_v50  ;;  %v10773_v50 = vld [vmem:[#allocation151_spill] sm:$0xff] }
 0xfd8   :  { %4329 = vmatpush1.bf16.msra.mxu0 %v6447_v23  ;;  %4370 = vmatpush1.bf16.msra.mxu1 %v9029_v20  ;;  %v10774_v20 = vld [vmem:[#allocation152_spill] sm:$0xff] }
 0xfd9   :  { %4330 = vmatprep.subr.bf16.mxu0 %v6448_v33  ;;  %4371 = vmatprep.subr.bf16.mxu1 %v9033_v59  ;;  %v10775_v59 = vld [vmem:[#allocation153_spill] sm:$0xff] }
 0xfdc   :  { %4331 = vmatpush1.bf16.msra.mxu0 %v9036_v3  ;;  %4372 = vmatpush1.bf16.msra.mxu1 %v9039_v32  ;;  %v10776_v3 = vld [vmem:[#allocation154_spill] sm:$0xff]  ;;  %v10777_v32 = vld [vmem:[#allocation155_spill] sm:$0xff] }
 0xfdd   :  { %4332 = vmatprep.subr.bf16.mxu0 %v6449_v5  ;;  %4373 = vmatprep.subr.bf16.mxu1 %v9043_v17  ;;  %v10778_v17 = vld [vmem:[#allocation156_spill] sm:$0xff] }
 0xfe0   :  { %4333 = vmatpush1.bf16.msra.mxu0 %v9046_v55  ;;  %4374 = vmatpush1.bf16.msra.mxu1 %v9049_v24  ;;  %v10779_v55 = vld [vmem:[#allocation157_spill] sm:$0xff]  ;;  %v10780_v24 = vld [vmem:[#allocation158_spill] sm:$0xff] }
 0xfe1   :  { %4334 = vmatprep.subr.bf16.mxu0 %v9052_v39  ;;  %4375 = vmatprep.subr.bf16.mxu1 %v9055_v40  ;;  %v10781_v39 = vld [vmem:[#allocation159_spill] sm:$0xff]  ;;  %v10782_v40 = vld [vmem:[#allocation45_spill] sm:$0xff] }
 0xfe4   :  { %4335 = vmatpush1.bf16.msra.mxu0 %v9058_v35  ;;  %4376 = vmatpush1.bf16.msra.mxu1 %v9061_v48  ;;  %v10783_v35 = vld [vmem:[#allocation47_spill] sm:$0xff]  ;;  %v10784_v48 = vld [vmem:[#allocation46_spill] sm:$0xff] }
 0xfe5   :  { %4336 = vmatprep.subr.bf16.mxu0 %v9064_v36  ;;  %4377 = vmatprep.subr.bf16.mxu1 %v9067_v22  ;;  %v10785_v36 = vld [vmem:[#allocation48_spill] sm:$0xff] }
 0xfe6   :  { %v10786_v22 = vld [vmem:[#allocation160_spill] sm:$0xff] }
 0xfe8   :  { %4337 = vmatpush1.bf16.msra.mxu0 %v9070_v34  ;;  %4378 = vmatpush1.bf16.msra.mxu1 %v9073_v14  ;;  %v10787_v34 = vld [vmem:[#allocation161_spill] sm:$0xff] }
 0xfe9   :  { %4338 = vmatprep.subr.bf16.mxu0 %v9076_v21  ;;  %4379 = vmatprep.subr.bf16.mxu1 %v9079_v12  ;;  %v10788_v14 = vld [vmem:[#allocation37_spill] sm:$0xff]  ;;  %v10789_v21 = vld [vmem:[#allocation39_spill] sm:$0xff]  ;;  %v10790_v12 = vld [vmem:[#allocation38_spill] sm:$0xff] }
 0xfec   :  { %4339 = vmatpush1.bf16.msra.mxu0 %v9082_v41  ;;  %4380 = vmatpush1.bf16.msra.mxu1 %v9085_v27  ;;  %v10791_v41 = vld [vmem:[#allocation40_spill] sm:$0xff]  ;;  %v10792_v27 = vld [vmem:[#allocation62_spill] sm:$0xff] }
 0xfed   :  { %4340 = vmatprep.subr.bf16.mxu0 %v9088_v46  ;;  %4381 = vmatprep.subr.bf16.mxu1 %v9091_v52  ;;  %v10793_v46 = vld [vmem:[#allocation65_spill] sm:$0xff]  ;;  %v10794_v52 = vld [vmem:[#allocation63_spill] sm:$0xff] }
 0xff0   :  { %4341 = vmatpush2.bf16.msra.mxu0 %v9094_v44  ;;  %4382 = vmatpush2.bf16.msra.mxu1 %v9097_v1  ;;  %v10795_v44 = vld [vmem:[#allocation68_spill] sm:$0xff] }
 0xff1   :  { %4342 = vmatprep.subr.bf16.mxu0 %v9100_v0  ;;  %4383 = vmatprep.subr.bf16.mxu1 %v9103_v10  ;;  %v10796_v10 = vld [vmem:[#allocation28_spill] sm:$0xff] }
 0xff4   :  { %4343 = vmatpush2.bf16.msra.mxu0 %v9106_v13  ;;  %4384 = vmatpush2.bf16.msra.mxu1 %v9109_v42 }
 0xff5   :  { %4344 = vmatprep.subr.bf16.mxu0 %v9112_v61  ;;  %4385 = vmatprep.subr.bf16.mxu1 %v9115_v11 }
 0xff8   :  { %4345 = vmatpush2.bf16.msra.mxu0 %v10772_v47  ;;  %4386 = vmatpush2.bf16.msra.mxu1 %v10773_v50  ;;  %v10800_v47 = vld [vmem:[#allocation57_spill] sm:$0xff] }
 0xff9   :  { %4346 = vmatprep.subr.bf16.mxu0 %v10774_v20  ;;  %4387 = vmatprep.subr.bf16.mxu1 %v10775_v59 }
 0xffc   :  { %4347 = vmatpush2.bf16.msra.mxu0 %v10776_v3  ;;  %4388 = vmatpush2.bf16.msra.mxu1 %v10777_v32 }
 0xffd   :  { %4348 = vmatprep.subr.bf16.mxu0 %v10778_v17  ;;  %4389 = vmatprep.subr.bf16.mxu1 %v10779_v55  ;;  %v10801_v55 = vld [vmem:[#allocation59_spill] sm:$0xff] }
0x1000   :  { %4349 = vmatpush2.bf16.msra.mxu0 %v10780_v24  ;;  %4390 = vmatpush2.bf16.msra.mxu1 %v10781_v39 }
0x1001   :  { %4350 = vmatprep.subr.bf16.mxu0 %v10782_v40  ;;  %4391 = vmatprep.subr.bf16.mxu1 %v10783_v35 }
0x1004   :  { %4351 = vmatpush2.bf16.msra.mxu0 %v10784_v48  ;;  %4392 = vmatpush2.bf16.msra.mxu1 %v10785_v36 }
0x1005   :  { %4352 = vmatprep.subr.bf16.mxu0 %v10786_v22  ;;  %4393 = vmatprep.subr.bf16.mxu1 %v10787_v34 }
0x1008   :  { %4353 = vmatpush2.bf16.msra.mxu0 %v10788_v14  ;;  %4394 = vmatpush2.bf16.msra.mxu1 %v10789_v21 }
0x1009   :  { %4354 = vmatprep.subr.bf16.mxu0 %v10790_v12  ;;  %4395 = vmatprep.subr.bf16.mxu1 %v10791_v41  ;;  %v10802_v41 = vld [vmem:[#allocation58_spill] sm:$0xff] }
0x100c   :  { %4355 = vmatpush2.bf16.msra.mxu0 %v10792_v27  ;;  %4396 = vmatpush2.bf16.msra.mxu1 %v10793_v46 }
0x100d   :  { %4432 = vmatprep.subr.bf16.mxu0 %v10794_v52  ;;  %4473 = vmatprep.subr.bf16.mxu1 %v10795_v44  ;;  %v10803_v44 = vld [vmem:[#allocation60_spill] sm:$0xff] }
0x106e   :  { %v4130_v1 = vpop.f32.mrf.mxu0  ;;  %v4171_v0 = vpop.f32.mrf.mxu1 }
0x106f   :  { %v4131_v13 = vadd.f32 %v4130_v1, %v10796_v10  ;;  %v4172_v19 = vadd.f32 %v4171_v0, %v10798_v8 }
0x1070   :  { %v4132_v42 = vpop.f32.mrf.mxu0  ;;  %v4173_v61 = vpop.f32.mrf.mxu1 }
0x1071   :  { %v5130_v11 = vmul.f32 -1.442695, %v4131_v13  ;;  %v4133_v37 = vadd.f32 %v4132_v42, %v10797_v9  ;;  %v5132_v28 = vmul.f32 -1.442695, %v4172_v19  ;;  %v4174_v6 = vadd.f32 %v4173_v61, %v10799_v25  ;;  %v4206_v13 = vpop.permute.xlu0 %4205 }
0x1072   :  { %v4134_v49 = vpop.f32.mrf.mxu0  ;;  %v4175_v58 = vpop.f32.mrf.mxu1  ;;  %vm4207_vm9 = vcmp.eq.s32.totalorder %v4206_v13, 1  ;;  %v10837_v13 = vld [vmem:[#allocation86_spill] sm:$0xff] }
0x1073   :  { %5896 = vpow2.f32 %v5130_v11  ;;  %v5131_v62 = vmul.f32 -1.442695, %v4133_v37 }
0x1074   :  { %v4135_v2 = vpop.f32.mrf.mxu0  ;;  %v4176_v15 = vpop.f32.mrf.mxu1 }
0x1075   :  { %5898 = vpow2.f32 %v5131_v62 }
0x1076   :  { %5900 = vpow2.f32 %v5132_v28 }
0x1080   :  { %v5897_v60 = vpop.eup %5896 }
0x1081   :  { %v4187_v43 = vadd.f32 1.0, %v5897_v60 }
0x1082   :  { %v5899_v38 = vpop.eup %5898 }
0x1083   :  { %5902 = vrcp.f32 %v4187_v43  ;;  %v4188_v30 = vadd.f32 1.0, %v5899_v38  ;;  %v5901_v5 = vpop.eup %5900 }
0x1084   :  { %5904 = vtanh.f32 %v4174_v6  ;;  %v4189_v40 = vadd.f32 1.0, %v5901_v5  ;;  %v10806_v5 = vld [vmem:[#allocation66_spill] sm:$0xff] }
0x1085   :  { %5906 = vrcp.f32 %v4188_v30 }
0x108e   :  { %v4247_v23 = vpop.f32.mrf.mxu0  ;;  %v4288_v33 = vpop.f32.mrf.mxu1 }
0x108f   :  { %v4295_v50 = vadd.f32 %v4247_v23, %v10800_v47  ;;  %v4297_v27 = vadd.f32 %v4288_v33, %v10802_v41  ;;  %v10807_v47 = vld [vmem:[#allocation71_spill] sm:$0xff]  ;;  %v10830_v41 = vld [vmem:[#allocation42_spill] sm:$0xff] }
0x1090   :  { %v5903_v20 = vpop.eup %5902  ;;  %v4249_v59 = vpop.f32.mrf.mxu0 }
0x1091   :  { %v4290_v3 = vpop.f32.mrf.mxu1  ;;  %v5905_v32 = vpop.eup %5904  ;;  %v5133_v17 = vmul.f32 -1.442695, %v4295_v50  ;;  %v4296_v24 = vadd.f32 %v4249_v59, %v10801_v55  ;;  %v5135_v46 = vmul.f32 -1.442695, %v4297_v27  ;;  %v10808_v50 = vld [vmem:[#allocation67_spill] sm:$0xff]  ;;  %v10831_v27 = vld [vmem:[#allocation44_spill] sm:$0xff] }
0x1092   :  { %v5907_v39 = vpop.eup %5906  ;;  %v4251_v35 = vpop.f32.mrf.mxu0  ;;  %v4198_v22 = vmul.f32 %v5905_v32, %v5903_v20  ;;  %v4298_v1 = vadd.f32 %v4290_v3, %v10803_v44  ;;  %v10809_v20 = vld [vmem:[#allocation73_spill] sm:$0xff]  ;;  %v10815_v59 = vld [vmem:[#allocation35_spill] sm:$0xff]  ;;  %v10816_v3 = vld [vmem:[#allocation34_spill] sm:$0xff] }
0x1093   :  { %v4292_v48 = vpop.f32.mrf.mxu1  ;;  %v4197_v36 = vmul.f32 %v5907_v39, %v9197_v18  ;;  %5908 = vpow2.f32 %v5133_v17  ;;  %v5134_v34 = vmul.f32 -1.442695, %v4296_v24  ;;  %v10817_v32 = vld [vmem:[#allocation36_spill] sm:$0xff]  ;;  %v10818_v17 = vld [vmem:[#allocation49_spill] sm:$0xff]  ;;  %v10819_v55 = vld [vmem:[#allocation51_spill] sm:$0xff] }
0x1094   :  { %v4252_v14 = vpop.f32.mrf.mxu0  ;;  %v10820_v24 = vld [vmem:[#allocation50_spill] sm:$0xff]  ;;  %v10821_v39 = vld [vmem:[#allocation52_spill] sm:$0xff]  ;;  %v10824_v48 = vld [vmem:[#allocation79_spill] sm:$0xff] }
0x1095   :  { %v4293_v21 = vpop.f32.mrf.mxu1  ;;  %v9482_v12 = vadd.f32 %v4198_v22, %v4197_v36  ;;  %5910 = vpow2.f32 %v5134_v34  ;;  %v10823_v35 = vld [vmem:[#allocation74_spill] sm:$0xff]  ;;  %v10825_v36 = vld [vmem:[#allocation76_spill] sm:$0xff]  ;;  %v10828_v14 = vld [vmem:[#allocation41_spill] sm:$0xff] }
0x1096   :  { %5912 = vrcp.f32 %v4189_v40  ;;  %v10822_v40 = vld [vmem:[#allocation61_spill] sm:$0xff]  ;;  %v10826_v22 = vld [vmem:[#allocation80_spill] sm:$0xff]  ;;  %v10827_v34 = vld [vmem:[#allocation78_spill] sm:$0xff] }
0x1097   :  { %5914 = vtanh.f32 %v9482_v12  ;;  %v10829_v21 = vld [vmem:[#allocation43_spill] sm:$0xff] }
0x1098   :  { %5916 = vpow2.f32 %v5135_v46  ;;  %v10832_v46 = vld [vmem:[#allocation81_spill] sm:$0xff]  ;;  %v10834_v44 = vld [vmem:[#allocation83_spill] sm:$0xff] }
0x10a0   :  { %v5909_v52 = vpop.eup %5908 }
0x10a1   :  { %v4308_v0 = vadd.f32 1.0, %v5909_v52  ;;  %v10833_v52 = vld [vmem:[#allocation82_spill] sm:$0xff] }
0x10a2   :  { %v5911_v18 = vpop.eup %5910 }
0x10a3   :  { %v5913_v42 = vpop.eup %5912  ;;  %5918 = vrcp.f32 %v4308_v0  ;;  %v4309_v61 = vadd.f32 1.0, %v5911_v18  ;;  %v10836_v0 = vld [vmem:[#allocation85_spill] sm:$0xff]  ;;  %v10838_v18 = vld [vmem:[#allocation87_spill] sm:$0xff] }
0x10a4   :  { %v5915_v11 = vpop.eup %5914  ;;  %5920 = vtanh.f32 %v4298_v1  ;;  %v10835_v1 = vld [vmem:[#allocation84_spill] sm:$0xff] }
0x10a5   :  { %5922 = vrcp.f32 %v4309_v61  ;;  %v4201_v37 = vmul.f32 %v5915_v11, %v5913_v42  ;;  %v5917_v58 = vpop.eup %5916  ;;  %v10839_v42 = vld [vmem:[#allocation88_spill] sm:$0xff]  ;;  %v10840_v61 = vld [vmem:[#allocation89_spill] sm:$0xff]  ;;  %v10841_v11 = vld [vmem:[#allocation90_spill] sm:$0xff] }
0x10a6   :  { %v4310_v19 = vadd.f32 1.0, %v5917_v58  ;;  %v10843_v58 = vld [vmem:[#allocation92_spill] sm:$0xff] }
0x10a7   :  { %v9488_v49 = vsel %vm4207_vm9, %v4201_v37, %v9203_v45  ;;  %v4431_v33 = vpack.c.bf16 %v4201_v37, %v4201_v37  ;;  %v10804_v45 = vld [vmem:[#allocation64_spill] sm:$0xff]  ;;  %v10842_v37 = vld [vmem:[#allocation91_spill] sm:$0xff] }
0x10a8   :  { %5924 = vrcp.f32 %v4310_v19  ;;  %v10847_v19 = vld [vmem:[#allocation96_spill] sm:$0xff] }
0x10b0   :  { %v5919_v62 = vpop.eup %5918 }
0x10b1   :  { %v5921_v2 = vpop.eup %5920 }
0x10b2   :  { %v5923_v15 = vpop.eup %5922  ;;  %v4319_v60 = vmul.f32 %v5921_v2, %v5919_v62  ;;  %v10844_v62 = vld [vmem:[#allocation93_spill] sm:$0xff]  ;;  %v10845_v2 = vld [vmem:[#allocation94_spill] sm:$0xff] }
0x10b3   :  { %v4318_v28 = vmul.f32 %v5923_v15, %v9206_v16  ;;  %v10805_v16 = vld [vmem:[#allocation69_spill] sm:$0xff]  ;;  %v10846_v15 = vld [vmem:[#allocation95_spill] sm:$0xff] }
0x10b5   :  { %v4320_v6 = vadd.f32 %v4319_v60, %v4318_v28  ;;  %v5925_v43 = vpop.eup %5924  ;;  %v10848_v28 = vld [vmem:[#allocation97_spill] sm:$0xff]  ;;  %v10849_v60 = vld [vmem:[#allocation98_spill] sm:$0xff] }
0x10b7   :  { %5926 = vtanh.f32 %v4320_v6  ;;  %v10850_v6 = vld [vmem:[#allocation99_spill] sm:$0xff] }
0x10c4   :  { %v5927_v38 = vpop.eup %5926 }
0x10c5   :  { %v4322_v30 = vmul.f32 %v5927_v38, %v5925_v43  ;;  %v10851_v43 = vld [vmem:[#allocation100_spill] sm:$0xff]  ;;  %v10852_v38 = vld [vmem:[#allocation101_spill] sm:$0xff] }
0x10c7   :  { %v4323_v23 = vpack.c.bf16 %v4322_v30, %v4322_v30  ;;  %v10853_v30 = vld [vmem:[#allocation102_spill] sm:$0xff] }
0x10c9   :  { %4357 = vmatmul.mubr.bf16.vlgmr.msra.gmra.mxu0 %v4323_v23  ;;  %4398 = vmatmul.mubr.bf16.vlgmr.msra.gmra.mxu1 %v4323_v23  ;;  %v10854_v23 = vld [vmem:[#allocation103_spill] sm:$0xff] }
0x10ca   :  { %4464 = vmatprep.mubr.bf16.mxu0 %v4431_v33  ;;  %4505 = vmatprep.mubr.bf16.mxu1 %v4431_v33  ;;  %v10855_v33 = vld [vmem:[#allocation104_spill] sm:$0xff] }
0x10cb   :  { %4433 = vmatpush1.bf16.msra.mxu0 %v9213_v31  ;;  %4474 = vmatpush1.bf16.msra.mxu1 %v9216_v51  ;;  %v10810_v31 = vld [vmem:[#allocation70_spill] sm:$0xff]  ;;  %v10811_v51 = vld [vmem:[#allocation75_spill] sm:$0xff] }
0x10cc   :  { %4434 = vmatprep.subr.bf16.mxu0 %v9219_v63  ;;  %4475 = vmatprep.subr.bf16.mxu1 %v9222_v29  ;;  %v10812_v63 = vld [vmem:[#allocation72_spill] sm:$0xff]  ;;  %v10813_v29 = vld [vmem:[#allocation77_spill] sm:$0xff] }
0x10cf   :  { %4435 = vmatpush1.bf16.msra.mxu0 %v9225_v53  ;;  %4476 = vmatpush1.bf16.msra.mxu1 %v10804_v45  ;;  %v10814_v53 = vld [vmem:[#allocation33_spill] sm:$0xff] }
0x10d0   :  { %4436 = vmatprep.subr.bf16.mxu0 %v10805_v16  ;;  %4477 = vmatprep.subr.bf16.mxu1 %v10806_v5  ;;  %v10856_v45 = vld [vmem:[#allocation105_spill] sm:$0xff]  ;;  %v10857_v16 = vld [vmem:[#allocation106_spill] sm:$0xff]  ;;  %v10858_v5 = vld [vmem:[#allocation107_spill] sm:$0xff] }
0x10d3   :  { %4437 = vmatpush1.bf16.msra.mxu0 %v10807_v47  ;;  %4478 = vmatpush1.bf16.msra.mxu1 %v10808_v50  ;;  %v10859_v47 = vld [vmem:[#allocation108_spill] sm:$0xff]  ;;  %v10860_v50 = vld [vmem:[#allocation109_spill] sm:$0xff] }
0x10d4   :  { %4438 = vmatprep.subr.bf16.mxu0 %v10809_v20  ;;  %4479 = vmatprep.subr.bf16.mxu1 %v10810_v31  ;;  %v10861_v20 = vld [vmem:[#allocation32_spill] sm:$0xff] }
0x10d5   :  { %vm4538_vm10 = vcmp.eq.s32.totalorder %v10861_v20, 7 }
0x10d6   :  { %v4539_v31 = vsel %vm4538_vm10, 1, %v10111_v7 }
0x10d7   :  { %4439 = vmatpush1.bf16.msra.mxu0 %v10811_v51  ;;  %4480 = vmatpush1.bf16.msra.mxu1 %v10812_v63 }
0x10d8   :  { %4440 = vmatprep.subr.bf16.mxu0 %v10813_v29  ;;  %4481 = vmatprep.subr.bf16.mxu1 %v10814_v53 }
0x10d9   :  { %4541 = vperm.xlu1 %5351, %v4539_v31  }
0x10db   :  { %4441 = vmatpush1.bf16.msra.mxu0 %v10815_v59  ;;  %4482 = vmatpush1.bf16.msra.mxu1 %v10816_v3 }
0x10dc   :  { %4442 = vmatprep.subr.bf16.mxu0 %v10817_v32  ;;  %4483 = vmatprep.subr.bf16.mxu1 %v10818_v17 }
0x10df   :  { %4443 = vmatpush1.bf16.msra.mxu0 %v10819_v55  ;;  %4484 = vmatpush1.bf16.msra.mxu1 %v10820_v24 }
0x10e0   :  { %4444 = vmatprep.subr.bf16.mxu0 %v10821_v39  ;;  %4485 = vmatprep.subr.bf16.mxu1 %v10822_v40 }
0x10e3   :  { %4445 = vmatpush1.bf16.msra.mxu0 %v10823_v35  ;;  %4486 = vmatpush1.bf16.msra.mxu1 %v10824_v48 }
0x10e4   :  { %4446 = vmatprep.subr.bf16.mxu0 %v10825_v36  ;;  %4487 = vmatprep.subr.bf16.mxu1 %v10826_v22 }
0x10e7   :  { %4447 = vmatpush1.bf16.msra.mxu0 %v10827_v34  ;;  %4488 = vmatpush1.bf16.msra.mxu1 %v10828_v14 }
0x10e8   :  { %4448 = vmatprep.subr.bf16.mxu0 %v10829_v21  ;;  %4489 = vmatprep.subr.bf16.mxu1 %v10830_v41 }
0x10eb   :  { %4449 = vmatpush2.bf16.msra.mxu0 %v10831_v27  ;;  %4490 = vmatpush2.bf16.msra.mxu1 %v10832_v46 }
0x10ec   :  { %4450 = vmatprep.subr.bf16.mxu0 %v10833_v52  ;;  %4491 = vmatprep.subr.bf16.mxu1 %v10834_v44 }
0x10ef   :  { %4451 = vmatpush2.bf16.msra.mxu0 %v10835_v1  ;;  %4492 = vmatpush2.bf16.msra.mxu1 %v10836_v0 }
0x10f0   :  { %4452 = vmatprep.subr.bf16.mxu0 %v10837_v13  ;;  %4493 = vmatprep.subr.bf16.mxu1 %v10838_v18 }
0x10f3   :  { %4453 = vmatpush2.bf16.msra.mxu0 %v10839_v42  ;;  %4494 = vmatpush2.bf16.msra.mxu1 %v10840_v61 }
0x10f4   :  { %4454 = vmatprep.subr.bf16.mxu0 %v10841_v11  ;;  %4495 = vmatprep.subr.bf16.mxu1 %v10842_v37 }
0x10f7   :  { %4455 = vmatpush2.bf16.msra.mxu0 %v10843_v58  ;;  %4496 = vmatpush2.bf16.msra.mxu1 %v10844_v62 }
0x10f8   :  { %4456 = vmatprep.subr.bf16.mxu0 %v10845_v2  ;;  %4497 = vmatprep.subr.bf16.mxu1 %v10846_v15 }
0x10fb   :  { %4457 = vmatpush2.bf16.msra.mxu0 %v10847_v19  ;;  %4498 = vmatpush2.bf16.msra.mxu1 %v10848_v28 }
0x10fc   :  { %4458 = vmatprep.subr.bf16.mxu0 %v10849_v60  ;;  %4499 = vmatprep.subr.bf16.mxu1 %v10850_v6 }
0x10ff   :  { %4459 = vmatpush2.bf16.msra.mxu0 %v10851_v43  ;;  %4500 = vmatpush2.bf16.msra.mxu1 %v10852_v38 }
0x1100   :  { %4460 = vmatprep.subr.bf16.mxu0 %v10853_v30  ;;  %4501 = vmatprep.subr.bf16.mxu1 %v10854_v23 }
0x1103   :  { %4461 = vmatpush2.bf16.msra.mxu0 %v10855_v33  ;;  %4502 = vmatpush2.bf16.msra.mxu1 %v10856_v45 }
0x1104   :  { %4462 = vmatprep.subr.bf16.mxu0 %v10857_v16  ;;  %4503 = vmatprep.subr.bf16.mxu1 %v10858_v5 }
0x1107   :  { %4463 = vmatpush2.bf16.msra.mxu0 %v10859_v47  ;;  %4504 = vmatpush2.bf16.msra.mxu1 %v10860_v50 }
0x1189   :  { %v4358_v51 = vpop.f32.mrf.mxu0  ;;  %v4399_v63 = vpop.f32.mrf.mxu1 }
0x118a   :  { %v4359_v29 = vadd.f32 %v4358_v51, %v6763_v54  ;;  %v4400_v35 = vadd.f32 %v4399_v63, %v6767_v56 }
0x118b   :  { %v4360_v53 = vpop.f32.mrf.mxu0  ;;  %v4401_v59 = vpop.f32.mrf.mxu1 }
0x118c   :  { %v5136_v3 = vmul.f32 -1.442695, %v4359_v29  ;;  %v4361_v32 = vadd.f32 %v4360_v53, %v10222_v26  ;;  %v5138_v7 = vmul.f32 -1.442695, %v4400_v35  ;;  %v4402_v36 = vadd.f32 %v4401_v59, %v6769_v57 }
0x118d   :  { %v4362_v17 = vpop.f32.mrf.mxu0  ;;  %v4403_v55 = vpop.f32.mrf.mxu1 }
0x118e   :  { %5928 = vpow2.f32 %v5136_v3  ;;  %v5137_v24 = vmul.f32 -1.442695, %v4361_v32 }
0x118f   :  { %v4363_v39 = vpop.f32.mrf.mxu0  ;;  %v4404_v40 = vpop.f32.mrf.mxu1 }
0x1190   :  { %5930 = vpow2.f32 %v5137_v24 }
0x1191   :  { %5932 = vpow2.f32 %v5138_v7 }
0x119b   :  { %v5929_v48 = vpop.eup %5928 }
0x119c   :  { %v4415_v22 = vadd.f32 1.0, %v5929_v48 }
0x119d   :  { %v5931_v54 = vpop.eup %5930 }
0x119e   :  { %5934 = vrcp.f32 %v4415_v22  ;;  %v4416_v34 = vadd.f32 1.0, %v5931_v54  ;;  %v5933_v26 = vpop.eup %5932 }
0x119f   :  { %5936 = vtanh.f32 %v4402_v36  ;;  %v4417_v27 = vadd.f32 1.0, %v5933_v26 }
0x11a0   :  { %5938 = vrcp.f32 %v4416_v34 }
0x11a1   :  { %5940 = vrcp.f32 %v4417_v27 }
0x11ab   :  { %v5935_v14 = vpop.eup %5934 }
0x11ac   :  { %v5937_v21 = vpop.eup %5936 }
0x11ad   :  { %v5939_v41 = vpop.eup %5938  ;;  %v4426_v52 = vmul.f32 %v5937_v21, %v5935_v14 }
0x11ae   :  { %v4425_v46 = vmul.f32 %v5939_v41, %v9406_v4  ;;  %v5941_v44 = vpop.eup %5940 }
0x11b0   :  { %v4427_v56 = vadd.f32 %v4426_v52, %v4425_v46 }
0x11b2   :  { %5942 = vtanh.f32 %v4427_v56 }
0x11bf   :  { %v5943_v57 = vpop.eup %5942 }
0x11c0   :  { %v4429_v1 = vmul.f32 %v5943_v57, %v5941_v44 }
0x11c2   :  { %v4430_v0 = vpack.c.bf16 %v4429_v1, %v4429_v1 }
0x11c4   :  { %4465 = vmatmul.mubr.bf16.vlgmr.msra.gmra.mxu0 %v4430_v0  ;;  %4506 = vmatmul.mubr.bf16.vlgmr.msra.gmra.mxu1 %v4430_v0 }
0x1284   :  { %v4466_v13 = vpop.f32.mrf.mxu0  ;;  %v4507_v18 = vpop.f32.mrf.mxu1 }
0x1285   :  { %v4467_v42 = vadd.f32 %v4466_v13, %v10796_v10  ;;  %v4508_v28 = vadd.f32 %v4507_v18, %v10798_v8 }
0x1286   :  { %v4468_v61 = vpop.f32.mrf.mxu0  ;;  %v4509_v11 = vpop.f32.mrf.mxu1 }
0x1287   :  { %v5139_v37 = vmul.f32 -1.442695, %v4467_v42  ;;  %v4469_v58 = vadd.f32 %v4468_v61, %v10797_v9  ;;  %v5141_v60 = vmul.f32 -1.442695, %v4508_v28  ;;  %v4510_v43 = vadd.f32 %v4509_v11, %v10799_v25  ;;  %v4542_v25 = vpop.permute.xlu1 %4541 }
0x1288   :  { %v4470_v4 = vpop.f32.mrf.mxu0  ;;  %v4511_v62 = vpop.f32.mrf.mxu1  ;;  %vm4543_vm11 = vcmp.eq.s32.totalorder %v4542_v25, 1 }
0x1289   :  { %5944 = vpow2.f32 %v5139_v37  ;;  %v5140_v2 = vmul.f32 -1.442695, %v4469_v58 }
0x128a   :  { %v4471_v15 = vpop.f32.mrf.mxu0  ;;  %v4512_v19 = vpop.f32.mrf.mxu1 }
0x128b   :  { %5946 = vpow2.f32 %v5140_v2 }
0x128c   :  { %5948 = vpow2.f32 %v5141_v60 }
0x1296   :  { %v5945_v6 = vpop.eup %5944 }
0x1297   :  { %v4523_v38 = vadd.f32 1.0, %v5945_v6 }
0x1298   :  { %v5947_v10 = vpop.eup %5946 }
0x1299   :  { %5950 = vrcp.f32 %v4523_v38  ;;  %v4524_v30 = vadd.f32 1.0, %v5947_v10  ;;  %v5949_v9 = vpop.eup %5948 }
0x129a   :  { %5952 = vtanh.f32 %v4510_v43  ;;  %v4525_v16 = vadd.f32 1.0, %v5949_v9 }
0x129b   :  { %5954 = vrcp.f32 %v4524_v30 }
0x129c   :  { %5956 = vrcp.f32 %v4525_v16 }
0x12a6   :  { %v5951_v23 = vpop.eup %5950 }
0x12a7   :  { %v5953_v33 = vpop.eup %5952 }
0x12a8   :  { %v5955_v45 = vpop.eup %5954  ;;  %v4534_v47 = vmul.f32 %v5953_v33, %v5951_v23 }
0x12a9   :  { %v4533_v5 = vmul.f32 %v5955_v45, %v9482_v12  ;;  %v5957_v50 = vpop.eup %5956 }
0x12ab   :  { %v4535_v8 = vadd.f32 %v4534_v47, %v4533_v5 }
0x12ad   :  { %5958 = vtanh.f32 %v4535_v8 }
0x12ba   :  { %v5959_v20 = vpop.eup %5958 }
0x12bb   :  { %v4537_v31 = vmul.f32 %v5959_v20, %v5957_v50 }
0x12bd   :  { %v4544_v51 = vsel %vm4543_vm11, %v4537_v31, %v9488_v49 }
0x12be   :  { %6594 = dma.done.wait [#allocation6 + $0x1], 1024 }
0x12bf   :  { %6595 = vsyncadd [#allocation6 + $0x1], 4294966272 }
0x12c0   :  { %6596 = dma.done.wait [#allocation6 + $0x2], 1024 }
0x12c1   :  { %6597 = vsyncadd [#allocation6 + $0x2], 4294966272  ;;  %v6611_v63 = vmov 0.0   ;;  %vm6612_vm12 = vmmov 0   ;;  %v6450_v12 = vld [vmem:[#allocation4 + $0x38] sm:$0xff]   ;;  %v6451_v29 = vld [vmem:[#allocation4 + $0x30] sm:$0xff]   ;;  %v4551_v48 = vpack.c.bf16 %v4544_v51, %v4544_v51 }
0x12c2   :  { %5181 = vmatprep.subr.bf16.mxu0 %v6611_v63  ;;  %5197 = vmatprep.mubr.msk.bf16.mxu0 %vm6612_vm12, %v6611_v63  ;;  %v6452_v53 = vld [vmem:[#allocation4 + $0x28] sm:$0xff]   ;;  %v6458_v59 = vld [vmem:[#allocation5 + $0x38] sm:$0xff]   ;;  %v6453_v3 = vld [vmem:[#allocation4 + $0x20] sm:$0xff]  }
0x12c3   :  { %5201 = vmatprep.subr.bf16.mxu1 %v6611_v63  ;;  %5217 = vmatprep.mubr.msk.bf16.mxu1 %vm6612_vm12, %v6611_v63  ;;  %v6459_v49 = vld [vmem:[#allocation5 + $0x30] sm:$0xff]   ;;  %v6454_v32 = vld [vmem:[#allocation4 + $0x18] sm:$0xff]   ;;  %v6460_v17 = vld [vmem:[#allocation5 + $0x28] sm:$0xff]  }
0x12c4   :  { %5182 = vmatpush3.bf16.msra.mxu0 %v6450_v12  ;;  %5202 = vmatpush3.bf16.msra.mxu1 %v6458_v59  ;;  %v6455_v55 = vld [vmem:[#allocation4 + $0x10] sm:$0xff]   ;;  %v6461_v24 = vld [vmem:[#allocation5 + $0x20] sm:$0xff]   ;;  %v6456_v39 = vld [vmem:[#allocation4 + $0x8] sm:$0xff]  }
0x12c5   :  { %5183 = vmatprep.subr.bf16.mxu0 %v6611_v63  ;;  %5203 = vmatprep.subr.bf16.mxu1 %v6611_v63  ;;  %v6462_v40 = vld [vmem:[#allocation5 + $0x18] sm:$0xff]   ;;  %v6457_v35 = vld [vmem:[#allocation4] sm:$0xff]   ;;  %v6463_v7 = vld [vmem:[#allocation5 + $0x10] sm:$0xff]  }
0x12c6   :  { %v6464_v36 = vld [vmem:[#allocation5 + $0x8] sm:$0xff]   ;;  %v6465_v22 = vld [vmem:[#allocation5] sm:$0xff]  }
0x12c7   :  { %v5142_v54 = vld [vmem:[#allocation12] ss:$0 sm:$0xff]  ;;  %v5151_v56 = vld [vmem:[#allocation14] ss:$0 sm:$0xff] }
0x12c8   :  { %5184 = vmatpush3.bf16.msra.mxu0 %v6451_v29  ;;  %5204 = vmatpush3.bf16.msra.mxu1 %v6459_v49 }
0x12c9   :  { %5185 = vmatprep.subr.bf16.mxu0 %v6611_v63  ;;  %5205 = vmatprep.subr.bf16.mxu1 %v6611_v63 }
0x12cc   :  { %5186 = vmatpush3.bf16.msra.mxu0 %v6452_v53  ;;  %5206 = vmatpush3.bf16.msra.mxu1 %v6460_v17 }
0x12cd   :  { %5187 = vmatprep.subr.bf16.mxu0 %v6611_v63  ;;  %5207 = vmatprep.subr.bf16.mxu1 %v6611_v63 }
0x12d0   :  { %5188 = vmatpush3.bf16.msra.mxu0 %v6453_v3  ;;  %5208 = vmatpush3.bf16.msra.mxu1 %v6461_v24 }
0x12d1   :  { %5189 = vmatprep.subr.bf16.mxu0 %v6611_v63  ;;  %5209 = vmatprep.subr.bf16.mxu1 %v6611_v63 }
0x12d4   :  { %5190 = vmatpush3.bf16.msra.mxu0 %v6454_v32  ;;  %5210 = vmatpush3.bf16.msra.mxu1 %v6462_v40 }
0x12d5   :  { %5191 = vmatprep.subr.bf16.mxu0 %v6611_v63  ;;  %5211 = vmatprep.subr.bf16.mxu1 %v6611_v63 }
0x12d8   :  { %5192 = vmatpush3.bf16.msra.mxu0 %v6455_v55  ;;  %5212 = vmatpush3.bf16.msra.mxu1 %v6463_v7 }
0x12d9   :  { %5193 = vmatprep.subr.bf16.mxu0 %v6611_v63  ;;  %5213 = vmatprep.subr.bf16.mxu1 %v6611_v63 }
0x12dc   :  { %5194 = vmatpush3.bf16.msra.mxu0 %v6456_v39  ;;  %5214 = vmatpush3.bf16.msra.mxu1 %v6464_v36 }
0x12dd   :  { %5195 = vmatprep.subr.bf16.mxu0 %v6611_v63  ;;  %5215 = vmatprep.subr.bf16.mxu1 %v6611_v63 }
0x12e0   :  { %5196 = vmatpush3.bf16.msra.mxu0 %v6457_v35  ;;  %5216 = vmatpush3.bf16.msra.mxu1 %v6465_v22 }
0x12e3   :  { %5198 = vmatmul.mubr.bf16.vlgmr.msra.gmra.mxu0 %v4551_v48 }
0x13a3   :  { %v4657_v34 = vpop.f32.mrf.mxu0 }
0x13a4   :  { %v4658_v26 = vadd.f32 %v5142_v54, %v4657_v34 }
0x13a5   :  { %v5199_v14 = vpop.f32.mrf.mxu0 }
0x13a6   :  { %vm4663_vm13 = vcmp.ge.f32.partialorder %v4658_v26, 0.0  ;;  %v4664_v21 = vmul.f32 0.01, %v4658_v26 }
0x13a7   :  { %v4660_v41 = vpop.f32.mrf.mxu0 }
0x13a8   :  { %v4665_v27 = vsel %vm4663_vm13, %v4658_v26, %v4664_v21 }
0x13a9   :  { %v5200_v46 = vpop.f32.mrf.mxu0  ;;  %v4666_v52 = vpack.c.bf16 %v4665_v27, %v4665_v27 }
0x13ab   :  { %5218 = vmatmul.mubr.bf16.vlgmr.msra.gmra.mxu1 %v4666_v52 }
0x146b   :  { %v4772_v44 = vpop.f32.mrf.mxu1 }
0x146c   :  { %v4773_v57 = vadd.f32 %v5151_v56, %v4772_v44 }
0x146d   :  { %v5219_v1 = vpop.f32.mrf.mxu1 }
0x146e   :  { %4778 = vst [vmem:[%s9579_s10] sm:$0xff] %v4773_v57 }
0x146f   :  { %v4775_v0 = vpop.f32.mrf.mxu1 }
0x1471   :  { %v5220_v13 = vpop.f32.mrf.mxu1 }
0x1472   :  { %4783 = vsyncpa [#allocation8], 1 }
0x1473   :  { %4784 = vsyncpa [#allocation10], 1 }
0x1474   :  { %4785 = vsyncpa [#allocation13], 1 }
0x1475   :  { %4786 = vsyncmov [#allocation6] }
0x1478   :  { %s4787_s19 = vpop.sfrf %4786 }
0x1479   :  { %p5160_p2 = scmp.ne.s32.totalorder %s4787_s19, 0 }
0x147b   :  { %4791 = shalt.err (%p5160_p2)  }
0x147c   :  { %4793 = vsyncmov [#allocation6 + $0x1] }
0x147f   :  { %s4794_s22 = vpop.sfrf %4793 }
0x1480   :  { %p5161_p3 = scmp.ne.s32.totalorder %s4794_s22, 0 }
0x1482   :  { %4798 = shalt.err (%p5161_p3)  }
0x1483   :  { %4800 = vsyncmov [#allocation6 + $0x2] }
0x1486   :  { %s4801_s8 = vpop.sfrf %4800 }
0x1487   :  { %p5162_p4 = scmp.ne.s32.totalorder %s4801_s8, 0 }
0x1489   :  { %4805 = shalt.err (%p5162_p4)  }

</bundles_post_ra>
